<compile_context>
chip_gen: v7x
topology: tpu7x:2x2x1
jax: 0.10.0
libtpu: 0.0.40
codegen_flags: <defaults>
</compile_context>

<pallas_src>
import functools

import jax
import jax.numpy as jnp
from jax.experimental import pallas as pl
from jax.experimental.pallas import tpu as pltpu

EPS = 1e-5


# ----------------------------------------------------------------------------
# Fused Pallas kernel
# ----------------------------------------------------------------------------
def _win(hid, plane, kh, kw, Ho, Wo, sH, sW):
    """One depthwise tap window, read straight from the halo'd VMEM scratch."""
    rs = pl.ds(kh, Ho) if sH == 1 else pl.ds(kh, Ho, sH)
    cs = pl.ds(kw, Wo) if sW == 1 else pl.ds(kw, Wo, sW)
    return hid[plane, rs, cs, :]


def _fused_block_kernel(*refs, has_expand, use_res, stride, in_depth, td,
                        mm_dtype):
    """One (n, depth-block) grid step: P input planes -> TD output slices."""
    sD, sH, sW = stride
    D = in_depth
    TD = td
    BD = TD * sD                    # input planes covered by the "body" block
    n_tail = 3 - sD                 # extra halo planes at the end of the block
    P = BD + n_tail                 # total hidden planes handled this step

    body_ref = refs[0]
    tail_refs = refs[1:1 + n_tail]
    i = 1 + n_tail
    if has_expand:
        w1_ref, b1_ref = refs[i], refs[i + 1]
        i += 2
    w2_ref, b2_ref, w3_ref, b3_ref = refs[i:i + 4]
    o_ref, hid, acc = refs[i + 4], refs[i + 5], refs[i + 6]

    _, H, W, Cin = body_ref.shape
    _, Hp, Wp, hidden = hid.shape          # Hp = H + 2, Wp = W + 2
    _, Ho, Wo, oup = o_ref.shape

    db = pl.program_id(1)
    d_base = db * BD                       # first padded-depth plane this step

    # ---- 1. zero ONLY the 1-voxel H/W halo border of the hidden scratch ----
    # (the interior is fully overwritten below, so full-scratch zeroing is not
    #  needed; border zeroing every step is megacore-safe.)
    zrow = jnp.zeros((P, 1, Wp, hidden), jnp.float32)
    zcol = jnp.zeros((P, Hp, 1, hidden), jnp.float32)
    hid[:, pl.ds(0, 1), :, :] = zrow
    hid[:, pl.ds(Hp - 1, 1), :, :] = zrow
    hid[:, :, pl.ds(0, 1), :] = zcol
    hid[:, :, pl.ds(Wp - 1, 1), :] = zcol

    # ---- 2. expand 1x1x1 conv + BN + ReLU6 (one fused MXU matmul / block) ----
    def expand(x_nd):                      # (..., Cin) -> (..., hidden) f32
        if not has_expand:
            return x_nd.astype(jnp.float32)
        lead = x_nd.shape[:-1]
        m = 1
        for s in lead:
            m *= s
        h = jnp.dot(x_nd.reshape(m, Cin).astype(mm_dtype), w1_ref[...],
                    preferred_element_type=jnp.float32)
        h = jnp.clip(h + b1_ref[...], 0.0, 6.0)
        return h.reshape(lead + (hidden,))

    hid[pl.ds(0, BD), pl.ds(1, H), pl.ds(1, W), :] = expand(body_ref[...])
    for t in range(n_tail):
        hid[BD + t, pl.ds(1, H), pl.ds(1, W), :] = expand(tail_refs[t][...])

    # Re-zero hidden planes corresponding to the depth zero-padding.  Only the
    # expand path needs this (expand(0)+b1 through ReLU6 is nonzero) and only
    # the first plane of the first block / last plane of the last block can be
    # a pad plane, so the work is pl.when-gated to boundary steps.
    if has_expand:
        zplane = jnp.zeros((H, W, hidden), jnp.float32)

        @pl.when(d_base == 0)
        def _():
            hid[0, pl.ds(1, H), pl.ds(1, W), :] = zplane

        @pl.when(d_base + (P - 1) == D + 1)
        def _():
            hid[P - 1, pl.ds(1, H), pl.ds(1, W), :] = zplane

    # ---- 3/4/5. depthwise 3x3x3 + BN + ReLU6, project 1x1x1 + BN (+res) ----
    w2 = w2_ref[...]                         # (27, hidden) f32
    b2 = b2_ref[...].reshape(1, 1, hidden)   # explicit broadcast shape
    w3 = w3_ref[...]                         # (hidden, oup) mm_dtype
    b3 = b3_ref[...]                         # (1, oup) f32

    for od in range(TD):                     # one output depth slice at a time
        for kd in range(3):
            part = None                      # 9-tap partial sum (bounded live)
            for kh in range(3):
                for kw in range(3):
                    win = _win(hid, od * sD + kd, kh, kw, Ho, Wo, sH, sW)
                    contrib = win * w2[kd * 9 + kh * 3 + kw]
                    part = contrib if part is None else part + contrib
            if kd == 0:
                acc[...] = part              # VMEM scratch accumulator
            else:
                acc[...] += part
        a = jnp.clip(acc[...] + b2, 0.0, 6.0)               # (Ho, Wo, hidden)
        out2d = jnp.dot(a.reshape(Ho * Wo, hidden).astype(mm_dtype), w3,
                        preferred_element_type=jnp.float32)
        out2d = out2d + b3
        if use_res:
            # residual = x[n, d0+od]; still resident in the pipelined input
            # block -> read it late to keep its live range short.
            res = tail_refs[0][...] if od == TD - 1 else body_ref[od + 1]
            out2d = out2d + res.reshape(Ho * Wo, oup).astype(jnp.float32)
        o_ref[od] = out2d.reshape(Ho, Wo, oup).astype(o_ref.dtype)


# ----------------------------------------------------------------------------
# Wrappers
# ----------------------------------------------------------------------------
def _fold_bn(gamma, beta, mean, var):
    scale = gamma / jnp.sqrt(var + EPS)
    return scale, beta - mean * scale


def _choose_depth_block(Do, sD, H, W, Ho, Wo, Cin, hidden, oup, in_itemsize,
                        budget_bytes=20 * 1024 * 1024, max_td=8):
    """Largest divisor of Do (<= max_td) whose VMEM footprint fits the budget."""
    best = 1
    for td in range(1, min(Do, max_td) + 1):
        if Do % td:
            continue
        bd = td * sD
        p = bd + 3 - sD
        need = (2 * p * H * W * Cin * in_itemsize            # pipelined inputs
                + p * (H + 2) * (W + 2) * hidden * 4         # halo'd hidden
                + bd * H * W * hidden * 4                    # expand temp
                + Ho * Wo * hidden * 4                       # acc scratch
                + 2 * td * Ho * Wo * oup * in_itemsize)      # pipelined output
        if need <= budget_bytes:
            best = td
    return best


def inverted_residual_ndhwc(x, p, *, inp, oup, stride, expand_ratio,
                            matmul_dtype=jnp.bfloat16):
    """Channels-last entry point. x: (N, D, H, W, inp)."""
    N, D, H, W, Cin = x.shape
    assert Cin == inp
    sD, sH, sW = stride
    Do = (D - 1) // sD + 1
    Ho = (H - 1) // sH + 1
    Wo = (W - 1) // sW + 1
    hidden = round(inp * expand_ratio)
    has_expand = expand_ratio != 1
    use_res = tuple(stride) == (1, 1, 1) and inp == oup
    mm = matmul_dtype

    TD = _choose_depth_block(Do, sD, H, W, Ho, Wo, Cin, hidden, oup,
                             x.dtype.itemsize)
    BD = TD * sD
    n_tail = 3 - sD
    P = BD + n_tail
    num_db = Do // TD

    # Fold eval-mode BN into the conv weights/biases (tiny host-side math).
    s2, b2 = _fold_bn(p["g2"], p["b2"], p["m2"], p["v2"])
    w2_eff = (jnp.transpose(p["w2"][:, 0], (1, 2, 3, 0)) * s2).reshape(27, hidden)
    s3, b3 = _fold_bn(p["g3"], p["b3"], p["m3"], p["v3"])
    w3_eff = (p["w3"][:, :, 0, 0, 0].T * s3[None, :]).astype(mm)

    weight_args, weight_specs = [], []
    if has_expand:
        s1, b1 = _fold_bn(p["g1"], p["b1"], p["m1"], p["v1"])
        w1_eff = (p["w1"][:, :, 0, 0, 0].T * s1[None, :]).astype(mm)
        weight_args += [w1_eff, b1.reshape(1, hidden).astype(jnp.float32)]
        weight_specs += [pl.BlockSpec((inp, hidden), lambda n, d: (0, 0)),
                         pl.BlockSpec((1, hidden), lambda n, d: (0, 0))]
    weight_args += [w2_eff.astype(jnp.float32),
                    b2.reshape(1, hidden).astype(jnp.float32),
                    w3_eff,
                    b3.reshape(1, oup).astype(jnp.float32)]
    weight_specs += [pl.BlockSpec((27, hidden), lambda n, d: (0, 0)),
                     pl.BlockSpec((1, hidden), lambda n, d: (0, 0)),
                     pl.BlockSpec((hidden, oup), lambda n, d: (0, 0)),
                     pl.BlockSpec((1, oup), lambda n, d: (0, 0))]

    # Depth-only zero padding (1 plane each side): makes every per-step input
    # slice a plain contiguous BlockSpec block (auto double-buffered/prefetched
    # by the Pallas pipeline).  The H/W halo is still built in VMEM.
    x_pad = jnp.pad(x, ((0, 0), (1, 1), (0, 0), (0, 0), (0, 0)))

    body_spec = pl.BlockSpec((None, BD, H, W, Cin),
                             lambda n, d: (n, d, 0, 0, 0))
    tail_specs = [
        pl.BlockSpec((None, None, H, W, Cin),
                     lambda n, d, t=t: (n, (d + 1) * BD + t, 0, 0, 0))
        for t in range(n_tail)
    ]

    kernel = functools.partial(
        _fused_block_kernel, has_expand=has_expand, use_res=use_res,
        stride=(sD, sH, sW), in_depth=D, td=TD, mm_dtype=mm)

    return pl.pallas_call(
        kernel,
        out_shape=jax.ShapeDtypeStruct((N, Do, Ho, Wo, oup), x.dtype),
        grid=(N, num_db),
        in_specs=[body_spec] + tail_specs + weight_specs,
        out_specs=pl.BlockSpec((None, TD, Ho, Wo, oup),
                               lambda n, d: (n, d, 0, 0, 0)),
        scratch_shapes=[
            pltpu.VMEM((P, H + 2, W + 2, hidden), jnp.float32),  # halo'd hidden
            pltpu.VMEM((Ho, Wo, hidden), jnp.float32),           # dw accumulator
        ],
        compiler_params=pltpu.CompilerParams(
            dimension_semantics=("parallel", "parallel"),
            vmem_limit_bytes=48 * 1024 * 1024),
    )(x_pad, *([x_pad] * n_tail), *weight_args)


def inverted_residual_pallas(x_ncdhw, p, *, inp, oup, stride, expand_ratio,
                             matmul_dtype=jnp.bfloat16):
    """NCDHW (PyTorch-parity) boundary."""
    x = jnp.transpose(x_ncdhw, (0, 2, 3, 4, 1))                 # NCDHW -> NDHWC
    y = inverted_residual_ndhwc(x, p, inp=inp, oup=oup, stride=stride,
                                expand_ratio=expand_ratio,
                                matmul_dtype=matmul_dtype)
    return jnp.transpose(y, (0, 4, 1, 2, 3))                    # NDHWC -> NCDHW


# ----------------------------------------------------------------------------
# Pure-JAX reference (eval-mode BN), for verification
# ----------------------------------------------------------------------------
def inverted_residual_ref(x, p, *, inp, oup, stride, expand_ratio, hidden):
    def bn(h, g, b, m, v):
        sh = (1, -1, 1, 1, 1)
        return (h - m.reshape(sh)) * (g.reshape(sh) / jnp.sqrt(v.reshape(sh) + EPS)) \
            + b.reshape(sh)

    dn = ("NCDHW", "OIDHW", "NCDHW")
    hi = jax.lax.Precision.HIGHEST
    h = x
    if expand_ratio != 1:
        h = jax.lax.conv_general_dilated(h, p["w1"], (1, 1, 1), [(0, 0)] * 3,
                                         dimension_numbers=dn, precision=hi)
        h = jnp.clip(bn(h, p["g1"], p["b1"], p["m1"], p["v1"]), 0.0, 6.0)
    h = jax.lax.conv_general_dilated(h, p["w2"], stride, [(1, 1)] * 3,
                                     dimension_numbers=dn,
                                     feature_group_count=hidden, precision=hi)
    h = jnp.clip(bn(h, p["g2"], p["b2"], p["m2"], p["v2"]), 0.0, 6.0)
    h = jax.lax.conv_general_dilated(h, p["w3"], (1, 1, 1), [(0, 0)] * 3,
                                     dimension_numbers=dn, precision=hi)
    h = bn(h, p["g3"], p["b3"], p["m3"], p["v3"])
    if stride == (1, 1, 1) and inp == oup:
        h = x + h
    return h


# ----------------------------------------------------------------------------
# Deterministic parameter init + demo
# ----------------------------------------------------------------------------
def make_params(key, inp, oup, hidden):
    ks = jax.random.split(key, 16)
    f32 = jnp.float32
    p = {
        "w1": 0.2 * jax.random.normal(ks[0], (hidden, inp, 1, 1, 1), f32),
        "w2": 0.2 * jax.random.normal(ks[1], (hidden, 1, 3, 3, 3), f32),
        "w3": 0.2 * jax.random.normal(ks[2], (oup, hidden, 1, 1, 1), f32),
        "g1": 1.0 + 0.1 * jax.random.normal(ks[3], (hidden,), f32),
        "b1": 0.1 * jax.random.normal(ks[4], (hidden,), f32),
        "m1": 0.1 * jax.random.normal(ks[5], (hidden,), f32),
        "v1": jax.random.uniform(ks[6], (hidden,), f32, 0.5, 1.5),
        "g2": 1.0 + 0.1 * jax.random.normal(ks[7], (hidden,), f32),
        "b2": 0.1 * jax.random.normal(ks[8], (hidden,), f32),
        "m2": 0.1 * jax.random.normal(ks[9], (hidden,), f32),
        "v2": jax.random.uniform(ks[10], (hidden,), f32, 0.5, 1.5),
        "g3": 1.0 + 0.1 * jax.random.normal(ks[11], (oup,), f32),
        "b3": 0.1 * jax.random.normal(ks[12], (oup,), f32),
        "m3": 0.1 * jax.random.normal(ks[13], (oup,), f32),
        "v3": jax.random.uniform(ks[14], (oup,), f32, 0.5, 1.5),
    }
    return p, ks[15]


if __name__ == "__main__":
    N, D, H, W = 2, 4, 8, 8
    configs = [
        # (inp, oup, stride, expand_ratio, matmul_dtype)
        (8, 8, (1, 1, 1), 6, jnp.float32),     # exactness check of the algorithm
        (8, 8, (1, 1, 1), 6, jnp.bfloat16),    # bf16 MXU path + residual
        (16, 16, (1, 1, 1), 1, jnp.bfloat16),  # expand_ratio == 1 path + residual
        (8, 16, (1, 1, 1), 4, jnp.bfloat16),   # no-residual (inp != oup) path
    ]

    key = jax.random.PRNGKey(0)
    for inp, oup, stride, expand_ratio, mm in configs:
        hidden = round(inp * expand_ratio)
        params, key = make_params(key, inp, oup, hidden)
        x = jax.random.normal(key, (N, inp, D, H, W), jnp.float32)   # NCDHW

        out = inverted_residual_pallas(x, params, inp=inp, oup=oup,
                                       stride=stride, expand_ratio=expand_ratio,
                                       matmul_dtype=mm)
        out = jax.block_until_ready(out)

        ref = inverted_residual_ref(x, params, inp=inp, oup=oup, stride=stride,
                                    expand_ratio=expand_ratio, hidden=hidden)
        ref = jax.block_until_ready(ref)

        assert out.shape == ref.shape, (out.shape, ref.shape)
        err = float(jnp.max(jnp.abs(out - ref)))
        scale = float(jnp.max(jnp.abs(ref)))
        tol = 2e-4 if mm == jnp.float32 else 3e-2
        assert err <= tol * max(1.0, scale), \
            (inp, oup, stride, expand_ratio, str(mm), err, scale)

    print("KERNEL_OK")
</pallas_src>

<mosaic_0001>
module attributes {stable_mosaic.version = 11 : i64} {
  func.func @_fused_block_kernel(%arg0: i32, %arg1: i32, %arg2: memref<1x4x8x8x8xf32, #tpu.memory_space<vmem>>, %arg3: memref<1x1x8x8x8xf32, #tpu.memory_space<vmem>>, %arg4: memref<1x1x8x8x8xf32, #tpu.memory_space<vmem>>, %arg5: memref<8x48xf32, #tpu.memory_space<vmem>>, %arg6: memref<1x48xf32, #tpu.memory_space<vmem>>, %arg7: memref<27x48xf32, #tpu.memory_space<vmem>>, %arg8: memref<1x48xf32, #tpu.memory_space<vmem>>, %arg9: memref<48x8xf32, #tpu.memory_space<vmem>>, %arg10: memref<1x8xf32, #tpu.memory_space<vmem>>, %arg11: memref<1x4x8x8x8xf32, #tpu.memory_space<vmem>>, %arg12: memref<6x10x10x48xf32, #tpu.memory_space<vmem>>, %arg13: memref<8x8x48xf32, #tpu.memory_space<vmem>>) attributes {dimension_semantics = [#tpu.dimension_semantics<parallel>, #tpu.dimension_semantics<parallel>], iteration_bounds = array<i64: 2, 1>, scalar_prefetch = 0 : i64, scratch_operands = 2 : i64, tpu.core_type = #tpu.core_type<tc>, window_params = [{transform_indices = @transform_0, window_bounds = array<i64: 1, 4, 8, 8, 8>}, {transform_indices = @transform_1, window_bounds = array<i64: 1, 1, 8, 8, 8>}, {transform_indices = @transform_2, window_bounds = array<i64: 1, 1, 8, 8, 8>}, {pipeline_mode = #tpu.pipeline_mode<synchronous>, transform_indices = @transform_3, window_bounds = array<i64: 8, 48>}, {pipeline_mode = #tpu.pipeline_mode<synchronous>, transform_indices = @transform_4, window_bounds = array<i64: 1, 48>}, {pipeline_mode = #tpu.pipeline_mode<synchronous>, transform_indices = @transform_5, window_bounds = array<i64: 27, 48>}, {pipeline_mode = #tpu.pipeline_mode<synchronous>, transform_indices = @transform_6, window_bounds = array<i64: 1, 48>}, {pipeline_mode = #tpu.pipeline_mode<synchronous>, transform_indices = @transform_7, window_bounds = array<i64: 48, 8>}, {pipeline_mode = #tpu.pipeline_mode<synchronous>, transform_indices = @transform_8, window_bounds = array<i64: 1, 8>}, {transform_indices = @transform_9, window_bounds = array<i64: 1, 4, 8, 8, 8>}]} {
    %c4_i32 = arith.constant 4 : i32
    %0 = arith.muli %arg1, %c4_i32 : i32
    %cst = arith.constant 0.000000e+00 : f32
    %1 = vector.broadcast %cst : f32 to vector<6x1x10x48xf32>
    %cst_0 = arith.constant 0.000000e+00 : f32
    %2 = vector.broadcast %cst_0 : f32 to vector<6x10x1x48xf32>
    %c0 = arith.constant 0 : index
    %c0_1 = arith.constant 0 : index
    %c0_2 = arith.constant 0 : index
    %c0_3 = arith.constant 0 : index
    %3 = vector.load %arg12[%c0, %c0_1, %c0_2, %c0_3] : memref<6x10x10x48xf32, #tpu.memory_space<vmem>>, vector<6x1x10x48xf32>
    tpu.vector_store %arg12[%c0, %c0_1, %c0_2, %c0_3], %1 {strides = array<i32>} : memref<6x10x10x48xf32, #tpu.memory_space<vmem>>, vector<6x1x10x48xf32>,
    %c0_4 = arith.constant 0 : index
    %c9 = arith.constant 9 : index
    %c0_5 = arith.constant 0 : index
    %c0_6 = arith.constant 0 : index
    %4 = vector.load %arg12[%c0_4, %c9, %c0_5, %c0_6] : memref<6x10x10x48xf32, #tpu.memory_space<vmem>>, vector<6x1x10x48xf32>
    tpu.vector_store %arg12[%c0_4, %c9, %c0_5, %c0_6], %1 {strides = array<i32>} : memref<6x10x10x48xf32, #tpu.memory_space<vmem>>, vector<6x1x10x48xf32>,
    %c0_7 = arith.constant 0 : index
    %c0_8 = arith.constant 0 : index
    %c0_9 = arith.constant 0 : index
    %c0_10 = arith.constant 0 : index
    %5 = vector.load %arg12[%c0_7, %c0_8, %c0_9, %c0_10] : memref<6x10x10x48xf32, #tpu.memory_space<vmem>>, vector<6x10x1x48xf32>
    tpu.vector_store %arg12[%c0_7, %c0_8, %c0_9, %c0_10], %2 {strides = array<i32>} : memref<6x10x10x48xf32, #tpu.memory_space<vmem>>, vector<6x10x1x48xf32>,
    %c0_11 = arith.constant 0 : index
    %c0_12 = arith.constant 0 : index
    %c9_13 = arith.constant 9 : index
    %c0_14 = arith.constant 0 : index
    %6 = vector.load %arg12[%c0_11, %c0_12, %c9_13, %c0_14] : memref<6x10x10x48xf32, #tpu.memory_space<vmem>>, vector<6x10x1x48xf32>
    tpu.vector_store %arg12[%c0_11, %c0_12, %c9_13, %c0_14], %2 {strides = array<i32>} : memref<6x10x10x48xf32, #tpu.memory_space<vmem>>, vector<6x10x1x48xf32>,
    %c0_15 = arith.constant 0 : index
    %c0_16 = arith.constant 0 : index
    %c0_17 = arith.constant 0 : index
    %c0_18 = arith.constant 0 : index
    %c0_19 = arith.constant 0 : index
    %7 = vector.load %arg2[%c0_15, %c0_16, %c0_17, %c0_18, %c0_19] : memref<1x4x8x8x8xf32, #tpu.memory_space<vmem>>, vector<1x4x8x8x8xf32>
    %8 = vector.shape_cast %7 : vector<1x4x8x8x8xf32> to vector<4x8x8x8xf32>
    %9 = vector.shape_cast %8 : vector<4x8x8x8xf32> to vector<256x8xf32>
    %c0_20 = arith.constant 0 : index
    %c0_21 = arith.constant 0 : index
    %10 = vector.load %arg5[%c0_20, %c0_21] : memref<8x48xf32, #tpu.memory_space<vmem>>, vector<8x48xf32>
    %cst_22 = arith.constant dense<0.000000e+00> : vector<256x48xf32>
    %11 = tpu.matmul %9, %10, %cst_22 {dimension_numbers = #tpu.dot_dimension_numbers<[1], [0], [0], [1], [0, 0, 1, 1], [], []>} : vector<256x8xf32>, vector<8x48xf32>, vector<256x48xf32> -> vector<256x48xf32>
    %c0_23 = arith.constant 0 : index
    %c0_24 = arith.constant 0 : index
    %12 = vector.load %arg6[%c0_23, %c0_24] : memref<1x48xf32, #tpu.memory_space<vmem>>, vector<1x48xf32>
    %13 = vector.broadcast %12 : vector<1x48xf32> to vector<256x48xf32>
    %14 = arith.addf %11, %13 : vector<256x48xf32>
    %cst_25 = arith.constant 0.000000e+00 : f32
    %cst_26 = arith.constant 6.000000e+00 : f32
    %15 = vector.broadcast %cst_25 : f32 to vector<256x48xf32>
    %16 = arith.maximumf %15, %14 : vector<256x48xf32>
    %17 = vector.broadcast %cst_26 : f32 to vector<256x48xf32>
    %18 = arith.minimumf %17, %16 : vector<256x48xf32>
    %19 = vector.shape_cast %18 : vector<256x48xf32> to vector<4x8x8x48xf32>
    %c0_27 = arith.constant 0 : index
    %c1 = arith.constant 1 : index
    %c1_28 = arith.constant 1 : index
    %c0_29 = arith.constant 0 : index
    %20 = vector.load %arg12[%c0_27, %c1, %c1_28, %c0_29] : memref<6x10x10x48xf32, #tpu.memory_space<vmem>>, vector<4x8x8x48xf32>
    tpu.vector_store %arg12[%c0_27, %c1, %c1_28, %c0_29], %19 {strides = array<i32>} : memref<6x10x10x48xf32, #tpu.memory_space<vmem>>, vector<4x8x8x48xf32>,
    %c0_30 = arith.constant 0 : index
    %c0_31 = arith.constant 0 : index
    %c0_32 = arith.constant 0 : index
    %c0_33 = arith.constant 0 : index
    %c0_34 = arith.constant 0 : index
    %21 = vector.load %arg3[%c0_30, %c0_31, %c0_32, %c0_33, %c0_34] : memref<1x1x8x8x8xf32, #tpu.memory_space<vmem>>, vector<1x1x8x8x8xf32>
    %22 = vector.shape_cast %21 : vector<1x1x8x8x8xf32> to vector<8x8x8xf32>
    %23 = vector.shape_cast %22 : vector<8x8x8xf32> to vector<64x8xf32>
    %c0_35 = arith.constant 0 : index
    %c0_36 = arith.constant 0 : index
    %24 = vector.load %arg5[%c0_35, %c0_36] : memref<8x48xf32, #tpu.memory_space<vmem>>, vector<8x48xf32>
    %cst_37 = arith.constant dense<0.000000e+00> : vector<64x48xf32>
    %25 = tpu.matmul %23, %24, %cst_37 {dimension_numbers = #tpu.dot_dimension_numbers<[1], [0], [0], [1], [0, 0, 1, 1], [], []>} : vector<64x8xf32>, vector<8x48xf32>, vector<64x48xf32> -> vector<64x48xf32>
    %c0_38 = arith.constant 0 : index
    %c0_39 = arith.constant 0 : index
    %26 = vector.load %arg6[%c0_38, %c0_39] : memref<1x48xf32, #tpu.memory_space<vmem>>, vector<1x48xf32>
    %27 = vector.broadcast %26 : vector<1x48xf32> to vector<64x48xf32>
    %28 = arith.addf %25, %27 : vector<64x48xf32>
    %cst_40 = arith.constant 0.000000e+00 : f32
    %cst_41 = arith.constant 6.000000e+00 : f32
    %29 = vector.broadcast %cst_40 : f32 to vector<64x48xf32>
    %30 = arith.maximumf %29, %28 : vector<64x48xf32>
    %31 = vector.broadcast %cst_41 : f32 to vector<64x48xf32>
    %32 = arith.minimumf %31, %30 : vector<64x48xf32>
    %33 = vector.shape_cast %32 : vector<64x48xf32> to vector<8x8x48xf32>
    %c4 = arith.constant 4 : index
    %c1_42 = arith.constant 1 : index
    %c1_43 = arith.constant 1 : index
    %c0_44 = arith.constant 0 : index
    %34 = vector.load %arg12[%c4, %c1_42, %c1_43, %c0_44] : memref<6x10x10x48xf32, #tpu.memory_space<vmem>>, vector<1x8x8x48xf32>
    %35 = vector.shape_cast %34 : vector<1x8x8x48xf32> to vector<8x8x48xf32>
    %36 = vector.shape_cast %33 : vector<8x8x48xf32> to vector<1x8x8x48xf32>
    tpu.vector_store %arg12[%c4, %c1_42, %c1_43, %c0_44], %36 {strides = array<i32>} : memref<6x10x10x48xf32, #tpu.memory_space<vmem>>, vector<1x8x8x48xf32>,
    %c0_45 = arith.constant 0 : index
    %c0_46 = arith.constant 0 : index
    %c0_47 = arith.constant 0 : index
    %c0_48 = arith.constant 0 : index
    %c0_49 = arith.constant 0 : index
    %37 = vector.load %arg4[%c0_45, %c0_46, %c0_47, %c0_48, %c0_49] : memref<1x1x8x8x8xf32, #tpu.memory_space<vmem>>, vector<1x1x8x8x8xf32>
    %38 = vector.shape_cast %37 : vector<1x1x8x8x8xf32> to vector<8x8x8xf32>
    %39 = vector.shape_cast %38 : vector<8x8x8xf32> to vector<64x8xf32>
    %c0_50 = arith.constant 0 : index
    %c0_51 = arith.constant 0 : index
    %40 = vector.load %arg5[%c0_50, %c0_51] : memref<8x48xf32, #tpu.memory_space<vmem>>, vector<8x48xf32>
    %cst_52 = arith.constant dense<0.000000e+00> : vector<64x48xf32>
    %41 = tpu.matmul %39, %40, %cst_52 {dimension_numbers = #tpu.dot_dimension_numbers<[1], [0], [0], [1], [0, 0, 1, 1], [], []>} : vector<64x8xf32>, vector<8x48xf32>, vector<64x48xf32> -> vector<64x48xf32>
    %c0_53 = arith.constant 0 : index
    %c0_54 = arith.constant 0 : index
    %42 = vector.load %arg6[%c0_53, %c0_54] : memref<1x48xf32, #tpu.memory_space<vmem>>, vector<1x48xf32>
    %43 = vector.broadcast %42 : vector<1x48xf32> to vector<64x48xf32>
    %44 = arith.addf %41, %43 : vector<64x48xf32>
    %cst_55 = arith.constant 0.000000e+00 : f32
    %cst_56 = arith.constant 6.000000e+00 : f32
    %45 = vector.broadcast %cst_55 : f32 to vector<64x48xf32>
    %46 = arith.maximumf %45, %44 : vector<64x48xf32>
    %47 = vector.broadcast %cst_56 : f32 to vector<64x48xf32>
    %48 = arith.minimumf %47, %46 : vector<64x48xf32>
    %49 = vector.shape_cast %48 : vector<64x48xf32> to vector<8x8x48xf32>
    %c5 = arith.constant 5 : index
    %c1_57 = arith.constant 1 : index
    %c1_58 = arith.constant 1 : index
    %c0_59 = arith.constant 0 : index
    %50 = vector.load %arg12[%c5, %c1_57, %c1_58, %c0_59] : memref<6x10x10x48xf32, #tpu.memory_space<vmem>>, vector<1x8x8x48xf32>
    %51 = vector.shape_cast %50 : vector<1x8x8x48xf32> to vector<8x8x48xf32>
    %52 = vector.shape_cast %49 : vector<8x8x48xf32> to vector<1x8x8x48xf32>
    tpu.vector_store %arg12[%c5, %c1_57, %c1_58, %c0_59], %52 {strides = array<i32>} : memref<6x10x10x48xf32, #tpu.memory_space<vmem>>, vector<1x8x8x48xf32>,
    %cst_60 = arith.constant 0.000000e+00 : f32
    %53 = vector.broadcast %cst_60 : f32 to vector<8x8x48xf32>
    %c0_i32 = arith.constant 0 : i32
    %54 = arith.cmpi eq, %0, %c0_i32 : i32
    %55 = arith.extui %54 : i1 to i32
    %c0_i32_61 = arith.constant 0 : i32
    %56 = arith.cmpi ne, %55, %c0_i32_61 : i32
    scf.if %56 {
      %c0_626 = arith.constant 0 : index
      %c1_627 = arith.constant 1 : index
      %c1_628 = arith.constant 1 : index
      %c0_629 = arith.constant 0 : index
      %1022 = vector.load %arg12[%c0_626, %c1_627, %c1_628, %c0_629] : memref<6x10x10x48xf32, #tpu.memory_space<vmem>>, vector<1x8x8x48xf32>
      %1023 = vector.shape_cast %1022 : vector<1x8x8x48xf32> to vector<8x8x48xf32>
      %1024 = vector.shape_cast %53 : vector<8x8x48xf32> to vector<1x8x8x48xf32>
      tpu.vector_store %arg12[%c0_626, %c1_627, %c1_628, %c0_629], %1024 {strides = array<i32>} : memref<6x10x10x48xf32, #tpu.memory_space<vmem>>, vector<1x8x8x48xf32>,
    } else {
    }
    %c5_i32 = arith.constant 5 : i32
    %57 = arith.addi %0, %c5_i32 : i32
    %c5_i32_62 = arith.constant 5 : i32
    %58 = arith.cmpi eq, %57, %c5_i32_62 : i32
    %59 = arith.extui %58 : i1 to i32
    %c0_i32_63 = arith.constant 0 : i32
    %60 = arith.cmpi ne, %59, %c0_i32_63 : i32
    scf.if %60 {
      %c5_626 = arith.constant 5 : index
      %c1_627 = arith.constant 1 : index
      %c1_628 = arith.constant 1 : index
      %c0_629 = arith.constant 0 : index
      %1022 = vector.load %arg12[%c5_626, %c1_627, %c1_628, %c0_629] : memref<6x10x10x48xf32, #tpu.memory_space<vmem>>, vector<1x8x8x48xf32>
      %1023 = vector.shape_cast %1022 : vector<1x8x8x48xf32> to vector<8x8x48xf32>
      %1024 = vector.shape_cast %53 : vector<8x8x48xf32> to vector<1x8x8x48xf32>
      tpu.vector_store %arg12[%c5_626, %c1_627, %c1_628, %c0_629], %1024 {strides = array<i32>} : memref<6x10x10x48xf32, #tpu.memory_space<vmem>>, vector<1x8x8x48xf32>,
    } else {
    }
    %c0_64 = arith.constant 0 : index
    %c0_65 = arith.constant 0 : index
    %61 = vector.load %arg7[%c0_64, %c0_65] : memref<27x48xf32, #tpu.memory_space<vmem>>, vector<27x48xf32>
    %c0_66 = arith.constant 0 : index
    %c0_67 = arith.constant 0 : index
    %62 = vector.load %arg8[%c0_66, %c0_67] : memref<1x48xf32, #tpu.memory_space<vmem>>, vector<1x48xf32>
    %63 = vector.shape_cast %62 : vector<1x48xf32> to vector<1x1x48xf32>
    %c0_68 = arith.constant 0 : index
    %c0_69 = arith.constant 0 : index
    %64 = vector.load %arg9[%c0_68, %c0_69] : memref<48x8xf32, #tpu.memory_space<vmem>>, vector<48x8xf32>
    %c0_70 = arith.constant 0 : index
    %c0_71 = arith.constant 0 : index
    %65 = vector.load %arg10[%c0_70, %c0_71] : memref<1x8xf32, #tpu.memory_space<vmem>>, vector<1x8xf32>
    %c0_72 = arith.constant 0 : index
    %c0_73 = arith.constant 0 : index
    %c0_74 = arith.constant 0 : index
    %c0_75 = arith.constant 0 : index
    %66 = vector.load %arg12[%c0_72, %c0_73, %c0_74, %c0_75] : memref<6x10x10x48xf32, #tpu.memory_space<vmem>>, vector<1x8x8x48xf32>
    %67 = vector.shape_cast %66 : vector<1x8x8x48xf32> to vector<8x8x48xf32>
    %68 = vector.extract_strided_slice %61 {offsets = [0, 0], sizes = [1, 48], strides = [1, 1]} : vector<27x48xf32> to vector<1x48xf32>
    %69 = vector.shape_cast %68 : vector<1x48xf32> to vector<48xf32>
    %70 = vector.shape_cast %69 : vector<48xf32> to vector<1x1x48xf32>
    %71 = vector.broadcast %70 : vector<1x1x48xf32> to vector<8x8x48xf32>
    %72 = arith.mulf %67, %71 : vector<8x8x48xf32>
    %c0_76 = arith.constant 0 : index
    %c0_77 = arith.constant 0 : index
    %c1_78 = arith.constant 1 : index
    %c0_79 = arith.constant 0 : index
    %73 = vector.load %arg12[%c0_76, %c0_77, %c1_78, %c0_79] : memref<6x10x10x48xf32, #tpu.memory_space<vmem>>, vector<1x8x8x48xf32>
    %74 = vector.shape_cast %73 : vector<1x8x8x48xf32> to vector<8x8x48xf32>
    %75 = vector.extract_strided_slice %61 {offsets = [1, 0], sizes = [1, 48], strides = [1, 1]} : vector<27x48xf32> to vector<1x48xf32>
    %76 = vector.shape_cast %75 : vector<1x48xf32> to vector<48xf32>
    %77 = vector.shape_cast %76 : vector<48xf32> to vector<1x1x48xf32>
    %78 = vector.broadcast %77 : vector<1x1x48xf32> to vector<8x8x48xf32>
    %79 = arith.mulf %74, %78 : vector<8x8x48xf32>
    %80 = arith.addf %72, %79 : vector<8x8x48xf32>
    %c0_80 = arith.constant 0 : index
    %c0_81 = arith.constant 0 : index
    %c2 = arith.constant 2 : index
    %c0_82 = arith.constant 0 : index
    %81 = vector.load %arg12[%c0_80, %c0_81, %c2, %c0_82] : memref<6x10x10x48xf32, #tpu.memory_space<vmem>>, vector<1x8x8x48xf32>
    %82 = vector.shape_cast %81 : vector<1x8x8x48xf32> to vector<8x8x48xf32>
    %83 = vector.extract_strided_slice %61 {offsets = [2, 0], sizes = [1, 48], strides = [1, 1]} : vector<27x48xf32> to vector<1x48xf32>
    %84 = vector.shape_cast %83 : vector<1x48xf32> to vector<48xf32>
    %85 = vector.shape_cast %84 : vector<48xf32> to vector<1x1x48xf32>
    %86 = vector.broadcast %85 : vector<1x1x48xf32> to vector<8x8x48xf32>
    %87 = arith.mulf %82, %86 : vector<8x8x48xf32>
    %88 = arith.addf %80, %87 : vector<8x8x48xf32>
    %c0_83 = arith.constant 0 : index
    %c1_84 = arith.constant 1 : index
    %c0_85 = arith.constant 0 : index
    %c0_86 = arith.constant 0 : index
    %89 = vector.load %arg12[%c0_83, %c1_84, %c0_85, %c0_86] : memref<6x10x10x48xf32, #tpu.memory_space<vmem>>, vector<1x8x8x48xf32>
    %90 = vector.shape_cast %89 : vector<1x8x8x48xf32> to vector<8x8x48xf32>
    %91 = vector.extract_strided_slice %61 {offsets = [3, 0], sizes = [1, 48], strides = [1, 1]} : vector<27x48xf32> to vector<1x48xf32>
    %92 = vector.shape_cast %91 : vector<1x48xf32> to vector<48xf32>
    %93 = vector.shape_cast %92 : vector<48xf32> to vector<1x1x48xf32>
    %94 = vector.broadcast %93 : vector<1x1x48xf32> to vector<8x8x48xf32>
    %95 = arith.mulf %90, %94 : vector<8x8x48xf32>
    %96 = arith.addf %88, %95 : vector<8x8x48xf32>
    %c0_87 = arith.constant 0 : index
    %c1_88 = arith.constant 1 : index
    %c1_89 = arith.constant 1 : index
    %c0_90 = arith.constant 0 : index
    %97 = vector.load %arg12[%c0_87, %c1_88, %c1_89, %c0_90] : memref<6x10x10x48xf32, #tpu.memory_space<vmem>>, vector<1x8x8x48xf32>
    %98 = vector.shape_cast %97 : vector<1x8x8x48xf32> to vector<8x8x48xf32>
    %99 = vector.extract_strided_slice %61 {offsets = [4, 0], sizes = [1, 48], strides = [1, 1]} : vector<27x48xf32> to vector<1x48xf32>
    %100 = vector.shape_cast %99 : vector<1x48xf32> to vector<48xf32>
    %101 = vector.shape_cast %100 : vector<48xf32> to vector<1x1x48xf32>
    %102 = vector.broadcast %101 : vector<1x1x48xf32> to vector<8x8x48xf32>
    %103 = arith.mulf %98, %102 : vector<8x8x48xf32>
    %104 = arith.addf %96, %103 : vector<8x8x48xf32>
    %c0_91 = arith.constant 0 : index
    %c1_92 = arith.constant 1 : index
    %c2_93 = arith.constant 2 : index
    %c0_94 = arith.constant 0 : index
    %105 = vector.load %arg12[%c0_91, %c1_92, %c2_93, %c0_94] : memref<6x10x10x48xf32, #tpu.memory_space<vmem>>, vector<1x8x8x48xf32>
    %106 = vector.shape_cast %105 : vector<1x8x8x48xf32> to vector<8x8x48xf32>
    %107 = vector.extract_strided_slice %61 {offsets = [5, 0], sizes = [1, 48], strides = [1, 1]} : vector<27x48xf32> to vector<1x48xf32>
    %108 = vector.shape_cast %107 : vector<1x48xf32> to vector<48xf32>
    %109 = vector.shape_cast %108 : vector<48xf32> to vector<1x1x48xf32>
    %110 = vector.broadcast %109 : vector<1x1x48xf32> to vector<8x8x48xf32>
    %111 = arith.mulf %106, %110 : vector<8x8x48xf32>
    %112 = arith.addf %104, %111 : vector<8x8x48xf32>
    %c0_95 = arith.constant 0 : index
    %c2_96 = arith.constant 2 : index
    %c0_97 = arith.constant 0 : index
    %c0_98 = arith.constant 0 : index
    %113 = vector.load %arg12[%c0_95, %c2_96, %c0_97, %c0_98] : memref<6x10x10x48xf32, #tpu.memory_space<vmem>>, vector<1x8x8x48xf32>
    %114 = vector.shape_cast %113 : vector<1x8x8x48xf32> to vector<8x8x48xf32>
    %115 = vector.extract_strided_slice %61 {offsets = [6, 0], sizes = [1, 48], strides = [1, 1]} : vector<27x48xf32> to vector<1x48xf32>
    %116 = vector.shape_cast %115 : vector<1x48xf32> to vector<48xf32>
    %117 = vector.shape_cast %116 : vector<48xf32> to vector<1x1x48xf32>
    %118 = vector.broadcast %117 : vector<1x1x48xf32> to vector<8x8x48xf32>
    %119 = arith.mulf %114, %118 : vector<8x8x48xf32>
    %120 = arith.addf %112, %119 : vector<8x8x48xf32>
    %c0_99 = arith.constant 0 : index
    %c2_100 = arith.constant 2 : index
    %c1_101 = arith.constant 1 : index
    %c0_102 = arith.constant 0 : index
    %121 = vector.load %arg12[%c0_99, %c2_100, %c1_101, %c0_102] : memref<6x10x10x48xf32, #tpu.memory_space<vmem>>, vector<1x8x8x48xf32>
    %122 = vector.shape_cast %121 : vector<1x8x8x48xf32> to vector<8x8x48xf32>
    %123 = vector.extract_strided_slice %61 {offsets = [7, 0], sizes = [1, 48], strides = [1, 1]} : vector<27x48xf32> to vector<1x48xf32>
    %124 = vector.shape_cast %123 : vector<1x48xf32> to vector<48xf32>
    %125 = vector.shape_cast %124 : vector<48xf32> to vector<1x1x48xf32>
    %126 = vector.broadcast %125 : vector<1x1x48xf32> to vector<8x8x48xf32>
    %127 = arith.mulf %122, %126 : vector<8x8x48xf32>
    %128 = arith.addf %120, %127 : vector<8x8x48xf32>
    %c0_103 = arith.constant 0 : index
    %c2_104 = arith.constant 2 : index
    %c2_105 = arith.constant 2 : index
    %c0_106 = arith.constant 0 : index
    %129 = vector.load %arg12[%c0_103, %c2_104, %c2_105, %c0_106] : memref<6x10x10x48xf32, #tpu.memory_space<vmem>>, vector<1x8x8x48xf32>
    %130 = vector.shape_cast %129 : vector<1x8x8x48xf32> to vector<8x8x48xf32>
    %131 = vector.extract_strided_slice %61 {offsets = [8, 0], sizes = [1, 48], strides = [1, 1]} : vector<27x48xf32> to vector<1x48xf32>
    %132 = vector.shape_cast %131 : vector<1x48xf32> to vector<48xf32>
    %133 = vector.shape_cast %132 : vector<48xf32> to vector<1x1x48xf32>
    %134 = vector.broadcast %133 : vector<1x1x48xf32> to vector<8x8x48xf32>
    %135 = arith.mulf %130, %134 : vector<8x8x48xf32>
    %136 = arith.addf %128, %135 : vector<8x8x48xf32>
    %c0_107 = arith.constant 0 : index
    %c0_108 = arith.constant 0 : index
    %c0_109 = arith.constant 0 : index
    %137 = vector.load %arg13[%c0_107, %c0_108, %c0_109] : memref<8x8x48xf32, #tpu.memory_space<vmem>>, vector<8x8x48xf32>
    tpu.vector_store %arg13[%c0_107, %c0_108, %c0_109], %136 {strides = array<i32>} : memref<8x8x48xf32, #tpu.memory_space<vmem>>, vector<8x8x48xf32>,
    %c1_110 = arith.constant 1 : index
    %c0_111 = arith.constant 0 : index
    %c0_112 = arith.constant 0 : index
    %c0_113 = arith.constant 0 : index
    %138 = vector.load %arg12[%c1_110, %c0_111, %c0_112, %c0_113] : memref<6x10x10x48xf32, #tpu.memory_space<vmem>>, vector<1x8x8x48xf32>
    %139 = vector.shape_cast %138 : vector<1x8x8x48xf32> to vector<8x8x48xf32>
    %140 = vector.extract_strided_slice %61 {offsets = [9, 0], sizes = [1, 48], strides = [1, 1]} : vector<27x48xf32> to vector<1x48xf32>
    %141 = vector.shape_cast %140 : vector<1x48xf32> to vector<48xf32>
    %142 = vector.shape_cast %141 : vector<48xf32> to vector<1x1x48xf32>
    %143 = vector.broadcast %142 : vector<1x1x48xf32> to vector<8x8x48xf32>
    %144 = arith.mulf %139, %143 : vector<8x8x48xf32>
    %c1_114 = arith.constant 1 : index
    %c0_115 = arith.constant 0 : index
    %c1_116 = arith.constant 1 : index
    %c0_117 = arith.constant 0 : index
    %145 = vector.load %arg12[%c1_114, %c0_115, %c1_116, %c0_117] : memref<6x10x10x48xf32, #tpu.memory_space<vmem>>, vector<1x8x8x48xf32>
    %146 = vector.shape_cast %145 : vector<1x8x8x48xf32> to vector<8x8x48xf32>
    %147 = vector.extract_strided_slice %61 {offsets = [10, 0], sizes = [1, 48], strides = [1, 1]} : vector<27x48xf32> to vector<1x48xf32>
    %148 = vector.shape_cast %147 : vector<1x48xf32> to vector<48xf32>
    %149 = vector.shape_cast %148 : vector<48xf32> to vector<1x1x48xf32>
    %150 = vector.broadcast %149 : vector<1x1x48xf32> to vector<8x8x48xf32>
    %151 = arith.mulf %146, %150 : vector<8x8x48xf32>
    %152 = arith.addf %144, %151 : vector<8x8x48xf32>
    %c1_118 = arith.constant 1 : index
    %c0_119 = arith.constant 0 : index
    %c2_120 = arith.constant 2 : index
    %c0_121 = arith.constant 0 : index
    %153 = vector.load %arg12[%c1_118, %c0_119, %c2_120, %c0_121] : memref<6x10x10x48xf32, #tpu.memory_space<vmem>>, vector<1x8x8x48xf32>
    %154 = vector.shape_cast %153 : vector<1x8x8x48xf32> to vector<8x8x48xf32>
    %155 = vector.extract_strided_slice %61 {offsets = [11, 0], sizes = [1, 48], strides = [1, 1]} : vector<27x48xf32> to vector<1x48xf32>
    %156 = vector.shape_cast %155 : vector<1x48xf32> to vector<48xf32>
    %157 = vector.shape_cast %156 : vector<48xf32> to vector<1x1x48xf32>
    %158 = vector.broadcast %157 : vector<1x1x48xf32> to vector<8x8x48xf32>
    %159 = arith.mulf %154, %158 : vector<8x8x48xf32>
    %160 = arith.addf %152, %159 : vector<8x8x48xf32>
    %c1_122 = arith.constant 1 : index
    %c1_123 = arith.constant 1 : index
    %c0_124 = arith.constant 0 : index
    %c0_125 = arith.constant 0 : index
    %161 = vector.load %arg12[%c1_122, %c1_123, %c0_124, %c0_125] : memref<6x10x10x48xf32, #tpu.memory_space<vmem>>, vector<1x8x8x48xf32>
    %162 = vector.shape_cast %161 : vector<1x8x8x48xf32> to vector<8x8x48xf32>
    %163 = vector.extract_strided_slice %61 {offsets = [12, 0], sizes = [1, 48], strides = [1, 1]} : vector<27x48xf32> to vector<1x48xf32>
    %164 = vector.shape_cast %163 : vector<1x48xf32> to vector<48xf32>
    %165 = vector.shape_cast %164 : vector<48xf32> to vector<1x1x48xf32>
    %166 = vector.broadcast %165 : vector<1x1x48xf32> to vector<8x8x48xf32>
    %167 = arith.mulf %162, %166 : vector<8x8x48xf32>
    %168 = arith.addf %160, %167 : vector<8x8x48xf32>
    %c1_126 = arith.constant 1 : index
    %c1_127 = arith.constant 1 : index
    %c1_128 = arith.constant 1 : index
    %c0_129 = arith.constant 0 : index
    %169 = vector.load %arg12[%c1_126, %c1_127, %c1_128, %c0_129] : memref<6x10x10x48xf32, #tpu.memory_space<vmem>>, vector<1x8x8x48xf32>
    %170 = vector.shape_cast %169 : vector<1x8x8x48xf32> to vector<8x8x48xf32>
    %171 = vector.extract_strided_slice %61 {offsets = [13, 0], sizes = [1, 48], strides = [1, 1]} : vector<27x48xf32> to vector<1x48xf32>
    %172 = vector.shape_cast %171 : vector<1x48xf32> to vector<48xf32>
    %173 = vector.shape_cast %172 : vector<48xf32> to vector<1x1x48xf32>
    %174 = vector.broadcast %173 : vector<1x1x48xf32> to vector<8x8x48xf32>
    %175 = arith.mulf %170, %174 : vector<8x8x48xf32>
    %176 = arith.addf %168, %175 : vector<8x8x48xf32>
    %c1_130 = arith.constant 1 : index
    %c1_131 = arith.constant 1 : index
    %c2_132 = arith.constant 2 : index
    %c0_133 = arith.constant 0 : index
    %177 = vector.load %arg12[%c1_130, %c1_131, %c2_132, %c0_133] : memref<6x10x10x48xf32, #tpu.memory_space<vmem>>, vector<1x8x8x48xf32>
    %178 = vector.shape_cast %177 : vector<1x8x8x48xf32> to vector<8x8x48xf32>
    %179 = vector.extract_strided_slice %61 {offsets = [14, 0], sizes = [1, 48], strides = [1, 1]} : vector<27x48xf32> to vector<1x48xf32>
    %180 = vector.shape_cast %179 : vector<1x48xf32> to vector<48xf32>
    %181 = vector.shape_cast %180 : vector<48xf32> to vector<1x1x48xf32>
    %182 = vector.broadcast %181 : vector<1x1x48xf32> to vector<8x8x48xf32>
    %183 = arith.mulf %178, %182 : vector<8x8x48xf32>
    %184 = arith.addf %176, %183 : vector<8x8x48xf32>
    %c1_134 = arith.constant 1 : index
    %c2_135 = arith.constant 2 : index
    %c0_136 = arith.constant 0 : index
    %c0_137 = arith.constant 0 : index
    %185 = vector.load %arg12[%c1_134, %c2_135, %c0_136, %c0_137] : memref<6x10x10x48xf32, #tpu.memory_space<vmem>>, vector<1x8x8x48xf32>
    %186 = vector.shape_cast %185 : vector<1x8x8x48xf32> to vector<8x8x48xf32>
    %187 = vector.extract_strided_slice %61 {offsets = [15, 0], sizes = [1, 48], strides = [1, 1]} : vector<27x48xf32> to vector<1x48xf32>
    %188 = vector.shape_cast %187 : vector<1x48xf32> to vector<48xf32>
    %189 = vector.shape_cast %188 : vector<48xf32> to vector<1x1x48xf32>
    %190 = vector.broadcast %189 : vector<1x1x48xf32> to vector<8x8x48xf32>
    %191 = arith.mulf %186, %190 : vector<8x8x48xf32>
    %192 = arith.addf %184, %191 : vector<8x8x48xf32>
    %c1_138 = arith.constant 1 : index
    %c2_139 = arith.constant 2 : index
    %c1_140 = arith.constant 1 : index
    %c0_141 = arith.constant 0 : index
    %193 = vector.load %arg12[%c1_138, %c2_139, %c1_140, %c0_141] : memref<6x10x10x48xf32, #tpu.memory_space<vmem>>, vector<1x8x8x48xf32>
    %194 = vector.shape_cast %193 : vector<1x8x8x48xf32> to vector<8x8x48xf32>
    %195 = vector.extract_strided_slice %61 {offsets = [16, 0], sizes = [1, 48], strides = [1, 1]} : vector<27x48xf32> to vector<1x48xf32>
    %196 = vector.shape_cast %195 : vector<1x48xf32> to vector<48xf32>
    %197 = vector.shape_cast %196 : vector<48xf32> to vector<1x1x48xf32>
    %198 = vector.broadcast %197 : vector<1x1x48xf32> to vector<8x8x48xf32>
    %199 = arith.mulf %194, %198 : vector<8x8x48xf32>
    %200 = arith.addf %192, %199 : vector<8x8x48xf32>
    %c1_142 = arith.constant 1 : index
    %c2_143 = arith.constant 2 : index
    %c2_144 = arith.constant 2 : index
    %c0_145 = arith.constant 0 : index
    %201 = vector.load %arg12[%c1_142, %c2_143, %c2_144, %c0_145] : memref<6x10x10x48xf32, #tpu.memory_space<vmem>>, vector<1x8x8x48xf32>
    %202 = vector.shape_cast %201 : vector<1x8x8x48xf32> to vector<8x8x48xf32>
    %203 = vector.extract_strided_slice %61 {offsets = [17, 0], sizes = [1, 48], strides = [1, 1]} : vector<27x48xf32> to vector<1x48xf32>
    %204 = vector.shape_cast %203 : vector<1x48xf32> to vector<48xf32>
    %205 = vector.shape_cast %204 : vector<48xf32> to vector<1x1x48xf32>
    %206 = vector.broadcast %205 : vector<1x1x48xf32> to vector<8x8x48xf32>
    %207 = arith.mulf %202, %206 : vector<8x8x48xf32>
    %208 = arith.addf %200, %207 : vector<8x8x48xf32>
    %c0_146 = arith.constant 0 : index
    %c0_147 = arith.constant 0 : index
    %c0_148 = arith.constant 0 : index
    %209 = vector.load %arg13[%c0_146, %c0_147, %c0_148] : memref<8x8x48xf32, #tpu.memory_space<vmem>>, vector<8x8x48xf32>
    %210 = arith.addf %209, %208 : vector<8x8x48xf32>
    %c0_149 = arith.constant 0 : index
    %c0_150 = arith.constant 0 : index
    %c0_151 = arith.constant 0 : index
    %211 = vector.load %arg13[%c0_149, %c0_150, %c0_151] : memref<8x8x48xf32, #tpu.memory_space<vmem>>, vector<8x8x48xf32>
    tpu.vector_store %arg13[%c0_149, %c0_150, %c0_151], %210 {strides = array<i32>} : memref<8x8x48xf32, #tpu.memory_space<vmem>>, vector<8x8x48xf32>,
    %c2_152 = arith.constant 2 : index
    %c0_153 = arith.constant 0 : index
    %c0_154 = arith.constant 0 : index
    %c0_155 = arith.constant 0 : index
    %212 = vector.load %arg12[%c2_152, %c0_153, %c0_154, %c0_155] : memref<6x10x10x48xf32, #tpu.memory_space<vmem>>, vector<1x8x8x48xf32>
    %213 = vector.shape_cast %212 : vector<1x8x8x48xf32> to vector<8x8x48xf32>
    %214 = vector.extract_strided_slice %61 {offsets = [18, 0], sizes = [1, 48], strides = [1, 1]} : vector<27x48xf32> to vector<1x48xf32>
    %215 = vector.shape_cast %214 : vector<1x48xf32> to vector<48xf32>
    %216 = vector.shape_cast %215 : vector<48xf32> to vector<1x1x48xf32>
    %217 = vector.broadcast %216 : vector<1x1x48xf32> to vector<8x8x48xf32>
    %218 = arith.mulf %213, %217 : vector<8x8x48xf32>
    %c2_156 = arith.constant 2 : index
    %c0_157 = arith.constant 0 : index
    %c1_158 = arith.constant 1 : index
    %c0_159 = arith.constant 0 : index
    %219 = vector.load %arg12[%c2_156, %c0_157, %c1_158, %c0_159] : memref<6x10x10x48xf32, #tpu.memory_space<vmem>>, vector<1x8x8x48xf32>
    %220 = vector.shape_cast %219 : vector<1x8x8x48xf32> to vector<8x8x48xf32>
    %221 = vector.extract_strided_slice %61 {offsets = [19, 0], sizes = [1, 48], strides = [1, 1]} : vector<27x48xf32> to vector<1x48xf32>
    %222 = vector.shape_cast %221 : vector<1x48xf32> to vector<48xf32>
    %223 = vector.shape_cast %222 : vector<48xf32> to vector<1x1x48xf32>
    %224 = vector.broadcast %223 : vector<1x1x48xf32> to vector<8x8x48xf32>
    %225 = arith.mulf %220, %224 : vector<8x8x48xf32>
    %226 = arith.addf %218, %225 : vector<8x8x48xf32>
    %c2_160 = arith.constant 2 : index
    %c0_161 = arith.constant 0 : index
    %c2_162 = arith.constant 2 : index
    %c0_163 = arith.constant 0 : index
    %227 = vector.load %arg12[%c2_160, %c0_161, %c2_162, %c0_163] : memref<6x10x10x48xf32, #tpu.memory_space<vmem>>, vector<1x8x8x48xf32>
    %228 = vector.shape_cast %227 : vector<1x8x8x48xf32> to vector<8x8x48xf32>
    %229 = vector.extract_strided_slice %61 {offsets = [20, 0], sizes = [1, 48], strides = [1, 1]} : vector<27x48xf32> to vector<1x48xf32>
    %230 = vector.shape_cast %229 : vector<1x48xf32> to vector<48xf32>
    %231 = vector.shape_cast %230 : vector<48xf32> to vector<1x1x48xf32>
    %232 = vector.broadcast %231 : vector<1x1x48xf32> to vector<8x8x48xf32>
    %233 = arith.mulf %228, %232 : vector<8x8x48xf32>
    %234 = arith.addf %226, %233 : vector<8x8x48xf32>
    %c2_164 = arith.constant 2 : index
    %c1_165 = arith.constant 1 : index
    %c0_166 = arith.constant 0 : index
    %c0_167 = arith.constant 0 : index
    %235 = vector.load %arg12[%c2_164, %c1_165, %c0_166, %c0_167] : memref<6x10x10x48xf32, #tpu.memory_space<vmem>>, vector<1x8x8x48xf32>
    %236 = vector.shape_cast %235 : vector<1x8x8x48xf32> to vector<8x8x48xf32>
    %237 = vector.extract_strided_slice %61 {offsets = [21, 0], sizes = [1, 48], strides = [1, 1]} : vector<27x48xf32> to vector<1x48xf32>
    %238 = vector.shape_cast %237 : vector<1x48xf32> to vector<48xf32>
    %239 = vector.shape_cast %238 : vector<48xf32> to vector<1x1x48xf32>
    %240 = vector.broadcast %239 : vector<1x1x48xf32> to vector<8x8x48xf32>
    %241 = arith.mulf %236, %240 : vector<8x8x48xf32>
    %242 = arith.addf %234, %241 : vector<8x8x48xf32>
    %c2_168 = arith.constant 2 : index
    %c1_169 = arith.constant 1 : index
    %c1_170 = arith.constant 1 : index
    %c0_171 = arith.constant 0 : index
    %243 = vector.load %arg12[%c2_168, %c1_169, %c1_170, %c0_171] : memref<6x10x10x48xf32, #tpu.memory_space<vmem>>, vector<1x8x8x48xf32>
    %244 = vector.shape_cast %243 : vector<1x8x8x48xf32> to vector<8x8x48xf32>
    %245 = vector.extract_strided_slice %61 {offsets = [22, 0], sizes = [1, 48], strides = [1, 1]} : vector<27x48xf32> to vector<1x48xf32>
    %246 = vector.shape_cast %245 : vector<1x48xf32> to vector<48xf32>
    %247 = vector.shape_cast %246 : vector<48xf32> to vector<1x1x48xf32>
    %248 = vector.broadcast %247 : vector<1x1x48xf32> to vector<8x8x48xf32>
    %249 = arith.mulf %244, %248 : vector<8x8x48xf32>
    %250 = arith.addf %242, %249 : vector<8x8x48xf32>
    %c2_172 = arith.constant 2 : index
    %c1_173 = arith.constant 1 : index
    %c2_174 = arith.constant 2 : index
    %c0_175 = arith.constant 0 : index
    %251 = vector.load %arg12[%c2_172, %c1_173, %c2_174, %c0_175] : memref<6x10x10x48xf32, #tpu.memory_space<vmem>>, vector<1x8x8x48xf32>
    %252 = vector.shape_cast %251 : vector<1x8x8x48xf32> to vector<8x8x48xf32>
    %253 = vector.extract_strided_slice %61 {offsets = [23, 0], sizes = [1, 48], strides = [1, 1]} : vector<27x48xf32> to vector<1x48xf32>
    %254 = vector.shape_cast %253 : vector<1x48xf32> to vector<48xf32>
    %255 = vector.shape_cast %254 : vector<48xf32> to vector<1x1x48xf32>
    %256 = vector.broadcast %255 : vector<1x1x48xf32> to vector<8x8x48xf32>
    %257 = arith.mulf %252, %256 : vector<8x8x48xf32>
    %258 = arith.addf %250, %257 : vector<8x8x48xf32>
    %c2_176 = arith.constant 2 : index
    %c2_177 = arith.constant 2 : index
    %c0_178 = arith.constant 0 : index
    %c0_179 = arith.constant 0 : index
    %259 = vector.load %arg12[%c2_176, %c2_177, %c0_178, %c0_179] : memref<6x10x10x48xf32, #tpu.memory_space<vmem>>, vector<1x8x8x48xf32>
    %260 = vector.shape_cast %259 : vector<1x8x8x48xf32> to vector<8x8x48xf32>
    %261 = vector.extract_strided_slice %61 {offsets = [24, 0], sizes = [1, 48], strides = [1, 1]} : vector<27x48xf32> to vector<1x48xf32>
    %262 = vector.shape_cast %261 : vector<1x48xf32> to vector<48xf32>
    %263 = vector.shape_cast %262 : vector<48xf32> to vector<1x1x48xf32>
    %264 = vector.broadcast %263 : vector<1x1x48xf32> to vector<8x8x48xf32>
    %265 = arith.mulf %260, %264 : vector<8x8x48xf32>
    %266 = arith.addf %258, %265 : vector<8x8x48xf32>
    %c2_180 = arith.constant 2 : index
    %c2_181 = arith.constant 2 : index
    %c1_182 = arith.constant 1 : index
    %c0_183 = arith.constant 0 : index
    %267 = vector.load %arg12[%c2_180, %c2_181, %c1_182, %c0_183] : memref<6x10x10x48xf32, #tpu.memory_space<vmem>>, vector<1x8x8x48xf32>
    %268 = vector.shape_cast %267 : vector<1x8x8x48xf32> to vector<8x8x48xf32>
    %269 = vector.extract_strided_slice %61 {offsets = [25, 0], sizes = [1, 48], strides = [1, 1]} : vector<27x48xf32> to vector<1x48xf32>
    %270 = vector.shape_cast %269 : vector<1x48xf32> to vector<48xf32>
    %271 = vector.shape_cast %270 : vector<48xf32> to vector<1x1x48xf32>
    %272 = vector.broadcast %271 : vector<1x1x48xf32> to vector<8x8x48xf32>
    %273 = arith.mulf %268, %272 : vector<8x8x48xf32>
    %274 = arith.addf %266, %273 : vector<8x8x48xf32>
    %c2_184 = arith.constant 2 : index
    %c2_185 = arith.constant 2 : index
    %c2_186 = arith.constant 2 : index
    %c0_187 = arith.constant 0 : index
    %275 = vector.load %arg12[%c2_184, %c2_185, %c2_186, %c0_187] : memref<6x10x10x48xf32, #tpu.memory_space<vmem>>, vector<1x8x8x48xf32>
    %276 = vector.shape_cast %275 : vector<1x8x8x48xf32> to vector<8x8x48xf32>
    %277 = vector.extract_strided_slice %61 {offsets = [26, 0], sizes = [1, 48], strides = [1, 1]} : vector<27x48xf32> to vector<1x48xf32>
    %278 = vector.shape_cast %277 : vector<1x48xf32> to vector<48xf32>
    %279 = vector.shape_cast %278 : vector<48xf32> to vector<1x1x48xf32>
    %280 = vector.broadcast %279 : vector<1x1x48xf32> to vector<8x8x48xf32>
    %281 = arith.mulf %276, %280 : vector<8x8x48xf32>
    %282 = arith.addf %274, %281 : vector<8x8x48xf32>
    %c0_188 = arith.constant 0 : index
    %c0_189 = arith.constant 0 : index
    %c0_190 = arith.constant 0 : index
    %283 = vector.load %arg13[%c0_188, %c0_189, %c0_190] : memref<8x8x48xf32, #tpu.memory_space<vmem>>, vector<8x8x48xf32>
    %284 = arith.addf %283, %282 : vector<8x8x48xf32>
    %c0_191 = arith.constant 0 : index
    %c0_192 = arith.constant 0 : index
    %c0_193 = arith.constant 0 : index
    %285 = vector.load %arg13[%c0_191, %c0_192, %c0_193] : memref<8x8x48xf32, #tpu.memory_space<vmem>>, vector<8x8x48xf32>
    tpu.vector_store %arg13[%c0_191, %c0_192, %c0_193], %284 {strides = array<i32>} : memref<8x8x48xf32, #tpu.memory_space<vmem>>, vector<8x8x48xf32>,
    %c0_194 = arith.constant 0 : index
    %c0_195 = arith.constant 0 : index
    %c0_196 = arith.constant 0 : index
    %286 = vector.load %arg13[%c0_194, %c0_195, %c0_196] : memref<8x8x48xf32, #tpu.memory_space<vmem>>, vector<8x8x48xf32>
    %287 = vector.broadcast %63 : vector<1x1x48xf32> to vector<8x8x48xf32>
    %288 = arith.addf %286, %287 : vector<8x8x48xf32>
    %cst_197 = arith.constant 0.000000e+00 : f32
    %cst_198 = arith.constant 6.000000e+00 : f32
    %289 = vector.broadcast %cst_197 : f32 to vector<8x8x48xf32>
    %290 = arith.maximumf %289, %288 : vector<8x8x48xf32>
    %291 = vector.broadcast %cst_198 : f32 to vector<8x8x48xf32>
    %292 = arith.minimumf %291, %290 : vector<8x8x48xf32>
    %293 = vector.shape_cast %292 : vector<8x8x48xf32> to vector<64x48xf32>
    %cst_199 = arith.constant dense<0.000000e+00> : vector<64x8xf32>
    %294 = tpu.matmul %293, %64, %cst_199 {dimension_numbers = #tpu.dot_dimension_numbers<[1], [0], [0], [1], [0, 0, 1, 1], [], []>} : vector<64x48xf32>, vector<48x8xf32>, vector<64x8xf32> -> vector<64x8xf32>
    %295 = vector.broadcast %65 : vector<1x8xf32> to vector<64x8xf32>
    %296 = arith.addf %294, %295 : vector<64x8xf32>
    %c0_200 = arith.constant 0 : index
    %c1_201 = arith.constant 1 : index
    %c0_202 = arith.constant 0 : index
    %c0_203 = arith.constant 0 : index
    %c0_204 = arith.constant 0 : index
    %297 = vector.load %arg2[%c0_200, %c1_201, %c0_202, %c0_203, %c0_204] : memref<1x4x8x8x8xf32, #tpu.memory_space<vmem>>, vector<1x1x8x8x8xf32>
    %298 = vector.shape_cast %297 : vector<1x1x8x8x8xf32> to vector<8x8x8xf32>
    %299 = vector.shape_cast %298 : vector<8x8x8xf32> to vector<64x8xf32>
    %300 = arith.addf %296, %299 : vector<64x8xf32>
    %301 = vector.shape_cast %300 : vector<64x8xf32> to vector<8x8x8xf32>
    %c0_205 = arith.constant 0 : index
    %c0_206 = arith.constant 0 : index
    %c0_207 = arith.constant 0 : index
    %c0_208 = arith.constant 0 : index
    %c0_209 = arith.constant 0 : index
    %302 = vector.load %arg11[%c0_205, %c0_206, %c0_207, %c0_208, %c0_209] : memref<1x4x8x8x8xf32, #tpu.memory_space<vmem>>, vector<1x1x8x8x8xf32>
    %303 = vector.shape_cast %302 : vector<1x1x8x8x8xf32> to vector<8x8x8xf32>
    %304 = vector.shape_cast %301 : vector<8x8x8xf32> to vector<1x1x8x8x8xf32>
    tpu.vector_store %arg11[%c0_205, %c0_206, %c0_207, %c0_208, %c0_209], %304 {strides = array<i32>} : memref<1x4x8x8x8xf32, #tpu.memory_space<vmem>>, vector<1x1x8x8x8xf32>,
    %c1_210 = arith.constant 1 : index
    %c0_211 = arith.constant 0 : index
    %c0_212 = arith.constant 0 : index
    %c0_213 = arith.constant 0 : index
    %305 = vector.load %arg12[%c1_210, %c0_211, %c0_212, %c0_213] : memref<6x10x10x48xf32, #tpu.memory_space<vmem>>, vector<1x8x8x48xf32>
    %306 = vector.shape_cast %305 : vector<1x8x8x48xf32> to vector<8x8x48xf32>
    %307 = vector.extract_strided_slice %61 {offsets = [0, 0], sizes = [1, 48], strides = [1, 1]} : vector<27x48xf32> to vector<1x48xf32>
    %308 = vector.shape_cast %307 : vector<1x48xf32> to vector<48xf32>
    %309 = vector.shape_cast %308 : vector<48xf32> to vector<1x1x48xf32>
    %310 = vector.broadcast %309 : vector<1x1x48xf32> to vector<8x8x48xf32>
    %311 = arith.mulf %306, %310 : vector<8x8x48xf32>
    %c1_214 = arith.constant 1 : index
    %c0_215 = arith.constant 0 : index
    %c1_216 = arith.constant 1 : index
    %c0_217 = arith.constant 0 : index
    %312 = vector.load %arg12[%c1_214, %c0_215, %c1_216, %c0_217] : memref<6x10x10x48xf32, #tpu.memory_space<vmem>>, vector<1x8x8x48xf32>
    %313 = vector.shape_cast %312 : vector<1x8x8x48xf32> to vector<8x8x48xf32>
    %314 = vector.extract_strided_slice %61 {offsets = [1, 0], sizes = [1, 48], strides = [1, 1]} : vector<27x48xf32> to vector<1x48xf32>
    %315 = vector.shape_cast %314 : vector<1x48xf32> to vector<48xf32>
    %316 = vector.shape_cast %315 : vector<48xf32> to vector<1x1x48xf32>
    %317 = vector.broadcast %316 : vector<1x1x48xf32> to vector<8x8x48xf32>
    %318 = arith.mulf %313, %317 : vector<8x8x48xf32>
    %319 = arith.addf %311, %318 : vector<8x8x48xf32>
    %c1_218 = arith.constant 1 : index
    %c0_219 = arith.constant 0 : index
    %c2_220 = arith.constant 2 : index
    %c0_221 = arith.constant 0 : index
    %320 = vector.load %arg12[%c1_218, %c0_219, %c2_220, %c0_221] : memref<6x10x10x48xf32, #tpu.memory_space<vmem>>, vector<1x8x8x48xf32>
    %321 = vector.shape_cast %320 : vector<1x8x8x48xf32> to vector<8x8x48xf32>
    %322 = vector.extract_strided_slice %61 {offsets = [2, 0], sizes = [1, 48], strides = [1, 1]} : vector<27x48xf32> to vector<1x48xf32>
    %323 = vector.shape_cast %322 : vector<1x48xf32> to vector<48xf32>
    %324 = vector.shape_cast %323 : vector<48xf32> to vector<1x1x48xf32>
    %325 = vector.broadcast %324 : vector<1x1x48xf32> to vector<8x8x48xf32>
    %326 = arith.mulf %321, %325 : vector<8x8x48xf32>
    %327 = arith.addf %319, %326 : vector<8x8x48xf32>
    %c1_222 = arith.constant 1 : index
    %c1_223 = arith.constant 1 : index
    %c0_224 = arith.constant 0 : index
    %c0_225 = arith.constant 0 : index
    %328 = vector.load %arg12[%c1_222, %c1_223, %c0_224, %c0_225] : memref<6x10x10x48xf32, #tpu.memory_space<vmem>>, vector<1x8x8x48xf32>
    %329 = vector.shape_cast %328 : vector<1x8x8x48xf32> to vector<8x8x48xf32>
    %330 = vector.extract_strided_slice %61 {offsets = [3, 0], sizes = [1, 48], strides = [1, 1]} : vector<27x48xf32> to vector<1x48xf32>
    %331 = vector.shape_cast %330 : vector<1x48xf32> to vector<48xf32>
    %332 = vector.shape_cast %331 : vector<48xf32> to vector<1x1x48xf32>
    %333 = vector.broadcast %332 : vector<1x1x48xf32> to vector<8x8x48xf32>
    %334 = arith.mulf %329, %333 : vector<8x8x48xf32>
    %335 = arith.addf %327, %334 : vector<8x8x48xf32>
    %c1_226 = arith.constant 1 : index
    %c1_227 = arith.constant 1 : index
    %c1_228 = arith.constant 1 : index
    %c0_229 = arith.constant 0 : index
    %336 = vector.load %arg12[%c1_226, %c1_227, %c1_228, %c0_229] : memref<6x10x10x48xf32, #tpu.memory_space<vmem>>, vector<1x8x8x48xf32>
    %337 = vector.shape_cast %336 : vector<1x8x8x48xf32> to vector<8x8x48xf32>
    %338 = vector.extract_strided_slice %61 {offsets = [4, 0], sizes = [1, 48], strides = [1, 1]} : vector<27x48xf32> to vector<1x48xf32>
    %339 = vector.shape_cast %338 : vector<1x48xf32> to vector<48xf32>
    %340 = vector.shape_cast %339 : vector<48xf32> to vector<1x1x48xf32>
    %341 = vector.broadcast %340 : vector<1x1x48xf32> to vector<8x8x48xf32>
    %342 = arith.mulf %337, %341 : vector<8x8x48xf32>
    %343 = arith.addf %335, %342 : vector<8x8x48xf32>
    %c1_230 = arith.constant 1 : index
    %c1_231 = arith.constant 1 : index
    %c2_232 = arith.constant 2 : index
    %c0_233 = arith.constant 0 : index
    %344 = vector.load %arg12[%c1_230, %c1_231, %c2_232, %c0_233] : memref<6x10x10x48xf32, #tpu.memory_space<vmem>>, vector<1x8x8x48xf32>
    %345 = vector.shape_cast %344 : vector<1x8x8x48xf32> to vector<8x8x48xf32>
    %346 = vector.extract_strided_slice %61 {offsets = [5, 0], sizes = [1, 48], strides = [1, 1]} : vector<27x48xf32> to vector<1x48xf32>
    %347 = vector.shape_cast %346 : vector<1x48xf32> to vector<48xf32>
    %348 = vector.shape_cast %347 : vector<48xf32> to vector<1x1x48xf32>
    %349 = vector.broadcast %348 : vector<1x1x48xf32> to vector<8x8x48xf32>
    %350 = arith.mulf %345, %349 : vector<8x8x48xf32>
    %351 = arith.addf %343, %350 : vector<8x8x48xf32>
    %c1_234 = arith.constant 1 : index
    %c2_235 = arith.constant 2 : index
    %c0_236 = arith.constant 0 : index
    %c0_237 = arith.constant 0 : index
    %352 = vector.load %arg12[%c1_234, %c2_235, %c0_236, %c0_237] : memref<6x10x10x48xf32, #tpu.memory_space<vmem>>, vector<1x8x8x48xf32>
    %353 = vector.shape_cast %352 : vector<1x8x8x48xf32> to vector<8x8x48xf32>
    %354 = vector.extract_strided_slice %61 {offsets = [6, 0], sizes = [1, 48], strides = [1, 1]} : vector<27x48xf32> to vector<1x48xf32>
    %355 = vector.shape_cast %354 : vector<1x48xf32> to vector<48xf32>
    %356 = vector.shape_cast %355 : vector<48xf32> to vector<1x1x48xf32>
    %357 = vector.broadcast %356 : vector<1x1x48xf32> to vector<8x8x48xf32>
    %358 = arith.mulf %353, %357 : vector<8x8x48xf32>
    %359 = arith.addf %351, %358 : vector<8x8x48xf32>
    %c1_238 = arith.constant 1 : index
    %c2_239 = arith.constant 2 : index
    %c1_240 = arith.constant 1 : index
    %c0_241 = arith.constant 0 : index
    %360 = vector.load %arg12[%c1_238, %c2_239, %c1_240, %c0_241] : memref<6x10x10x48xf32, #tpu.memory_space<vmem>>, vector<1x8x8x48xf32>
    %361 = vector.shape_cast %360 : vector<1x8x8x48xf32> to vector<8x8x48xf32>
    %362 = vector.extract_strided_slice %61 {offsets = [7, 0], sizes = [1, 48], strides = [1, 1]} : vector<27x48xf32> to vector<1x48xf32>
    %363 = vector.shape_cast %362 : vector<1x48xf32> to vector<48xf32>
    %364 = vector.shape_cast %363 : vector<48xf32> to vector<1x1x48xf32>
    %365 = vector.broadcast %364 : vector<1x1x48xf32> to vector<8x8x48xf32>
    %366 = arith.mulf %361, %365 : vector<8x8x48xf32>
    %367 = arith.addf %359, %366 : vector<8x8x48xf32>
    %c1_242 = arith.constant 1 : index
    %c2_243 = arith.constant 2 : index
    %c2_244 = arith.constant 2 : index
    %c0_245 = arith.constant 0 : index
    %368 = vector.load %arg12[%c1_242, %c2_243, %c2_244, %c0_245] : memref<6x10x10x48xf32, #tpu.memory_space<vmem>>, vector<1x8x8x48xf32>
    %369 = vector.shape_cast %368 : vector<1x8x8x48xf32> to vector<8x8x48xf32>
    %370 = vector.extract_strided_slice %61 {offsets = [8, 0], sizes = [1, 48], strides = [1, 1]} : vector<27x48xf32> to vector<1x48xf32>
    %371 = vector.shape_cast %370 : vector<1x48xf32> to vector<48xf32>
    %372 = vector.shape_cast %371 : vector<48xf32> to vector<1x1x48xf32>
    %373 = vector.broadcast %372 : vector<1x1x48xf32> to vector<8x8x48xf32>
    %374 = arith.mulf %369, %373 : vector<8x8x48xf32>
    %375 = arith.addf %367, %374 : vector<8x8x48xf32>
    %c0_246 = arith.constant 0 : index
    %c0_247 = arith.constant 0 : index
    %c0_248 = arith.constant 0 : index
    %376 = vector.load %arg13[%c0_246, %c0_247, %c0_248] : memref<8x8x48xf32, #tpu.memory_space<vmem>>, vector<8x8x48xf32>
    tpu.vector_store %arg13[%c0_246, %c0_247, %c0_248], %375 {strides = array<i32>} : memref<8x8x48xf32, #tpu.memory_space<vmem>>, vector<8x8x48xf32>,
    %c2_249 = arith.constant 2 : index
    %c0_250 = arith.constant 0 : index
    %c0_251 = arith.constant 0 : index
    %c0_252 = arith.constant 0 : index
    %377 = vector.load %arg12[%c2_249, %c0_250, %c0_251, %c0_252] : memref<6x10x10x48xf32, #tpu.memory_space<vmem>>, vector<1x8x8x48xf32>
    %378 = vector.shape_cast %377 : vector<1x8x8x48xf32> to vector<8x8x48xf32>
    %379 = vector.extract_strided_slice %61 {offsets = [9, 0], sizes = [1, 48], strides = [1, 1]} : vector<27x48xf32> to vector<1x48xf32>
    %380 = vector.shape_cast %379 : vector<1x48xf32> to vector<48xf32>
    %381 = vector.shape_cast %380 : vector<48xf32> to vector<1x1x48xf32>
    %382 = vector.broadcast %381 : vector<1x1x48xf32> to vector<8x8x48xf32>
    %383 = arith.mulf %378, %382 : vector<8x8x48xf32>
    %c2_253 = arith.constant 2 : index
    %c0_254 = arith.constant 0 : index
    %c1_255 = arith.constant 1 : index
    %c0_256 = arith.constant 0 : index
    %384 = vector.load %arg12[%c2_253, %c0_254, %c1_255, %c0_256] : memref<6x10x10x48xf32, #tpu.memory_space<vmem>>, vector<1x8x8x48xf32>
    %385 = vector.shape_cast %384 : vector<1x8x8x48xf32> to vector<8x8x48xf32>
    %386 = vector.extract_strided_slice %61 {offsets = [10, 0], sizes = [1, 48], strides = [1, 1]} : vector<27x48xf32> to vector<1x48xf32>
    %387 = vector.shape_cast %386 : vector<1x48xf32> to vector<48xf32>
    %388 = vector.shape_cast %387 : vector<48xf32> to vector<1x1x48xf32>
    %389 = vector.broadcast %388 : vector<1x1x48xf32> to vector<8x8x48xf32>
    %390 = arith.mulf %385, %389 : vector<8x8x48xf32>
    %391 = arith.addf %383, %390 : vector<8x8x48xf32>
    %c2_257 = arith.constant 2 : index
    %c0_258 = arith.constant 0 : index
    %c2_259 = arith.constant 2 : index
    %c0_260 = arith.constant 0 : index
    %392 = vector.load %arg12[%c2_257, %c0_258, %c2_259, %c0_260] : memref<6x10x10x48xf32, #tpu.memory_space<vmem>>, vector<1x8x8x48xf32>
    %393 = vector.shape_cast %392 : vector<1x8x8x48xf32> to vector<8x8x48xf32>
    %394 = vector.extract_strided_slice %61 {offsets = [11, 0], sizes = [1, 48], strides = [1, 1]} : vector<27x48xf32> to vector<1x48xf32>
    %395 = vector.shape_cast %394 : vector<1x48xf32> to vector<48xf32>
    %396 = vector.shape_cast %395 : vector<48xf32> to vector<1x1x48xf32>
    %397 = vector.broadcast %396 : vector<1x1x48xf32> to vector<8x8x48xf32>
    %398 = arith.mulf %393, %397 : vector<8x8x48xf32>
    %399 = arith.addf %391, %398 : vector<8x8x48xf32>
    %c2_261 = arith.constant 2 : index
    %c1_262 = arith.constant 1 : index
    %c0_263 = arith.constant 0 : index
    %c0_264 = arith.constant 0 : index
    %400 = vector.load %arg12[%c2_261, %c1_262, %c0_263, %c0_264] : memref<6x10x10x48xf32, #tpu.memory_space<vmem>>, vector<1x8x8x48xf32>
    %401 = vector.shape_cast %400 : vector<1x8x8x48xf32> to vector<8x8x48xf32>
    %402 = vector.extract_strided_slice %61 {offsets = [12, 0], sizes = [1, 48], strides = [1, 1]} : vector<27x48xf32> to vector<1x48xf32>
    %403 = vector.shape_cast %402 : vector<1x48xf32> to vector<48xf32>
    %404 = vector.shape_cast %403 : vector<48xf32> to vector<1x1x48xf32>
    %405 = vector.broadcast %404 : vector<1x1x48xf32> to vector<8x8x48xf32>
    %406 = arith.mulf %401, %405 : vector<8x8x48xf32>
    %407 = arith.addf %399, %406 : vector<8x8x48xf32>
    %c2_265 = arith.constant 2 : index
    %c1_266 = arith.constant 1 : index
    %c1_267 = arith.constant 1 : index
    %c0_268 = arith.constant 0 : index
    %408 = vector.load %arg12[%c2_265, %c1_266, %c1_267, %c0_268] : memref<6x10x10x48xf32, #tpu.memory_space<vmem>>, vector<1x8x8x48xf32>
    %409 = vector.shape_cast %408 : vector<1x8x8x48xf32> to vector<8x8x48xf32>
    %410 = vector.extract_strided_slice %61 {offsets = [13, 0], sizes = [1, 48], strides = [1, 1]} : vector<27x48xf32> to vector<1x48xf32>
    %411 = vector.shape_cast %410 : vector<1x48xf32> to vector<48xf32>
    %412 = vector.shape_cast %411 : vector<48xf32> to vector<1x1x48xf32>
    %413 = vector.broadcast %412 : vector<1x1x48xf32> to vector<8x8x48xf32>
    %414 = arith.mulf %409, %413 : vector<8x8x48xf32>
    %415 = arith.addf %407, %414 : vector<8x8x48xf32>
    %c2_269 = arith.constant 2 : index
    %c1_270 = arith.constant 1 : index
    %c2_271 = arith.constant 2 : index
    %c0_272 = arith.constant 0 : index
    %416 = vector.load %arg12[%c2_269, %c1_270, %c2_271, %c0_272] : memref<6x10x10x48xf32, #tpu.memory_space<vmem>>, vector<1x8x8x48xf32>
    %417 = vector.shape_cast %416 : vector<1x8x8x48xf32> to vector<8x8x48xf32>
    %418 = vector.extract_strided_slice %61 {offsets = [14, 0], sizes = [1, 48], strides = [1, 1]} : vector<27x48xf32> to vector<1x48xf32>
    %419 = vector.shape_cast %418 : vector<1x48xf32> to vector<48xf32>
    %420 = vector.shape_cast %419 : vector<48xf32> to vector<1x1x48xf32>
    %421 = vector.broadcast %420 : vector<1x1x48xf32> to vector<8x8x48xf32>
    %422 = arith.mulf %417, %421 : vector<8x8x48xf32>
    %423 = arith.addf %415, %422 : vector<8x8x48xf32>
    %c2_273 = arith.constant 2 : index
    %c2_274 = arith.constant 2 : index
    %c0_275 = arith.constant 0 : index
    %c0_276 = arith.constant 0 : index
    %424 = vector.load %arg12[%c2_273, %c2_274, %c0_275, %c0_276] : memref<6x10x10x48xf32, #tpu.memory_space<vmem>>, vector<1x8x8x48xf32>
    %425 = vector.shape_cast %424 : vector<1x8x8x48xf32> to vector<8x8x48xf32>
    %426 = vector.extract_strided_slice %61 {offsets = [15, 0], sizes = [1, 48], strides = [1, 1]} : vector<27x48xf32> to vector<1x48xf32>
    %427 = vector.shape_cast %426 : vector<1x48xf32> to vector<48xf32>
    %428 = vector.shape_cast %427 : vector<48xf32> to vector<1x1x48xf32>
    %429 = vector.broadcast %428 : vector<1x1x48xf32> to vector<8x8x48xf32>
    %430 = arith.mulf %425, %429 : vector<8x8x48xf32>
    %431 = arith.addf %423, %430 : vector<8x8x48xf32>
    %c2_277 = arith.constant 2 : index
    %c2_278 = arith.constant 2 : index
    %c1_279 = arith.constant 1 : index
    %c0_280 = arith.constant 0 : index
    %432 = vector.load %arg12[%c2_277, %c2_278, %c1_279, %c0_280] : memref<6x10x10x48xf32, #tpu.memory_space<vmem>>, vector<1x8x8x48xf32>
    %433 = vector.shape_cast %432 : vector<1x8x8x48xf32> to vector<8x8x48xf32>
    %434 = vector.extract_strided_slice %61 {offsets = [16, 0], sizes = [1, 48], strides = [1, 1]} : vector<27x48xf32> to vector<1x48xf32>
    %435 = vector.shape_cast %434 : vector<1x48xf32> to vector<48xf32>
    %436 = vector.shape_cast %435 : vector<48xf32> to vector<1x1x48xf32>
    %437 = vector.broadcast %436 : vector<1x1x48xf32> to vector<8x8x48xf32>
    %438 = arith.mulf %433, %437 : vector<8x8x48xf32>
    %439 = arith.addf %431, %438 : vector<8x8x48xf32>
    %c2_281 = arith.constant 2 : index
    %c2_282 = arith.constant 2 : index
    %c2_283 = arith.constant 2 : index
    %c0_284 = arith.constant 0 : index
    %440 = vector.load %arg12[%c2_281, %c2_282, %c2_283, %c0_284] : memref<6x10x10x48xf32, #tpu.memory_space<vmem>>, vector<1x8x8x48xf32>
    %441 = vector.shape_cast %440 : vector<1x8x8x48xf32> to vector<8x8x48xf32>
    %442 = vector.extract_strided_slice %61 {offsets = [17, 0], sizes = [1, 48], strides = [1, 1]} : vector<27x48xf32> to vector<1x48xf32>
    %443 = vector.shape_cast %442 : vector<1x48xf32> to vector<48xf32>
    %444 = vector.shape_cast %443 : vector<48xf32> to vector<1x1x48xf32>
    %445 = vector.broadcast %444 : vector<1x1x48xf32> to vector<8x8x48xf32>
    %446 = arith.mulf %441, %445 : vector<8x8x48xf32>
    %447 = arith.addf %439, %446 : vector<8x8x48xf32>
    %c0_285 = arith.constant 0 : index
    %c0_286 = arith.constant 0 : index
    %c0_287 = arith.constant 0 : index
    %448 = vector.load %arg13[%c0_285, %c0_286, %c0_287] : memref<8x8x48xf32, #tpu.memory_space<vmem>>, vector<8x8x48xf32>
    %449 = arith.addf %448, %447 : vector<8x8x48xf32>
    %c0_288 = arith.constant 0 : index
    %c0_289 = arith.constant 0 : index
    %c0_290 = arith.constant 0 : index
    %450 = vector.load %arg13[%c0_288, %c0_289, %c0_290] : memref<8x8x48xf32, #tpu.memory_space<vmem>>, vector<8x8x48xf32>
    tpu.vector_store %arg13[%c0_288, %c0_289, %c0_290], %449 {strides = array<i32>} : memref<8x8x48xf32, #tpu.memory_space<vmem>>, vector<8x8x48xf32>,
    %c3 = arith.constant 3 : index
    %c0_291 = arith.constant 0 : index
    %c0_292 = arith.constant 0 : index
    %c0_293 = arith.constant 0 : index
    %451 = vector.load %arg12[%c3, %c0_291, %c0_292, %c0_293] : memref<6x10x10x48xf32, #tpu.memory_space<vmem>>, vector<1x8x8x48xf32>
    %452 = vector.shape_cast %451 : vector<1x8x8x48xf32> to vector<8x8x48xf32>
    %453 = vector.extract_strided_slice %61 {offsets = [18, 0], sizes = [1, 48], strides = [1, 1]} : vector<27x48xf32> to vector<1x48xf32>
    %454 = vector.shape_cast %453 : vector<1x48xf32> to vector<48xf32>
    %455 = vector.shape_cast %454 : vector<48xf32> to vector<1x1x48xf32>
    %456 = vector.broadcast %455 : vector<1x1x48xf32> to vector<8x8x48xf32>
    %457 = arith.mulf %452, %456 : vector<8x8x48xf32>
    %c3_294 = arith.constant 3 : index
    %c0_295 = arith.constant 0 : index
    %c1_296 = arith.constant 1 : index
    %c0_297 = arith.constant 0 : index
    %458 = vector.load %arg12[%c3_294, %c0_295, %c1_296, %c0_297] : memref<6x10x10x48xf32, #tpu.memory_space<vmem>>, vector<1x8x8x48xf32>
    %459 = vector.shape_cast %458 : vector<1x8x8x48xf32> to vector<8x8x48xf32>
    %460 = vector.extract_strided_slice %61 {offsets = [19, 0], sizes = [1, 48], strides = [1, 1]} : vector<27x48xf32> to vector<1x48xf32>
    %461 = vector.shape_cast %460 : vector<1x48xf32> to vector<48xf32>
    %462 = vector.shape_cast %461 : vector<48xf32> to vector<1x1x48xf32>
    %463 = vector.broadcast %462 : vector<1x1x48xf32> to vector<8x8x48xf32>
    %464 = arith.mulf %459, %463 : vector<8x8x48xf32>
    %465 = arith.addf %457, %464 : vector<8x8x48xf32>
    %c3_298 = arith.constant 3 : index
    %c0_299 = arith.constant 0 : index
    %c2_300 = arith.constant 2 : index
    %c0_301 = arith.constant 0 : index
    %466 = vector.load %arg12[%c3_298, %c0_299, %c2_300, %c0_301] : memref<6x10x10x48xf32, #tpu.memory_space<vmem>>, vector<1x8x8x48xf32>
    %467 = vector.shape_cast %466 : vector<1x8x8x48xf32> to vector<8x8x48xf32>
    %468 = vector.extract_strided_slice %61 {offsets = [20, 0], sizes = [1, 48], strides = [1, 1]} : vector<27x48xf32> to vector<1x48xf32>
    %469 = vector.shape_cast %468 : vector<1x48xf32> to vector<48xf32>
    %470 = vector.shape_cast %469 : vector<48xf32> to vector<1x1x48xf32>
    %471 = vector.broadcast %470 : vector<1x1x48xf32> to vector<8x8x48xf32>
    %472 = arith.mulf %467, %471 : vector<8x8x48xf32>
    %473 = arith.addf %465, %472 : vector<8x8x48xf32>
    %c3_302 = arith.constant 3 : index
    %c1_303 = arith.constant 1 : index
    %c0_304 = arith.constant 0 : index
    %c0_305 = arith.constant 0 : index
    %474 = vector.load %arg12[%c3_302, %c1_303, %c0_304, %c0_305] : memref<6x10x10x48xf32, #tpu.memory_space<vmem>>, vector<1x8x8x48xf32>
    %475 = vector.shape_cast %474 : vector<1x8x8x48xf32> to vector<8x8x48xf32>
    %476 = vector.extract_strided_slice %61 {offsets = [21, 0], sizes = [1, 48], strides = [1, 1]} : vector<27x48xf32> to vector<1x48xf32>
    %477 = vector.shape_cast %476 : vector<1x48xf32> to vector<48xf32>
    %478 = vector.shape_cast %477 : vector<48xf32> to vector<1x1x48xf32>
    %479 = vector.broadcast %478 : vector<1x1x48xf32> to vector<8x8x48xf32>
    %480 = arith.mulf %475, %479 : vector<8x8x48xf32>
    %481 = arith.addf %473, %480 : vector<8x8x48xf32>
    %c3_306 = arith.constant 3 : index
    %c1_307 = arith.constant 1 : index
    %c1_308 = arith.constant 1 : index
    %c0_309 = arith.constant 0 : index
    %482 = vector.load %arg12[%c3_306, %c1_307, %c1_308, %c0_309] : memref<6x10x10x48xf32, #tpu.memory_space<vmem>>, vector<1x8x8x48xf32>
    %483 = vector.shape_cast %482 : vector<1x8x8x48xf32> to vector<8x8x48xf32>
    %484 = vector.extract_strided_slice %61 {offsets = [22, 0], sizes = [1, 48], strides = [1, 1]} : vector<27x48xf32> to vector<1x48xf32>
    %485 = vector.shape_cast %484 : vector<1x48xf32> to vector<48xf32>
    %486 = vector.shape_cast %485 : vector<48xf32> to vector<1x1x48xf32>
    %487 = vector.broadcast %486 : vector<1x1x48xf32> to vector<8x8x48xf32>
    %488 = arith.mulf %483, %487 : vector<8x8x48xf32>
    %489 = arith.addf %481, %488 : vector<8x8x48xf32>
    %c3_310 = arith.constant 3 : index
    %c1_311 = arith.constant 1 : index
    %c2_312 = arith.constant 2 : index
    %c0_313 = arith.constant 0 : index
    %490 = vector.load %arg12[%c3_310, %c1_311, %c2_312, %c0_313] : memref<6x10x10x48xf32, #tpu.memory_space<vmem>>, vector<1x8x8x48xf32>
    %491 = vector.shape_cast %490 : vector<1x8x8x48xf32> to vector<8x8x48xf32>
    %492 = vector.extract_strided_slice %61 {offsets = [23, 0], sizes = [1, 48], strides = [1, 1]} : vector<27x48xf32> to vector<1x48xf32>
    %493 = vector.shape_cast %492 : vector<1x48xf32> to vector<48xf32>
    %494 = vector.shape_cast %493 : vector<48xf32> to vector<1x1x48xf32>
    %495 = vector.broadcast %494 : vector<1x1x48xf32> to vector<8x8x48xf32>
    %496 = arith.mulf %491, %495 : vector<8x8x48xf32>
    %497 = arith.addf %489, %496 : vector<8x8x48xf32>
    %c3_314 = arith.constant 3 : index
    %c2_315 = arith.constant 2 : index
    %c0_316 = arith.constant 0 : index
    %c0_317 = arith.constant 0 : index
    %498 = vector.load %arg12[%c3_314, %c2_315, %c0_316, %c0_317] : memref<6x10x10x48xf32, #tpu.memory_space<vmem>>, vector<1x8x8x48xf32>
    %499 = vector.shape_cast %498 : vector<1x8x8x48xf32> to vector<8x8x48xf32>
    %500 = vector.extract_strided_slice %61 {offsets = [24, 0], sizes = [1, 48], strides = [1, 1]} : vector<27x48xf32> to vector<1x48xf32>
    %501 = vector.shape_cast %500 : vector<1x48xf32> to vector<48xf32>
    %502 = vector.shape_cast %501 : vector<48xf32> to vector<1x1x48xf32>
    %503 = vector.broadcast %502 : vector<1x1x48xf32> to vector<8x8x48xf32>
    %504 = arith.mulf %499, %503 : vector<8x8x48xf32>
    %505 = arith.addf %497, %504 : vector<8x8x48xf32>
    %c3_318 = arith.constant 3 : index
    %c2_319 = arith.constant 2 : index
    %c1_320 = arith.constant 1 : index
    %c0_321 = arith.constant 0 : index
    %506 = vector.load %arg12[%c3_318, %c2_319, %c1_320, %c0_321] : memref<6x10x10x48xf32, #tpu.memory_space<vmem>>, vector<1x8x8x48xf32>
    %507 = vector.shape_cast %506 : vector<1x8x8x48xf32> to vector<8x8x48xf32>
    %508 = vector.extract_strided_slice %61 {offsets = [25, 0], sizes = [1, 48], strides = [1, 1]} : vector<27x48xf32> to vector<1x48xf32>
    %509 = vector.shape_cast %508 : vector<1x48xf32> to vector<48xf32>
    %510 = vector.shape_cast %509 : vector<48xf32> to vector<1x1x48xf32>
    %511 = vector.broadcast %510 : vector<1x1x48xf32> to vector<8x8x48xf32>
    %512 = arith.mulf %507, %511 : vector<8x8x48xf32>
    %513 = arith.addf %505, %512 : vector<8x8x48xf32>
    %c3_322 = arith.constant 3 : index
    %c2_323 = arith.constant 2 : index
    %c2_324 = arith.constant 2 : index
    %c0_325 = arith.constant 0 : index
    %514 = vector.load %arg12[%c3_322, %c2_323, %c2_324, %c0_325] : memref<6x10x10x48xf32, #tpu.memory_space<vmem>>, vector<1x8x8x48xf32>
    %515 = vector.shape_cast %514 : vector<1x8x8x48xf32> to vector<8x8x48xf32>
    %516 = vector.extract_strided_slice %61 {offsets = [26, 0], sizes = [1, 48], strides = [1, 1]} : vector<27x48xf32> to vector<1x48xf32>
    %517 = vector.shape_cast %516 : vector<1x48xf32> to vector<48xf32>
    %518 = vector.shape_cast %517 : vector<48xf32> to vector<1x1x48xf32>
    %519 = vector.broadcast %518 : vector<1x1x48xf32> to vector<8x8x48xf32>
    %520 = arith.mulf %515, %519 : vector<8x8x48xf32>
    %521 = arith.addf %513, %520 : vector<8x8x48xf32>
    %c0_326 = arith.constant 0 : index
    %c0_327 = arith.constant 0 : index
    %c0_328 = arith.constant 0 : index
    %522 = vector.load %arg13[%c0_326, %c0_327, %c0_328] : memref<8x8x48xf32, #tpu.memory_space<vmem>>, vector<8x8x48xf32>
    %523 = arith.addf %522, %521 : vector<8x8x48xf32>
    %c0_329 = arith.constant 0 : index
    %c0_330 = arith.constant 0 : index
    %c0_331 = arith.constant 0 : index
    %524 = vector.load %arg13[%c0_329, %c0_330, %c0_331] : memref<8x8x48xf32, #tpu.memory_space<vmem>>, vector<8x8x48xf32>
    tpu.vector_store %arg13[%c0_329, %c0_330, %c0_331], %523 {strides = array<i32>} : memref<8x8x48xf32, #tpu.memory_space<vmem>>, vector<8x8x48xf32>,
    %c0_332 = arith.constant 0 : index
    %c0_333 = arith.constant 0 : index
    %c0_334 = arith.constant 0 : index
    %525 = vector.load %arg13[%c0_332, %c0_333, %c0_334] : memref<8x8x48xf32, #tpu.memory_space<vmem>>, vector<8x8x48xf32>
    %526 = vector.broadcast %63 : vector<1x1x48xf32> to vector<8x8x48xf32>
    %527 = arith.addf %525, %526 : vector<8x8x48xf32>
    %cst_335 = arith.constant 0.000000e+00 : f32
    %cst_336 = arith.constant 6.000000e+00 : f32
    %528 = vector.broadcast %cst_335 : f32 to vector<8x8x48xf32>
    %529 = arith.maximumf %528, %527 : vector<8x8x48xf32>
    %530 = vector.broadcast %cst_336 : f32 to vector<8x8x48xf32>
    %531 = arith.minimumf %530, %529 : vector<8x8x48xf32>
    %532 = vector.shape_cast %531 : vector<8x8x48xf32> to vector<64x48xf32>
    %cst_337 = arith.constant dense<0.000000e+00> : vector<64x8xf32>
    %533 = tpu.matmul %532, %64, %cst_337 {dimension_numbers = #tpu.dot_dimension_numbers<[1], [0], [0], [1], [0, 0, 1, 1], [], []>} : vector<64x48xf32>, vector<48x8xf32>, vector<64x8xf32> -> vector<64x8xf32>
    %534 = vector.broadcast %65 : vector<1x8xf32> to vector<64x8xf32>
    %535 = arith.addf %533, %534 : vector<64x8xf32>
    %c0_338 = arith.constant 0 : index
    %c2_339 = arith.constant 2 : index
    %c0_340 = arith.constant 0 : index
    %c0_341 = arith.constant 0 : index
    %c0_342 = arith.constant 0 : index
    %536 = vector.load %arg2[%c0_338, %c2_339, %c0_340, %c0_341, %c0_342] : memref<1x4x8x8x8xf32, #tpu.memory_space<vmem>>, vector<1x1x8x8x8xf32>
    %537 = vector.shape_cast %536 : vector<1x1x8x8x8xf32> to vector<8x8x8xf32>
    %538 = vector.shape_cast %537 : vector<8x8x8xf32> to vector<64x8xf32>
    %539 = arith.addf %535, %538 : vector<64x8xf32>
    %540 = vector.shape_cast %539 : vector<64x8xf32> to vector<8x8x8xf32>
    %c0_343 = arith.constant 0 : index
    %c1_344 = arith.constant 1 : index
    %c0_345 = arith.constant 0 : index
    %c0_346 = arith.constant 0 : index
    %c0_347 = arith.constant 0 : index
    %541 = vector.load %arg11[%c0_343, %c1_344, %c0_345, %c0_346, %c0_347] : memref<1x4x8x8x8xf32, #tpu.memory_space<vmem>>, vector<1x1x8x8x8xf32>
    %542 = vector.shape_cast %541 : vector<1x1x8x8x8xf32> to vector<8x8x8xf32>
    %543 = vector.shape_cast %540 : vector<8x8x8xf32> to vector<1x1x8x8x8xf32>
    tpu.vector_store %arg11[%c0_343, %c1_344, %c0_345, %c0_346, %c0_347], %543 {strides = array<i32>} : memref<1x4x8x8x8xf32, #tpu.memory_space<vmem>>, vector<1x1x8x8x8xf32>,
    %c2_348 = arith.constant 2 : index
    %c0_349 = arith.constant 0 : index
    %c0_350 = arith.constant 0 : index
    %c0_351 = arith.constant 0 : index
    %544 = vector.load %arg12[%c2_348, %c0_349, %c0_350, %c0_351] : memref<6x10x10x48xf32, #tpu.memory_space<vmem>>, vector<1x8x8x48xf32>
    %545 = vector.shape_cast %544 : vector<1x8x8x48xf32> to vector<8x8x48xf32>
    %546 = vector.extract_strided_slice %61 {offsets = [0, 0], sizes = [1, 48], strides = [1, 1]} : vector<27x48xf32> to vector<1x48xf32>
    %547 = vector.shape_cast %546 : vector<1x48xf32> to vector<48xf32>
    %548 = vector.shape_cast %547 : vector<48xf32> to vector<1x1x48xf32>
    %549 = vector.broadcast %548 : vector<1x1x48xf32> to vector<8x8x48xf32>
    %550 = arith.mulf %545, %549 : vector<8x8x48xf32>
    %c2_352 = arith.constant 2 : index
    %c0_353 = arith.constant 0 : index
    %c1_354 = arith.constant 1 : index
    %c0_355 = arith.constant 0 : index
    %551 = vector.load %arg12[%c2_352, %c0_353, %c1_354, %c0_355] : memref<6x10x10x48xf32, #tpu.memory_space<vmem>>, vector<1x8x8x48xf32>
    %552 = vector.shape_cast %551 : vector<1x8x8x48xf32> to vector<8x8x48xf32>
    %553 = vector.extract_strided_slice %61 {offsets = [1, 0], sizes = [1, 48], strides = [1, 1]} : vector<27x48xf32> to vector<1x48xf32>
    %554 = vector.shape_cast %553 : vector<1x48xf32> to vector<48xf32>
    %555 = vector.shape_cast %554 : vector<48xf32> to vector<1x1x48xf32>
    %556 = vector.broadcast %555 : vector<1x1x48xf32> to vector<8x8x48xf32>
    %557 = arith.mulf %552, %556 : vector<8x8x48xf32>
    %558 = arith.addf %550, %557 : vector<8x8x48xf32>
    %c2_356 = arith.constant 2 : index
    %c0_357 = arith.constant 0 : index
    %c2_358 = arith.constant 2 : index
    %c0_359 = arith.constant 0 : index
    %559 = vector.load %arg12[%c2_356, %c0_357, %c2_358, %c0_359] : memref<6x10x10x48xf32, #tpu.memory_space<vmem>>, vector<1x8x8x48xf32>
    %560 = vector.shape_cast %559 : vector<1x8x8x48xf32> to vector<8x8x48xf32>
    %561 = vector.extract_strided_slice %61 {offsets = [2, 0], sizes = [1, 48], strides = [1, 1]} : vector<27x48xf32> to vector<1x48xf32>
    %562 = vector.shape_cast %561 : vector<1x48xf32> to vector<48xf32>
    %563 = vector.shape_cast %562 : vector<48xf32> to vector<1x1x48xf32>
    %564 = vector.broadcast %563 : vector<1x1x48xf32> to vector<8x8x48xf32>
    %565 = arith.mulf %560, %564 : vector<8x8x48xf32>
    %566 = arith.addf %558, %565 : vector<8x8x48xf32>
    %c2_360 = arith.constant 2 : index
    %c1_361 = arith.constant 1 : index
    %c0_362 = arith.constant 0 : index
    %c0_363 = arith.constant 0 : index
    %567 = vector.load %arg12[%c2_360, %c1_361, %c0_362, %c0_363] : memref<6x10x10x48xf32, #tpu.memory_space<vmem>>, vector<1x8x8x48xf32>
    %568 = vector.shape_cast %567 : vector<1x8x8x48xf32> to vector<8x8x48xf32>
    %569 = vector.extract_strided_slice %61 {offsets = [3, 0], sizes = [1, 48], strides = [1, 1]} : vector<27x48xf32> to vector<1x48xf32>
    %570 = vector.shape_cast %569 : vector<1x48xf32> to vector<48xf32>
    %571 = vector.shape_cast %570 : vector<48xf32> to vector<1x1x48xf32>
    %572 = vector.broadcast %571 : vector<1x1x48xf32> to vector<8x8x48xf32>
    %573 = arith.mulf %568, %572 : vector<8x8x48xf32>
    %574 = arith.addf %566, %573 : vector<8x8x48xf32>
    %c2_364 = arith.constant 2 : index
    %c1_365 = arith.constant 1 : index
    %c1_366 = arith.constant 1 : index
    %c0_367 = arith.constant 0 : index
    %575 = vector.load %arg12[%c2_364, %c1_365, %c1_366, %c0_367] : memref<6x10x10x48xf32, #tpu.memory_space<vmem>>, vector<1x8x8x48xf32>
    %576 = vector.shape_cast %575 : vector<1x8x8x48xf32> to vector<8x8x48xf32>
    %577 = vector.extract_strided_slice %61 {offsets = [4, 0], sizes = [1, 48], strides = [1, 1]} : vector<27x48xf32> to vector<1x48xf32>
    %578 = vector.shape_cast %577 : vector<1x48xf32> to vector<48xf32>
    %579 = vector.shape_cast %578 : vector<48xf32> to vector<1x1x48xf32>
    %580 = vector.broadcast %579 : vector<1x1x48xf32> to vector<8x8x48xf32>
    %581 = arith.mulf %576, %580 : vector<8x8x48xf32>
    %582 = arith.addf %574, %581 : vector<8x8x48xf32>
    %c2_368 = arith.constant 2 : index
    %c1_369 = arith.constant 1 : index
    %c2_370 = arith.constant 2 : index
    %c0_371 = arith.constant 0 : index
    %583 = vector.load %arg12[%c2_368, %c1_369, %c2_370, %c0_371] : memref<6x10x10x48xf32, #tpu.memory_space<vmem>>, vector<1x8x8x48xf32>
    %584 = vector.shape_cast %583 : vector<1x8x8x48xf32> to vector<8x8x48xf32>
    %585 = vector.extract_strided_slice %61 {offsets = [5, 0], sizes = [1, 48], strides = [1, 1]} : vector<27x48xf32> to vector<1x48xf32>
    %586 = vector.shape_cast %585 : vector<1x48xf32> to vector<48xf32>
    %587 = vector.shape_cast %586 : vector<48xf32> to vector<1x1x48xf32>
    %588 = vector.broadcast %587 : vector<1x1x48xf32> to vector<8x8x48xf32>
    %589 = arith.mulf %584, %588 : vector<8x8x48xf32>
    %590 = arith.addf %582, %589 : vector<8x8x48xf32>
    %c2_372 = arith.constant 2 : index
    %c2_373 = arith.constant 2 : index
    %c0_374 = arith.constant 0 : index
    %c0_375 = arith.constant 0 : index
    %591 = vector.load %arg12[%c2_372, %c2_373, %c0_374, %c0_375] : memref<6x10x10x48xf32, #tpu.memory_space<vmem>>, vector<1x8x8x48xf32>
    %592 = vector.shape_cast %591 : vector<1x8x8x48xf32> to vector<8x8x48xf32>
    %593 = vector.extract_strided_slice %61 {offsets = [6, 0], sizes = [1, 48], strides = [1, 1]} : vector<27x48xf32> to vector<1x48xf32>
    %594 = vector.shape_cast %593 : vector<1x48xf32> to vector<48xf32>
    %595 = vector.shape_cast %594 : vector<48xf32> to vector<1x1x48xf32>
    %596 = vector.broadcast %595 : vector<1x1x48xf32> to vector<8x8x48xf32>
    %597 = arith.mulf %592, %596 : vector<8x8x48xf32>
    %598 = arith.addf %590, %597 : vector<8x8x48xf32>
    %c2_376 = arith.constant 2 : index
    %c2_377 = arith.constant 2 : index
    %c1_378 = arith.constant 1 : index
    %c0_379 = arith.constant 0 : index
    %599 = vector.load %arg12[%c2_376, %c2_377, %c1_378, %c0_379] : memref<6x10x10x48xf32, #tpu.memory_space<vmem>>, vector<1x8x8x48xf32>
    %600 = vector.shape_cast %599 : vector<1x8x8x48xf32> to vector<8x8x48xf32>
    %601 = vector.extract_strided_slice %61 {offsets = [7, 0], sizes = [1, 48], strides = [1, 1]} : vector<27x48xf32> to vector<1x48xf32>
    %602 = vector.shape_cast %601 : vector<1x48xf32> to vector<48xf32>
    %603 = vector.shape_cast %602 : vector<48xf32> to vector<1x1x48xf32>
    %604 = vector.broadcast %603 : vector<1x1x48xf32> to vector<8x8x48xf32>
    %605 = arith.mulf %600, %604 : vector<8x8x48xf32>
    %606 = arith.addf %598, %605 : vector<8x8x48xf32>
    %c2_380 = arith.constant 2 : index
    %c2_381 = arith.constant 2 : index
    %c2_382 = arith.constant 2 : index
    %c0_383 = arith.constant 0 : index
    %607 = vector.load %arg12[%c2_380, %c2_381, %c2_382, %c0_383] : memref<6x10x10x48xf32, #tpu.memory_space<vmem>>, vector<1x8x8x48xf32>
    %608 = vector.shape_cast %607 : vector<1x8x8x48xf32> to vector<8x8x48xf32>
    %609 = vector.extract_strided_slice %61 {offsets = [8, 0], sizes = [1, 48], strides = [1, 1]} : vector<27x48xf32> to vector<1x48xf32>
    %610 = vector.shape_cast %609 : vector<1x48xf32> to vector<48xf32>
    %611 = vector.shape_cast %610 : vector<48xf32> to vector<1x1x48xf32>
    %612 = vector.broadcast %611 : vector<1x1x48xf32> to vector<8x8x48xf32>
    %613 = arith.mulf %608, %612 : vector<8x8x48xf32>
    %614 = arith.addf %606, %613 : vector<8x8x48xf32>
    %c0_384 = arith.constant 0 : index
    %c0_385 = arith.constant 0 : index
    %c0_386 = arith.constant 0 : index
    %615 = vector.load %arg13[%c0_384, %c0_385, %c0_386] : memref<8x8x48xf32, #tpu.memory_space<vmem>>, vector<8x8x48xf32>
    tpu.vector_store %arg13[%c0_384, %c0_385, %c0_386], %614 {strides = array<i32>} : memref<8x8x48xf32, #tpu.memory_space<vmem>>, vector<8x8x48xf32>,
    %c3_387 = arith.constant 3 : index
    %c0_388 = arith.constant 0 : index
    %c0_389 = arith.constant 0 : index
    %c0_390 = arith.constant 0 : index
    %616 = vector.load %arg12[%c3_387, %c0_388, %c0_389, %c0_390] : memref<6x10x10x48xf32, #tpu.memory_space<vmem>>, vector<1x8x8x48xf32>
    %617 = vector.shape_cast %616 : vector<1x8x8x48xf32> to vector<8x8x48xf32>
    %618 = vector.extract_strided_slice %61 {offsets = [9, 0], sizes = [1, 48], strides = [1, 1]} : vector<27x48xf32> to vector<1x48xf32>
    %619 = vector.shape_cast %618 : vector<1x48xf32> to vector<48xf32>
    %620 = vector.shape_cast %619 : vector<48xf32> to vector<1x1x48xf32>
    %621 = vector.broadcast %620 : vector<1x1x48xf32> to vector<8x8x48xf32>
    %622 = arith.mulf %617, %621 : vector<8x8x48xf32>
    %c3_391 = arith.constant 3 : index
    %c0_392 = arith.constant 0 : index
    %c1_393 = arith.constant 1 : index
    %c0_394 = arith.constant 0 : index
    %623 = vector.load %arg12[%c3_391, %c0_392, %c1_393, %c0_394] : memref<6x10x10x48xf32, #tpu.memory_space<vmem>>, vector<1x8x8x48xf32>
    %624 = vector.shape_cast %623 : vector<1x8x8x48xf32> to vector<8x8x48xf32>
    %625 = vector.extract_strided_slice %61 {offsets = [10, 0], sizes = [1, 48], strides = [1, 1]} : vector<27x48xf32> to vector<1x48xf32>
    %626 = vector.shape_cast %625 : vector<1x48xf32> to vector<48xf32>
    %627 = vector.shape_cast %626 : vector<48xf32> to vector<1x1x48xf32>
    %628 = vector.broadcast %627 : vector<1x1x48xf32> to vector<8x8x48xf32>
    %629 = arith.mulf %624, %628 : vector<8x8x48xf32>
    %630 = arith.addf %622, %629 : vector<8x8x48xf32>
    %c3_395 = arith.constant 3 : index
    %c0_396 = arith.constant 0 : index
    %c2_397 = arith.constant 2 : index
    %c0_398 = arith.constant 0 : index
    %631 = vector.load %arg12[%c3_395, %c0_396, %c2_397, %c0_398] : memref<6x10x10x48xf32, #tpu.memory_space<vmem>>, vector<1x8x8x48xf32>
    %632 = vector.shape_cast %631 : vector<1x8x8x48xf32> to vector<8x8x48xf32>
    %633 = vector.extract_strided_slice %61 {offsets = [11, 0], sizes = [1, 48], strides = [1, 1]} : vector<27x48xf32> to vector<1x48xf32>
    %634 = vector.shape_cast %633 : vector<1x48xf32> to vector<48xf32>
    %635 = vector.shape_cast %634 : vector<48xf32> to vector<1x1x48xf32>
    %636 = vector.broadcast %635 : vector<1x1x48xf32> to vector<8x8x48xf32>
    %637 = arith.mulf %632, %636 : vector<8x8x48xf32>
    %638 = arith.addf %630, %637 : vector<8x8x48xf32>
    %c3_399 = arith.constant 3 : index
    %c1_400 = arith.constant 1 : index
    %c0_401 = arith.constant 0 : index
    %c0_402 = arith.constant 0 : index
    %639 = vector.load %arg12[%c3_399, %c1_400, %c0_401, %c0_402] : memref<6x10x10x48xf32, #tpu.memory_space<vmem>>, vector<1x8x8x48xf32>
    %640 = vector.shape_cast %639 : vector<1x8x8x48xf32> to vector<8x8x48xf32>
    %641 = vector.extract_strided_slice %61 {offsets = [12, 0], sizes = [1, 48], strides = [1, 1]} : vector<27x48xf32> to vector<1x48xf32>
    %642 = vector.shape_cast %641 : vector<1x48xf32> to vector<48xf32>
    %643 = vector.shape_cast %642 : vector<48xf32> to vector<1x1x48xf32>
    %644 = vector.broadcast %643 : vector<1x1x48xf32> to vector<8x8x48xf32>
    %645 = arith.mulf %640, %644 : vector<8x8x48xf32>
    %646 = arith.addf %638, %645 : vector<8x8x48xf32>
    %c3_403 = arith.constant 3 : index
    %c1_404 = arith.constant 1 : index
    %c1_405 = arith.constant 1 : index
    %c0_406 = arith.constant 0 : index
    %647 = vector.load %arg12[%c3_403, %c1_404, %c1_405, %c0_406] : memref<6x10x10x48xf32, #tpu.memory_space<vmem>>, vector<1x8x8x48xf32>
    %648 = vector.shape_cast %647 : vector<1x8x8x48xf32> to vector<8x8x48xf32>
    %649 = vector.extract_strided_slice %61 {offsets = [13, 0], sizes = [1, 48], strides = [1, 1]} : vector<27x48xf32> to vector<1x48xf32>
    %650 = vector.shape_cast %649 : vector<1x48xf32> to vector<48xf32>
    %651 = vector.shape_cast %650 : vector<48xf32> to vector<1x1x48xf32>
    %652 = vector.broadcast %651 : vector<1x1x48xf32> to vector<8x8x48xf32>
    %653 = arith.mulf %648, %652 : vector<8x8x48xf32>
    %654 = arith.addf %646, %653 : vector<8x8x48xf32>
    %c3_407 = arith.constant 3 : index
    %c1_408 = arith.constant 1 : index
    %c2_409 = arith.constant 2 : index
    %c0_410 = arith.constant 0 : index
    %655 = vector.load %arg12[%c3_407, %c1_408, %c2_409, %c0_410] : memref<6x10x10x48xf32, #tpu.memory_space<vmem>>, vector<1x8x8x48xf32>
    %656 = vector.shape_cast %655 : vector<1x8x8x48xf32> to vector<8x8x48xf32>
    %657 = vector.extract_strided_slice %61 {offsets = [14, 0], sizes = [1, 48], strides = [1, 1]} : vector<27x48xf32> to vector<1x48xf32>
    %658 = vector.shape_cast %657 : vector<1x48xf32> to vector<48xf32>
    %659 = vector.shape_cast %658 : vector<48xf32> to vector<1x1x48xf32>
    %660 = vector.broadcast %659 : vector<1x1x48xf32> to vector<8x8x48xf32>
    %661 = arith.mulf %656, %660 : vector<8x8x48xf32>
    %662 = arith.addf %654, %661 : vector<8x8x48xf32>
    %c3_411 = arith.constant 3 : index
    %c2_412 = arith.constant 2 : index
    %c0_413 = arith.constant 0 : index
    %c0_414 = arith.constant 0 : index
    %663 = vector.load %arg12[%c3_411, %c2_412, %c0_413, %c0_414] : memref<6x10x10x48xf32, #tpu.memory_space<vmem>>, vector<1x8x8x48xf32>
    %664 = vector.shape_cast %663 : vector<1x8x8x48xf32> to vector<8x8x48xf32>
    %665 = vector.extract_strided_slice %61 {offsets = [15, 0], sizes = [1, 48], strides = [1, 1]} : vector<27x48xf32> to vector<1x48xf32>
    %666 = vector.shape_cast %665 : vector<1x48xf32> to vector<48xf32>
    %667 = vector.shape_cast %666 : vector<48xf32> to vector<1x1x48xf32>
    %668 = vector.broadcast %667 : vector<1x1x48xf32> to vector<8x8x48xf32>
    %669 = arith.mulf %664, %668 : vector<8x8x48xf32>
    %670 = arith.addf %662, %669 : vector<8x8x48xf32>
    %c3_415 = arith.constant 3 : index
    %c2_416 = arith.constant 2 : index
    %c1_417 = arith.constant 1 : index
    %c0_418 = arith.constant 0 : index
    %671 = vector.load %arg12[%c3_415, %c2_416, %c1_417, %c0_418] : memref<6x10x10x48xf32, #tpu.memory_space<vmem>>, vector<1x8x8x48xf32>
    %672 = vector.shape_cast %671 : vector<1x8x8x48xf32> to vector<8x8x48xf32>
    %673 = vector.extract_strided_slice %61 {offsets = [16, 0], sizes = [1, 48], strides = [1, 1]} : vector<27x48xf32> to vector<1x48xf32>
    %674 = vector.shape_cast %673 : vector<1x48xf32> to vector<48xf32>
    %675 = vector.shape_cast %674 : vector<48xf32> to vector<1x1x48xf32>
    %676 = vector.broadcast %675 : vector<1x1x48xf32> to vector<8x8x48xf32>
    %677 = arith.mulf %672, %676 : vector<8x8x48xf32>
    %678 = arith.addf %670, %677 : vector<8x8x48xf32>
    %c3_419 = arith.constant 3 : index
    %c2_420 = arith.constant 2 : index
    %c2_421 = arith.constant 2 : index
    %c0_422 = arith.constant 0 : index
    %679 = vector.load %arg12[%c3_419, %c2_420, %c2_421, %c0_422] : memref<6x10x10x48xf32, #tpu.memory_space<vmem>>, vector<1x8x8x48xf32>
    %680 = vector.shape_cast %679 : vector<1x8x8x48xf32> to vector<8x8x48xf32>
    %681 = vector.extract_strided_slice %61 {offsets = [17, 0], sizes = [1, 48], strides = [1, 1]} : vector<27x48xf32> to vector<1x48xf32>
    %682 = vector.shape_cast %681 : vector<1x48xf32> to vector<48xf32>
    %683 = vector.shape_cast %682 : vector<48xf32> to vector<1x1x48xf32>
    %684 = vector.broadcast %683 : vector<1x1x48xf32> to vector<8x8x48xf32>
    %685 = arith.mulf %680, %684 : vector<8x8x48xf32>
    %686 = arith.addf %678, %685 : vector<8x8x48xf32>
    %c0_423 = arith.constant 0 : index
    %c0_424 = arith.constant 0 : index
    %c0_425 = arith.constant 0 : index
    %687 = vector.load %arg13[%c0_423, %c0_424, %c0_425] : memref<8x8x48xf32, #tpu.memory_space<vmem>>, vector<8x8x48xf32>
    %688 = arith.addf %687, %686 : vector<8x8x48xf32>
    %c0_426 = arith.constant 0 : index
    %c0_427 = arith.constant 0 : index
    %c0_428 = arith.constant 0 : index
    %689 = vector.load %arg13[%c0_426, %c0_427, %c0_428] : memref<8x8x48xf32, #tpu.memory_space<vmem>>, vector<8x8x48xf32>
    tpu.vector_store %arg13[%c0_426, %c0_427, %c0_428], %688 {strides = array<i32>} : memref<8x8x48xf32, #tpu.memory_space<vmem>>, vector<8x8x48xf32>,
    %c4_429 = arith.constant 4 : index
    %c0_430 = arith.constant 0 : index
    %c0_431 = arith.constant 0 : index
    %c0_432 = arith.constant 0 : index
    %690 = vector.load %arg12[%c4_429, %c0_430, %c0_431, %c0_432] : memref<6x10x10x48xf32, #tpu.memory_space<vmem>>, vector<1x8x8x48xf32>
    %691 = vector.shape_cast %690 : vector<1x8x8x48xf32> to vector<8x8x48xf32>
    %692 = vector.extract_strided_slice %61 {offsets = [18, 0], sizes = [1, 48], strides = [1, 1]} : vector<27x48xf32> to vector<1x48xf32>
    %693 = vector.shape_cast %692 : vector<1x48xf32> to vector<48xf32>
    %694 = vector.shape_cast %693 : vector<48xf32> to vector<1x1x48xf32>
    %695 = vector.broadcast %694 : vector<1x1x48xf32> to vector<8x8x48xf32>
    %696 = arith.mulf %691, %695 : vector<8x8x48xf32>
    %c4_433 = arith.constant 4 : index
    %c0_434 = arith.constant 0 : index
    %c1_435 = arith.constant 1 : index
    %c0_436 = arith.constant 0 : index
    %697 = vector.load %arg12[%c4_433, %c0_434, %c1_435, %c0_436] : memref<6x10x10x48xf32, #tpu.memory_space<vmem>>, vector<1x8x8x48xf32>
    %698 = vector.shape_cast %697 : vector<1x8x8x48xf32> to vector<8x8x48xf32>
    %699 = vector.extract_strided_slice %61 {offsets = [19, 0], sizes = [1, 48], strides = [1, 1]} : vector<27x48xf32> to vector<1x48xf32>
    %700 = vector.shape_cast %699 : vector<1x48xf32> to vector<48xf32>
    %701 = vector.shape_cast %700 : vector<48xf32> to vector<1x1x48xf32>
    %702 = vector.broadcast %701 : vector<1x1x48xf32> to vector<8x8x48xf32>
    %703 = arith.mulf %698, %702 : vector<8x8x48xf32>
    %704 = arith.addf %696, %703 : vector<8x8x48xf32>
    %c4_437 = arith.constant 4 : index
    %c0_438 = arith.constant 0 : index
    %c2_439 = arith.constant 2 : index
    %c0_440 = arith.constant 0 : index
    %705 = vector.load %arg12[%c4_437, %c0_438, %c2_439, %c0_440] : memref<6x10x10x48xf32, #tpu.memory_space<vmem>>, vector<1x8x8x48xf32>
    %706 = vector.shape_cast %705 : vector<1x8x8x48xf32> to vector<8x8x48xf32>
    %707 = vector.extract_strided_slice %61 {offsets = [20, 0], sizes = [1, 48], strides = [1, 1]} : vector<27x48xf32> to vector<1x48xf32>
    %708 = vector.shape_cast %707 : vector<1x48xf32> to vector<48xf32>
    %709 = vector.shape_cast %708 : vector<48xf32> to vector<1x1x48xf32>
    %710 = vector.broadcast %709 : vector<1x1x48xf32> to vector<8x8x48xf32>
    %711 = arith.mulf %706, %710 : vector<8x8x48xf32>
    %712 = arith.addf %704, %711 : vector<8x8x48xf32>
    %c4_441 = arith.constant 4 : index
    %c1_442 = arith.constant 1 : index
    %c0_443 = arith.constant 0 : index
    %c0_444 = arith.constant 0 : index
    %713 = vector.load %arg12[%c4_441, %c1_442, %c0_443, %c0_444] : memref<6x10x10x48xf32, #tpu.memory_space<vmem>>, vector<1x8x8x48xf32>
    %714 = vector.shape_cast %713 : vector<1x8x8x48xf32> to vector<8x8x48xf32>
    %715 = vector.extract_strided_slice %61 {offsets = [21, 0], sizes = [1, 48], strides = [1, 1]} : vector<27x48xf32> to vector<1x48xf32>
    %716 = vector.shape_cast %715 : vector<1x48xf32> to vector<48xf32>
    %717 = vector.shape_cast %716 : vector<48xf32> to vector<1x1x48xf32>
    %718 = vector.broadcast %717 : vector<1x1x48xf32> to vector<8x8x48xf32>
    %719 = arith.mulf %714, %718 : vector<8x8x48xf32>
    %720 = arith.addf %712, %719 : vector<8x8x48xf32>
    %c4_445 = arith.constant 4 : index
    %c1_446 = arith.constant 1 : index
    %c1_447 = arith.constant 1 : index
    %c0_448 = arith.constant 0 : index
    %721 = vector.load %arg12[%c4_445, %c1_446, %c1_447, %c0_448] : memref<6x10x10x48xf32, #tpu.memory_space<vmem>>, vector<1x8x8x48xf32>
    %722 = vector.shape_cast %721 : vector<1x8x8x48xf32> to vector<8x8x48xf32>
    %723 = vector.extract_strided_slice %61 {offsets = [22, 0], sizes = [1, 48], strides = [1, 1]} : vector<27x48xf32> to vector<1x48xf32>
    %724 = vector.shape_cast %723 : vector<1x48xf32> to vector<48xf32>
    %725 = vector.shape_cast %724 : vector<48xf32> to vector<1x1x48xf32>
    %726 = vector.broadcast %725 : vector<1x1x48xf32> to vector<8x8x48xf32>
    %727 = arith.mulf %722, %726 : vector<8x8x48xf32>
    %728 = arith.addf %720, %727 : vector<8x8x48xf32>
    %c4_449 = arith.constant 4 : index
    %c1_450 = arith.constant 1 : index
    %c2_451 = arith.constant 2 : index
    %c0_452 = arith.constant 0 : index
    %729 = vector.load %arg12[%c4_449, %c1_450, %c2_451, %c0_452] : memref<6x10x10x48xf32, #tpu.memory_space<vmem>>, vector<1x8x8x48xf32>
    %730 = vector.shape_cast %729 : vector<1x8x8x48xf32> to vector<8x8x48xf32>
    %731 = vector.extract_strided_slice %61 {offsets = [23, 0], sizes = [1, 48], strides = [1, 1]} : vector<27x48xf32> to vector<1x48xf32>
    %732 = vector.shape_cast %731 : vector<1x48xf32> to vector<48xf32>
    %733 = vector.shape_cast %732 : vector<48xf32> to vector<1x1x48xf32>
    %734 = vector.broadcast %733 : vector<1x1x48xf32> to vector<8x8x48xf32>
    %735 = arith.mulf %730, %734 : vector<8x8x48xf32>
    %736 = arith.addf %728, %735 : vector<8x8x48xf32>
    %c4_453 = arith.constant 4 : index
    %c2_454 = arith.constant 2 : index
    %c0_455 = arith.constant 0 : index
    %c0_456 = arith.constant 0 : index
    %737 = vector.load %arg12[%c4_453, %c2_454, %c0_455, %c0_456] : memref<6x10x10x48xf32, #tpu.memory_space<vmem>>, vector<1x8x8x48xf32>
    %738 = vector.shape_cast %737 : vector<1x8x8x48xf32> to vector<8x8x48xf32>
    %739 = vector.extract_strided_slice %61 {offsets = [24, 0], sizes = [1, 48], strides = [1, 1]} : vector<27x48xf32> to vector<1x48xf32>
    %740 = vector.shape_cast %739 : vector<1x48xf32> to vector<48xf32>
    %741 = vector.shape_cast %740 : vector<48xf32> to vector<1x1x48xf32>
    %742 = vector.broadcast %741 : vector<1x1x48xf32> to vector<8x8x48xf32>
    %743 = arith.mulf %738, %742 : vector<8x8x48xf32>
    %744 = arith.addf %736, %743 : vector<8x8x48xf32>
    %c4_457 = arith.constant 4 : index
    %c2_458 = arith.constant 2 : index
    %c1_459 = arith.constant 1 : index
    %c0_460 = arith.constant 0 : index
    %745 = vector.load %arg12[%c4_457, %c2_458, %c1_459, %c0_460] : memref<6x10x10x48xf32, #tpu.memory_space<vmem>>, vector<1x8x8x48xf32>
    %746 = vector.shape_cast %745 : vector<1x8x8x48xf32> to vector<8x8x48xf32>
    %747 = vector.extract_strided_slice %61 {offsets = [25, 0], sizes = [1, 48], strides = [1, 1]} : vector<27x48xf32> to vector<1x48xf32>
    %748 = vector.shape_cast %747 : vector<1x48xf32> to vector<48xf32>
    %749 = vector.shape_cast %748 : vector<48xf32> to vector<1x1x48xf32>
    %750 = vector.broadcast %749 : vector<1x1x48xf32> to vector<8x8x48xf32>
    %751 = arith.mulf %746, %750 : vector<8x8x48xf32>
    %752 = arith.addf %744, %751 : vector<8x8x48xf32>
    %c4_461 = arith.constant 4 : index
    %c2_462 = arith.constant 2 : index
    %c2_463 = arith.constant 2 : index
    %c0_464 = arith.constant 0 : index
    %753 = vector.load %arg12[%c4_461, %c2_462, %c2_463, %c0_464] : memref<6x10x10x48xf32, #tpu.memory_space<vmem>>, vector<1x8x8x48xf32>
    %754 = vector.shape_cast %753 : vector<1x8x8x48xf32> to vector<8x8x48xf32>
    %755 = vector.extract_strided_slice %61 {offsets = [26, 0], sizes = [1, 48], strides = [1, 1]} : vector<27x48xf32> to vector<1x48xf32>
    %756 = vector.shape_cast %755 : vector<1x48xf32> to vector<48xf32>
    %757 = vector.shape_cast %756 : vector<48xf32> to vector<1x1x48xf32>
    %758 = vector.broadcast %757 : vector<1x1x48xf32> to vector<8x8x48xf32>
    %759 = arith.mulf %754, %758 : vector<8x8x48xf32>
    %760 = arith.addf %752, %759 : vector<8x8x48xf32>
    %c0_465 = arith.constant 0 : index
    %c0_466 = arith.constant 0 : index
    %c0_467 = arith.constant 0 : index
    %761 = vector.load %arg13[%c0_465, %c0_466, %c0_467] : memref<8x8x48xf32, #tpu.memory_space<vmem>>, vector<8x8x48xf32>
    %762 = arith.addf %761, %760 : vector<8x8x48xf32>
    %c0_468 = arith.constant 0 : index
    %c0_469 = arith.constant 0 : index
    %c0_470 = arith.constant 0 : index
    %763 = vector.load %arg13[%c0_468, %c0_469, %c0_470] : memref<8x8x48xf32, #tpu.memory_space<vmem>>, vector<8x8x48xf32>
    tpu.vector_store %arg13[%c0_468, %c0_469, %c0_470], %762 {strides = array<i32>} : memref<8x8x48xf32, #tpu.memory_space<vmem>>, vector<8x8x48xf32>,
    %c0_471 = arith.constant 0 : index
    %c0_472 = arith.constant 0 : index
    %c0_473 = arith.constant 0 : index
    %764 = vector.load %arg13[%c0_471, %c0_472, %c0_473] : memref<8x8x48xf32, #tpu.memory_space<vmem>>, vector<8x8x48xf32>
    %765 = vector.broadcast %63 : vector<1x1x48xf32> to vector<8x8x48xf32>
    %766 = arith.addf %764, %765 : vector<8x8x48xf32>
    %cst_474 = arith.constant 0.000000e+00 : f32
    %cst_475 = arith.constant 6.000000e+00 : f32
    %767 = vector.broadcast %cst_474 : f32 to vector<8x8x48xf32>
    %768 = arith.maximumf %767, %766 : vector<8x8x48xf32>
    %769 = vector.broadcast %cst_475 : f32 to vector<8x8x48xf32>
    %770 = arith.minimumf %769, %768 : vector<8x8x48xf32>
    %771 = vector.shape_cast %770 : vector<8x8x48xf32> to vector<64x48xf32>
    %cst_476 = arith.constant dense<0.000000e+00> : vector<64x8xf32>
    %772 = tpu.matmul %771, %64, %cst_476 {dimension_numbers = #tpu.dot_dimension_numbers<[1], [0], [0], [1], [0, 0, 1, 1], [], []>} : vector<64x48xf32>, vector<48x8xf32>, vector<64x8xf32> -> vector<64x8xf32>
    %773 = vector.broadcast %65 : vector<1x8xf32> to vector<64x8xf32>
    %774 = arith.addf %772, %773 : vector<64x8xf32>
    %c0_477 = arith.constant 0 : index
    %c3_478 = arith.constant 3 : index
    %c0_479 = arith.constant 0 : index
    %c0_480 = arith.constant 0 : index
    %c0_481 = arith.constant 0 : index
    %775 = vector.load %arg2[%c0_477, %c3_478, %c0_479, %c0_480, %c0_481] : memref<1x4x8x8x8xf32, #tpu.memory_space<vmem>>, vector<1x1x8x8x8xf32>
    %776 = vector.shape_cast %775 : vector<1x1x8x8x8xf32> to vector<8x8x8xf32>
    %777 = vector.shape_cast %776 : vector<8x8x8xf32> to vector<64x8xf32>
    %778 = arith.addf %774, %777 : vector<64x8xf32>
    %779 = vector.shape_cast %778 : vector<64x8xf32> to vector<8x8x8xf32>
    %c0_482 = arith.constant 0 : index
    %c2_483 = arith.constant 2 : index
    %c0_484 = arith.constant 0 : index
    %c0_485 = arith.constant 0 : index
    %c0_486 = arith.constant 0 : index
    %780 = vector.load %arg11[%c0_482, %c2_483, %c0_484, %c0_485, %c0_486] : memref<1x4x8x8x8xf32, #tpu.memory_space<vmem>>, vector<1x1x8x8x8xf32>
    %781 = vector.shape_cast %780 : vector<1x1x8x8x8xf32> to vector<8x8x8xf32>
    %782 = vector.shape_cast %779 : vector<8x8x8xf32> to vector<1x1x8x8x8xf32>
    tpu.vector_store %arg11[%c0_482, %c2_483, %c0_484, %c0_485, %c0_486], %782 {strides = array<i32>} : memref<1x4x8x8x8xf32, #tpu.memory_space<vmem>>, vector<1x1x8x8x8xf32>,
    %c3_487 = arith.constant 3 : index
    %c0_488 = arith.constant 0 : index
    %c0_489 = arith.constant 0 : index
    %c0_490 = arith.constant 0 : index
    %783 = vector.load %arg12[%c3_487, %c0_488, %c0_489, %c0_490] : memref<6x10x10x48xf32, #tpu.memory_space<vmem>>, vector<1x8x8x48xf32>
    %784 = vector.shape_cast %783 : vector<1x8x8x48xf32> to vector<8x8x48xf32>
    %785 = vector.extract_strided_slice %61 {offsets = [0, 0], sizes = [1, 48], strides = [1, 1]} : vector<27x48xf32> to vector<1x48xf32>
    %786 = vector.shape_cast %785 : vector<1x48xf32> to vector<48xf32>
    %787 = vector.shape_cast %786 : vector<48xf32> to vector<1x1x48xf32>
    %788 = vector.broadcast %787 : vector<1x1x48xf32> to vector<8x8x48xf32>
    %789 = arith.mulf %784, %788 : vector<8x8x48xf32>
    %c3_491 = arith.constant 3 : index
    %c0_492 = arith.constant 0 : index
    %c1_493 = arith.constant 1 : index
    %c0_494 = arith.constant 0 : index
    %790 = vector.load %arg12[%c3_491, %c0_492, %c1_493, %c0_494] : memref<6x10x10x48xf32, #tpu.memory_space<vmem>>, vector<1x8x8x48xf32>
    %791 = vector.shape_cast %790 : vector<1x8x8x48xf32> to vector<8x8x48xf32>
    %792 = vector.extract_strided_slice %61 {offsets = [1, 0], sizes = [1, 48], strides = [1, 1]} : vector<27x48xf32> to vector<1x48xf32>
    %793 = vector.shape_cast %792 : vector<1x48xf32> to vector<48xf32>
    %794 = vector.shape_cast %793 : vector<48xf32> to vector<1x1x48xf32>
    %795 = vector.broadcast %794 : vector<1x1x48xf32> to vector<8x8x48xf32>
    %796 = arith.mulf %791, %795 : vector<8x8x48xf32>
    %797 = arith.addf %789, %796 : vector<8x8x48xf32>
    %c3_495 = arith.constant 3 : index
    %c0_496 = arith.constant 0 : index
    %c2_497 = arith.constant 2 : index
    %c0_498 = arith.constant 0 : index
    %798 = vector.load %arg12[%c3_495, %c0_496, %c2_497, %c0_498] : memref<6x10x10x48xf32, #tpu.memory_space<vmem>>, vector<1x8x8x48xf32>
    %799 = vector.shape_cast %798 : vector<1x8x8x48xf32> to vector<8x8x48xf32>
    %800 = vector.extract_strided_slice %61 {offsets = [2, 0], sizes = [1, 48], strides = [1, 1]} : vector<27x48xf32> to vector<1x48xf32>
    %801 = vector.shape_cast %800 : vector<1x48xf32> to vector<48xf32>
    %802 = vector.shape_cast %801 : vector<48xf32> to vector<1x1x48xf32>
    %803 = vector.broadcast %802 : vector<1x1x48xf32> to vector<8x8x48xf32>
    %804 = arith.mulf %799, %803 : vector<8x8x48xf32>
    %805 = arith.addf %797, %804 : vector<8x8x48xf32>
    %c3_499 = arith.constant 3 : index
    %c1_500 = arith.constant 1 : index
    %c0_501 = arith.constant 0 : index
    %c0_502 = arith.constant 0 : index
    %806 = vector.load %arg12[%c3_499, %c1_500, %c0_501, %c0_502] : memref<6x10x10x48xf32, #tpu.memory_space<vmem>>, vector<1x8x8x48xf32>
    %807 = vector.shape_cast %806 : vector<1x8x8x48xf32> to vector<8x8x48xf32>
    %808 = vector.extract_strided_slice %61 {offsets = [3, 0], sizes = [1, 48], strides = [1, 1]} : vector<27x48xf32> to vector<1x48xf32>
    %809 = vector.shape_cast %808 : vector<1x48xf32> to vector<48xf32>
    %810 = vector.shape_cast %809 : vector<48xf32> to vector<1x1x48xf32>
    %811 = vector.broadcast %810 : vector<1x1x48xf32> to vector<8x8x48xf32>
    %812 = arith.mulf %807, %811 : vector<8x8x48xf32>
    %813 = arith.addf %805, %812 : vector<8x8x48xf32>
    %c3_503 = arith.constant 3 : index
    %c1_504 = arith.constant 1 : index
    %c1_505 = arith.constant 1 : index
    %c0_506 = arith.constant 0 : index
    %814 = vector.load %arg12[%c3_503, %c1_504, %c1_505, %c0_506] : memref<6x10x10x48xf32, #tpu.memory_space<vmem>>, vector<1x8x8x48xf32>
    %815 = vector.shape_cast %814 : vector<1x8x8x48xf32> to vector<8x8x48xf32>
    %816 = vector.extract_strided_slice %61 {offsets = [4, 0], sizes = [1, 48], strides = [1, 1]} : vector<27x48xf32> to vector<1x48xf32>
    %817 = vector.shape_cast %816 : vector<1x48xf32> to vector<48xf32>
    %818 = vector.shape_cast %817 : vector<48xf32> to vector<1x1x48xf32>
    %819 = vector.broadcast %818 : vector<1x1x48xf32> to vector<8x8x48xf32>
    %820 = arith.mulf %815, %819 : vector<8x8x48xf32>
    %821 = arith.addf %813, %820 : vector<8x8x48xf32>
    %c3_507 = arith.constant 3 : index
    %c1_508 = arith.constant 1 : index
    %c2_509 = arith.constant 2 : index
    %c0_510 = arith.constant 0 : index
    %822 = vector.load %arg12[%c3_507, %c1_508, %c2_509, %c0_510] : memref<6x10x10x48xf32, #tpu.memory_space<vmem>>, vector<1x8x8x48xf32>
    %823 = vector.shape_cast %822 : vector<1x8x8x48xf32> to vector<8x8x48xf32>
    %824 = vector.extract_strided_slice %61 {offsets = [5, 0], sizes = [1, 48], strides = [1, 1]} : vector<27x48xf32> to vector<1x48xf32>
    %825 = vector.shape_cast %824 : vector<1x48xf32> to vector<48xf32>
    %826 = vector.shape_cast %825 : vector<48xf32> to vector<1x1x48xf32>
    %827 = vector.broadcast %826 : vector<1x1x48xf32> to vector<8x8x48xf32>
    %828 = arith.mulf %823, %827 : vector<8x8x48xf32>
    %829 = arith.addf %821, %828 : vector<8x8x48xf32>
    %c3_511 = arith.constant 3 : index
    %c2_512 = arith.constant 2 : index
    %c0_513 = arith.constant 0 : index
    %c0_514 = arith.constant 0 : index
    %830 = vector.load %arg12[%c3_511, %c2_512, %c0_513, %c0_514] : memref<6x10x10x48xf32, #tpu.memory_space<vmem>>, vector<1x8x8x48xf32>
    %831 = vector.shape_cast %830 : vector<1x8x8x48xf32> to vector<8x8x48xf32>
    %832 = vector.extract_strided_slice %61 {offsets = [6, 0], sizes = [1, 48], strides = [1, 1]} : vector<27x48xf32> to vector<1x48xf32>
    %833 = vector.shape_cast %832 : vector<1x48xf32> to vector<48xf32>
    %834 = vector.shape_cast %833 : vector<48xf32> to vector<1x1x48xf32>
    %835 = vector.broadcast %834 : vector<1x1x48xf32> to vector<8x8x48xf32>
    %836 = arith.mulf %831, %835 : vector<8x8x48xf32>
    %837 = arith.addf %829, %836 : vector<8x8x48xf32>
    %c3_515 = arith.constant 3 : index
    %c2_516 = arith.constant 2 : index
    %c1_517 = arith.constant 1 : index
    %c0_518 = arith.constant 0 : index
    %838 = vector.load %arg12[%c3_515, %c2_516, %c1_517, %c0_518] : memref<6x10x10x48xf32, #tpu.memory_space<vmem>>, vector<1x8x8x48xf32>
    %839 = vector.shape_cast %838 : vector<1x8x8x48xf32> to vector<8x8x48xf32>
    %840 = vector.extract_strided_slice %61 {offsets = [7, 0], sizes = [1, 48], strides = [1, 1]} : vector<27x48xf32> to vector<1x48xf32>
    %841 = vector.shape_cast %840 : vector<1x48xf32> to vector<48xf32>
    %842 = vector.shape_cast %841 : vector<48xf32> to vector<1x1x48xf32>
    %843 = vector.broadcast %842 : vector<1x1x48xf32> to vector<8x8x48xf32>
    %844 = arith.mulf %839, %843 : vector<8x8x48xf32>
    %845 = arith.addf %837, %844 : vector<8x8x48xf32>
    %c3_519 = arith.constant 3 : index
    %c2_520 = arith.constant 2 : index
    %c2_521 = arith.constant 2 : index
    %c0_522 = arith.constant 0 : index
    %846 = vector.load %arg12[%c3_519, %c2_520, %c2_521, %c0_522] : memref<6x10x10x48xf32, #tpu.memory_space<vmem>>, vector<1x8x8x48xf32>
    %847 = vector.shape_cast %846 : vector<1x8x8x48xf32> to vector<8x8x48xf32>
    %848 = vector.extract_strided_slice %61 {offsets = [8, 0], sizes = [1, 48], strides = [1, 1]} : vector<27x48xf32> to vector<1x48xf32>
    %849 = vector.shape_cast %848 : vector<1x48xf32> to vector<48xf32>
    %850 = vector.shape_cast %849 : vector<48xf32> to vector<1x1x48xf32>
    %851 = vector.broadcast %850 : vector<1x1x48xf32> to vector<8x8x48xf32>
    %852 = arith.mulf %847, %851 : vector<8x8x48xf32>
    %853 = arith.addf %845, %852 : vector<8x8x48xf32>
    %c0_523 = arith.constant 0 : index
    %c0_524 = arith.constant 0 : index
    %c0_525 = arith.constant 0 : index
    %854 = vector.load %arg13[%c0_523, %c0_524, %c0_525] : memref<8x8x48xf32, #tpu.memory_space<vmem>>, vector<8x8x48xf32>
    tpu.vector_store %arg13[%c0_523, %c0_524, %c0_525], %853 {strides = array<i32>} : memref<8x8x48xf32, #tpu.memory_space<vmem>>, vector<8x8x48xf32>,
    %c4_526 = arith.constant 4 : index
    %c0_527 = arith.constant 0 : index
    %c0_528 = arith.constant 0 : index
    %c0_529 = arith.constant 0 : index
    %855 = vector.load %arg12[%c4_526, %c0_527, %c0_528, %c0_529] : memref<6x10x10x48xf32, #tpu.memory_space<vmem>>, vector<1x8x8x48xf32>
    %856 = vector.shape_cast %855 : vector<1x8x8x48xf32> to vector<8x8x48xf32>
    %857 = vector.extract_strided_slice %61 {offsets = [9, 0], sizes = [1, 48], strides = [1, 1]} : vector<27x48xf32> to vector<1x48xf32>
    %858 = vector.shape_cast %857 : vector<1x48xf32> to vector<48xf32>
    %859 = vector.shape_cast %858 : vector<48xf32> to vector<1x1x48xf32>
    %860 = vector.broadcast %859 : vector<1x1x48xf32> to vector<8x8x48xf32>
    %861 = arith.mulf %856, %860 : vector<8x8x48xf32>
    %c4_530 = arith.constant 4 : index
    %c0_531 = arith.constant 0 : index
    %c1_532 = arith.constant 1 : index
    %c0_533 = arith.constant 0 : index
    %862 = vector.load %arg12[%c4_530, %c0_531, %c1_532, %c0_533] : memref<6x10x10x48xf32, #tpu.memory_space<vmem>>, vector<1x8x8x48xf32>
    %863 = vector.shape_cast %862 : vector<1x8x8x48xf32> to vector<8x8x48xf32>
    %864 = vector.extract_strided_slice %61 {offsets = [10, 0], sizes = [1, 48], strides = [1, 1]} : vector<27x48xf32> to vector<1x48xf32>
    %865 = vector.shape_cast %864 : vector<1x48xf32> to vector<48xf32>
    %866 = vector.shape_cast %865 : vector<48xf32> to vector<1x1x48xf32>
    %867 = vector.broadcast %866 : vector<1x1x48xf32> to vector<8x8x48xf32>
    %868 = arith.mulf %863, %867 : vector<8x8x48xf32>
    %869 = arith.addf %861, %868 : vector<8x8x48xf32>
    %c4_534 = arith.constant 4 : index
    %c0_535 = arith.constant 0 : index
    %c2_536 = arith.constant 2 : index
    %c0_537 = arith.constant 0 : index
    %870 = vector.load %arg12[%c4_534, %c0_535, %c2_536, %c0_537] : memref<6x10x10x48xf32, #tpu.memory_space<vmem>>, vector<1x8x8x48xf32>
    %871 = vector.shape_cast %870 : vector<1x8x8x48xf32> to vector<8x8x48xf32>
    %872 = vector.extract_strided_slice %61 {offsets = [11, 0], sizes = [1, 48], strides = [1, 1]} : vector<27x48xf32> to vector<1x48xf32>
    %873 = vector.shape_cast %872 : vector<1x48xf32> to vector<48xf32>
    %874 = vector.shape_cast %873 : vector<48xf32> to vector<1x1x48xf32>
    %875 = vector.broadcast %874 : vector<1x1x48xf32> to vector<8x8x48xf32>
    %876 = arith.mulf %871, %875 : vector<8x8x48xf32>
    %877 = arith.addf %869, %876 : vector<8x8x48xf32>
    %c4_538 = arith.constant 4 : index
    %c1_539 = arith.constant 1 : index
    %c0_540 = arith.constant 0 : index
    %c0_541 = arith.constant 0 : index
    %878 = vector.load %arg12[%c4_538, %c1_539, %c0_540, %c0_541] : memref<6x10x10x48xf32, #tpu.memory_space<vmem>>, vector<1x8x8x48xf32>
    %879 = vector.shape_cast %878 : vector<1x8x8x48xf32> to vector<8x8x48xf32>
    %880 = vector.extract_strided_slice %61 {offsets = [12, 0], sizes = [1, 48], strides = [1, 1]} : vector<27x48xf32> to vector<1x48xf32>
    %881 = vector.shape_cast %880 : vector<1x48xf32> to vector<48xf32>
    %882 = vector.shape_cast %881 : vector<48xf32> to vector<1x1x48xf32>
    %883 = vector.broadcast %882 : vector<1x1x48xf32> to vector<8x8x48xf32>
    %884 = arith.mulf %879, %883 : vector<8x8x48xf32>
    %885 = arith.addf %877, %884 : vector<8x8x48xf32>
    %c4_542 = arith.constant 4 : index
    %c1_543 = arith.constant 1 : index
    %c1_544 = arith.constant 1 : index
    %c0_545 = arith.constant 0 : index
    %886 = vector.load %arg12[%c4_542, %c1_543, %c1_544, %c0_545] : memref<6x10x10x48xf32, #tpu.memory_space<vmem>>, vector<1x8x8x48xf32>
    %887 = vector.shape_cast %886 : vector<1x8x8x48xf32> to vector<8x8x48xf32>
    %888 = vector.extract_strided_slice %61 {offsets = [13, 0], sizes = [1, 48], strides = [1, 1]} : vector<27x48xf32> to vector<1x48xf32>
    %889 = vector.shape_cast %888 : vector<1x48xf32> to vector<48xf32>
    %890 = vector.shape_cast %889 : vector<48xf32> to vector<1x1x48xf32>
    %891 = vector.broadcast %890 : vector<1x1x48xf32> to vector<8x8x48xf32>
    %892 = arith.mulf %887, %891 : vector<8x8x48xf32>
    %893 = arith.addf %885, %892 : vector<8x8x48xf32>
    %c4_546 = arith.constant 4 : index
    %c1_547 = arith.constant 1 : index
    %c2_548 = arith.constant 2 : index
    %c0_549 = arith.constant 0 : index
    %894 = vector.load %arg12[%c4_546, %c1_547, %c2_548, %c0_549] : memref<6x10x10x48xf32, #tpu.memory_space<vmem>>, vector<1x8x8x48xf32>
    %895 = vector.shape_cast %894 : vector<1x8x8x48xf32> to vector<8x8x48xf32>
    %896 = vector.extract_strided_slice %61 {offsets = [14, 0], sizes = [1, 48], strides = [1, 1]} : vector<27x48xf32> to vector<1x48xf32>
    %897 = vector.shape_cast %896 : vector<1x48xf32> to vector<48xf32>
    %898 = vector.shape_cast %897 : vector<48xf32> to vector<1x1x48xf32>
    %899 = vector.broadcast %898 : vector<1x1x48xf32> to vector<8x8x48xf32>
    %900 = arith.mulf %895, %899 : vector<8x8x48xf32>
    %901 = arith.addf %893, %900 : vector<8x8x48xf32>
    %c4_550 = arith.constant 4 : index
    %c2_551 = arith.constant 2 : index
    %c0_552 = arith.constant 0 : index
    %c0_553 = arith.constant 0 : index
    %902 = vector.load %arg12[%c4_550, %c2_551, %c0_552, %c0_553] : memref<6x10x10x48xf32, #tpu.memory_space<vmem>>, vector<1x8x8x48xf32>
    %903 = vector.shape_cast %902 : vector<1x8x8x48xf32> to vector<8x8x48xf32>
    %904 = vector.extract_strided_slice %61 {offsets = [15, 0], sizes = [1, 48], strides = [1, 1]} : vector<27x48xf32> to vector<1x48xf32>
    %905 = vector.shape_cast %904 : vector<1x48xf32> to vector<48xf32>
    %906 = vector.shape_cast %905 : vector<48xf32> to vector<1x1x48xf32>
    %907 = vector.broadcast %906 : vector<1x1x48xf32> to vector<8x8x48xf32>
    %908 = arith.mulf %903, %907 : vector<8x8x48xf32>
    %909 = arith.addf %901, %908 : vector<8x8x48xf32>
    %c4_554 = arith.constant 4 : index
    %c2_555 = arith.constant 2 : index
    %c1_556 = arith.constant 1 : index
    %c0_557 = arith.constant 0 : index
    %910 = vector.load %arg12[%c4_554, %c2_555, %c1_556, %c0_557] : memref<6x10x10x48xf32, #tpu.memory_space<vmem>>, vector<1x8x8x48xf32>
    %911 = vector.shape_cast %910 : vector<1x8x8x48xf32> to vector<8x8x48xf32>
    %912 = vector.extract_strided_slice %61 {offsets = [16, 0], sizes = [1, 48], strides = [1, 1]} : vector<27x48xf32> to vector<1x48xf32>
    %913 = vector.shape_cast %912 : vector<1x48xf32> to vector<48xf32>
    %914 = vector.shape_cast %913 : vector<48xf32> to vector<1x1x48xf32>
    %915 = vector.broadcast %914 : vector<1x1x48xf32> to vector<8x8x48xf32>
    %916 = arith.mulf %911, %915 : vector<8x8x48xf32>
    %917 = arith.addf %909, %916 : vector<8x8x48xf32>
    %c4_558 = arith.constant 4 : index
    %c2_559 = arith.constant 2 : index
    %c2_560 = arith.constant 2 : index
    %c0_561 = arith.constant 0 : index
    %918 = vector.load %arg12[%c4_558, %c2_559, %c2_560, %c0_561] : memref<6x10x10x48xf32, #tpu.memory_space<vmem>>, vector<1x8x8x48xf32>
    %919 = vector.shape_cast %918 : vector<1x8x8x48xf32> to vector<8x8x48xf32>
    %920 = vector.extract_strided_slice %61 {offsets = [17, 0], sizes = [1, 48], strides = [1, 1]} : vector<27x48xf32> to vector<1x48xf32>
    %921 = vector.shape_cast %920 : vector<1x48xf32> to vector<48xf32>
    %922 = vector.shape_cast %921 : vector<48xf32> to vector<1x1x48xf32>
    %923 = vector.broadcast %922 : vector<1x1x48xf32> to vector<8x8x48xf32>
    %924 = arith.mulf %919, %923 : vector<8x8x48xf32>
    %925 = arith.addf %917, %924 : vector<8x8x48xf32>
    %c0_562 = arith.constant 0 : index
    %c0_563 = arith.constant 0 : index
    %c0_564 = arith.constant 0 : index
    %926 = vector.load %arg13[%c0_562, %c0_563, %c0_564] : memref<8x8x48xf32, #tpu.memory_space<vmem>>, vector<8x8x48xf32>
    %927 = arith.addf %926, %925 : vector<8x8x48xf32>
    %c0_565 = arith.constant 0 : index
    %c0_566 = arith.constant 0 : index
    %c0_567 = arith.constant 0 : index
    %928 = vector.load %arg13[%c0_565, %c0_566, %c0_567] : memref<8x8x48xf32, #tpu.memory_space<vmem>>, vector<8x8x48xf32>
    tpu.vector_store %arg13[%c0_565, %c0_566, %c0_567], %927 {strides = array<i32>} : memref<8x8x48xf32, #tpu.memory_space<vmem>>, vector<8x8x48xf32>,
    %c5_568 = arith.constant 5 : index
    %c0_569 = arith.constant 0 : index
    %c0_570 = arith.constant 0 : index
    %c0_571 = arith.constant 0 : index
    %929 = vector.load %arg12[%c5_568, %c0_569, %c0_570, %c0_571] : memref<6x10x10x48xf32, #tpu.memory_space<vmem>>, vector<1x8x8x48xf32>
    %930 = vector.shape_cast %929 : vector<1x8x8x48xf32> to vector<8x8x48xf32>
    %931 = vector.extract_strided_slice %61 {offsets = [18, 0], sizes = [1, 48], strides = [1, 1]} : vector<27x48xf32> to vector<1x48xf32>
    %932 = vector.shape_cast %931 : vector<1x48xf32> to vector<48xf32>
    %933 = vector.shape_cast %932 : vector<48xf32> to vector<1x1x48xf32>
    %934 = vector.broadcast %933 : vector<1x1x48xf32> to vector<8x8x48xf32>
    %935 = arith.mulf %930, %934 : vector<8x8x48xf32>
    %c5_572 = arith.constant 5 : index
    %c0_573 = arith.constant 0 : index
    %c1_574 = arith.constant 1 : index
    %c0_575 = arith.constant 0 : index
    %936 = vector.load %arg12[%c5_572, %c0_573, %c1_574, %c0_575] : memref<6x10x10x48xf32, #tpu.memory_space<vmem>>, vector<1x8x8x48xf32>
    %937 = vector.shape_cast %936 : vector<1x8x8x48xf32> to vector<8x8x48xf32>
    %938 = vector.extract_strided_slice %61 {offsets = [19, 0], sizes = [1, 48], strides = [1, 1]} : vector<27x48xf32> to vector<1x48xf32>
    %939 = vector.shape_cast %938 : vector<1x48xf32> to vector<48xf32>
    %940 = vector.shape_cast %939 : vector<48xf32> to vector<1x1x48xf32>
    %941 = vector.broadcast %940 : vector<1x1x48xf32> to vector<8x8x48xf32>
    %942 = arith.mulf %937, %941 : vector<8x8x48xf32>
    %943 = arith.addf %935, %942 : vector<8x8x48xf32>
    %c5_576 = arith.constant 5 : index
    %c0_577 = arith.constant 0 : index
    %c2_578 = arith.constant 2 : index
    %c0_579 = arith.constant 0 : index
    %944 = vector.load %arg12[%c5_576, %c0_577, %c2_578, %c0_579] : memref<6x10x10x48xf32, #tpu.memory_space<vmem>>, vector<1x8x8x48xf32>
    %945 = vector.shape_cast %944 : vector<1x8x8x48xf32> to vector<8x8x48xf32>
    %946 = vector.extract_strided_slice %61 {offsets = [20, 0], sizes = [1, 48], strides = [1, 1]} : vector<27x48xf32> to vector<1x48xf32>
    %947 = vector.shape_cast %946 : vector<1x48xf32> to vector<48xf32>
    %948 = vector.shape_cast %947 : vector<48xf32> to vector<1x1x48xf32>
    %949 = vector.broadcast %948 : vector<1x1x48xf32> to vector<8x8x48xf32>
    %950 = arith.mulf %945, %949 : vector<8x8x48xf32>
    %951 = arith.addf %943, %950 : vector<8x8x48xf32>
    %c5_580 = arith.constant 5 : index
    %c1_581 = arith.constant 1 : index
    %c0_582 = arith.constant 0 : index
    %c0_583 = arith.constant 0 : index
    %952 = vector.load %arg12[%c5_580, %c1_581, %c0_582, %c0_583] : memref<6x10x10x48xf32, #tpu.memory_space<vmem>>, vector<1x8x8x48xf32>
    %953 = vector.shape_cast %952 : vector<1x8x8x48xf32> to vector<8x8x48xf32>
    %954 = vector.extract_strided_slice %61 {offsets = [21, 0], sizes = [1, 48], strides = [1, 1]} : vector<27x48xf32> to vector<1x48xf32>
    %955 = vector.shape_cast %954 : vector<1x48xf32> to vector<48xf32>
    %956 = vector.shape_cast %955 : vector<48xf32> to vector<1x1x48xf32>
    %957 = vector.broadcast %956 : vector<1x1x48xf32> to vector<8x8x48xf32>
    %958 = arith.mulf %953, %957 : vector<8x8x48xf32>
    %959 = arith.addf %951, %958 : vector<8x8x48xf32>
    %c5_584 = arith.constant 5 : index
    %c1_585 = arith.constant 1 : index
    %c1_586 = arith.constant 1 : index
    %c0_587 = arith.constant 0 : index
    %960 = vector.load %arg12[%c5_584, %c1_585, %c1_586, %c0_587] : memref<6x10x10x48xf32, #tpu.memory_space<vmem>>, vector<1x8x8x48xf32>
    %961 = vector.shape_cast %960 : vector<1x8x8x48xf32> to vector<8x8x48xf32>
    %962 = vector.extract_strided_slice %61 {offsets = [22, 0], sizes = [1, 48], strides = [1, 1]} : vector<27x48xf32> to vector<1x48xf32>
    %963 = vector.shape_cast %962 : vector<1x48xf32> to vector<48xf32>
    %964 = vector.shape_cast %963 : vector<48xf32> to vector<1x1x48xf32>
    %965 = vector.broadcast %964 : vector<1x1x48xf32> to vector<8x8x48xf32>
    %966 = arith.mulf %961, %965 : vector<8x8x48xf32>
    %967 = arith.addf %959, %966 : vector<8x8x48xf32>
    %c5_588 = arith.constant 5 : index
    %c1_589 = arith.constant 1 : index
    %c2_590 = arith.constant 2 : index
    %c0_591 = arith.constant 0 : index
    %968 = vector.load %arg12[%c5_588, %c1_589, %c2_590, %c0_591] : memref<6x10x10x48xf32, #tpu.memory_space<vmem>>, vector<1x8x8x48xf32>
    %969 = vector.shape_cast %968 : vector<1x8x8x48xf32> to vector<8x8x48xf32>
    %970 = vector.extract_strided_slice %61 {offsets = [23, 0], sizes = [1, 48], strides = [1, 1]} : vector<27x48xf32> to vector<1x48xf32>
    %971 = vector.shape_cast %970 : vector<1x48xf32> to vector<48xf32>
    %972 = vector.shape_cast %971 : vector<48xf32> to vector<1x1x48xf32>
    %973 = vector.broadcast %972 : vector<1x1x48xf32> to vector<8x8x48xf32>
    %974 = arith.mulf %969, %973 : vector<8x8x48xf32>
    %975 = arith.addf %967, %974 : vector<8x8x48xf32>
    %c5_592 = arith.constant 5 : index
    %c2_593 = arith.constant 2 : index
    %c0_594 = arith.constant 0 : index
    %c0_595 = arith.constant 0 : index
    %976 = vector.load %arg12[%c5_592, %c2_593, %c0_594, %c0_595] : memref<6x10x10x48xf32, #tpu.memory_space<vmem>>, vector<1x8x8x48xf32>
    %977 = vector.shape_cast %976 : vector<1x8x8x48xf32> to vector<8x8x48xf32>
    %978 = vector.extract_strided_slice %61 {offsets = [24, 0], sizes = [1, 48], strides = [1, 1]} : vector<27x48xf32> to vector<1x48xf32>
    %979 = vector.shape_cast %978 : vector<1x48xf32> to vector<48xf32>
    %980 = vector.shape_cast %979 : vector<48xf32> to vector<1x1x48xf32>
    %981 = vector.broadcast %980 : vector<1x1x48xf32> to vector<8x8x48xf32>
    %982 = arith.mulf %977, %981 : vector<8x8x48xf32>
    %983 = arith.addf %975, %982 : vector<8x8x48xf32>
    %c5_596 = arith.constant 5 : index
    %c2_597 = arith.constant 2 : index
    %c1_598 = arith.constant 1 : index
    %c0_599 = arith.constant 0 : index
    %984 = vector.load %arg12[%c5_596, %c2_597, %c1_598, %c0_599] : memref<6x10x10x48xf32, #tpu.memory_space<vmem>>, vector<1x8x8x48xf32>
    %985 = vector.shape_cast %984 : vector<1x8x8x48xf32> to vector<8x8x48xf32>
    %986 = vector.extract_strided_slice %61 {offsets = [25, 0], sizes = [1, 48], strides = [1, 1]} : vector<27x48xf32> to vector<1x48xf32>
    %987 = vector.shape_cast %986 : vector<1x48xf32> to vector<48xf32>
    %988 = vector.shape_cast %987 : vector<48xf32> to vector<1x1x48xf32>
    %989 = vector.broadcast %988 : vector<1x1x48xf32> to vector<8x8x48xf32>
    %990 = arith.mulf %985, %989 : vector<8x8x48xf32>
    %991 = arith.addf %983, %990 : vector<8x8x48xf32>
    %c5_600 = arith.constant 5 : index
    %c2_601 = arith.constant 2 : index
    %c2_602 = arith.constant 2 : index
    %c0_603 = arith.constant 0 : index
    %992 = vector.load %arg12[%c5_600, %c2_601, %c2_602, %c0_603] : memref<6x10x10x48xf32, #tpu.memory_space<vmem>>, vector<1x8x8x48xf32>
    %993 = vector.shape_cast %992 : vector<1x8x8x48xf32> to vector<8x8x48xf32>
    %994 = vector.extract_strided_slice %61 {offsets = [26, 0], sizes = [1, 48], strides = [1, 1]} : vector<27x48xf32> to vector<1x48xf32>
    %995 = vector.shape_cast %994 : vector<1x48xf32> to vector<48xf32>
    %996 = vector.shape_cast %995 : vector<48xf32> to vector<1x1x48xf32>
    %997 = vector.broadcast %996 : vector<1x1x48xf32> to vector<8x8x48xf32>
    %998 = arith.mulf %993, %997 : vector<8x8x48xf32>
    %999 = arith.addf %991, %998 : vector<8x8x48xf32>
    %c0_604 = arith.constant 0 : index
    %c0_605 = arith.constant 0 : index
    %c0_606 = arith.constant 0 : index
    %1000 = vector.load %arg13[%c0_604, %c0_605, %c0_606] : memref<8x8x48xf32, #tpu.memory_space<vmem>>, vector<8x8x48xf32>
    %1001 = arith.addf %1000, %999 : vector<8x8x48xf32>
    %c0_607 = arith.constant 0 : index
    %c0_608 = arith.constant 0 : index
    %c0_609 = arith.constant 0 : index
    %1002 = vector.load %arg13[%c0_607, %c0_608, %c0_609] : memref<8x8x48xf32, #tpu.memory_space<vmem>>, vector<8x8x48xf32>
    tpu.vector_store %arg13[%c0_607, %c0_608, %c0_609], %1001 {strides = array<i32>} : memref<8x8x48xf32, #tpu.memory_space<vmem>>, vector<8x8x48xf32>,
    %c0_610 = arith.constant 0 : index
    %c0_611 = arith.constant 0 : index
    %c0_612 = arith.constant 0 : index
    %1003 = vector.load %arg13[%c0_610, %c0_611, %c0_612] : memref<8x8x48xf32, #tpu.memory_space<vmem>>, vector<8x8x48xf32>
    %1004 = vector.broadcast %63 : vector<1x1x48xf32> to vector<8x8x48xf32>
    %1005 = arith.addf %1003, %1004 : vector<8x8x48xf32>
    %cst_613 = arith.constant 0.000000e+00 : f32
    %cst_614 = arith.constant 6.000000e+00 : f32
    %1006 = vector.broadcast %cst_613 : f32 to vector<8x8x48xf32>
    %1007 = arith.maximumf %1006, %1005 : vector<8x8x48xf32>
    %1008 = vector.broadcast %cst_614 : f32 to vector<8x8x48xf32>
    %1009 = arith.minimumf %1008, %1007 : vector<8x8x48xf32>
    %1010 = vector.shape_cast %1009 : vector<8x8x48xf32> to vector<64x48xf32>
    %cst_615 = arith.constant dense<0.000000e+00> : vector<64x8xf32>
    %1011 = tpu.matmul %1010, %64, %cst_615 {dimension_numbers = #tpu.dot_dimension_numbers<[1], [0], [0], [1], [0, 0, 1, 1], [], []>} : vector<64x48xf32>, vector<48x8xf32>, vector<64x8xf32> -> vector<64x8xf32>
    %1012 = vector.broadcast %65 : vector<1x8xf32> to vector<64x8xf32>
    %1013 = arith.addf %1011, %1012 : vector<64x8xf32>
    %c0_616 = arith.constant 0 : index
    %c0_617 = arith.constant 0 : index
    %c0_618 = arith.constant 0 : index
    %c0_619 = arith.constant 0 : index
    %c0_620 = arith.constant 0 : index
    %1014 = vector.load %arg3[%c0_616, %c0_617, %c0_618, %c0_619, %c0_620] : memref<1x1x8x8x8xf32, #tpu.memory_space<vmem>>, vector<1x1x8x8x8xf32>
    %1015 = vector.shape_cast %1014 : vector<1x1x8x8x8xf32> to vector<8x8x8xf32>
    %1016 = vector.shape_cast %1015 : vector<8x8x8xf32> to vector<64x8xf32>
    %1017 = arith.addf %1013, %1016 : vector<64x8xf32>
    %1018 = vector.shape_cast %1017 : vector<64x8xf32> to vector<8x8x8xf32>
    %c0_621 = arith.constant 0 : index
    %c3_622 = arith.constant 3 : index
    %c0_623 = arith.constant 0 : index
    %c0_624 = arith.constant 0 : index
    %c0_625 = arith.constant 0 : index
    %1019 = vector.load %arg11[%c0_621, %c3_622, %c0_623, %c0_624, %c0_625] : memref<1x4x8x8x8xf32, #tpu.memory_space<vmem>>, vector<1x1x8x8x8xf32>
    %1020 = vector.shape_cast %1019 : vector<1x1x8x8x8xf32> to vector<8x8x8xf32>
    %1021 = vector.shape_cast %1018 : vector<8x8x8xf32> to vector<1x1x8x8x8xf32>
    tpu.vector_store %arg11[%c0_621, %c3_622, %c0_623, %c0_624, %c0_625], %1021 {strides = array<i32>} : memref<1x4x8x8x8xf32, #tpu.memory_space<vmem>>, vector<1x1x8x8x8xf32>,
    return
  }
  func.func @transform_0(%arg0: i32, %arg1: i32) -> (i32, i32, i32, i32, i32) {
    %c0_i32 = arith.constant 0 : i32
    %c0_i32_0 = arith.constant 0 : i32
    %c0_i32_1 = arith.constant 0 : i32
    %c0_i32_2 = arith.constant 0 : i32
    return %arg0, %arg1, %c0_i32, %c0_i32_0, %c0_i32_1 : i32, i32, i32, i32, i32
  }
  func.func @transform_1(%arg0: i32, %arg1: i32) -> (i32, i32, i32, i32, i32) {
    %c1_i32 = arith.constant 1 : i32
    %0 = arith.addi %arg1, %c1_i32 : i32
    %c4_i32 = arith.constant 4 : i32
    %1 = arith.muli %0, %c4_i32 : i32
    %c0_i32 = arith.constant 0 : i32
    %2 = arith.addi %1, %c0_i32 : i32
    %c0_i32_0 = arith.constant 0 : i32
    %c0_i32_1 = arith.constant 0 : i32
    %c0_i32_2 = arith.constant 0 : i32
    %c0_i32_3 = arith.constant 0 : i32
    return %arg0, %2, %c0_i32_0, %c0_i32_1, %c0_i32_2 : i32, i32, i32, i32, i32
  }
  func.func @transform_2(%arg0: i32, %arg1: i32) -> (i32, i32, i32, i32, i32) {
    %c1_i32 = arith.constant 1 : i32
    %0 = arith.addi %arg1, %c1_i32 : i32
    %c4_i32 = arith.constant 4 : i32
    %1 = arith.muli %0, %c4_i32 : i32
    %c1_i32_0 = arith.constant 1 : i32
    %2 = arith.addi %1, %c1_i32_0 : i32
    %c0_i32 = arith.constant 0 : i32
    %c0_i32_1 = arith.constant 0 : i32
    %c0_i32_2 = arith.constant 0 : i32
    %c0_i32_3 = arith.constant 0 : i32
    return %arg0, %2, %c0_i32, %c0_i32_1, %c0_i32_2 : i32, i32, i32, i32, i32
  }
  func.func @transform_3(%arg0: i32, %arg1: i32) -> (i32, i32) {
    %c0_i32 = arith.constant 0 : i32
    %c0_i32_0 = arith.constant 0 : i32
    %c0_i32_1 = arith.constant 0 : i32
    return %c0_i32, %c0_i32_0 : i32, i32
  }
  func.func @transform_4(%arg0: i32, %arg1: i32) -> (i32, i32) {
    %c0_i32 = arith.constant 0 : i32
    %c0_i32_0 = arith.constant 0 : i32
    %c0_i32_1 = arith.constant 0 : i32
    return %c0_i32, %c0_i32_0 : i32, i32
  }
  func.func @transform_5(%arg0: i32, %arg1: i32) -> (i32, i32) {
    %c0_i32 = arith.constant 0 : i32
    %c0_i32_0 = arith.constant 0 : i32
    %c0_i32_1 = arith.constant 0 : i32
    return %c0_i32, %c0_i32_0 : i32, i32
  }
  func.func @transform_6(%arg0: i32, %arg1: i32) -> (i32, i32) {
    %c0_i32 = arith.constant 0 : i32
    %c0_i32_0 = arith.constant 0 : i32
    %c0_i32_1 = arith.constant 0 : i32
    return %c0_i32, %c0_i32_0 : i32, i32
  }
  func.func @transform_7(%arg0: i32, %arg1: i32) -> (i32, i32) {
    %c0_i32 = arith.constant 0 : i32
    %c0_i32_0 = arith.constant 0 : i32
    %c0_i32_1 = arith.constant 0 : i32
    return %c0_i32, %c0_i32_0 : i32, i32
  }
  func.func @transform_8(%arg0: i32, %arg1: i32) -> (i32, i32) {
    %c0_i32 = arith.constant 0 : i32
    %c0_i32_0 = arith.constant 0 : i32
    %c0_i32_1 = arith.constant 0 : i32
    return %c0_i32, %c0_i32_0 : i32, i32
  }
  func.func @transform_9(%arg0: i32, %arg1: i32) -> (i32, i32, i32, i32, i32) {
    %c0_i32 = arith.constant 0 : i32
    %c0_i32_0 = arith.constant 0 : i32
    %c0_i32_1 = arith.constant 0 : i32
    %c0_i32_2 = arith.constant 0 : i32
    return %arg0, %arg1, %c0_i32, %c0_i32_0, %c0_i32_1 : i32, i32, i32, i32, i32
  }
}

</mosaic_0001>

<bundles_post_ra>
// kernel: tpu_custom_call.1
= control target key start
LH: loop header
LB: loop body
LE: loop exit
PB: predicated region body
PF: predicated region fallthrough
CT: control target
= control target key end

     0   :  { %s10105_s0 = inlined_call_operand.hbm [shape: f32[2,6,8,8,8], index: 0, kind: input, shape index: {}]   ;;  %s10106_s1 = inlined_call_operand.hbm [shape: f32[2,6,8,8,8], index: 1, kind: input, shape index: {}]   ;;  %s10107_s2 = inlined_call_operand.hbm [shape: f32[2,6,8,8,8], index: 2, kind: input, shape index: {}]   ;;  %s10108_s3 = inlined_call_operand.vmem [shape: f32[8,48], index: 3, kind: input, shape index: {}]   ;;  %s10109_s4 = inlined_call_operand.vmem [shape: f32[1,48], index: 4, kind: input, shape index: {}]   ;;  %s10110_s5 = inlined_call_operand.vmem [shape: f32[27,48], index: 5, kind: input, shape index: {}]   ;;  %s10111_s6 = inlined_call_operand.vmem [shape: f32[1,48], index: 6, kind: input, shape index: {}]   ;;  %s10112_s7 = inlined_call_operand.vmem [shape: f32[48,8], index: 7, kind: input, shape index: {}]   ;;  %s10113_s8 = inlined_call_operand.vmem [shape: f32[1,8], index: 8, kind: input, shape index: {}]   ;;  %s10114_s9 = inlined_call_operand.hbm [shape: f32[2,4,8,8,8], index: 9, kind: output, shape index: {}]  }
   0x1   :  { %10208 = sst [smem:[#allocation253_spill]] %s10106_s1 }
   0x2   :  { %10209 = sst [smem:[#allocation254_spill]] %s10114_s9 }
   0x3   :  { %14 = vsyncpa [#allocation5], 0 }
   0x4   :  { %16 = vsyncpa [#allocation5 + $0x1], 0 }
   0x5   :  { %17 = vsyncpa [#allocation8], 0 }
   0x6   :  { %19 = vsyncpa [#allocation8 + $0x1], 0 }
   0x7   :  { %20 = vsyncpa [#allocation6], 0 }
   0x8   :  { %22 = vsyncpa [#allocation6 + $0x1], 0  ;;  %s6080_s30 = smov 0   ;;  %s6082_s10 = smov 0  }
   0x9   :  { %s6084_s11 = smov 0   ;;  %s6086_s12 = smov 0  }
   0xa   :  { %s6088_s13 = smov 0   ;;  %s6090_s14 = smov 0  }
   0xb LB: > { %10210 = sst [smem:[#allocation14_spill]] %s5999_s30  ;;  %s6111_s15 = sadd.s32 4294967295, %s6019_s14   ;;  %s6019_s14 = sphi %s6090_s14, %s28_s14   ;;  %s6015_s13 = sphi %s6088_s13, %s10976_s13   ;;  %s6011_s12 = sphi %s6086_s12, %s10975_s12   ;;  %s6007_s11 = sphi %s6084_s11, %s10974_s11   ;;  %s6003_s10 = sphi %s6082_s10, %s10978_s10   ;;  %s5999_s30 = sphi %s6080_s30, %s10977_s30  }
   0xc   : > { %10211 = sst [smem:[#allocation15_spill]] %s6007_s11  ;;  %s5232_s16 = sadd.s32 4294967294, %s6019_s14  }
   0xd   : > { %10212 = sst [smem:[#allocation16_spill]] %s6015_s13  ;;  %s40_s17 = sadd.s32 1, %s6015_s13 }
   0xe   : > { %10213 = sst [smem:[#allocation17_spill]] %s6019_s14  ;;  %s49_s18 = sadd.s32 1, %s6007_s11 }
   0xf   : > { %p42_p0 = scmp.ge.s32.totalorder %s40_s17, 2  ;;  %p56_p1 = scmp.ne.s32.totalorder %s6007_s11, %s6003_s10 }
  0x10   : > { %p57_p2 = scmp.eq.s32.totalorder %s6019_s14, 0  ;;  %p62_p3 = scmp.ne.s32.totalorder %s6003_s10, %s5999_s30 }
  0x11   : > { %s10980_s17 = smov (%p42_p0, %s40_s17), 0  ;;  %p63_p5 = scmp.eq.s32.totalorder %s6111_s15, 0 }
  0x12   : > { %10214 = sst [smem:[#allocation18_spill]] %s10980_s17  ;;  %p6123_p4 = por %p57_p2, %p56_p1 }
  0x13   : > { %s44_s20 = ssub.s32 %s6015_s13, %s10980_s17  ;;  %p280_p6 = scmp.eq.s32.totalorder %s6111_s15, 1 }
  0x14   : > { %p47_p7 = scmp.eq.s32.totalorder %s44_s20, 0  ;;  %p6131_p8 = por %p63_p5, %p62_p3 }
  0x15   : > { %p6135_p9 = por %p280_p6, %p56_p1  ;;  %p286_p10 = scmp.eq.s32.totalorder %s5232_s16, 1 }
  0x16   : > { %s10216_s21 = scalar_select %p6131_p8, 1, 0 }
  0x17   : > { %s10217_s22 = scalar_select %p6135_p9, 1, 0 }
  0x18   : > { %s6140_s23 = scalar_select %p47_p7, %s6007_s11, %s49_s18  }
  0x19   : > { %10218 = sst [smem:[#allocation19_spill]] %s10217_s22  ;;  %p6142_p11 = por %p286_p10, %p62_p3 }
  0x1a   : > { %10219 = sst [smem:[#allocation20_spill]] %s6140_s23  ;;  %p5737_p13 = scmp.lt.s32.totalorder %s6019_s14, 2 }
  0x1b   : > { %s10220_s24 = scalar_select %p6142_p11, 1, 0 }
  0x1c   : > { %s6149_s25 = sand.u32 1, %s6007_s11   ;;  %s6152_s26 = smul.u32 6144, %s6015_s13 }
  0x1d   : > { %10221 = sst [smem:[#allocation21_spill]] %s10220_s24  ;;  %p6156_p0 = pnand %p5737_p13, %p6123_p4 }
  0x1e   : > { %s356_s28 = sand.u32 1, %s6019_s14   ;;  %s10119_s29 = sshll.u32 %s6149_s25, 6 }
  0x1f   : > { %s10223_s1 = sld [smem:[#allocation253_spill]]  ;;  %s360_s13 = scalar_lea.vmem [#allocation7], %s10119_s29 }
  0x20   : > { %s371_s19 = sshll.u32 %s360_s13, 4  ;;  %s6172_s23 = scalar_lea.sflag [#allocation8], %s356_s28  ;;  %s6170_s19 = int_to_ptr.vmem [resolvable:$true] %s371_s19 }
  0x21   : > { %p6177_p2 = pneg %p6156_p0 }
  0x25   : > { %s5137_s20 = scalar_lea.hbm %s10223_s1, %s6152_s26  ;;  %s5846_s29 = scalar_lea.hbm %s10223_s1, 12288 }
  0x26   : > { %s6166_s17 = scalar_lea.hbm %s5137_s20, 4096  ;;  %s5871_s11 = scalar_lea.hbm %s5137_s20, 5120 }
  0x27   : > { %p5842_p1 = scmp.ne.s32.totalorder %s6166_s17, %s5871_s11  ;;  %p5847_p5 = scmp.lt.u32.totalorder %s6166_s17, %s10223_s1 }
  0x28   : > { %p5848_p6 = scmp.lt.u32.totalorder %s5846_s29, %s5871_s11  ;;  %p5850_p10 = scmp.lt.u32.totalorder %s5871_s11, %s6166_s17 }
  0x29   : > { %p5844_p3 = pnand %p6177_p2, %p5842_p1 }
  0x2a   : > { %p5849_p7 = por %p5848_p6, %p5847_p5 }
  0x2b   : > { %p5845_p4 = pneg %p5844_p3 }
  0x2c   : > { %p5851_p13 = por %p5850_p10, %p5849_p7 }
  0x2e   : > { %p5852_p12 = pnand %p5851_p13, %p5845_p4 }
  0x30   : > { %5855 = shalt.err (!%p5852_p12)
}
  0x31   : > { %s5856_s28 = scalar_lea.vmem %s6170_s19, 1024  ;;  %s6021_s20 = smov [#allocation7]  }
  0x32   : > { %p5857_p1 = scmp.ne.s32.totalorder %s6170_s19, %s5856_s28  ;;  %s5861_s16 = sshll.u32 %s6021_s20, 4  ;;  %s5862_s16 = int_to_ptr.vmem [resolvable:$false] %s5861_s16 }
  0x33   : > { %s5863_s30 = scalar_lea.vmem %s5862_s16, 2048  ;;  %p5864_p9 = scmp.lt.s32.totalorder %s6170_s19, %s5862_s16 }
  0x34   : > { %p5859_p3 = pnand %p5857_p1, %p6177_p2  ;;  %p5865_p8 = scmp.lt.s32.totalorder %s5863_s30, %s5856_s28 }
  0x36   : > { %p5860_p11 = pneg %p5859_p3  ;;  %p5866_p5 = por %p5865_p8, %p5864_p9 }
  0x38   : > { %p5867_p6 = pnand %p5866_p5, %p5860_p11 }
  0x3a   : > { %5870 = shalt.err (!%p5867_p6)
}
  0x3b   : > { %s10126_s11 = smov 128   ;;  %s10128_s29 = smov 8  }
  0x3c   : > { %5729 = dma.hbm_to_vmem [thread:$0]  (!%p6156_p0), %s6166_s17, 1024, %s6170_s19, %s6172_s23, %s10126_s11, %s10126_s11, %s10128_s29  }
  0x3d   : > { %s10225_s18 = sshll.u32 %s6149_s25, 6  ;;  %p5241_p8 = scmp.ge.s32.totalorder %s6019_s14, 1 }
  0x3e   : > { %s385_s13 = scalar_lea.vmem [#allocation9], %s10225_s18  ;;  %p405_p9 = scmp.lt.s32.totalorder %s6019_s14, 3 }
  0x3f   : > { %s397_s28 = sshll.u32 %s385_s13, 4  ;;  %s5235_s16 = sshll.u32 %s6149_s25, 8  ;;  %s6207_s28 = int_to_ptr.vmem [resolvable:$true] %s397_s28 }
  0x40   : > { %p6210_p11 = pnand %p5241_p8, %p405_p9  ;;  %s6219_s9 = scalar_lea.hbm %s10105_s0, %s6152_s26 }
  0x41   : > { %s6225_s19 = scalar_lea.hbm %s10107_s2, %s6152_s26  ;;  %s328_s18 = scalar_lea.vmem [#allocation4], %s5235_s16 }
  0x42   : > { %s10226_s20 = scalar_select %p6210_p11, 1, 0 }
  0x43   : > { %s346_s13 = sshll.u32 %s328_s18, 4  ;;  %s6228_s11 = scalar_lea.hbm %s6225_s19, 5120  ;;  %s6230_s13 = int_to_ptr.vmem [resolvable:$true] %s346_s13 }
  0x44   : > { %s325_s29 = scalar_lea.sflag [#allocation5], %s6149_s25  ;;  %s5872_s1 = scalar_lea.hbm %s6219_s9, 4096 }
  0x45   : > { %p5873_p12 = scmp.ne.s32.totalorder %s6219_s9, %s5872_s1  ;;  %s5877_s17 = scalar_lea.hbm %s10105_s0, 12288 }
  0x46   : > { %p5878_p10 = scmp.lt.u32.totalorder %s6219_s9, %s10105_s0  ;;  %p5879_p13 = scmp.lt.u32.totalorder %s5877_s17, %s5872_s1 }
  0x47   : > { %p5875_p4 = pnand %p5873_p12, %p6177_p2  ;;  %p5881_p3 = scmp.lt.u32.totalorder %s5872_s1, %s6219_s9 }
  0x48   : > { %p5880_p1 = por %p5879_p13, %p5878_p10 }
  0x49   : > { %p5876_p7 = pneg %p5875_p4 }
  0x4a   : > { %p5882_p5 = por %p5881_p3, %p5880_p1 }
  0x4c   : > { %p5883_p6 = pnand %p5882_p5, %p5876_p7 }
  0x4e   : > { %5886 = shalt.err (!%p5883_p6)
}
  0x4f   : > { %s5887_s16 = scalar_lea.vmem %s6230_s13, 4096  ;;  %s6024_s18 = smov [#allocation4]  }
  0x50   : > { %p5888_p8 = scmp.ne.s32.totalorder %s6230_s13, %s5887_s16  ;;  %s5892_s22 = sshll.u32 %s6024_s18, 4  ;;  %s5893_s22 = int_to_ptr.vmem [resolvable:$false] %s5892_s22 }
  0x51   : > { %s5894_s14 = scalar_lea.vmem %s5893_s22, 8192  ;;  %p5895_p4 = scmp.lt.s32.totalorder %s6230_s13, %s5893_s22 }
  0x52   : > { %p5890_p9 = pnand %p5888_p8, %p6177_p2  ;;  %p5896_p11 = scmp.lt.s32.totalorder %s5894_s14, %s5887_s16 }
  0x54   : > { %p5891_p12 = pneg %p5890_p9  ;;  %p5897_p10 = por %p5896_p11, %p5895_p4 }
  0x56   : > { %p5898_p13 = pnand %p5897_p10, %p5891_p12 }
  0x58   : > { %5901 = shalt.err (!%p5898_p13)
}
  0x59   : > { %s10227_s1 = smov 8   ;;  %s10228_s30 = smov 128  }
  0x5a   : > { %5726 = dma.hbm_to_vmem [thread:$0]  (!%p6156_p0), %s6219_s9, 4096, %s6230_s13, %s325_s29, %s10228_s30, %s10228_s30, %s10227_s1  }
  0x5b   : > { %s5932_s17 = scalar_lea.hbm %s6225_s19, 6144  ;;  %s5907_s18 = scalar_lea.hbm %s10107_s2, 12288 }
  0x5c   : > { %p5903_p7 = scmp.ne.s32.totalorder %s6228_s11, %s5932_s17  ;;  %p5908_p3 = scmp.lt.u32.totalorder %s6228_s11, %s10107_s2 }
  0x5d   : > { %p5909_p5 = scmp.lt.u32.totalorder %s5907_s18, %s5932_s17  ;;  %p5911_p8 = scmp.lt.u32.totalorder %s5932_s17, %s6228_s11 }
  0x5e   : > { %p5905_p11 = pnand %p5903_p7, %p6177_p2 }
  0x5f   : > { %p5910_p6 = por %p5909_p5, %p5908_p3 }
  0x60   : > { %p5906_p1 = pneg %p5905_p11 }
  0x61   : > { %p5912_p9 = por %p5911_p8, %p5910_p6 }
  0x63   : > { %p5913_p12 = pnand %p5912_p9, %p5906_p1 }
  0x65   : > { %5916 = shalt.err (!%p5913_p12)
}
  0x66   : > { %s5917_s9 = scalar_lea.vmem %s6207_s28, 1024  ;;  %s6025_s25 = smov [#allocation9]  }
  0x67   : > { %p5918_p4 = scmp.ne.s32.totalorder %s6207_s28, %s5917_s9  ;;  %s5922_s29 = sshll.u32 %s6025_s25, 4  ;;  %s5923_s29 = int_to_ptr.vmem [resolvable:$false] %s5922_s29 }
  0x68   : > { %s5924_s19 = scalar_lea.vmem %s5923_s29, 2048  ;;  %p5925_p7 = scmp.lt.s32.totalorder %s6207_s28, %s5923_s29 }
  0x69   : > { %p5920_p10 = pnand %p5918_p4, %p6177_p2  ;;  %p5926_p11 = scmp.lt.s32.totalorder %s5924_s19, %s5917_s9 }
  0x6b   : > { %p5921_p13 = pneg %p5920_p10  ;;  %p5927_p3 = por %p5926_p11, %p5925_p7 }
  0x6d   : > { %p5928_p5 = pnand %p5927_p3, %p5921_p13 }
  0x6f   : > { %5931 = shalt.err (!%p5928_p5)
}
  0x70   : > { %5732 = dma.hbm_to_vmem [thread:$0]  (!%p6156_p0), %s6228_s11, 1024, %s6207_s28, %s6172_s23, %s10228_s30, %s10228_s30, %s10227_s1  }
  0x71   : > { %p10229_p2 = scmp.ne.s32.totalorder %s10226_s20, 0 }
  0x73   : > { %409 = sbr.rel (%p10229_p2) target bundleno = 1140 (0x474), region = 56 }
  0x7a   : > { %s6287_s24 = sand.u32 1, %s6003_s10   ;;  %p10230_p1 = scmp.ne.s32.totalorder %s10216_s21, 0 }
  0x7b   : > { %s5242_s13 = sshll.u32 %s6287_s24, 8  ;;  %s412_s17 = scalar_lea.sflag [#allocation5], %s6287_s24 }
  0x7c   : > { %s6293_s27 = scalar_lea.vmem [#allocation4], %s5242_s13 }
  0x7d   : > { %5986 = dma.done.wait (%p10230_p1), %s412_s17, 4096  }
  0x7e   : > { %5988 = vsyncadd (%p10230_p1), %s412_s17, 4294963200  ;;  %s420_s23 = sand.u32 1, %s6111_s15   ;;  %s5243_s11 = sshll.u32 %s6287_s24, 6 }
  0x7f   : > { %s421_s28 = scalar_lea.sflag [#allocation8], %s420_s23  ;;  %s6303_s20 = scalar_lea.vmem [#allocation7], %s5243_s11 }
  0x80   : > { %5990 = dma.done.wait (%p10230_p1), %s421_s28, 2048  }
  0x81   : > { %5992 = vsyncadd (%p10230_p1), %s421_s28, 4294965248  ;;  %vm491_vm0 = vcmask 392192   ;;  %vm518_vm1 = vcmask 385024   ;;  %v10132_v0 = vmov 0.0   ;;  %vm679_vm2 = vcmask 64512   ;;  %v671_v1 = vld [vmem:[%s10108_s3] sm:$0xff] }
  0x82   : > { %521 = vst.msk [vmem:[#allocation2 + $0x20] sm:$0x1] %vm518_vm1, %v10132_v0  ;;  %581 = vst.msk [vmem:[#allocation2 + $0x29] sm:$0x1] %vm518_vm1, %v10132_v0  ;;  %v639_v2 = vld [vmem:[%s6293_s27] sm:$0xff]  ;;  %v640_v3 = vld [vmem:[%s6293_s27 + $0x8] sm:$0xff]  ;;  %5492 = vmatprep.subr.mxu0 %v671_v1  ;;  %5542 = vmatprep.subr.mxu1 %v671_v1  ;;  %v1483_v50 = vlaneseq }
  0x83   : > { %492 = vst.msk [vmem:[#allocation2] sm:$0xff] %vm491_vm0, %v10132_v0  ;;  %495 = vst.msk [vmem:[#allocation2 + $0xa0] sm:$0xff] %vm491_vm0, %v10132_v0  ;;  %5494 = vmatprep.mubr.msk.f32.mxu0 %vm679_vm2, %v639_v2  ;;  %v641_v4 = vld [vmem:[%s6293_s27 + $0x10] sm:$0xff]  ;;  %5493 = vmatpush3.msra.mxu0 %v671_v1  ;;  %v642_v5 = vld [vmem:[%s6293_s27 + $0x18] sm:$0xff]  ;;  %s6594_s1 = scalar_lea.vmem [#allocation9], %s5243_s11  ;;  %vm493_vm3 = vcmask 386048  }
  0x84   : > { %497 = vst.msk [vmem:[#allocation2 + $0x140] sm:$0xff] %vm491_vm0, %v10132_v0  ;;  %499 = vst.msk [vmem:[#allocation2 + $0x1e0] sm:$0xff] %vm491_vm0, %v10132_v0  ;;  %5495 = vmatmul.mubr.msk.f32.vlgmr.msra.gmra.mrb[0].mxu0 %vm679_vm2, %v640_v3  ;;  %5543 = vmatpush3.msra.mxu1 %v671_v1  ;;  %v643_v6 = vld [vmem:[%s6293_s27 + $0x20] sm:$0xff]  ;;  %v644_v7 = vld [vmem:[%s6293_s27 + $0x28] sm:$0xff]  ;;  %v1484_v51 = vshrl.u32 %v1483_v50, 7  ;;  %s9903_s22 = scalar_lea.vmem [#allocation10], %s5242_s13 }
  0x85   : > { %501 = vst.msk [vmem:[#allocation2 + $0x280] sm:$0xff] %vm491_vm0, %v10132_v0  ;;  %503 = vst.msk [vmem:[#allocation2 + $0x320] sm:$0xff] %vm491_vm0, %v10132_v0  ;;  %5497 = vmatprep.mubr.msk.f32.mxu0 %vm679_vm2, %v641_v4  ;;  %5556 = vmatprep.subr.mxu1 %v671_v1  ;;  %v645_v8 = vld [vmem:[%s6293_s27 + $0x30] sm:$0xff]  ;;  %v1098_v9 = vld [vmem:[%s6303_s20] sm:$0xff]  ;;  %s10965_s13 = sld [smem:[#allocation19_spill]]  ;;  %s5092_s14 = sshll.u32 %s9903_s22, 4  ;;  %s10052_s14 = int_to_ptr.vmem [resolvable:$true] %s5092_s14 }
  0x86   : > { %506 = vst.msk [vmem:[#allocation2 + $0x90] sm:$0xff] %vm491_vm0, %v10132_v0  ;;  %508 = vst.msk [vmem:[#allocation2 + $0x130] sm:$0xff] %vm491_vm0, %v10132_v0  ;;  %v1099_v10 = vld [vmem:[%s6303_s20 + $0x8] sm:$0xff]  ;;  %v1100_v11 = vld [vmem:[%s6303_s20 + $0x10] sm:$0xff]  ;;  %5544 = vmatprep.mubr.msk.f32.mxu1 %vm679_vm2, %v1098_v9  ;;  %v1561_v52 = vsub.s32 3, %v1484_v51  ;;  %v6693_v54 = vsub.s32 4, %v1484_v51 }
  0x87   : > { %510 = vst.msk [vmem:[#allocation2 + $0x1d0] sm:$0xff] %vm491_vm0, %v10132_v0  ;;  %512 = vst.msk [vmem:[#allocation2 + $0x270] sm:$0xff] %vm491_vm0, %v10132_v0  ;;  %v646_v12 = vld [vmem:[%s6293_s27 + $0x38] sm:$0xff]  ;;  %v647_v13 = vld [vmem:[%s6293_s27 + $0x40] sm:$0xff]  ;;  %5545 = vmatmul.mubr.msk.f32.vlgmr.msra.gmra.mrb[0].mxu1 %vm679_vm2, %v1099_v10  ;;  %v6698_v56 = vsub.s32 5, %v1484_v51  ;;  %v6700_v57 = vsub.s32 6, %v1484_v51 }
  0x88   : > { %514 = vst.msk [vmem:[#allocation2 + $0x310] sm:$0xff] %vm491_vm0, %v10132_v0  ;;  %516 = vst.msk [vmem:[#allocation2 + $0x3b0] sm:$0xff] %vm491_vm0, %v10132_v0  ;;  %5498 = vmatmul.mubr.msk.f32.gmra.mrb[2].mxu0 %vm679_vm2, %v642_v5  ;;  %5547 = vmatprep.mubr.msk.f32.mxu1 %vm679_vm2, %v1100_v11  ;;  %v1101_v14 = vld [vmem:[%s6303_s20 + $0x18] sm:$0xff]  ;;  %v1102_v15 = vld [vmem:[%s6303_s20 + $0x20] sm:$0xff]  ;;  %v6702_v58 = vsub.s32 7, %v1484_v51  ;;  %v6720_v63 = vsub.s32 0, %v1484_v51 }
  0x89   : > { %520 = vst.msk [vmem:[#allocation2 + $0x10] sm:$0x1] %vm518_vm1, %v10132_v0  ;;  %522 = vst.msk [vmem:[#allocation2 + $0x30] sm:$0x1] %vm518_vm1, %v10132_v0  ;;  %5500 = vmatprep.mubr.msk.f32.mxu0 %vm679_vm2, %v643_v6  ;;  %5557 = vmatpush3.msra.mxu1 %v671_v1  ;;  %v648_v16 = vld [vmem:[%s6293_s27 + $0x48] sm:$0xff]  ;;  %v649_v17 = vld [vmem:[%s6293_s27 + $0x50] sm:$0xff] }
  0x8a   : > { %523 = vst.msk [vmem:[#allocation2 + $0x40] sm:$0x1] %vm518_vm1, %v10132_v0  ;;  %524 = vst.msk [vmem:[#allocation2 + $0x50] sm:$0x1] %vm518_vm1, %v10132_v0  ;;  %v1103_v18 = vld [vmem:[%s6303_s20 + $0x28] sm:$0xff]  ;;  %v1104_v19 = vld [vmem:[%s6303_s20 + $0x30] sm:$0xff] }
  0x8b   : > { %525 = vst.msk [vmem:[#allocation2 + $0x60] sm:$0x1] %vm518_vm1, %v10132_v0  ;;  %526 = vst.msk [vmem:[#allocation2 + $0x70] sm:$0x1] %vm518_vm1, %v10132_v0  ;;  %5548 = vmatmul.mubr.msk.f32.gmra.mrb[2].mxu1 %vm679_vm2, %v1101_v14  ;;  %v650_v20 = vld [vmem:[%s6293_s27 + $0x58] sm:$0xff]  ;;  %v651_v21 = vld [vmem:[%s6293_s27 + $0x60] sm:$0xff] }
  0x8c   : > { %527 = vst.msk [vmem:[#allocation2 + $0x80] sm:$0x1] %vm518_vm1, %v10132_v0  ;;  %530 = vst.msk [vmem:[#allocation2 + $0xb0] sm:$0x1] %vm518_vm1, %v10132_v0  ;;  %5501 = vmatmul.mubr.msk.f32.gmra.mrb[4].mxu0 %vm679_vm2, %v644_v7  ;;  %5550 = vmatprep.mubr.msk.f32.mxu1 %vm679_vm2, %v1102_v15  ;;  %v1105_v22 = vld [vmem:[%s6303_s20 + $0x38] sm:$0xff]  ;;  %v1268_v23 = vld [vmem:[%s6594_s1] sm:$0xff] }
  0x8d   : > { %531 = vst.msk [vmem:[#allocation2 + $0xc0] sm:$0x1] %vm518_vm1, %v10132_v0  ;;  %532 = vst.msk [vmem:[#allocation2 + $0xd0] sm:$0x1] %vm518_vm1, %v10132_v0  ;;  %5503 = vmatprep.mubr.msk.f32.mxu0 %vm679_vm2, %v645_v8  ;;  %v652_v24 = vld [vmem:[%s6293_s27 + $0x68] sm:$0xff]  ;;  %v653_v25 = vld [vmem:[%s6293_s27 + $0x70] sm:$0xff] }
  0x8e   : > { %533 = vst.msk [vmem:[#allocation2 + $0xe0] sm:$0x1] %vm518_vm1, %v10132_v0  ;;  %534 = vst.msk [vmem:[#allocation2 + $0xf0] sm:$0x1] %vm518_vm1, %v10132_v0  ;;  %v1269_v26 = vld [vmem:[%s6594_s1 + $0x8] sm:$0xff]  ;;  %v1270_v27 = vld [vmem:[%s6594_s1 + $0x10] sm:$0xff] }
  0x8f   : > { %535 = vst.msk [vmem:[#allocation2 + $0x100] sm:$0x1] %vm518_vm1, %v10132_v0  ;;  %536 = vst.msk [vmem:[#allocation2 + $0x110] sm:$0x1] %vm518_vm1, %v10132_v0  ;;  %5551 = vmatmul.mubr.msk.f32.gmra.mrb[4].mxu1 %vm679_vm2, %v1103_v18  ;;  %v654_v28 = vld [vmem:[%s6293_s27 + $0x78] sm:$0xff]  ;;  %v655_v29 = vld [vmem:[%s6293_s27 + $0x80] sm:$0xff] }
  0x90   : > { %537 = vst.msk [vmem:[#allocation2 + $0x120] sm:$0x1] %vm518_vm1, %v10132_v0  ;;  %540 = vst.msk [vmem:[#allocation2 + $0x150] sm:$0x1] %vm518_vm1, %v10132_v0  ;;  %5504 = vmatmul.mubr.msk.f32.gmra.mrb[6].mxu0 %vm679_vm2, %v646_v12  ;;  %5553 = vmatprep.mubr.msk.f32.mxu1 %vm679_vm2, %v1104_v19  ;;  %v1271_v30 = vld [vmem:[%s6594_s1 + $0x18] sm:$0xff]  ;;  %v1272_v31 = vld [vmem:[%s6594_s1 + $0x20] sm:$0xff] }
  0x91   : > { %541 = vst.msk [vmem:[#allocation2 + $0x160] sm:$0x1] %vm518_vm1, %v10132_v0  ;;  %542 = vst.msk [vmem:[#allocation2 + $0x170] sm:$0x1] %vm518_vm1, %v10132_v0  ;;  %5506 = vmatprep.mubr.msk.f32.mxu0 %vm679_vm2, %v647_v13  ;;  %v656_v32 = vld [vmem:[%s6293_s27 + $0x88] sm:$0xff]  ;;  %v657_v33 = vld [vmem:[%s6293_s27 + $0x90] sm:$0xff] }
  0x92   : > { %543 = vst.msk [vmem:[#allocation2 + $0x180] sm:$0x1] %vm518_vm1, %v10132_v0  ;;  %544 = vst.msk [vmem:[#allocation2 + $0x190] sm:$0x1] %vm518_vm1, %v10132_v0  ;;  %v1273_v34 = vld [vmem:[%s6594_s1 + $0x28] sm:$0xff]  ;;  %v1274_v35 = vld [vmem:[%s6594_s1 + $0x30] sm:$0xff] }
  0x93   : > { %545 = vst.msk [vmem:[#allocation2 + $0x1a0] sm:$0x1] %vm518_vm1, %v10132_v0  ;;  %546 = vst.msk [vmem:[#allocation2 + $0x1b0] sm:$0x1] %vm518_vm1, %v10132_v0  ;;  %5554 = vmatmul.mubr.msk.f32.gmra.mrb[6].mxu1 %vm679_vm2, %v1105_v22  ;;  %v658_v36 = vld [vmem:[%s6293_s27 + $0x98] sm:$0xff]  ;;  %v659_v37 = vld [vmem:[%s6293_s27 + $0xa0] sm:$0xff] }
  0x94   : > { %547 = vst.msk [vmem:[#allocation2 + $0x1c0] sm:$0x1] %vm518_vm1, %v10132_v0  ;;  %550 = vst.msk [vmem:[#allocation2 + $0x1f0] sm:$0x1] %vm518_vm1, %v10132_v0  ;;  %5507 = vmatmul.mubr.msk.f32.gmra.mrb[8].mxu0 %vm679_vm2, %v648_v16  ;;  %5558 = vmatprep.mubr.msk.f32.mxu1 %vm679_vm2, %v1268_v23  ;;  %v1275_v38 = vld [vmem:[%s6594_s1 + $0x38] sm:$0xff]  ;;  %v660_v39 = vld [vmem:[%s6293_s27 + $0xa8] sm:$0xff] }
  0x95   : > { %551 = vst.msk [vmem:[#allocation2 + $0x200] sm:$0x1] %vm518_vm1, %v10132_v0  ;;  %552 = vst.msk [vmem:[#allocation2 + $0x210] sm:$0x1] %vm518_vm1, %v10132_v0  ;;  %5509 = vmatprep.mubr.msk.f32.mxu0 %vm679_vm2, %v649_v17  ;;  %v661_v40 = vld [vmem:[%s6293_s27 + $0xb0] sm:$0xff]  ;;  %v662_v41 = vld [vmem:[%s6293_s27 + $0xb8] sm:$0xff] }
  0x96   : > { %553 = vst.msk [vmem:[#allocation2 + $0x220] sm:$0x1] %vm518_vm1, %v10132_v0  ;;  %554 = vst.msk [vmem:[#allocation2 + $0x230] sm:$0x1] %vm518_vm1, %v10132_v0  ;;  %v663_v42 = vld [vmem:[%s6293_s27 + $0xc0] sm:$0xff]  ;;  %v664_v43 = vld [vmem:[%s6293_s27 + $0xc8] sm:$0xff] }
  0x97   : > { %555 = vst.msk [vmem:[#allocation2 + $0x240] sm:$0x1] %vm518_vm1, %v10132_v0  ;;  %556 = vst.msk [vmem:[#allocation2 + $0x250] sm:$0x1] %vm518_vm1, %v10132_v0  ;;  %5559 = vmatmul.mubr.msk.f32.vlgmr.msra.gmra.mrb[8].mxu1 %vm679_vm2, %v1269_v26  ;;  %v665_v44 = vld [vmem:[%s6293_s27 + $0xd0] sm:$0xff]  ;;  %v666_v45 = vld [vmem:[%s6293_s27 + $0xd8] sm:$0xff] }
  0x98   : > { %557 = vst.msk [vmem:[#allocation2 + $0x260] sm:$0x1] %vm518_vm1, %v10132_v0  ;;  %560 = vst.msk [vmem:[#allocation2 + $0x290] sm:$0x1] %vm518_vm1, %v10132_v0  ;;  %5510 = vmatmul.mubr.msk.f32.gmra.mrb[10].mxu0 %vm679_vm2, %v650_v20  ;;  %5561 = vmatprep.mubr.msk.f32.mxu1 %vm679_vm2, %v1270_v27  ;;  %v667_v46 = vld [vmem:[%s6293_s27 + $0xe0] sm:$0xff]  ;;  %v668_v47 = vld [vmem:[%s6293_s27 + $0xe8] sm:$0xff] }
  0x99   : > { %561 = vst.msk [vmem:[#allocation2 + $0x2a0] sm:$0x1] %vm518_vm1, %v10132_v0  ;;  %562 = vst.msk [vmem:[#allocation2 + $0x2b0] sm:$0x1] %vm518_vm1, %v10132_v0  ;;  %5512 = vmatprep.mubr.msk.f32.mxu0 %vm679_vm2, %v651_v21  ;;  %v669_v48 = vld [vmem:[%s6293_s27 + $0xf0] sm:$0xff]  ;;  %v670_v49 = vld [vmem:[%s6293_s27 + $0xf8] sm:$0xff] }
  0x9a   : > { %563 = vst.msk [vmem:[#allocation2 + $0x2c0] sm:$0x1] %vm518_vm1, %v10132_v0  ;;  %564 = vst.msk [vmem:[#allocation2 + $0x2d0] sm:$0x1] %vm518_vm1, %v10132_v0  ;;  %v6691_v53 = vld [vmem:[%s10110_s5 + $0x10] sm:$0xff]  ;;  %v6722_v1 = vsub.s32 1, %v1484_v51 }
  0x9b   : > { %565 = vst.msk [vmem:[#allocation2 + $0x2e0] sm:$0x1] %vm518_vm1, %v10132_v0  ;;  %566 = vst.msk [vmem:[#allocation2 + $0x2f0] sm:$0x1] %vm518_vm1, %v10132_v0  ;;  %5562 = vmatmul.mubr.msk.f32.gmra.mrb[10].mxu1 %vm679_vm2, %v1271_v30  ;;  %v6696_v55 = vrot.slane %v6691_v53, %v1561_v52  ;;  %v6706_v59 = vrot.slane %v6691_v53, %v6693_v54  ;;  %v6710_v60 = vrot.slane %v6691_v53, %v6698_v56  ;;  %v1463_v2 = vld [vmem:[%s10110_s5] sm:$0xff]  ;;  %v1464_v19 = vld [vmem:[%s10110_s5 + $0x8] sm:$0xff] }
  0x9c   : > { %567 = vst.msk [vmem:[#allocation2 + $0x300] sm:$0x1] %vm518_vm1, %v10132_v0  ;;  %570 = vst.msk [vmem:[#allocation2 + $0x330] sm:$0x1] %vm518_vm1, %v10132_v0  ;;  %5513 = vmatmul.mubr.msk.f32.gmra.mrb[12].mxu0 %vm679_vm2, %v652_v24  ;;  %5564 = vmatprep.mubr.msk.f32.mxu1 %vm679_vm2, %v1272_v31  ;;  %v6714_v61 = vrot.slane %v6691_v53, %v6700_v57  ;;  %v6718_v62 = vrot.slane %v6691_v53, %v6702_v58  ;;  %v6730_v3 = vld [vmem:[%s10109_s4] ss:$0 sm:$0xff] }
  0x9d   : > { %571 = vst.msk [vmem:[#allocation2 + $0x340] sm:$0x1] %vm518_vm1, %v10132_v0  ;;  %572 = vst.msk [vmem:[#allocation2 + $0x350] sm:$0x1] %vm518_vm1, %v10132_v0  ;;  %5515 = vmatprep.mubr.msk.f32.mxu0 %vm679_vm2, %v653_v25  ;;  %v6733_v5 = vrot.slane %v1463_v2, %v6720_v63  ;;  %v6736_v6 = vrot.slane %v1463_v2, %v6722_v1  ;;  %v6738_v7 = vsub.s32 2, %v1484_v51  ;;  %s10966_s29 = sld [smem:[#allocation254_spill]] }
  0x9e   : > { %573 = vst.msk [vmem:[#allocation2 + $0x360] sm:$0x1] %vm518_vm1, %v10132_v0  ;;  %574 = vst.msk [vmem:[#allocation2 + $0x370] sm:$0x1] %vm518_vm1, %v10132_v0  ;;  %v6754_v27 = vrot.slane %v1464_v19, %v6722_v1  ;;  %p10967_p6 = scmp.ne.s32.totalorder %s10965_s13, 0  ;;  %s6027_s17 = smov [#allocation10]  }
  0x9f   : > { %575 = vst.msk [vmem:[#allocation2 + $0x380] sm:$0x1] %vm518_vm1, %v10132_v0  ;;  %576 = vst.msk [vmem:[#allocation2 + $0x390] sm:$0x1] %vm518_vm1, %v10132_v0  ;;  %5565 = vmatmul.mubr.msk.f32.gmra.mrb[12].mxu1 %vm679_vm2, %v1273_v34  ;;  %v6743_v14 = vrot.slane %v1463_v2, %v6738_v7  ;;  %s5937_s23 = sshll.u32 %s6027_s17, 4  ;;  %s5938_s23 = int_to_ptr.vmem [resolvable:$false] %s5937_s23 }
  0xa0   : > { %577 = vst.msk [vmem:[#allocation2 + $0x3a0] sm:$0x1] %vm518_vm1, %v10132_v0  ;;  %580 = vst.msk [vmem:[#allocation2 + $0x19] sm:$0x1] %vm518_vm1, %v10132_v0  ;;  %5516 = vmatmul.mubr.msk.f32.gmra.mrb[14].mxu0 %vm679_vm2, %v654_v28  ;;  %5567 = vmatprep.mubr.msk.f32.mxu1 %vm679_vm2, %v1274_v35  ;;  %v6757_v28 = vrot.slane %v1464_v19, %v6738_v7  ;;  %v6763_v35 = vrot.slane %v1463_v2, %v1561_v52  ;;  %s5939_s11 = scalar_lea.vmem %s5938_s23, 8192  ;;  %p5940_p12 = scmp.lt.s32.totalorder %s10052_s14, %s5938_s23 }
  0xa1   : > { %582 = vst.msk [vmem:[#allocation2 + $0x39] sm:$0x1] %vm518_vm1, %v10132_v0  ;;  %583 = vst.msk [vmem:[#allocation2 + $0x49] sm:$0x1] %vm518_vm1, %v10132_v0  ;;  %5518 = vmatprep.mubr.msk.f32.mxu0 %vm679_vm2, %v655_v29 }
  0xa2   : > { %584 = vst.msk [vmem:[#allocation2 + $0x59] sm:$0x1] %vm518_vm1, %v10132_v0  ;;  %585 = vst.msk [vmem:[#allocation2 + $0x69] sm:$0x1] %vm518_vm1, %v10132_v0 }
  0xa3   : > { %586 = vst.msk [vmem:[#allocation2 + $0x79] sm:$0x1] %vm518_vm1, %v10132_v0  ;;  %587 = vst.msk [vmem:[#allocation2 + $0x89] sm:$0x1] %vm518_vm1, %v10132_v0  ;;  %5568 = vmatmul.mubr.msk.f32.gmra.mrb[14].mxu1 %vm679_vm2, %v1275_v38 }
  0xa4   : > { %590 = vst.msk [vmem:[#allocation2 + $0xb9] sm:$0x1] %vm518_vm1, %v10132_v0  ;;  %591 = vst.msk [vmem:[#allocation2 + $0xc9] sm:$0x1] %vm518_vm1, %v10132_v0  ;;  %5519 = vmatmul.mubr.msk.f32.gmra.mrb[16].mxu0 %vm679_vm2, %v656_v32 }
  0xa5   : > { %592 = vst.msk [vmem:[#allocation2 + $0xd9] sm:$0x1] %vm518_vm1, %v10132_v0  ;;  %593 = vst.msk [vmem:[#allocation2 + $0xe9] sm:$0x1] %vm518_vm1, %v10132_v0  ;;  %5521 = vmatprep.mubr.msk.f32.mxu0 %vm679_vm2, %v657_v33 }
  0xa6   : > { %594 = vst.msk [vmem:[#allocation2 + $0xf9] sm:$0x1] %vm518_vm1, %v10132_v0  ;;  %595 = vst.msk [vmem:[#allocation2 + $0x109] sm:$0x1] %vm518_vm1, %v10132_v0 }
  0xa7   : > { %596 = vst.msk [vmem:[#allocation2 + $0x119] sm:$0x1] %vm518_vm1, %v10132_v0  ;;  %597 = vst.msk [vmem:[#allocation2 + $0x129] sm:$0x1] %vm518_vm1, %v10132_v0 }
  0xa8   : > { %600 = vst.msk [vmem:[#allocation2 + $0x159] sm:$0x1] %vm518_vm1, %v10132_v0  ;;  %601 = vst.msk [vmem:[#allocation2 + $0x169] sm:$0x1] %vm518_vm1, %v10132_v0  ;;  %5522 = vmatmul.mubr.msk.f32.gmra.mrb[18].mxu0 %vm679_vm2, %v658_v36  ;;  %v6766_v36 = vrot.slane %v1463_v2, %v6693_v54 }
  0xa9   : > { %602 = vst.msk [vmem:[#allocation2 + $0x179] sm:$0x1] %vm518_vm1, %v10132_v0  ;;  %603 = vst.msk [vmem:[#allocation2 + $0x189] sm:$0x1] %vm518_vm1, %v10132_v0  ;;  %5524 = vmatprep.mubr.msk.f32.mxu0 %vm679_vm2, %v659_v37 }
  0xaa   : > { %604 = vst.msk [vmem:[#allocation2 + $0x199] sm:$0x1] %vm518_vm1, %v10132_v0  ;;  %605 = vst.msk [vmem:[#allocation2 + $0x1a9] sm:$0x1] %vm518_vm1, %v10132_v0 }
  0xab   : > { %606 = vst.msk [vmem:[#allocation2 + $0x1b9] sm:$0x1] %vm518_vm1, %v10132_v0  ;;  %607 = vst.msk [vmem:[#allocation2 + $0x1c9] sm:$0x1] %vm518_vm1, %v10132_v0 }
  0xac   : > { %610 = vst.msk [vmem:[#allocation2 + $0x1f9] sm:$0x1] %vm518_vm1, %v10132_v0  ;;  %611 = vst.msk [vmem:[#allocation2 + $0x209] sm:$0x1] %vm518_vm1, %v10132_v0  ;;  %5525 = vmatmul.mubr.msk.f32.gmra.mrb[20].mxu0 %vm679_vm2, %v660_v39 }
  0xad   : > { %612 = vst.msk [vmem:[#allocation2 + $0x219] sm:$0x1] %vm518_vm1, %v10132_v0  ;;  %613 = vst.msk [vmem:[#allocation2 + $0x229] sm:$0x1] %vm518_vm1, %v10132_v0  ;;  %5527 = vmatprep.mubr.msk.f32.mxu0 %vm679_vm2, %v661_v40  ;;  %v6772_v40 = vrot.slane %v1463_v2, %v6698_v56 }
  0xae   : > { %614 = vst.msk [vmem:[#allocation2 + $0x239] sm:$0x1] %vm518_vm1, %v10132_v0  ;;  %615 = vst.msk [vmem:[#allocation2 + $0x249] sm:$0x1] %vm518_vm1, %v10132_v0 }
  0xaf   : > { %616 = vst.msk [vmem:[#allocation2 + $0x259] sm:$0x1] %vm518_vm1, %v10132_v0  ;;  %617 = vst.msk [vmem:[#allocation2 + $0x269] sm:$0x1] %vm518_vm1, %v10132_v0 }
  0xb0   : > { %620 = vst.msk [vmem:[#allocation2 + $0x299] sm:$0x1] %vm518_vm1, %v10132_v0  ;;  %621 = vst.msk [vmem:[#allocation2 + $0x2a9] sm:$0x1] %vm518_vm1, %v10132_v0  ;;  %5528 = vmatmul.mubr.msk.f32.gmra.mrb[22].mxu0 %vm679_vm2, %v662_v41  ;;  %v6775_v41 = vrot.slane %v1463_v2, %v6700_v57 }
  0xb1   : > { %622 = vst.msk [vmem:[#allocation2 + $0x2b9] sm:$0x1] %vm518_vm1, %v10132_v0  ;;  %623 = vst.msk [vmem:[#allocation2 + $0x2c9] sm:$0x1] %vm518_vm1, %v10132_v0  ;;  %5530 = vmatprep.mubr.msk.f32.mxu0 %vm679_vm2, %v663_v42 }
  0xb2   : > { %624 = vst.msk [vmem:[#allocation2 + $0x2d9] sm:$0x1] %vm518_vm1, %v10132_v0  ;;  %625 = vst.msk [vmem:[#allocation2 + $0x2e9] sm:$0x1] %vm518_vm1, %v10132_v0 }
  0xb3   : > { %626 = vst.msk [vmem:[#allocation2 + $0x2f9] sm:$0x1] %vm518_vm1, %v10132_v0  ;;  %627 = vst.msk [vmem:[#allocation2 + $0x309] sm:$0x1] %vm518_vm1, %v10132_v0 }
  0xb4   : > { %630 = vst.msk [vmem:[#allocation2 + $0x339] sm:$0x1] %vm518_vm1, %v10132_v0  ;;  %631 = vst.msk [vmem:[#allocation2 + $0x349] sm:$0x1] %vm518_vm1, %v10132_v0  ;;  %5531 = vmatmul.mubr.msk.f32.gmra.mrb[24].mxu0 %vm679_vm2, %v664_v43 }
  0xb5   : > { %632 = vst.msk [vmem:[#allocation2 + $0x359] sm:$0x1] %vm518_vm1, %v10132_v0  ;;  %633 = vst.msk [vmem:[#allocation2 + $0x369] sm:$0x1] %vm518_vm1, %v10132_v0  ;;  %5533 = vmatprep.mubr.msk.f32.mxu0 %vm679_vm2, %v665_v44 }
  0xb6   : > { %634 = vst.msk [vmem:[#allocation2 + $0x379] sm:$0x1] %vm518_vm1, %v10132_v0  ;;  %635 = vst.msk [vmem:[#allocation2 + $0x389] sm:$0x1] %vm518_vm1, %v10132_v0 }
  0xb7   : > { %636 = vst.msk [vmem:[#allocation2 + $0x399] sm:$0x1] %vm518_vm1, %v10132_v0  ;;  %637 = vst.msk [vmem:[#allocation2 + $0x3a9] sm:$0x1] %vm518_vm1, %v10132_v0 }
  0xb8   : > { %519 = vst.msk [vmem:[#allocation2] sm:$0x1] %vm518_vm1, %v10132_v0  ;;  %528 = vst.msk [vmem:[#allocation2 + $0x90] sm:$0x1] %vm518_vm1, %v10132_v0  ;;  %5534 = vmatmul.mubr.msk.f32.gmra.mrb[26].mxu0 %vm679_vm2, %v666_v45  ;;  %v6779_v45 = vrot.slane %v1464_v19, %v1561_v52  ;;  %v6791_v52 = vrot.slane %v6691_v53, %v6738_v7 }
  0xb9   : > { %529 = vst.msk [vmem:[#allocation2 + $0xa0] sm:$0x1] %vm518_vm1, %v10132_v0  ;;  %538 = vst.msk [vmem:[#allocation2 + $0x130] sm:$0x1] %vm518_vm1, %v10132_v0  ;;  %5536 = vmatprep.mubr.msk.f32.mxu0 %vm679_vm2, %v667_v46 }
  0xba   : > { %539 = vst.msk [vmem:[#allocation2 + $0x140] sm:$0x1] %vm518_vm1, %v10132_v0  ;;  %548 = vst.msk [vmem:[#allocation2 + $0x1d0] sm:$0x1] %vm518_vm1, %v10132_v0 }
  0xbb   : > { %549 = vst.msk [vmem:[#allocation2 + $0x1e0] sm:$0x1] %vm518_vm1, %v10132_v0  ;;  %558 = vst.msk [vmem:[#allocation2 + $0x270] sm:$0x1] %vm518_vm1, %v10132_v0 }
  0xbc   : > { %559 = vst.msk [vmem:[#allocation2 + $0x280] sm:$0x1] %vm518_vm1, %v10132_v0  ;;  %568 = vst.msk [vmem:[#allocation2 + $0x310] sm:$0x1] %vm518_vm1, %v10132_v0  ;;  %5537 = vmatmul.mubr.msk.f32.gmra.mrb[28].mxu0 %vm679_vm2, %v668_v47 }
  0xbd   : > { %569 = vst.msk [vmem:[#allocation2 + $0x320] sm:$0x1] %vm518_vm1, %v10132_v0  ;;  %578 = vst.msk [vmem:[#allocation2 + $0x3b0] sm:$0x1] %vm518_vm1, %v10132_v0  ;;  %5539 = vmatprep.mubr.msk.f32.mxu0 %vm679_vm2, %v669_v48 }
  0xbe   : > { %494 = vst.msk [vmem:[#allocation2 + $0x8] sm:$0x3] %vm493_vm3, %v10132_v0  ;;  %496 = vst.msk [vmem:[#allocation2 + $0xa8] sm:$0x3] %vm493_vm3, %v10132_v0 }
  0xbf   : > { %498 = vst.msk [vmem:[#allocation2 + $0x148] sm:$0x3] %vm493_vm3, %v10132_v0  ;;  %500 = vst.msk [vmem:[#allocation2 + $0x1e8] sm:$0x3] %vm493_vm3, %v10132_v0  ;;  %v1475_v10 = vld [vmem:[#allocation2] sm:$0xff] }
  0xc0   : > { %5540 = vmatmul.mubr.msk.f32.gmra.mrb[30].mxu0 %vm679_vm2, %v670_v49  ;;  %502 = vst.msk [vmem:[#allocation2 + $0x288] sm:$0x3] %vm493_vm3, %v10132_v0  ;;  %504 = vst.msk [vmem:[#allocation2 + $0x328] sm:$0x3] %vm493_vm3, %v10132_v0  ;;  %v1487_v16 = vmul.f32 %v6733_v5, %v1475_v10  ;;  %v1729_v33 = vld [vmem:[#allocation2 + $0xa0] sm:$0xff]  ;;  %v6787_v49 = vrot.slane %v1463_v2, %v6702_v58  ;;  %v6802_v2 = vrot.slane %v1464_v19, %v6693_v54 }
  0xc1   : > { %507 = vst.msk [vmem:[#allocation2 + $0x98] sm:$0x3] %vm493_vm3, %v10132_v0  ;;  %509 = vst.msk [vmem:[#allocation2 + $0x138] sm:$0x3] %vm493_vm3, %v10132_v0  ;;  %v1741_v46 = vmul.f32 %v6754_v27, %v1729_v33 }
  0xc2   : > { %511 = vst.msk [vmem:[#allocation2 + $0x1d8] sm:$0x3] %vm493_vm3, %v10132_v0  ;;  %513 = vst.msk [vmem:[#allocation2 + $0x278] sm:$0x3] %vm493_vm3, %v10132_v0 }
  0xc3   : > { %515 = vst.msk [vmem:[#allocation2 + $0x318] sm:$0x3] %vm493_vm3, %v10132_v0  ;;  %517 = vst.msk [vmem:[#allocation2 + $0x3b8] sm:$0x3] %vm493_vm3, %v10132_v0 }
  0xc4   : > { %579 = vst.msk [vmem:[#allocation2 + $0x9] sm:$0x1] %vm518_vm1, %v10132_v0  ;;  %588 = vst.msk [vmem:[#allocation2 + $0x99] sm:$0x1] %vm518_vm1, %v10132_v0 }
  0xc5   : > { %589 = vst.msk [vmem:[#allocation2 + $0xa9] sm:$0x1] %vm518_vm1, %v10132_v0  ;;  %598 = vst.msk [vmem:[#allocation2 + $0x139] sm:$0x1] %vm518_vm1, %v10132_v0  ;;  %v1495_v11 = vld [vmem:[#allocation2 + $0x1] sm:$0xff] }
  0xc6   : > { %599 = vst.msk [vmem:[#allocation2 + $0x149] sm:$0x1] %vm518_vm1, %v10132_v0  ;;  %608 = vst.msk [vmem:[#allocation2 + $0x1d9] sm:$0x1] %vm518_vm1, %v10132_v0  ;;  %v1507_v17 = vmul.f32 %v6736_v6, %v1495_v11  ;;  %v1749_v34 = vld [vmem:[#allocation2 + $0xa1] sm:$0xff] }
  0xc7   : > { %609 = vst.msk [vmem:[#allocation2 + $0x1e9] sm:$0x1] %vm518_vm1, %v10132_v0  ;;  %618 = vst.msk [vmem:[#allocation2 + $0x279] sm:$0x1] %vm518_vm1, %v10132_v0  ;;  %v1761_v47 = vmul.f32 %v6757_v28, %v1749_v34 }
  0xc8   : > { %619 = vst.msk [vmem:[#allocation2 + $0x289] sm:$0x1] %vm518_vm1, %v10132_v0  ;;  %628 = vst.msk [vmem:[#allocation2 + $0x319] sm:$0x1] %vm518_vm1, %v10132_v0  ;;  %v1515_v29 = vadd.f32 %v1507_v17, %v1487_v16  ;;  %v6808_v16 = vrot.slane %v1464_v19, %v6700_v57  ;;  %v6811_v17 = vrot.slane %v1464_v19, %v6702_v58 }
  0xc9   : > { %629 = vst.msk [vmem:[#allocation2 + $0x329] sm:$0x1] %vm518_vm1, %v10132_v0  ;;  %638 = vst.msk [vmem:[#allocation2 + $0x3b9] sm:$0x1] %vm518_vm1, %v10132_v0 }
  0xca   : > { %10231 = vst [vmem:[#allocation22_spill] sm:$0xff] %v6696_v55  ;;  %10232 = vst [vmem:[#allocation23_spill] sm:$0xff] %v6706_v59 }
  0xcb   : > { %10233 = vst [vmem:[#allocation24_spill] sm:$0xff] %v6710_v60  ;;  %10234 = vst [vmem:[#allocation25_spill] sm:$0xff] %v6714_v61  ;;  %v1523_v21 = vld [vmem:[#allocation2 + $0x2] sm:$0xff] }
  0xcc   : > { %10235 = vst [vmem:[#allocation26_spill] sm:$0xff] %v6718_v62  ;;  %10236 = vst [vmem:[#allocation27_spill] sm:$0xff] %v6733_v5  ;;  %v1535_v30 = vmul.f32 %v6743_v14, %v1523_v21 }
  0xcd   : > { %10237 = vst [vmem:[#allocation28_spill] sm:$0xff] %v6736_v6  ;;  %10238 = vst [vmem:[#allocation29_spill] sm:$0xff] %v6743_v14 }
  0xce   : > { %10239 = vst [vmem:[#allocation30_spill] sm:$0xff] %v6766_v36  ;;  %10240 = vst [vmem:[#allocation31_spill] sm:$0xff] %v6772_v40  ;;  %v1543_v48 = vadd.f32 %v1535_v30, %v1515_v29 }
  0xcf   : > { %10241 = vst [vmem:[#allocation32_spill] sm:$0xff] %v6775_v41  ;;  %10242 = vst [vmem:[#allocation33_spill] sm:$0xff] %v6779_v45 }
  0xd0   : > { %10243 = vst [vmem:[#allocation34_spill] sm:$0xff] %v6787_v49  ;;  %10244 = vst [vmem:[#allocation35_spill] sm:$0xff] %v6791_v52 }
  0xd1   : > { %10246 = vst [vmem:[#allocation37_spill] sm:$0xff] %v6802_v2  ;;  %10247 = vst [vmem:[#allocation38_spill] sm:$0xff] %v6808_v16 }
  0xd2   : > { %10248 = vst [vmem:[#allocation39_spill] sm:$0xff] %v6811_v17 }
 0x157   : > { %v5496_v4 = vpop.f32.mrb[0].mxu0 }
 0x158   : > { %v848_v8 = vadd.f32 %v5496_v4, %v6730_v3  ;;  %v842_v9 = vpop.f32.mrb[1].mxu0  ;;  %v1777_v4 = vld [vmem:[#allocation2 + $0xa2] sm:$0xff] }
 0x159   : > { %v843_v12 = vadd.f32 %v6730_v3, %v842_v9 }
 0x15a   : > { %v1002_v13 = vmax.f32 %v848_v8, 0.0  ;;  %v6796_v8 = vrot.slane %v1464_v19, %v6720_v63 }
 0x15b   : > { %v1001_v15 = vmax.f32 %v843_v12, 0.0  ;;  %v5499_v18 = vpop.f32.mrb[2].mxu0  ;;  %v2000_v12 = vld [vmem:[#allocation2 + $0x140] sm:$0xff] }
 0x15c   : > { %v1034_v20 = vmin.f32 %v1002_v13, 6.0  ;;  %v858_v22 = vadd.f32 %v5499_v18, %v6730_v3  ;;  %v852_v23 = vpop.f32.mrb[3].mxu0  ;;  %10245 = vst [vmem:[#allocation36_spill] sm:$0xff] %v6796_v8  ;;  %v2020_v18 = vld [vmem:[#allocation2 + $0x141] sm:$0xff] }
 0x15d   : > { %v1033_v24 = vmin.f32 %v1001_v15, 6.0  ;;  %v853_v25 = vadd.f32 %v6730_v3, %v852_v23  ;;  %v6805_v15 = vrot.slane %v1464_v19, %v6698_v56  ;;  %v6818_v23 = vrot.slane %v6691_v53, %v6720_v63 }
 0x15e   : > { %1067 = vst.msk [vmem:[#allocation2 + $0x21] sm:$0xff] %vm491_vm0, %v1034_v20  ;;  %v1004_v26 = vmax.f32 %v858_v22, 0.0  ;;  %v1769_v56 = vadd.f32 %v1761_v47, %v1741_v46  ;;  %v2032_v34 = vmul.f32 %v6696_v55, %v2020_v18  ;;  %v2048_v46 = vld [vmem:[#allocation2 + $0x142] sm:$0xff] }
 0x15f   : > { %1443 = vst.msk [vmem:[#allocation2 + $0x21] sm:$0xff] %vm491_vm0, %v10132_v0  ;;  %1066 = vst.msk [vmem:[#allocation2 + $0x11] sm:$0xff] %vm491_vm0, %v1033_v24  ;;  %v1003_v31 = vmax.f32 %v853_v25, 0.0  ;;  %v5502_v32 = vpop.f32.mrb[4].mxu0  ;;  %v1789_v24 = vmul.f32 %v6779_v45, %v1777_v4  ;;  %v6850_v4 = vrot.slane %v6691_v53, %v6722_v1 }
 0x160   : > { %1442 = vst.msk [vmem:[#allocation2 + $0x11] sm:$0xff] %vm491_vm0, %v10132_v0  ;;  %v1036_v37 = vmin.f32 %v1004_v26, 6.0  ;;  %v868_v38 = vadd.f32 %v5502_v32, %v6730_v3  ;;  %v862_v39 = vpop.f32.mrb[5].mxu0  ;;  %10249 = vst [vmem:[#allocation40_spill] sm:$0xff] %v6818_v23 }
 0x161   : > { %v1035_v42 = vmin.f32 %v1003_v31, 6.0  ;;  %v863_v43 = vadd.f32 %v6730_v3, %v862_v39  ;;  %v2012_v31 = vmul.f32 %v6791_v52, %v2000_v12  ;;  %10250 = vst [vmem:[#allocation41_spill] sm:$0xff] %v6850_v4 }
 0x162   : > { %1069 = vst.msk [vmem:[#allocation2 + $0x41] sm:$0xff] %vm491_vm0, %v1036_v37  ;;  %v1006_v44 = vmax.f32 %v868_v38, 0.0  ;;  %v2692_v37 = vmul.f32 %v2000_v12, %v6754_v27  ;;  %v2708_v38 = vmul.f32 %v2020_v18, %v6757_v28 }
 0x163   : > { %1445 = vst.msk [vmem:[#allocation2 + $0x41] sm:$0xff] %vm491_vm0, %v10132_v0  ;;  %1068 = vst.msk [vmem:[#allocation2 + $0x31] sm:$0xff] %vm491_vm0, %v1035_v42  ;;  %v1005_v50 = vmax.f32 %v863_v43, 0.0  ;;  %v5505_v51 = vpop.f32.mrb[6].mxu0  ;;  %v2040_v53 = vadd.f32 %v2032_v34, %v2012_v31 }
 0x164   : > { %1444 = vst.msk [vmem:[#allocation2 + $0x31] sm:$0xff] %vm491_vm0, %v10132_v0  ;;  %v1038_v9 = vmin.f32 %v1006_v44, 6.0  ;;  %v878_v10 = vadd.f32 %v5505_v51, %v6730_v3  ;;  %v6799_v11 = vpop.f32.mrb[7].mxu0 }
 0x165   : > { %v1037_v13 = vmin.f32 %v1005_v50, 6.0 }
 0x166   : > { %v6813_v20 = vld [vmem:[#allocation2 + $0x20] sm:$0xff]  ;;  %1071 = vst.msk [vmem:[#allocation2 + $0x61] sm:$0xff] %vm491_vm0, %v1038_v9  ;;  %v1008_v54 = vmax.f32 %v878_v10, 0.0  ;;  %v6852_v9 = vadd.f32 %v1789_v24, %v1769_v56  ;;  %v2060_v56 = vmul.f32 %v6706_v59, %v2048_v46  ;;  %v2716_v24 = vadd.f32 %v2708_v38, %v2692_v37 }
 0x167   : > { %v1497_v21 = vld [vmem:[#allocation2 + $0x21] sm:$0xff]  ;;  %v1489_v57 = vmul.f32 %v6733_v5, %v6813_v20  ;;  %v1476_v25 = vld [vmem:[#allocation2 + $0x10] sm:$0xff]  ;;  %1447 = vst.msk [vmem:[#allocation2 + $0x61] sm:$0xff] %vm491_vm0, %v10132_v0  ;;  %1070 = vst.msk [vmem:[#allocation2 + $0x51] sm:$0xff] %vm491_vm0, %v1037_v13  ;;  %v6830_v30 = vpop.f32.mrb[8].mxu0  ;;  %v1564_v12 = vmul.f32 %v6763_v35, %v6813_v20 }
 0x168   : > { %v1525_v22 = vld [vmem:[#allocation2 + $0x22] sm:$0xff]  ;;  %v1509_v58 = vmul.f32 %v6736_v6, %v1497_v21  ;;  %v1496_v26 = vld [vmem:[#allocation2 + $0x11] sm:$0xff]  ;;  %v1488_v32 = vmul.f32 %v6733_v5, %v1476_v25  ;;  %1446 = vst.msk [vmem:[#allocation2 + $0x51] sm:$0xff] %vm491_vm0, %v10132_v0  ;;  %v6836_v33 = vpop.f32.mrb[9].mxu0  ;;  %v1563_v44 = vmul.f32 %v6763_v35, %v1476_v25  ;;  %v1040_v51 = vmin.f32 %v1008_v54, 6.0 }
 0x169   : > { %v1537_v19 = vmul.f32 %v6743_v14, %v1525_v22  ;;  %v6825_v29 = vld [vmem:[#allocation2 + $0x12] sm:$0xff]  ;;  %v1508_v42 = vmul.f32 %v6736_v6, %v1496_v26  ;;  %v1591_v47 = vmul.f32 %v6766_v36, %v1496_v26  ;;  %v6885_v61 = vadd.f32 %v2060_v56, %v2040_v53 }
 0x16a   : > { %v1517_v39 = vadd.f32 %v1509_v58, %v1489_v57  ;;  %v1536_v43 = vmul.f32 %v6743_v14, %v6825_v29  ;;  %v6846_v50 = vld [vmem:[#allocation2 + $0x40] sm:$0xff]  ;;  %v1571_v18 = vadd.f32 %v1563_v44, %v1543_v48  ;;  %1073 = vst.msk [vmem:[#allocation2 + $0x81] sm:$0xff] %vm491_vm0, %v1040_v51  ;;  %v1620_v48 = vmul.f32 %v6772_v40, %v1525_v22 }
 0x16b   : > { %v1516_v13 = vadd.f32 %v1508_v42, %v1488_v32  ;;  %v1478_v57 = vld [vmem:[#allocation2 + $0x30] sm:$0xff]  ;;  %v6858_v26 = vpop.f32.mrb[10].mxu0  ;;  %v1499_v0 = vld [vmem:[#allocation2 + $0x41] sm:$0xff]  ;;  %v1592_v32 = vmul.f32 %v6766_v36, %v1497_v21  ;;  %v10252_v44 = vmov 0.0   ;;  %v1491_v51 = vmul.f32 %v6733_v5, %v6846_v50  ;;  %v1466_v21 = vld [vmem:[%s10110_s5 + $0x18] sm:$0x7] }
 0x16c   : > { %v1545_v10 = vadd.f32 %v1537_v19, %v1517_v39  ;;  %v1498_v58 = vld [vmem:[#allocation2 + $0x31] sm:$0xff]  ;;  %v6861_v54 = vpop.f32.mrb[11].mxu0  ;;  %v2732_v19 = vmul.f32 %v2048_v46, %v6779_v45  ;;  %v6867_v42 = vadd.f32 %v1591_v47, %v1571_v18  ;;  %1449 = vst.msk [vmem:[#allocation2 + $0x81] sm:$0xff] %vm491_vm0, %v10252_v44  ;;  %v1490_v31 = vmul.f32 %v6733_v5, %v1478_v57 }
 0x16d   : > { %v6856_v25 = vld [vmem:[#allocation2 + $0x32] sm:$0xff]  ;;  %v1544_v39 = vadd.f32 %v1536_v43, %v1516_v13  ;;  %v1510_v34 = vmul.f32 %v6736_v6, %v1498_v58  ;;  %v1511_v38 = vmul.f32 %v6736_v6, %v1499_v0  ;;  %v1527_v43 = vld [vmem:[#allocation2 + $0x42] sm:$0xff]  ;;  %v1565_v46 = vmul.f32 %v6763_v35, %v1478_v57 }
 0x16e   : > { %10251 = vst [vmem:[#allocation42_spill] sm:$0xff] %v6867_v42  ;;  %v1538_v37 = vmul.f32 %v6743_v14, %v6856_v25  ;;  %v1593_v47 = vmul.f32 %v6766_v36, %v1498_v58  ;;  %v873_v42 = vadd.f32 %v6730_v3, %v6799_v11  ;;  %v6887_v60 = vadd.f32 %v2732_v19, %v2716_v24  ;;  %v6892_v17 = vld [vmem:[#allocation2 + $0x61] sm:$0xff] }
 0x16f   : > { %v1572_v22 = vadd.f32 %v1564_v12, %v1544_v39  ;;  %v5514_v13 = vpop.f32.mrb[12].mxu0  ;;  %v1518_v18 = vadd.f32 %v1510_v34, %v1490_v31  ;;  %v1573_v4 = vadd.f32 %v1565_v46, %v1545_v10  ;;  %v1649_v12 = vmul.f32 %v6775_v41, %v1478_v57  ;;  %v6890_v39 = vld [vmem:[#allocation2 + $0x60] sm:$0xff] }
 0x170   : > { %v902_v62 = vpop.f32.mrb[13].mxu0  ;;  %v6895_v16 = vrot.slane %v1466_v21, %v6720_v63  ;;  %v6897_v31 = vld [vmem:[#allocation2 + $0x1e0] sm:$0xff]  ;;  %v1539_v11 = vmul.f32 %v6743_v14, %v1527_v43  ;;  %v6903_v53 = vrot.slane %v1466_v21, %v6722_v1  ;;  %v6906_v10 = vrot.slane %v1466_v21, %v6738_v7 }
 0x171   : > { %v1600_v23 = vadd.f32 %v1592_v32, %v1572_v22  ;;  %10254 = vst [vmem:[#allocation44_spill] sm:$0xff] %v6897_v31  ;;  %v6900_v34 = vadd.f32 %v1538_v37, %v1518_v18  ;;  %v1519_v57 = vadd.f32 %v1511_v38, %v1491_v51  ;;  %v6908_v56 = vadd.f32 %v1593_v47, %v1573_v4  ;;  %v6915_v22 = vld [vmem:[#allocation2 + $0x62] sm:$0xff]  ;;  %v6931_v51 = vld [vmem:[#allocation2 + $0x50] sm:$0xff] }
 0x172   : > { %10253 = vst [vmem:[#allocation43_spill] sm:$0xff] %v6895_v16  ;;  %10255 = vst [vmem:[#allocation45_spill] sm:$0xff] %v6903_v53  ;;  %v1677_v19 = vmul.f32 %v6787_v49, %v1498_v58  ;;  %v1493_v32 = vmul.f32 %v6733_v5, %v6890_v39  ;;  %v1513_v37 = vmul.f32 %v6736_v6, %v6892_v17  ;;  %v1007_v1 = vmax.f32 %v873_v42, 0.0  ;;  %v6947_v38 = vld [vmem:[#allocation2 + $0x51] sm:$0xff] }
 0x173   : > { %10256 = vst [vmem:[#allocation46_spill] sm:$0xff] %v6906_v10  ;;  %10257 = vst [vmem:[#allocation47_spill] sm:$0xff] %v6908_v56  ;;  %v1628_v24 = vadd.f32 %v1620_v48, %v1600_v23  ;;  %v5517_v63 = vpop.f32.mrb[14].mxu0  ;;  %v6919_v7 = vmul.f32 %v6897_v31, %v6791_v52  ;;  %v6923_v23 = vmul.f32 %v6775_v41, %v6813_v20  ;;  %v6949_v47 = vld [vmem:[#allocation2 + $0x52] sm:$0xff] }
 0x174   : > { %v912_v46 = vpop.f32.mrb[15].mxu0  ;;  %v6927_v4 = vmul.f32 %v6772_v40, %v6825_v29  ;;  %v1705_v48 = vmul.f32 %v6796_v8, %v6856_v25  ;;  %v6935_v42 = vmul.f32 %v6763_v35, %v6846_v50  ;;  %v6938_v21 = vmul.f32 %v6766_v36, %v1499_v0 }
 0x175   : > { %10258 = vst [vmem:[#allocation48_spill] sm:$0xff] %v6919_v7  ;;  %10259 = vst [vmem:[#allocation49_spill] sm:$0xff] %v6923_v23  ;;  %v1657_v58 = vadd.f32 %v1649_v12, %v1628_v24  ;;  %v6941_v20 = vmul.f32 %v6772_v40, %v1527_v43  ;;  %v6945_v29 = vmul.f32 %v6775_v41, %v6846_v50 }
 0x176   : > { %10260 = vst [vmem:[#allocation50_spill] sm:$0xff] %v6927_v4  ;;  %10261 = vst [vmem:[#allocation51_spill] sm:$0xff] %v6938_v21  ;;  %v6951_v18 = vadd.f32 %v1539_v11, %v1519_v57  ;;  %v6955_v12 = vmul.f32 %v6772_v40, %v6856_v25  ;;  %v6959_v0 = vmul.f32 %v6743_v14, %v6915_v22  ;;  %v1039_v11 = vmin.f32 %v1007_v1, 6.0 }
 0x177   : > { %10262 = vst [vmem:[#allocation52_spill] sm:$0xff] %v6941_v20  ;;  %10263 = vst [vmem:[#allocation53_spill] sm:$0xff] %v6945_v29  ;;  %v1685_v24 = vadd.f32 %v1677_v19, %v1657_v58  ;;  %v5520_v43 = vpop.f32.mrb[16].mxu0  ;;  %v1521_v20 = vadd.f32 %v1513_v37, %v1493_v32  ;;  %v6963_v50 = vmul.f32 %v6763_v35, %v6890_v39 }
 0x178   : > { %10264 = vst [vmem:[#allocation54_spill] sm:$0xff] %v6955_v12  ;;  %v1492_v21 = vmul.f32 %v6733_v5, %v6931_v51  ;;  %v922_v57 = vpop.f32.mrb[17].mxu0  ;;  %v1512_v25 = vmul.f32 %v6736_v6, %v6947_v38  ;;  %v6971_v19 = vmul.f32 %v6743_v14, %v6949_v47  ;;  %v888_v32 = vadd.f32 %v6830_v30, %v6730_v3 }
 0x179   : > { %v1713_v29 = vadd.f32 %v1705_v48, %v1685_v24  ;;  %1072 = vst.msk [vmem:[#allocation2 + $0x71] sm:$0xff] %vm491_vm0, %v1039_v11  ;;  %v883_v37 = vadd.f32 %v6730_v3, %v6836_v33  ;;  %v898_v1 = vadd.f32 %v6858_v26, %v6730_v3  ;;  %v893_v58 = vadd.f32 %v6730_v3, %v6861_v54 }
 0x17a   : > { %v908_v48 = vadd.f32 %v5514_v13, %v6730_v3  ;;  %v1567_v24 = vmul.f32 %v6763_v35, %v6931_v51  ;;  %1448 = vst.msk [vmem:[#allocation2 + $0x71] sm:$0xff] %vm491_vm0, %v10252_v44  ;;  %v1010_v30 = vmax.f32 %v888_v32, 0.0  ;;  %v903_v11 = vadd.f32 %v6730_v3, %v902_v62 }
 0x17b   : > { %1721 = vst.msk [vmem:[#allocation3 + $0x8] sm:$0xff] %vm491_vm0, %v1713_v29  ;;  %v918_v33 = vadd.f32 %v5517_v63, %v6730_v3  ;;  %v5523_v12 = vpop.f32.mrb[18].mxu0  ;;  %v1009_v26 = vmax.f32 %v883_v37, 0.0  ;;  %v1012_v56 = vmax.f32 %v898_v1, 0.0  ;;  %v1011_v23 = vmax.f32 %v893_v58, 0.0 }
 0x17c   : > { %v1014_v54 = vmax.f32 %v908_v48, 0.0  ;;  %v932_v4 = vpop.f32.mrb[19].mxu0  ;;  %v1042_v13 = vmin.f32 %v1010_v30, 6.0  ;;  %v1013_v7 = vmax.f32 %v903_v11, 0.0  ;;  %v913_v31 = vadd.f32 %v6730_v3, %v912_v46 }
 0x17d   : > { %v1016_v29 = vmax.f32 %v918_v33, 0.0  ;;  %v1041_v10 = vmin.f32 %v1009_v26, 6.0  ;;  %v1044_v53 = vmin.f32 %v1012_v56, 6.0  ;;  %v1043_v16 = vmin.f32 %v1011_v23, 6.0 }
 0x17e   : > { %v1046_v44 = vmin.f32 %v1014_v54, 6.0  ;;  %1075 = vst.msk [vmem:[#allocation2 + $0xc1] sm:$0xff] %vm491_vm0, %v1042_v13  ;;  %v1045_v62 = vmin.f32 %v1013_v7, 6.0  ;;  %v1015_v63 = vmax.f32 %v913_v31, 0.0  ;;  %v928_v37 = vadd.f32 %v5520_v43, %v6730_v3 }
 0x17f   : > { %v1048_v32 = vmin.f32 %v1016_v29, 6.0  ;;  %v5526_v1 = vpop.f32.mrb[20].mxu0  ;;  %v1520_v58 = vadd.f32 %v1512_v25, %v1492_v21  ;;  %1074 = vst.msk [vmem:[#allocation2 + $0xb1] sm:$0xff] %vm491_vm0, %v1041_v10  ;;  %1077 = vst.msk [vmem:[#allocation2 + $0xe1] sm:$0xff] %vm491_vm0, %v1044_v53  ;;  %v923_v56 = vadd.f32 %v6730_v3, %v922_v57  ;;  %v938_v46 = vadd.f32 %v5523_v12, %v6730_v3  ;;  %v1586_v21 = vld [vmem:[#allocation2 + $0x81] sm:$0xff] }
 0x180   : > { %1076 = vst.msk [vmem:[#allocation2 + $0xd1] sm:$0xff] %vm491_vm0, %v1043_v16  ;;  %1079 = vst.msk [vmem:[#allocation2 + $0x101] sm:$0xff] %vm491_vm0, %v1046_v44  ;;  %v933_v7 = vadd.f32 %v6730_v3, %v932_v4  ;;  %v942_v23 = vpop.f32.mrb[21].mxu0  ;;  %v7002_v31 = vmul.f32 %v6766_v36, %v6892_v17  ;;  %v7006_v10 = vmul.f32 %v6772_v40, %v6915_v22  ;;  %v1047_v16 = vmin.f32 %v1015_v63, 6.0  ;;  %v1558_v4 = vld [vmem:[#allocation2 + $0x80] sm:$0xff] }
 0x181   : > { %1078 = vst.msk [vmem:[#allocation2 + $0xf1] sm:$0xff] %vm491_vm0, %v1045_v62  ;;  %1081 = vst.msk [vmem:[#allocation2 + $0x121] sm:$0xff] %vm491_vm0, %v1048_v32  ;;  %v1018_v44 = vmax.f32 %v928_v37, 0.0  ;;  %v7012_v53 = vadd.f32 %v6935_v42, %v6900_v34  ;;  %v1017_v12 = vmax.f32 %v923_v56, 0.0  ;;  %v1020_v43 = vmax.f32 %v938_v46, 0.0  ;;  %v1614_v34 = vld [vmem:[#allocation2 + $0x82] sm:$0xff] }
 0x182   : > { %10265 = vst [vmem:[#allocation55_spill] sm:$0xff] %v7002_v31  ;;  %10266 = vst [vmem:[#allocation56_spill] sm:$0xff] %v7006_v10  ;;  %v1019_v17 = vmax.f32 %v933_v7, 0.0  ;;  %v1549_v57 = vadd.f32 %v6959_v0, %v1521_v20  ;;  %v7017_v22 = vmul.f32 %v6775_v41, %v6890_v39  ;;  %v1595_v25 = vmul.f32 %v6766_v36, %v6947_v38  ;;  %v1482_v42 = vld [vmem:[#allocation2 + $0x70] sm:$0xff]  ;;  %v7042_v29 = vld [vmem:[#allocation2 + $0x1e1] sm:$0xff] }
 0x183   : > { %10267 = vst [vmem:[#allocation57_spill] sm:$0xff] %v7012_v53  ;;  %v7023_v48 = vmul.f32 %v6772_v40, %v6949_v47  ;;  %v1502_v30 = vld [vmem:[#allocation2 + $0x71] sm:$0xff]  ;;  %1080 = vst.msk [vmem:[#allocation2 + $0x111] sm:$0xff] %vm491_vm0, %v1047_v16  ;;  %v7026_v11 = vpop.f32.mrb[22].mxu0  ;;  %v1548_v20 = vadd.f32 %v6971_v19, %v1520_v58  ;;  %v1575_v0 = vadd.f32 %v1567_v24, %v6951_v18  ;;  %v1050_v38 = vmin.f32 %v1018_v44, 6.0  ;;  %v7044_v19 = vld [vmem:[#allocation2 + $0x1e2] sm:$0xff] }
 0x184   : > { %10268 = vst [vmem:[#allocation58_spill] sm:$0xff] %v7017_v22  ;;  %v7032_v39 = vmul.f32 %v6775_v41, %v6931_v51  ;;  %v7034_v33 = vpop.f32.mrb[23].mxu0  ;;  %v7037_v47 = vmul.f32 %v6763_v35, %v1558_v4  ;;  %v7040_v26 = vmul.f32 %v6766_v36, %v1586_v21  ;;  %v1049_v54 = vmin.f32 %v1017_v12, 6.0  ;;  %10272 = vst [vmem:[#allocation62_spill] sm:$0xff] %v7042_v29  ;;  %v1530_v56 = vld [vmem:[#allocation2 + $0x72] sm:$0xff] }
 0x185   : > { %10269 = vst [vmem:[#allocation59_spill] sm:$0xff] %v7023_v48  ;;  %v1052_v13 = vmin.f32 %v1020_v43, 6.0  ;;  %10273 = vst [vmem:[#allocation63_spill] sm:$0xff] %v7044_v19  ;;  %v7047_v18 = vmul.f32 %v6772_v40, %v1614_v34  ;;  %v1494_v51 = vmul.f32 %v6733_v5, %v1482_v42  ;;  %v1514_v24 = vmul.f32 %v6736_v6, %v1502_v30  ;;  %v7051_v62 = vld [vmem:[#allocation2 + $0xc0] sm:$0xff] }
 0x186   : > { %10270 = vst [vmem:[#allocation60_spill] sm:$0xff] %v7032_v39  ;;  %10271 = vst [vmem:[#allocation61_spill] sm:$0xff] %v7040_v26  ;;  %v7053_v32 = vld [vmem:[#allocation2 + $0xc1] sm:$0xff]  ;;  %v1051_v37 = vmin.f32 %v1019_v17, 6.0  ;;  %v7059_v58 = vmul.f32 %v6775_v41, %v1558_v4  ;;  %v1569_v46 = vmul.f32 %v6763_v35, %v1482_v42  ;;  %v1743_v7 = vmul.f32 %v6754_v27, %v7051_v62  ;;  %v1778_v26 = vld [vmem:[#allocation2 + $0xb2] sm:$0xff] }
 0x187   : > { %10274 = vst [vmem:[#allocation64_spill] sm:$0xff] %v7047_v18  ;;  %v7055_v63 = vld [vmem:[#allocation2 + $0xc2] sm:$0xff]  ;;  %1083 = vst.msk [vmem:[#allocation2 + $0x161] sm:$0xff] %vm491_vm0, %v1050_v38  ;;  %v1763_v16 = vmul.f32 %v6757_v28, %v7053_v32  ;;  %v7068_v44 = vpop.f32.mrb[24].mxu0  ;;  %v7071_v21 = vadd.f32 %v6963_v50, %v1548_v20  ;;  %v7073_v4 = vadd.f32 %v1595_v25, %v1575_v0  ;;  %v7173_v53 = vld [vmem:[#allocation2 + $0xd2] sm:$0xff] }
 0x188   : > { %10275 = vst [vmem:[#allocation65_spill] sm:$0xff] %v7059_v58  ;;  %1082 = vst.msk [vmem:[#allocation2 + $0x151] sm:$0xff] %vm491_vm0, %v1049_v54  ;;  %v7077_v12 = vadd.f32 %v5526_v1, %v6730_v3  ;;  %v7080_v43 = vadd.f32 %v6730_v3, %v942_v23  ;;  %v7082_v17 = vpop.f32.mrb[25].mxu0  ;;  %v1791_v38 = vmul.f32 %v6779_v45, %v7055_v63  ;;  %v1730_v54 = vld [vmem:[#allocation2 + $0xb0] sm:$0xff] }
 0x189   : > { %1085 = vst.msk [vmem:[#allocation2 + $0x181] sm:$0xff] %vm491_vm0, %v1052_v13  ;;  %10276 = vst [vmem:[#allocation66_spill] sm:$0xff] %v7071_v21  ;;  %v1771_v34 = vadd.f32 %v1763_v16, %v1743_v7  ;;  %v1750_v13 = vld [vmem:[#allocation2 + $0xb1] sm:$0xff]  ;;  %v7088_v50 = vmul.f32 %v7042_v29, %v6696_v55  ;;  %v7092_v25 = vmul.f32 %v7044_v19, %v6706_v59 }
 0x18a   : > { %10277 = vst [vmem:[#allocation67_spill] sm:$0xff] %v7073_v4  ;;  %1084 = vst.msk [vmem:[#allocation2 + $0x171] sm:$0xff] %vm491_vm0, %v1051_v37  ;;  %v1522_v1 = vadd.f32 %v1514_v24, %v1494_v51  ;;  %v1542_v23 = vmul.f32 %v6743_v14, %v1530_v56  ;;  %v2478_v20 = vmul.f32 %v7051_v62, %v6733_v5 }
 0x18b   : > { %10278 = vst [vmem:[#allocation68_spill] sm:$0xff] %v7088_v50  ;;  %10279 = vst [vmem:[#allocation69_spill] sm:$0xff] %v7092_v25  ;;  %v2494_v0 = vmul.f32 %v7053_v32, %v6736_v6  ;;  %v1577_v37 = vadd.f32 %v1569_v46, %v1549_v57  ;;  %v1597_v7 = vmul.f32 %v6766_v36, %v1502_v30  ;;  %v7103_v58 = vpop.f32.mrb[26].mxu0 }
 0x18c   : > { %v7101_v16 = vmul.f32 %v6772_v40, %v1530_v56  ;;  %v1799_v18 = vadd.f32 %v1791_v38, %v1771_v34  ;;  %10281 = vst [vmem:[#allocation71_spill] sm:$0xff] %v7103_v58  ;;  %v7106_v51 = vmul.f32 %v6775_v41, %v1482_v42  ;;  %v1742_v10 = vmul.f32 %v6754_v27, %v1730_v54  ;;  %v7112_v21 = vpop.f32.mrb[27].mxu0  ;;  %v10290_v56 = vld [vmem:[#allocation39_spill] sm:$0xff] }
 0x18d   : > { %v7108_v24 = vadd.f32 %v2494_v0, %v2478_v20  ;;  %v1762_v31 = vmul.f32 %v6757_v28, %v1750_v13  ;;  %10284 = vst [vmem:[#allocation74_spill] sm:$0xff] %v7112_v21  ;;  %v1818_v57 = vmul.f32 %v6802_v2, %v1730_v54  ;;  %v2477_v30 = vmul.f32 %v1730_v54, %v6733_v5 }
 0x18e   : > { %10280 = vst [vmem:[#allocation70_spill] sm:$0xff] %v7101_v16  ;;  %10282 = vst [vmem:[#allocation72_spill] sm:$0xff] %v7106_v51  ;;  %v1550_v34 = vadd.f32 %v1542_v23, %v1522_v1  ;;  %v1790_v42 = vmul.f32 %v6779_v45, %v1778_v26  ;;  %v2493_v20 = vmul.f32 %v1750_v13, %v6736_v6 }
 0x18f   : > { %10283 = vst [vmem:[#allocation73_spill] sm:$0xff] %v7108_v24  ;;  %v1770_v38 = vadd.f32 %v1762_v31, %v1742_v10  ;;  %v7120_v0 = vadd.f32 %v1597_v7, %v1577_v37  ;;  %v1826_v16 = vadd.f32 %v1818_v57, %v6852_v9  ;;  %v1846_v51 = vmul.f32 %v6805_v15, %v1750_v13  ;;  %v7128_v48 = vpop.f32.mrb[28].mxu0  ;;  %v10288_v13 = vld [vmem:[#allocation38_spill] sm:$0xff] }
 0x190   : > { %v7126_v22 = vadd.f32 %v7026_v11, %v6730_v3  ;;  %10286 = vst [vmem:[#allocation76_spill] sm:$0xff] %v7128_v48  ;;  %v1819_v1 = vmul.f32 %v6802_v2, %v7051_v62  ;;  %v2501_v10 = vadd.f32 %v2493_v20, %v2477_v30  ;;  %v2517_v23 = vmul.f32 %v1778_v26, %v6743_v14  ;;  %v7133_v46 = vpop.f32.mrb[29].mxu0  ;;  %v7140_v11 = vld [vmem:[#allocation2 + $0xd0] sm:$0xff] }
 0x191   : > { %10285 = vst [vmem:[#allocation75_spill] sm:$0xff] %v7120_v0  ;;  %v1798_v31 = vadd.f32 %v1790_v42, %v1770_v38  ;;  %10287 = vst [vmem:[#allocation77_spill] sm:$0xff] %v7133_v46  ;;  %v1847_v9 = vmul.f32 %v6805_v15, %v7053_v32  ;;  %v1875_v37 = vmul.f32 %v10288_v13, %v7055_v63  ;;  %v7147_v20 = vld [vmem:[#allocation2 + $0xd1] sm:$0xff] }
 0x192   : > { %v1854_v7 = vadd.f32 %v1846_v51, %v1826_v16  ;;  %v1874_v3 = vmul.f32 %v10288_v13, %v1778_v26  ;;  %v7143_v57 = vadd.f32 %v7037_v47, %v1550_v34  ;;  %v2541_v30 = vmul.f32 %v7051_v62, %v6763_v35  ;;  %v10292_v16 = vld [vmem:[#allocation40_spill] sm:$0xff]  ;;  %v10294_v26 = vld [vmem:[#allocation41_spill] sm:$0xff]  ;;  %v1733_v34 = vld [vmem:[#allocation2 + $0xe0] sm:$0xff] }
 0x193   : > { %v1827_v38 = vadd.f32 %v1819_v1, %v1798_v31  ;;  %v2525_v42 = vadd.f32 %v2517_v23, %v2501_v10  ;;  %v7151_v0 = vmul.f32 %v10290_v56, %v7051_v62  ;;  %v7155_v51 = vmul.f32 %v10292_v16, %v7053_v32  ;;  %v1781_v1 = vld [vmem:[#allocation2 + $0xe2] sm:$0xff]  ;;  %v7163_v31 = vpop.f32.mrb[30].mxu0 }
 0x194   : > { %10289 = vst [vmem:[#allocation38_spill] sm:$0xff] %v7143_v57  ;;  %v7159_v4 = vmul.f32 %v10294_v26, %v7055_v63  ;;  %v7161_v47 = vadd.f32 %v1874_v3, %v1854_v7  ;;  %v1753_v57 = vld [vmem:[#allocation2 + $0xe1] sm:$0xff]  ;;  %10297 = vst [vmem:[#allocation81_spill] sm:$0xff] %v7163_v31  ;;  %v7167_v10 = vmul.f32 %v7055_v63, %v6743_v14  ;;  %v7175_v7 = vpop.f32.mrb[31].mxu0 }
 0x195   : > { %10291 = vst [vmem:[#allocation39_spill] sm:$0xff] %v7151_v0  ;;  %10293 = vst [vmem:[#allocation78_spill] sm:$0xff] %v7155_v51  ;;  %v2565_v62 = vmul.f32 %v7053_v32, %v6766_v36  ;;  %v2549_v23 = vadd.f32 %v2541_v30, %v2525_v42  ;;  %v1744_v39 = vmul.f32 %v6754_v27, %v7140_v11 }
 0x196   : > { %10295 = vst [vmem:[#allocation79_spill] sm:$0xff] %v7159_v4  ;;  %10296 = vst [vmem:[#allocation80_spill] sm:$0xff] %v7161_v47  ;;  %v2589_v3 = vmul.f32 %v7055_v63, %v6772_v40  ;;  %v7180_v24 = vmul.f32 %v1730_v54, %v6763_v35  ;;  %v1820_v32 = vmul.f32 %v6802_v2, %v7140_v11 }
 0x197   : > { %10298 = vst [vmem:[#allocation82_spill] sm:$0xff] %v7167_v10  ;;  %10299 = vst [vmem:[#allocation83_spill] sm:$0xff] %v7175_v7  ;;  %v1764_v10 = vmul.f32 %v6757_v28, %v7147_v20  ;;  %v1745_v30 = vmul.f32 %v6754_v27, %v1733_v34  ;;  %v1765_v42 = vmul.f32 %v6757_v28, %v1753_v57 }
 0x198   : > { %10300 = vst [vmem:[#allocation84_spill] sm:$0xff] %v7180_v24  ;;  %v1793_v4 = vmul.f32 %v6779_v45, %v1781_v1  ;;  %v1855_v51 = vadd.f32 %v1847_v9, %v1827_v38  ;;  %v1792_v63 = vmul.f32 %v6779_v45, %v7173_v53  ;;  %v1828_v47 = vadd.f32 %v1820_v32, %v1799_v18 }
 0x199   : > { %v1772_v0 = vadd.f32 %v1764_v10, %v1744_v39  ;;  %v1848_v54 = vmul.f32 %v6805_v15, %v7147_v20  ;;  %v1821_v24 = vmul.f32 %v6802_v2, %v1733_v34  ;;  %v1849_v7 = vmul.f32 %v6805_v15, %v1753_v57 }
 0x19a   : > { %v1883_v31 = vadd.f32 %v1875_v37, %v1855_v51  ;;  %v1904_v25 = vmul.f32 %v10290_v56, %v7140_v11  ;;  %v1876_v39 = vmul.f32 %v10288_v13, %v7173_v53  ;;  %v2573_v9 = vadd.f32 %v2565_v62, %v2549_v23 }
 0x19b   : > { %v1800_v46 = vadd.f32 %v1792_v63, %v1772_v0  ;;  %v1856_v48 = vadd.f32 %v1848_v54, %v1828_v47  ;;  %v1773_v38 = vadd.f32 %v1765_v42, %v1745_v30  ;;  %v7200_v18 = vmul.f32 %v10288_v13, %v1781_v1  ;;  %v1735_v47 = vld [vmem:[#allocation2 + $0x100] sm:$0xff]  ;;  %v1976_v42 = vld [vmem:[#allocation3 + $0x8] sm:$0xff] }
 0x19c   : > { %v1912_v10 = vadd.f32 %v1904_v25, %v1883_v31  ;;  %v1932_v32 = vmul.f32 %v10292_v16, %v7147_v20  ;;  %v7205_v19 = vmul.f32 %v10290_v56, %v1733_v34  ;;  %v2597_v51 = vadd.f32 %v2589_v3, %v2573_v9  ;;  %v1755_v63 = vld [vmem:[#allocation2 + $0x101] sm:$0xff]  ;;  %v7226_v9 = vpop.f32.mrb[0].mxu1 }
 0x19d   : > { %v7207_v37 = vadd.f32 %v1876_v39, %v1856_v48  ;;  %v2613_v0 = vmul.f32 %v7140_v11, %v6775_v41  ;;  %v2480_v62 = vmul.f32 %v1733_v34, %v6733_v5  ;;  %v2496_v23 = vmul.f32 %v1753_v57, %v6736_v6  ;;  %v7224_v39 = vld [vmem:[#allocation2 + $0xf0] sm:$0xff]  ;;  %10305 = vst [vmem:[#allocation89_spill] sm:$0xff] %v7226_v9 }
 0x19e   : > { %10301 = vst [vmem:[#allocation85_spill] sm:$0xff] %v7205_v19  ;;  %v1940_v30 = vadd.f32 %v1932_v32, %v1912_v10  ;;  %v1960_v25 = vmul.f32 %v10294_v26, %v7173_v53  ;;  %v7216_v31 = vmul.f32 %v10292_v16, %v1753_v57  ;;  %v2479_v48 = vmul.f32 %v7140_v11, %v6733_v5  ;;  %v1754_v19 = vld [vmem:[#allocation2 + $0xf1] sm:$0xff] }
 0x19f   : > { %10302 = vst [vmem:[#allocation86_spill] sm:$0xff] %v7207_v37  ;;  %v2495_v3 = vmul.f32 %v7147_v20, %v6736_v6  ;;  %v7222_v54 = vadd.f32 %v2613_v0, %v2597_v51  ;;  %v7229_v10 = vmul.f32 %v10294_v26, %v1781_v1  ;;  %v1747_v57 = vmul.f32 %v6754_v27, %v1735_v47  ;;  %v7233_v37 = vpop.f32.mrb[1].mxu1 }
 0x1a0   : > { %10303 = vst [vmem:[#allocation87_spill] sm:$0xff] %v7216_v31  ;;  %v1968_v32 = vadd.f32 %v1960_v25, %v1940_v30  ;;  %v1767_v31 = vmul.f32 %v6757_v28, %v1755_v63  ;;  %10307 = vst [vmem:[#allocation91_spill] sm:$0xff] %v7233_v37  ;;  %v1801_v50 = vadd.f32 %v1793_v4, %v1773_v38 }
 0x1a1   : > { %10304 = vst [vmem:[#allocation88_spill] sm:$0xff] %v7222_v54  ;;  %10306 = vst [vmem:[#allocation90_spill] sm:$0xff] %v7229_v10  ;;  %v7236_v29 = vmul.f32 %v1781_v1, %v6743_v14  ;;  %v7239_v51 = vmul.f32 %v1733_v34, %v6763_v35  ;;  %v1829_v0 = vadd.f32 %v1821_v24, %v1800_v46  ;;  %v1782_v10 = vld [vmem:[#allocation2 + $0xf2] sm:$0xff]  ;;  %v1783_v46 = vld [vmem:[#allocation2 + $0x102] sm:$0xff] }
 0x1a2   : > { %v7241_v54 = vadd.f32 %v2496_v23, %v2480_v62  ;;  %v1984_v9 = vadd.f32 %v1976_v42, %v1968_v32  ;;  %v7245_v30 = vmul.f32 %v7173_v53, %v6743_v14  ;;  %v1746_v25 = vmul.f32 %v6754_v27, %v7224_v39 }
 0x1a3   : > { %10308 = vst [vmem:[#allocation92_spill] sm:$0xff] %v7236_v29  ;;  %10309 = vst [vmem:[#allocation93_spill] sm:$0xff] %v7239_v51  ;;  %v7249_v37 = vadd.f32 %v2495_v3, %v2479_v48  ;;  %v7253_v4 = vmul.f32 %v7140_v11, %v6763_v35  ;;  %v7257_v24 = vmul.f32 %v7147_v20, %v6787_v49  ;;  %v1736_v29 = vld [vmem:[#allocation2 + $0x110] sm:$0xff] }
 0x1a4   : > { %10310 = vst [vmem:[#allocation94_spill] sm:$0xff] %v7241_v54  ;;  %10311 = vst [vmem:[#allocation95_spill] sm:$0xff] %v7245_v30  ;;  %v1766_v34 = vmul.f32 %v6757_v28, %v1754_v19  ;;  %v7262_v1 = vmul.f32 %v7173_v53, %v6796_v8  ;;  %v1775_v38 = vadd.f32 %v1767_v31, %v1747_v57 }
 0x1a5   : > { %10312 = vst [vmem:[#allocation96_spill] sm:$0xff] %v7249_v37  ;;  %10313 = vst [vmem:[#allocation97_spill] sm:$0xff] %v7253_v4  ;;  %v2482_v62 = vmul.f32 %v1735_v47, %v6733_v5  ;;  %v2498_v23 = vmul.f32 %v1755_v63, %v6736_v6  ;;  %v1794_v42 = vmul.f32 %v6779_v45, %v1782_v10 }
 0x1a6   : > { %10314 = vst [vmem:[#allocation98_spill] sm:$0xff] %v7257_v24  ;;  %10315 = vst [vmem:[#allocation99_spill] sm:$0xff] %v7262_v1  ;;  %v1774_v11 = vadd.f32 %v1766_v34, %v1746_v25  ;;  %v1822_v20 = vmul.f32 %v6802_v2, %v7224_v39  ;;  %v1857_v48 = vadd.f32 %v1849_v7, %v1829_v0  ;;  %v1756_v7 = vld [vmem:[#allocation2 + $0x111] sm:$0xff] }
 0x1a7   : > { %1992 = vst.msk [vmem:[#allocation3 + $0x8] sm:$0xff] %vm491_vm0, %v1984_v9  ;;  %v1795_v3 = vmul.f32 %v6779_v45, %v1783_v46  ;;  %v1823_v32 = vmul.f32 %v6802_v2, %v1735_v47  ;;  %v1851_v53 = vmul.f32 %v6805_v15, %v1755_v63  ;;  %v1879_v9 = vmul.f32 %v10288_v13, %v1783_v46 }
 0x1a8   : > { %v7275_v31 = vmul.f32 %v10290_v56, %v1735_v47  ;;  %v7278_v57 = vmul.f32 %v10292_v16, %v1755_v63  ;;  %v7281_v25 = vmul.f32 %v10294_v26, %v1783_v46  ;;  %v1802_v34 = vadd.f32 %v1794_v42, %v1774_v11 }
 0x1a9   : > { %v1803_v0 = vadd.f32 %v1795_v3, %v1775_v38  ;;  %v7283_v54 = vadd.f32 %v2498_v23, %v2482_v62  ;;  %v7286_v51 = vmul.f32 %v1783_v46, %v6743_v14  ;;  %v7289_v30 = vmul.f32 %v1735_v47, %v6763_v35  ;;  %v1784_v46 = vld [vmem:[#allocation2 + $0x112] sm:$0xff]  ;;  %v1813_v47 = vld [vmem:[#allocation2 + $0x120] sm:$0xff] }
 0x1aa   : > { %10316 = vst [vmem:[#allocation100_spill] sm:$0xff] %v7275_v31  ;;  %10317 = vst [vmem:[#allocation101_spill] sm:$0xff] %v7278_v57  ;;  %v1830_v37 = vadd.f32 %v1822_v20, %v1801_v50  ;;  %v1831_v31 = vadd.f32 %v1823_v32, %v1802_v34  ;;  %v1850_v63 = vmul.f32 %v6805_v15, %v1754_v19  ;;  %v1841_v20 = vld [vmem:[#allocation2 + $0x121] sm:$0xff] }
 0x1ab   : > { %10318 = vst [vmem:[#allocation102_spill] sm:$0xff] %v7281_v25  ;;  %10319 = vst [vmem:[#allocation103_spill] sm:$0xff] %v7283_v54  ;;  %v1885_v57 = vadd.f32 %v7200_v18, %v1857_v48  ;;  %v2481_v11 = vmul.f32 %v7224_v39, %v6733_v5  ;;  %v2497_v42 = vmul.f32 %v1754_v19, %v6736_v6 }
 0x1ac   : > { %10320 = vst [vmem:[#allocation104_spill] sm:$0xff] %v7286_v51  ;;  %10321 = vst [vmem:[#allocation105_spill] sm:$0xff] %v7289_v30  ;;  %v1748_v38 = vmul.f32 %v6754_v27, %v1736_v29  ;;  %v1768_v62 = vmul.f32 %v6757_v28, %v1756_v7  ;;  %v1878_v23 = vmul.f32 %v10288_v13, %v1782_v10  ;;  %v1869_v51 = vld [vmem:[#allocation2 + $0x122] sm:$0xff] }
 0x1ad   : > { %v1906_v50 = vmul.f32 %v10290_v56, %v7224_v39  ;;  %v1824_v3 = vmul.f32 %v6802_v2, %v1736_v29  ;;  %v1859_v18 = vadd.f32 %v1851_v53, %v1831_v31  ;;  %v7303_v48 = vmul.f32 %v10292_v16, %v1754_v19  ;;  %v7316_v53 = vld [vmem:[#allocation2 + $0x160] sm:$0xff] }
 0x1ae   : > { %v7306_v32 = vmul.f32 %v10294_v26, %v1782_v10  ;;  %v7309_v34 = vmul.f32 %v1782_v10, %v6743_v14  ;;  %v1776_v54 = vadd.f32 %v1768_v62, %v1748_v38  ;;  %v1858_v30 = vadd.f32 %v1850_v63, %v1830_v37  ;;  %10326 = vst [vmem:[#allocation110_spill] sm:$0xff] %v7316_v53  ;;  %v7318_v19 = vld [vmem:[#allocation2 + $0x161] sm:$0xff] }
 0x1af   : > { %10322 = vst [vmem:[#allocation106_spill] sm:$0xff] %v7303_v48  ;;  %v7313_v25 = vmul.f32 %v7224_v39, %v6763_v35  ;;  %v1796_v4 = vmul.f32 %v6779_v45, %v1784_v46  ;;  %v1832_v1 = vadd.f32 %v1824_v3, %v1803_v0  ;;  %v7320_v31 = vadd.f32 %v1906_v50, %v1885_v57 }
 0x1b0   : > { %10323 = vst [vmem:[#allocation107_spill] sm:$0xff] %v7306_v32  ;;  %10324 = vst [vmem:[#allocation108_spill] sm:$0xff] %v7309_v34  ;;  %v7322_v32 = vadd.f32 %v2497_v42, %v2481_v11  ;;  %v1825_v10 = vmul.f32 %v6802_v2, %v1813_v47  ;;  %v1853_v38 = vmul.f32 %v6805_v15, %v1841_v20 }
 0x1b1   : > { %10325 = vst [vmem:[#allocation109_spill] sm:$0xff] %v7313_v25  ;;  %10327 = vst [vmem:[#allocation111_spill] sm:$0xff] %v7320_v31  ;;  %v7327_v37 = vmul.f32 %v10288_v13, %v1869_v51  ;;  %v1804_v39 = vadd.f32 %v1796_v4, %v1776_v54  ;;  %v1852_v63 = vmul.f32 %v6805_v15, %v1756_v7 }
 0x1b2   : > { %10328 = vst [vmem:[#allocation112_spill] sm:$0xff] %v7322_v32  ;;  %v1887_v62 = vadd.f32 %v1879_v9, %v1859_v18  ;;  %v2483_v0 = vmul.f32 %v1736_v29, %v6733_v5  ;;  %v2499_v3 = vmul.f32 %v1756_v7, %v6736_v6  ;;  %v2014_v57 = vmul.f32 %v6791_v52, %v7316_v53  ;;  %v2050_v32 = vld [vmem:[#allocation2 + $0x162] sm:$0xff] }
 0x1b3   : > { %10329 = vst [vmem:[#allocation113_spill] sm:$0xff] %v7327_v37  ;;  %v2034_v11 = vmul.f32 %v6696_v55, %v7318_v19  ;;  %v7336_v42 = vadd.f32 %v1878_v23, %v1858_v30  ;;  %v7339_v50 = vmul.f32 %v10290_v56, %v1813_v47  ;;  %v7342_v54 = vmul.f32 %v10292_v16, %v1841_v20  ;;  %v7352_v30 = vld [vmem:[#allocation2 + $0x150] sm:$0xff] }
 0x1b4   : > { %v1860_v4 = vadd.f32 %v1852_v63, %v1832_v1  ;;  %v7345_v9 = vmul.f32 %v10294_v26, %v1869_v51  ;;  %v7348_v18 = vmul.f32 %v1813_v47, %v6763_v35  ;;  %v1880_v37 = vmul.f32 %v10288_v13, %v1784_v46  ;;  %v2021_v1 = vld [vmem:[#allocation2 + $0x151] sm:$0xff] }
 0x1b5   : > { %10330 = vst [vmem:[#allocation114_spill] sm:$0xff] %v7336_v42  ;;  %10331 = vst [vmem:[#allocation115_spill] sm:$0xff] %v7339_v50  ;;  %v1908_v34 = vmul.f32 %v10290_v56, %v1736_v29  ;;  %v1833_v23 = vadd.f32 %v1825_v10, %v1804_v39  ;;  %v7355_v50 = vmul.f32 %v10292_v16, %v1756_v7  ;;  %v10342_v10 = vld [vmem:[#allocation24_spill] sm:$0xff] }
 0x1b6   : > { %10332 = vst [vmem:[#allocation116_spill] sm:$0xff] %v7342_v54  ;;  %10333 = vst [vmem:[#allocation117_spill] sm:$0xff] %v7345_v9  ;;  %v7358_v20 = vmul.f32 %v10294_v26, %v1784_v46  ;;  %v7361_v51 = vmul.f32 %v1784_v46, %v6743_v14  ;;  %v7365_v63 = vadd.f32 %v2499_v3, %v2483_v0  ;;  %v2049_v0 = vld [vmem:[#allocation2 + $0x152] sm:$0xff] }
 0x1b7   : > { %10334 = vst [vmem:[#allocation118_spill] sm:$0xff] %v7348_v18  ;;  %10335 = vst [vmem:[#allocation119_spill] sm:$0xff] %v7355_v50  ;;  %v7363_v47 = vadd.f32 %v1908_v34, %v1887_v62  ;;  %v7368_v18 = vmul.f32 %v1736_v29, %v6763_v35  ;;  %v2042_v9 = vadd.f32 %v2034_v11, %v2014_v57  ;;  %v10345_v57 = vld [vmem:[#allocation26_spill] sm:$0xff] }
 0x1b8   : > { %10336 = vst [vmem:[#allocation120_spill] sm:$0xff] %v7358_v20  ;;  %10337 = vst [vmem:[#allocation121_spill] sm:$0xff] %v7361_v51  ;;  %v7370_v54 = vadd.f32 %v1880_v37, %v1860_v4  ;;  %v2062_v7 = vmul.f32 %v6706_v59, %v2050_v32  ;;  %v2090_v39 = vmul.f32 %v10342_v10, %v7316_v53  ;;  %v10343_v51 = vld [vmem:[#allocation25_spill] sm:$0xff] }
 0x1b9   : > { %10338 = vst [vmem:[#allocation122_spill] sm:$0xff] %v7363_v47  ;;  %10339 = vst [vmem:[#allocation123_spill] sm:$0xff] %v7365_v63  ;;  %v2013_v46 = vmul.f32 %v6791_v52, %v7352_v30  ;;  %v2118_v34 = vmul.f32 %v10343_v51, %v7318_v19  ;;  %v2694_v62 = vmul.f32 %v7316_v53, %v6754_v27 }
 0x1ba   : > { %10340 = vst [vmem:[#allocation124_spill] sm:$0xff] %v7368_v18  ;;  %10341 = vst [vmem:[#allocation125_spill] sm:$0xff] %v7370_v54  ;;  %v2710_v29 = vmul.f32 %v7318_v19, %v6757_v28  ;;  %v2033_v37 = vmul.f32 %v6696_v55, %v2021_v1  ;;  %v7384_v3 = vadd.f32 %v1853_v38, %v1833_v23 }
 0x1bb   : > { %v7387_v11 = vmul.f32 %v10345_v57, %v2050_v32  ;;  %v2734_v4 = vmul.f32 %v2050_v32, %v6779_v45  ;;  %v2693_v63 = vmul.f32 %v7352_v30, %v6754_v27  ;;  %v7392_v18 = vadd.f32 %v2062_v7, %v2042_v9  ;;  %v2004_v9 = vld [vmem:[#allocation2 + $0x180] sm:$0xff] }
 0x1bc   : > { %10344 = vst [vmem:[#allocation126_spill] sm:$0xff] %v7384_v3  ;;  %v2757_v54 = vmul.f32 %v7316_v53, %v6802_v2  ;;  %v2041_v20 = vadd.f32 %v2033_v37, %v2013_v46  ;;  %v2709_v50 = vmul.f32 %v2021_v1, %v6757_v28  ;;  %v7399_v38 = vmul.f32 %v7318_v19, %v6805_v15  ;;  %v2024_v7 = vld [vmem:[#allocation2 + $0x181] sm:$0xff] }
 0x1bd   : > { %v7402_v23 = vmul.f32 %v2050_v32, %v10288_v13  ;;  %v2061_v3 = vmul.f32 %v6706_v59, %v2049_v0  ;;  %v3347_v47 = vmul.f32 %v7352_v30, %v6733_v5  ;;  %v2718_v25 = vadd.f32 %v2710_v29, %v2694_v62 }
 0x1be   : > { %v3348_v46 = vmul.f32 %v7316_v53, %v6733_v5  ;;  %v3364_v37 = vmul.f32 %v7318_v19, %v6736_v6  ;;  %v3363_v42 = vmul.f32 %v2021_v1, %v6736_v6  ;;  %v7413_v48 = vmul.f32 %v2050_v32, %v6743_v14 }
 0x1bf   : > { %v2069_v31 = vadd.f32 %v2061_v3, %v2041_v20  ;;  %v2089_v24 = vmul.f32 %v10342_v10, %v7352_v30  ;;  %v2717_v8 = vadd.f32 %v2709_v50, %v2693_v63  ;;  %v3387_v21 = vmul.f32 %v2049_v0, %v6743_v14 }
 0x1c0   : > { %10346 = vst [vmem:[#allocation127_spill] sm:$0xff] %v7413_v48  ;;  %v3371_v49 = vadd.f32 %v3363_v42, %v3347_v47  ;;  %v2016_v62 = vmul.f32 %v6791_v52, %v2004_v9  ;;  %v2036_v29 = vmul.f32 %v6696_v55, %v2024_v7  ;;  %v3411_v58 = vmul.f32 %v7316_v53, %v6763_v35  ;;  %v2052_v53 = vld [vmem:[#allocation2 + $0x182] sm:$0xff] }
 0x1c1   : > { %v3435_v26 = vmul.f32 %v7318_v19, %v6766_v36  ;;  %v7425_v48 = vmul.f32 %v2050_v32, %v6772_v40  ;;  %v2756_v20 = vmul.f32 %v7352_v30, %v6802_v2  ;;  %v7429_v50 = vadd.f32 %v2734_v4, %v2718_v25  ;;  %v7439_v40 = vld [vmem:[#allocation2 + $0x170] sm:$0xff] }
 0x1c2   : > { %v7431_v42 = vadd.f32 %v3364_v37, %v3348_v46  ;;  %v2733_v47 = vmul.f32 %v2049_v0, %v6779_v45  ;;  %v3395_v63 = vadd.f32 %v3387_v21, %v3371_v49  ;;  %v2098_v3 = vadd.f32 %v2090_v39, %v2069_v31  ;;  %v7441_v36 = vld [vmem:[#allocation2 + $0x171] sm:$0xff] }
 0x1c3   : > { %v7435_v16 = vmul.f32 %v10343_v51, %v2021_v1  ;;  %v2696_v19 = vmul.f32 %v2004_v9, %v6754_v27  ;;  %v2712_v32 = vmul.f32 %v2024_v7, %v6757_v28  ;;  %v7444_v25 = vadd.f32 %v2089_v24, %v6885_v61 }
 0x1c4   : > { %10347 = vst [vmem:[#allocation128_spill] sm:$0xff] %v7431_v42  ;;  %v7447_v4 = vmul.f32 %v10345_v57, %v2049_v0  ;;  %v2741_v49 = vadd.f32 %v2733_v47, %v2717_v8  ;;  %v2044_v21 = vadd.f32 %v2036_v29, %v2016_v62  ;;  %v7450_v31 = vadd.f32 %v2756_v20, %v6887_v60 }
 0x1c5   : > { %10348 = vst [vmem:[#allocation129_spill] sm:$0xff] %v7435_v16  ;;  %10349 = vst [vmem:[#allocation130_spill] sm:$0xff] %v7444_v25  ;;  %v7453_v39 = vmul.f32 %v2021_v1, %v6805_v15  ;;  %v7456_v46 = vmul.f32 %v2049_v0, %v10288_v13  ;;  %v7460_v37 = vmul.f32 %v7352_v30, %v6763_v35 }
 0x1c6   : > { %10350 = vst [vmem:[#allocation131_spill] sm:$0xff] %v7447_v4  ;;  %10351 = vst [vmem:[#allocation132_spill] sm:$0xff] %v7450_v31  ;;  %v2064_v61 = vmul.f32 %v6706_v59, %v2052_v53  ;;  %v7464_v24 = vmul.f32 %v10342_v10, %v2004_v9  ;;  %v2015_v8 = vmul.f32 %v6791_v52, %v7439_v40 }
 0x1c7   : > { %10352 = vst [vmem:[#allocation133_spill] sm:$0xff] %v7453_v39  ;;  %10353 = vst [vmem:[#allocation134_spill] sm:$0xff] %v7456_v46  ;;  %v2035_v60 = vmul.f32 %v6696_v55, %v7441_v36  ;;  %v7471_v1 = vmul.f32 %v10343_v51, %v2024_v7  ;;  %v7474_v0 = vmul.f32 %v10345_v57, %v2052_v53 }
 0x1c8   : > { %10354 = vst [vmem:[#allocation135_spill] sm:$0xff] %v7460_v37  ;;  %10355 = vst [vmem:[#allocation136_spill] sm:$0xff] %v7464_v24  ;;  %v2720_v62 = vadd.f32 %v2712_v32, %v2696_v19  ;;  %v2126_v30 = vadd.f32 %v2118_v34, %v2098_v3  ;;  %v2765_v29 = vadd.f32 %v2757_v54, %v2741_v49  ;;  %v7480_v37 = vld [vmem:[#allocation2 + $0x172] sm:$0xff] }
 0x1c9   : > { %10356 = vst [vmem:[#allocation137_spill] sm:$0xff] %v7471_v1  ;;  %10357 = vst [vmem:[#allocation138_spill] sm:$0xff] %v7474_v0  ;;  %v7476_v20 = vadd.f32 %v2064_v61, %v2044_v21  ;;  %v3350_v47 = vmul.f32 %v2004_v9, %v6733_v5  ;;  %v3366_v42 = vmul.f32 %v2024_v7, %v6736_v6  ;;  %v7553_v0 = vld [vmem:[%s10109_s4] ss:$0 sm:$0xff] }
 0x1ca   : > { %v2736_v24 = vmul.f32 %v2052_v53, %v6779_v45  ;;  %v7484_v46 = vmul.f32 %v2004_v9, %v6802_v2  ;;  %v7487_v1 = vmul.f32 %v2024_v7, %v6805_v15  ;;  %v2091_v34 = vmul.f32 %v10342_v10, %v7439_v40 }
 0x1cb   : > { %v3419_v54 = vadd.f32 %v3411_v58, %v3395_v63  ;;  %v7492_v3 = vmul.f32 %v2052_v53, %v10288_v13  ;;  %v7495_v19 = vmul.f32 %v2052_v53, %v6743_v14  ;;  %v2043_v32 = vadd.f32 %v2035_v60, %v2015_v8 }
 0x1cc   : > { %10358 = vst [vmem:[#allocation139_spill] sm:$0xff] %v7484_v46  ;;  %10359 = vst [vmem:[#allocation140_spill] sm:$0xff] %v7487_v1  ;;  %v7497_v49 = vadd.f32 %v2736_v24, %v2720_v62  ;;  %v7500_v21 = vmul.f32 %v2004_v9, %v6763_v35  ;;  %v2063_v7 = vmul.f32 %v6706_v59, %v7480_v37  ;;  %v10367_v24 = vld [vmem:[#allocation43_spill] sm:$0xff]  ;;  %v10369_v62 = vld [vmem:[#allocation45_spill] sm:$0xff]  ;;  %v1024_v46 = vmax.f32 %v7126_v22, 0.0 }
 0x1cd   : > { %10360 = vst [vmem:[#allocation141_spill] sm:$0xff] %v7492_v3  ;;  %10361 = vst [vmem:[#allocation142_spill] sm:$0xff] %v7495_v19  ;;  %v2154_v61 = vadd.f32 %v7387_v11, %v2126_v30  ;;  %v7505_v1 = vadd.f32 %v3366_v42, %v3350_v47  ;;  %v7509_v58 = vmul.f32 %v10343_v51, %v7441_v36  ;;  %v10370_v47 = vld [vmem:[#allocation46_spill] sm:$0xff] }
 0x1ce   : > { %10362 = vst [vmem:[#allocation143_spill] sm:$0xff] %v7500_v21  ;;  %v7513_v53 = vmul.f32 %v10345_v57, %v7480_v37  ;;  %v2789_v63 = vadd.f32 %v7399_v38, %v2765_v29  ;;  %v7517_v9 = vadd.f32 %v2091_v34, %v7392_v18  ;;  %v2175_v8 = vmul.f32 %v10367_v24, %v7439_v40 }
 0x1cf   : > { %10363 = vst [vmem:[#allocation144_spill] sm:$0xff] %v7505_v1  ;;  %10364 = vst [vmem:[#allocation145_spill] sm:$0xff] %v7509_v58  ;;  %v2695_v11 = vmul.f32 %v7439_v40, %v6754_v27  ;;  %v2711_v42 = vmul.f32 %v7441_v36, %v6757_v28  ;;  %v7525_v60 = vadd.f32 %v2063_v7, %v2043_v32  ;;  %v10390_v58 = vld [vmem:[#allocation63_spill] sm:$0xff] }
 0x1d0   : > { %10365 = vst [vmem:[#allocation146_spill] sm:$0xff] %v7513_v53  ;;  %10366 = vst [vmem:[#allocation147_spill] sm:$0xff] %v7517_v9  ;;  %v2203_v30 = vmul.f32 %v10369_v62, %v7441_v36  ;;  %v7531_v38 = vmul.f32 %v10370_v47, %v7480_v37  ;;  %v3443_v18 = vadd.f32 %v3435_v26, %v3419_v54  ;;  %v10372_v26 = vmax.f32 %v7077_v12, 0.0 }
 0x1d1   : > { %10368 = vst [vmem:[#allocation148_spill] sm:$0xff] %v7525_v60  ;;  %v2183_v29 = vadd.f32 %v2175_v8, %v2154_v61  ;;  %v2735_v34 = vmul.f32 %v7480_v37, %v6779_v45  ;;  %v2758_v19 = vmul.f32 %v7439_v40, %v6802_v2  ;;  %v7539_v1 = vmul.f32 %v7441_v36, %v6805_v15  ;;  %v7599_v60 = vpop.f32.mrb[2].mxu1 }
 0x1d2   : > { %v2813_v32 = vadd.f32 %v7402_v23, %v2789_v63  ;;  %v3467_v7 = vadd.f32 %v7425_v48, %v3443_v18  ;;  %v3483_v21 = vmul.f32 %v7439_v40, %v6775_v41  ;;  %v1054_v54 = vmin.f32 %v10372_v26, 6.0  ;;  %v10377_v18 = vld [vmem:[#allocation40_spill] sm:$0xff] }
 0x1d3   : > { %10371 = vst [vmem:[#allocation149_spill] sm:$0xff] %v7539_v1  ;;  %v2719_v61 = vadd.f32 %v2711_v42, %v2695_v11  ;;  %v10373_v8 = vmax.f32 %v7080_v43, 0.0  ;;  %v953_v48 = vadd.f32 %v7553_v0, %v7034_v33  ;;  %v2829_v23 = vmul.f32 %v7439_v40, %v10290_v56 }
 0x1d4   : > { %v7559_v63 = vadd.f32 %v3483_v21, %v3467_v7  ;;  %1087 = vst.msk [vmem:[#allocation2 + $0x1a1] sm:$0xff] %vm491_vm0, %v1054_v54  ;;  %v968_v12 = vadd.f32 %v7553_v0, %v7068_v44  ;;  %v963_v22 = vadd.f32 %v7553_v0, %v7082_v17  ;;  %v7567_v43 = vadd.f32 %v2758_v19, %v7429_v50  ;;  %v10378_v54 = vld [vmem:[#allocation41_spill] sm:$0xff]  ;;  %v10379_v19 = vld [vmem:[#allocation71_spill] sm:$0xff] }
 0x1d5   : > { %v1053_v3 = vmin.f32 %v10373_v8, 6.0  ;;  %v7571_v11 = vmul.f32 %v7480_v37, %v10288_v13  ;;  %v1056_v33 = vmin.f32 %v1024_v46, 6.0  ;;  %v1023_v21 = vmax.f32 %v953_v48, 0.0  ;;  %v1468_v46 = vld [vmem:[%s10112_s7] sm:$0xff]  ;;  %10383 = vst [vmem:[#allocation71_spill] sm:$0xff] %v7599_v60 }
 0x1d6   : > { %10374 = vst [vmem:[#allocation150_spill] sm:$0xff] %v7559_v63  ;;  %10375 = vst [vmem:[#allocation151_spill] sm:$0xff] %v7567_v43  ;;  %v2837_v42 = vadd.f32 %v2829_v23, %v2813_v32  ;;  %v2853_v7 = vmul.f32 %v7441_v36, %v10377_v18  ;;  %v1026_v26 = vmax.f32 %v968_v12, 0.0  ;;  %v1025_v44 = vmax.f32 %v963_v22, 0.0  ;;  %v10380_v63 = vld [vmem:[#allocation74_spill] sm:$0xff]  ;;  %v1469_v32 = vld [vmem:[%s10112_s7 + $0x8] sm:$0xff] }
 0x1d7   : > { %10376 = vst [vmem:[#allocation152_spill] sm:$0xff] %v7571_v11  ;;  %1086 = vst.msk [vmem:[#allocation2 + $0x191] sm:$0xff] %vm491_vm0, %v1053_v3  ;;  %v2877_v17 = vmul.f32 %v7480_v37, %v10378_v54  ;;  %v1055_v50 = vmin.f32 %v1023_v21, 6.0  ;;  %v978_v8 = vadd.f32 %v7553_v0, %v10379_v19  ;;  %v973_v3 = vadd.f32 %v7553_v0, %v10380_v63  ;;  %v10381_v12 = vld [vmem:[#allocation44_spill] sm:$0xff]  ;;  %v1471_v19 = vld [vmem:[%s10112_s7 + $0x18] sm:$0xff] }
 0x1d8   : > { %1089 = vst.msk [vmem:[#allocation2 + $0x1c1] sm:$0xff] %vm491_vm0, %v1056_v33  ;;  %v1058_v48 = vmin.f32 %v1026_v26, 6.0  ;;  %v1057_v23 = vmin.f32 %v1025_v44, 6.0  ;;  %v3562_v22 = vmul.f32 %v10381_v12, %v6754_v27  ;;  %v10382_v33 = vld [vmem:[#allocation62_spill] sm:$0xff]  ;;  %v1470_v63 = vld [vmem:[%s10112_s7 + $0x10] sm:$0xff]  ;;  %v2211_v11 = vadd.f32 %v2203_v30, %v2183_v29  ;;  %v7604_v12 = vpop.f32.mrb[3].mxu1 }
 0x1d9   : > { %v3578_v21 = vmul.f32 %v10382_v33, %v6757_v28  ;;  %v7601_v1 = vadd.f32 %v2735_v34, %v2719_v61  ;;  %1088 = vst.msk [vmem:[#allocation2 + $0x1b1] sm:$0xff] %vm491_vm0, %v1055_v50  ;;  %v1028_v26 = vmax.f32 %v978_v8, 0.0  ;;  %v1027_v44 = vmax.f32 %v973_v3, 0.0  ;;  %10385 = vst [vmem:[#allocation44_spill] sm:$0xff] %v7604_v12  ;;  %v10387_v61 = vld [vmem:[#allocation48_spill] sm:$0xff] }
 0x1da   : > { %v2861_v33 = vadd.f32 %v2853_v7, %v2837_v42  ;;  %v3349_v43 = vmul.f32 %v7439_v40, %v6733_v5  ;;  %v3365_v53 = vmul.f32 %v7441_v36, %v6736_v6  ;;  %1091 = vst.msk [vmem:[#allocation2 + $0x201] sm:$0xff] %vm491_vm0, %v1058_v48  ;;  %1090 = vst.msk [vmem:[#allocation2 + $0x1f1] sm:$0xff] %vm491_vm0, %v1057_v23  ;;  %v10388_v50 = vld [vmem:[#allocation68_spill] sm:$0xff]  ;;  %v10392_v23 = vld [vmem:[#allocation77_spill] sm:$0xff] }
 0x1db   : > { %10384 = vst [vmem:[#allocation74_spill] sm:$0xff] %v7601_v1  ;;  %v7612_v30 = vpack.c.bf16 %v1469_v32, %v1468_v46  ;;  %v2006_v29 = vld [vmem:[#allocation2 + $0x1a0] sm:$0xff]  ;;  %v2949_v8 = vadd.f32 %v10388_v50, %v10387_v61  ;;  %v1060_v3 = vmin.f32 %v1028_v26, 6.0  ;;  %v1059_v1 = vmin.f32 %v1027_v44, 6.0  ;;  %v10391_v12 = vld [vmem:[#allocation76_spill] sm:$0xff] }
 0x1dc   : > { %v2026_v34 = vld [vmem:[#allocation2 + $0x1a1] sm:$0xff]  ;;  %v7616_v42 = vpack.c.bf16 %v1471_v19, %v1470_v63  ;;  %v3586_v7 = vadd.f32 %v3578_v21, %v3562_v22  ;;  %v3602_v9 = vmul.f32 %v10390_v58, %v6779_v45  ;;  %v7622_v48 = vadd.f32 %v7553_v0, %v10391_v12 }
 0x1dd   : > { %10386 = vst [vmem:[#allocation62_spill] sm:$0xff] %v7612_v30  ;;  %v7626_v46 = vadd.f32 %v7553_v0, %v10392_v23  ;;  %5667 = vmatprep.subr.bf16.mxu1 %v7612_v30  ;;  %v2018_v32 = vmul.f32 %v6791_v52, %v2006_v29  ;;  %v2038_v26 = vmul.f32 %v6696_v55, %v2026_v34  ;;  %1093 = vst.msk [vmem:[#allocation2 + $0x221] sm:$0xff] %vm491_vm0, %v1060_v3  ;;  %v10397_v44 = vld [vmem:[#allocation34_spill] sm:$0xff] }
 0x1de   : > { %10389 = vst [vmem:[#allocation48_spill] sm:$0xff] %v7616_v42  ;;  %v2698_v63 = vmul.f32 %v2006_v29, %v6754_v27  ;;  %v2714_v22 = vmul.f32 %v2026_v34, %v6757_v28  ;;  %1092 = vst.msk [vmem:[#allocation2 + $0x211] sm:$0xff] %vm491_vm0, %v1059_v1  ;;  %5669 = vmatpush3.bf16.msra.mxu1 %v7612_v30  ;;  %v7637_v58 = vadd.f32 %v7531_v38, %v2211_v11  ;;  %v2054_v61 = vld [vmem:[#allocation2 + $0x1a2] sm:$0xff]  ;;  %v10401_v38 = vld [vmem:[#allocation36_spill] sm:$0xff] }
 0x1df   : > { %10393 = vst [vmem:[#allocation68_spill] sm:$0xff] %v7626_v46  ;;  %v7641_v21 = vmul.f32 %v7480_v37, %v6743_v14  ;;  %v7645_v19 = vmul.f32 %v7439_v40, %v6763_v35  ;;  %v7649_v12 = vmul.f32 %v7441_v36, %v10397_v44  ;;  %5671 = vmatprep.subr.bf16.mxu1 %v7616_v42  ;;  %v2005_v3 = vld [vmem:[#allocation2 + $0x190] sm:$0xff] }
 0x1e0   : > { %10394 = vst [vmem:[#allocation63_spill] sm:$0xff] %v7637_v58  ;;  %v7652_v1 = vadd.f32 %v2877_v17, %v2861_v33  ;;  %v7654_v50 = vadd.f32 %v3365_v53, %v3349_v43  ;;  %v7658_v11 = vmul.f32 %v7480_v37, %v10401_v38  ;;  %v2025_v23 = vld [vmem:[#allocation2 + $0x191] sm:$0xff]  ;;  %5691 = vmatprep.subr.bf16.mxu0 %v7612_v30  ;;  %v10406_v53 = vld [vmem:[#allocation83_spill] sm:$0xff] }
 0x1e1   : > { %10395 = vst [vmem:[#allocation76_spill] sm:$0xff] %v7641_v21  ;;  %10396 = vst [vmem:[#allocation77_spill] sm:$0xff] %v7645_v19  ;;  %v10403_v21 = vld [vmem:[#allocation69_spill] sm:$0xff]  ;;  %v7664_v36 = vadd.f32 %v3602_v9, %v3586_v7  ;;  %v7673_v43 = vadd.f32 %v7553_v0, %v10406_v53  ;;  %5693 = vmatpush3.bf16.msra.mxu0 %v7612_v30  ;;  %v2046_v37 = vadd.f32 %v2038_v26, %v2018_v32  ;;  %v2007_v60 = vld [vmem:[#allocation2 + $0x1b0] sm:$0xff] }
 0x1e2   : > { %10398 = vst [vmem:[#allocation153_spill] sm:$0xff] %v7649_v12  ;;  %10399 = vst [vmem:[#allocation154_spill] sm:$0xff] %v7652_v1  ;;  %v7661_v40 = vadd.f32 %v10403_v21, %v2949_v8  ;;  %v10404_v12 = vld [vmem:[#allocation81_spill] sm:$0xff]  ;;  %v2066_v33 = vmul.f32 %v6706_v59, %v2054_v61  ;;  %v2722_v8 = vadd.f32 %v2714_v22, %v2698_v63  ;;  %5673 = vmatpush3.bf16.msra.mxu1 %v7616_v42  ;;  %v10449_v30 = vld [vmem:[#allocation30_spill] sm:$0xff] }
 0x1e3   : > { %10400 = vst [vmem:[#allocation155_spill] sm:$0xff] %v7654_v50  ;;  %10402 = vst [vmem:[#allocation156_spill] sm:$0xff] %v7658_v11  ;;  %v7669_v17 = vadd.f32 %v7553_v0, %v10404_v12  ;;  %v3352_v9 = vmul.f32 %v2006_v29, %v6733_v5  ;;  %v3368_v7 = vmul.f32 %v2026_v34, %v6736_v6  ;;  %5695 = vmatprep.subr.bf16.mxu0 %v7616_v42  ;;  %v2053_v21 = vld [vmem:[#allocation2 + $0x192] sm:$0xff] }
 0x1e4   : > { %10407 = vst [vmem:[#allocation81_spill] sm:$0xff] %v7673_v43  ;;  %v2017_v12 = vmul.f32 %v6791_v52, %v2005_v3  ;;  %v2037_v19 = vmul.f32 %v6696_v55, %v2025_v23  ;;  %v7685_v0 = vmul.f32 %v10342_v10, %v2006_v29  ;;  %v7688_v32 = vmul.f32 %v10343_v51, %v2026_v34  ;;  %v2027_v39 = vld [vmem:[#allocation2 + $0x1b1] sm:$0xff]  ;;  %v2921_v4 = vld [vmem:[#allocation2 + $0x220] sm:$0xff]  ;;  %v10451_v43 = vld [vmem:[#allocation31_spill] sm:$0xff] }
 0x1e5   : > { %10405 = vst [vmem:[#allocation69_spill] sm:$0xff] %v7669_v17  ;;  %v7691_v26 = vmul.f32 %v10345_v57, %v2054_v61  ;;  %v2738_v63 = vmul.f32 %v2054_v61, %v6779_v45  ;;  %v7695_v22 = vmul.f32 %v2006_v29, %v6802_v2  ;;  %v7698_v53 = vmul.f32 %v2026_v34, %v6805_v15  ;;  %v2937_v16 = vld [vmem:[#allocation2 + $0x221] sm:$0xff]  ;;  %v7874_v46 = vld [vmem:[#allocation2 + $0x211] sm:$0xff] }
 0x1e6   : > { %10408 = vst [vmem:[#allocation83_spill] sm:$0xff] %v7685_v0  ;;  %10409 = vst [vmem:[#allocation157_spill] sm:$0xff] %v7688_v32  ;;  %v2697_v50 = vmul.f32 %v2005_v3, %v6754_v27  ;;  %v2713_v11 = vmul.f32 %v2025_v23, %v6757_v28  ;;  %5697 = vmatpush3.bf16.msra.mxu0 %v7616_v42  ;;  %v2074_v0 = vadd.f32 %v2066_v33, %v2046_v37 }
 0x1e7   : > { %10410 = vst [vmem:[#allocation158_spill] sm:$0xff] %v7691_v26  ;;  %10411 = vst [vmem:[#allocation159_spill] sm:$0xff] %v7695_v22  ;;  %v7704_v32 = vmul.f32 %v2054_v61, %v10288_v13  ;;  %v7707_v26 = vmul.f32 %v2054_v61, %v6743_v14  ;;  %v2093_v1 = vmul.f32 %v10342_v10, %v2005_v3 }
 0x1e8   : > { %10412 = vst [vmem:[#allocation160_spill] sm:$0xff] %v7698_v53  ;;  %v2746_v22 = vadd.f32 %v2738_v63, %v2722_v8  ;;  %v7710_v58 = vadd.f32 %v3368_v7, %v3352_v9  ;;  %v7713_v34 = vmul.f32 %v2006_v29, %v6763_v35  ;;  %v2045_v53 = vadd.f32 %v2037_v19, %v2017_v12  ;;  %v2084_v19 = vld [vmem:[#allocation2 + $0x1c0] sm:$0xff] }
 0x1e9   : > { %10413 = vst [vmem:[#allocation161_spill] sm:$0xff] %v7704_v32  ;;  %10414 = vst [vmem:[#allocation162_spill] sm:$0xff] %v7707_v26  ;;  %v2065_v42 = vmul.f32 %v6706_v59, %v2053_v21  ;;  %v7717_v37 = vmul.f32 %v10343_v51, %v2025_v23  ;;  %v7720_v33 = vmul.f32 %v10345_v57, %v2053_v21  ;;  %v2112_v63 = vld [vmem:[#allocation2 + $0x1c1] sm:$0xff] }
 0x1ea   : > { %10415 = vst [vmem:[#allocation163_spill] sm:$0xff] %v7710_v58  ;;  %10416 = vst [vmem:[#allocation164_spill] sm:$0xff] %v7713_v34  ;;  %v2760_v61 = vmul.f32 %v2005_v3, %v6802_v2  ;;  %v2721_v26 = vadd.f32 %v2713_v11, %v2697_v50  ;;  %v2737_v8 = vmul.f32 %v2053_v21, %v6779_v45  ;;  %v2140_v58 = vld [vmem:[#allocation2 + $0x1c2] sm:$0xff] }
 0x1eb   : > { %10417 = vst [vmem:[#allocation165_spill] sm:$0xff] %v7717_v37  ;;  %10418 = vst [vmem:[#allocation166_spill] sm:$0xff] %v7720_v33  ;;  %v3351_v9 = vmul.f32 %v2005_v3, %v6733_v5  ;;  %v3367_v29 = vmul.f32 %v2025_v23, %v6736_v6  ;;  %v7727_v7 = vadd.f32 %v2093_v1, %v7476_v20 }
 0x1ec   : > { %v7730_v12 = vmul.f32 %v2025_v23, %v6805_v15  ;;  %v2019_v34 = vmul.f32 %v6791_v52, %v2007_v60  ;;  %v2039_v32 = vmul.f32 %v6696_v55, %v2027_v39  ;;  %v7734_v50 = vadd.f32 %v2065_v42, %v2045_v53  ;;  %v7753_v42 = vpop.f32.mrb[4].mxu1 }
 0x1ed   : > { %10419 = vst [vmem:[#allocation167_spill] sm:$0xff] %v7727_v7  ;;  %v7737_v11 = vmul.f32 %v2053_v21, %v10288_v13  ;;  %v2699_v33 = vmul.f32 %v2007_v60, %v6754_v27  ;;  %v2715_v37 = vmul.f32 %v2027_v39, %v6757_v28  ;;  %v7742_v20 = vadd.f32 %v2760_v61, %v7497_v49  ;;  %v7765_v61 = vpop.f32.mrb[5].mxu1 }
 0x1ee   : > { %10420 = vst [vmem:[#allocation168_spill] sm:$0xff] %v7730_v12  ;;  %10421 = vst [vmem:[#allocation169_spill] sm:$0xff] %v7734_v50  ;;  %v7745_v1 = vmul.f32 %v2053_v21, %v6743_v14  ;;  %v7748_v23 = vmul.f32 %v2005_v3, %v6763_v35  ;;  %v7751_v12 = vmul.f32 %v10342_v10, %v2084_v19  ;;  %v2055_v21 = vld [vmem:[#allocation2 + $0x1b2] sm:$0xff] }
 0x1ef   : > { %10422 = vst [vmem:[#allocation170_spill] sm:$0xff] %v7737_v11  ;;  %10423 = vst [vmem:[#allocation171_spill] sm:$0xff] %v7742_v20  ;;  %v7755_v53 = vadd.f32 %v2737_v8, %v2721_v26  ;;  %v7757_v50 = vadd.f32 %v3367_v29, %v3351_v9  ;;  %v7760_v11 = vmul.f32 %v10343_v51, %v2112_v63  ;;  %v2919_v8 = vld [vmem:[#allocation2 + $0x200] sm:$0xff] }
 0x1f0   : > { %10424 = vst [vmem:[#allocation172_spill] sm:$0xff] %v7745_v1  ;;  %10425 = vst [vmem:[#allocation173_spill] sm:$0xff] %v7748_v23  ;;  %v7763_v49 = vmul.f32 %v10345_v57, %v2140_v58  ;;  %v7768_v3 = vmul.f32 %v2084_v19, %v6802_v2  ;;  %v7771_v1 = vmul.f32 %v2112_v63, %v6805_v15  ;;  %v2935_v9 = vld [vmem:[#allocation2 + $0x201] sm:$0xff] }
 0x1f1   : > { %10426 = vst [vmem:[#allocation174_spill] sm:$0xff] %v7751_v12  ;;  %10427 = vst [vmem:[#allocation175_spill] sm:$0xff] %v7753_v42  ;;  %v2047_v23 = vadd.f32 %v2039_v32, %v2019_v34  ;;  %v2095_v26 = vmul.f32 %v10342_v10, %v2007_v60  ;;  %v7775_v29 = vmul.f32 %v2140_v58, %v10288_v13 }
 0x1f2   : > { %10428 = vst [vmem:[#allocation176_spill] sm:$0xff] %v7755_v53  ;;  %10429 = vst [vmem:[#allocation177_spill] sm:$0xff] %v7757_v50  ;;  %v7778_v50 = vmul.f32 %v2084_v19, %v6763_v35  ;;  %v2067_v12 = vmul.f32 %v6706_v59, %v2055_v21  ;;  %v3353_v32 = vmul.f32 %v2007_v60, %v6733_v5 }
 0x1f3   : > { %10430 = vst [vmem:[#allocation178_spill] sm:$0xff] %v7760_v11  ;;  %10431 = vst [vmem:[#allocation179_spill] sm:$0xff] %v7763_v49  ;;  %v2723_v49 = vadd.f32 %v2715_v37, %v2699_v33  ;;  %v2762_v11 = vmul.f32 %v2007_v60, %v6802_v2  ;;  %v3369_v34 = vmul.f32 %v2027_v39, %v6736_v6  ;;  %v2959_v33 = vld [vmem:[#allocation2 + $0x202] sm:$0xff] }
 0x1f4   : > { %10432 = vst [vmem:[#allocation180_spill] sm:$0xff] %v7765_v61  ;;  %10433 = vst [vmem:[#allocation181_spill] sm:$0xff] %v7768_v3  ;;  %v7783_v3 = vmul.f32 %v10343_v51, %v2027_v39  ;;  %v7788_v63 = vmul.f32 %v10345_v57, %v2055_v21  ;;  %v2739_v58 = vmul.f32 %v2055_v21, %v6779_v45 }
 0x1f5   : > { %10434 = vst [vmem:[#allocation182_spill] sm:$0xff] %v7771_v1  ;;  %10435 = vst [vmem:[#allocation183_spill] sm:$0xff] %v7775_v29  ;;  %v2927_v19 = vmul.f32 %v2919_v8, %v6791_v52  ;;  %v2943_v37 = vmul.f32 %v2935_v9, %v6696_v55  ;;  %v7795_v29 = vadd.f32 %v2067_v12, %v2047_v23 }
 0x1f6   : > { %10436 = vst [vmem:[#allocation184_spill] sm:$0xff] %v7778_v50  ;;  %10437 = vst [vmem:[#allocation185_spill] sm:$0xff] %v7783_v3  ;;  %v7793_v50 = vld [vmem:[#allocation2 + $0x1f0] sm:$0xff]  ;;  %v7797_v1 = vadd.f32 %v2095_v26, %v2074_v0  ;;  %v7800_v3 = vmul.f32 %v2027_v39, %v6805_v15  ;;  %v7803_v53 = vmul.f32 %v2055_v21, %v10288_v13 }
 0x1f7   : > { %10438 = vst [vmem:[#allocation186_spill] sm:$0xff] %v7788_v63  ;;  %10439 = vst [vmem:[#allocation187_spill] sm:$0xff] %v7795_v29  ;;  %v2934_v63 = vld [vmem:[#allocation2 + $0x1f1] sm:$0xff]  ;;  %v7805_v20 = vadd.f32 %v2739_v58, %v2723_v49  ;;  %v7807_v7 = vadd.f32 %v2762_v11, %v2746_v22  ;;  %v7810_v61 = vmul.f32 %v2055_v21, %v6743_v14 }
 0x1f8   : > { %10440 = vst [vmem:[#allocation188_spill] sm:$0xff] %v7797_v1  ;;  %10441 = vst [vmem:[#allocation189_spill] sm:$0xff] %v7800_v3  ;;  %v7813_v42 = vmul.f32 %v2007_v60, %v6763_v35  ;;  %v7815_v12 = vadd.f32 %v3369_v34, %v3353_v32  ;;  %v2967_v0 = vmul.f32 %v2959_v33, %v6706_v59  ;;  %v2958_v21 = vld [vmem:[#allocation2 + $0x1f2] sm:$0xff] }
 0x1f9   : > { %10442 = vst [vmem:[#allocation190_spill] sm:$0xff] %v7803_v53  ;;  %10443 = vst [vmem:[#allocation191_spill] sm:$0xff] %v7805_v20  ;;  %v2991_v39 = vmul.f32 %v2919_v8, %v10342_v10  ;;  %v2926_v23 = vmul.f32 %v7793_v50, %v6791_v52  ;;  %v2951_v26 = vadd.f32 %v2943_v37, %v2927_v19 }
 0x1fa   : > { %10444 = vst [vmem:[#allocation192_spill] sm:$0xff] %v7807_v7  ;;  %10445 = vst [vmem:[#allocation193_spill] sm:$0xff] %v7810_v61  ;;  %v3564_v49 = vmul.f32 %v2919_v8, %v6754_v27  ;;  %v3580_v22 = vmul.f32 %v2935_v9, %v6757_v28  ;;  %v2942_v11 = vmul.f32 %v2934_v63, %v6696_v55 }
 0x1fb   : > { %10446 = vst [vmem:[#allocation194_spill] sm:$0xff] %v7813_v42  ;;  %10447 = vst [vmem:[#allocation195_spill] sm:$0xff] %v7815_v12  ;;  %v7825_v60 = vmul.f32 %v2935_v9, %v10343_v51  ;;  %v7828_v32 = vmul.f32 %v2959_v33, %v10345_v57  ;;  %v3604_v34 = vmul.f32 %v2959_v33, %v6779_v45 }
 0x1fc   : > { %v3563_v58 = vmul.f32 %v7793_v50, %v6754_v27  ;;  %v3627_v19 = vmul.f32 %v2919_v8, %v6802_v2  ;;  %v7835_v37 = vmul.f32 %v2935_v9, %v6805_v15  ;;  %v7838_v61 = vmul.f32 %v2959_v33, %v10288_v13 }
 0x1fd   : > { %v3579_v12 = vmul.f32 %v2934_v63, %v6757_v28  ;;  %v4217_v42 = vmul.f32 %v2919_v8, %v6733_v5  ;;  %v2950_v20 = vadd.f32 %v2942_v11, %v2926_v23  ;;  %v2966_v53 = vmul.f32 %v2958_v21, %v6706_v59 }
 0x1fe   : > { %v4216_v29 = vmul.f32 %v7793_v50, %v6733_v5  ;;  %v7845_v3 = vadd.f32 %v2967_v0, %v2951_v26  ;;  %v3588_v7 = vadd.f32 %v3580_v22, %v3564_v49  ;;  %v4233_v1 = vmul.f32 %v2935_v9, %v6736_v6 }
 0x1ff   : > { %v4232_v31 = vmul.f32 %v2934_v63, %v6736_v6  ;;  %v7850_v25 = vmul.f32 %v2959_v33, %v6743_v14  ;;  %v3587_v38 = vadd.f32 %v3579_v12, %v3563_v58  ;;  %v3603_v23 = vmul.f32 %v2958_v21, %v6779_v45 }
 0x200   : > { %v4256_v11 = vmul.f32 %v2958_v21, %v6743_v14  ;;  %v4280_v44 = vmul.f32 %v2919_v8, %v6763_v35  ;;  %v4304_v0 = vmul.f32 %v2935_v9, %v10449_v30  ;;  %v2990_v26 = vmul.f32 %v7793_v50, %v10342_v10  ;;  %v2961_v9 = vld [vmem:[#allocation2 + $0x222] sm:$0xff] }
 0x201   : > { %10448 = vst [vmem:[#allocation196_spill] sm:$0xff] %v7850_v25  ;;  %v4240_v49 = vadd.f32 %v4232_v31, %v4216_v29  ;;  %v2974_v22 = vadd.f32 %v2966_v53, %v2950_v20  ;;  %v3626_v54 = vmul.f32 %v7793_v50, %v6802_v2  ;;  %v2929_v18 = vmul.f32 %v2921_v4, %v6791_v52  ;;  %v7872_v29 = vld [vmem:[#allocation2 + $0x210] sm:$0xff] }
 0x202   : > { %v2945_v12 = vmul.f32 %v2937_v16, %v6696_v55  ;;  %v7862_v58 = vadd.f32 %v3604_v34, %v3588_v7  ;;  %v7864_v25 = vadd.f32 %v4233_v1, %v4217_v42  ;;  %v4328_v8 = vmul.f32 %v2959_v33, %v10451_v43 }
 0x203   : > { %v4264_v17 = vadd.f32 %v4256_v11, %v4240_v49  ;;  %v7868_v30 = vmul.f32 %v2934_v63, %v10343_v51  ;;  %v3611_v31 = vadd.f32 %v3603_v23, %v3587_v38  ;;  %v3566_v20 = vmul.f32 %v2921_v4, %v6754_v27  ;;  %v7907_v49 = vld [vmem:[#allocation2 + $0x212] sm:$0xff] }
 0x204   : > { %10450 = vst [vmem:[#allocation197_spill] sm:$0xff] %v7864_v25  ;;  %v3582_v53 = vmul.f32 %v2937_v16, %v6757_v28  ;;  %v7877_v7 = vadd.f32 %v2990_v26, %v7661_v40  ;;  %v7880_v1 = vmul.f32 %v2958_v21, %v10345_v57  ;;  %v7883_v42 = vmul.f32 %v2934_v63, %v6805_v15 }
 0x205   : > { %10452 = vst [vmem:[#allocation31_spill] sm:$0xff] %v7868_v30  ;;  %v7886_v33 = vmul.f32 %v2958_v21, %v10288_v13  ;;  %v2999_v38 = vadd.f32 %v2991_v39, %v2974_v22  ;;  %v7889_v34 = vadd.f32 %v3626_v54, %v7664_v36  ;;  %v2953_v23 = vadd.f32 %v2945_v12, %v2929_v18 }
 0x206   : > { %10453 = vst [vmem:[#allocation198_spill] sm:$0xff] %v7877_v7  ;;  %10454 = vst [vmem:[#allocation199_spill] sm:$0xff] %v7880_v1  ;;  %v2969_v11 = vmul.f32 %v2961_v9, %v6706_v59  ;;  %v7894_v40 = vmul.f32 %v7793_v50, %v6763_v35  ;;  %v7897_v26 = vmul.f32 %v2921_v4, %v10342_v10 }
 0x207   : > { %10455 = vst [vmem:[#allocation200_spill] sm:$0xff] %v7883_v42  ;;  %10456 = vst [vmem:[#allocation201_spill] sm:$0xff] %v7886_v33  ;;  %v2928_v63 = vmul.f32 %v7872_v29, %v6791_v52  ;;  %v2944_v21 = vmul.f32 %v7874_v46, %v6696_v55  ;;  %v3635_v39 = vadd.f32 %v3627_v19, %v3611_v31 }
 0x208   : > { %10457 = vst [vmem:[#allocation202_spill] sm:$0xff] %v7889_v34  ;;  %10458 = vst [vmem:[#allocation203_spill] sm:$0xff] %v7894_v40  ;;  %v7904_v54 = vmul.f32 %v2937_v16, %v10343_v51  ;;  %v3590_v18 = vadd.f32 %v3582_v53, %v3566_v20  ;;  %v3606_v36 = vmul.f32 %v2961_v9, %v6779_v45 }
 0x209   : > { %10459 = vst [vmem:[#allocation204_spill] sm:$0xff] %v7897_v26  ;;  %v7910_v50 = vmul.f32 %v2961_v9, %v10345_v57  ;;  %v4219_v22 = vmul.f32 %v2921_v4, %v6733_v5  ;;  %v4235_v12 = vmul.f32 %v2937_v16, %v6736_v6  ;;  %v2992_v25 = vmul.f32 %v7872_v29, %v10342_v10 }
 0x20a   : > { %10460 = vst [vmem:[#allocation205_spill] sm:$0xff] %v7904_v54  ;;  %v7916_v40 = vadd.f32 %v2969_v11, %v2953_v23  ;;  %v7919_v19 = vmul.f32 %v2921_v4, %v6802_v2  ;;  %v7922_v31 = vmul.f32 %v2937_v16, %v6805_v15  ;;  %v3023_v20 = vadd.f32 %v7825_v60, %v2999_v38 }
 0x20b   : > { %10461 = vst [vmem:[#allocation206_spill] sm:$0xff] %v7910_v50  ;;  %v4288_v53 = vadd.f32 %v4280_v44, %v4264_v17  ;;  %v7926_v50 = vmul.f32 %v2961_v9, %v10288_v13  ;;  %v2952_v54 = vadd.f32 %v2944_v21, %v2928_v63  ;;  %v2968_v26 = vmul.f32 %v7907_v49, %v6706_v59 }
 0x20c   : > { %10462 = vst [vmem:[#allocation207_spill] sm:$0xff] %v7919_v19  ;;  %10463 = vst [vmem:[#allocation208_spill] sm:$0xff] %v7922_v31  ;;  %v7930_v33 = vadd.f32 %v3606_v36, %v3590_v18  ;;  %v7933_v23 = vmul.f32 %v2961_v9, %v6743_v14  ;;  %v7936_v11 = vmul.f32 %v2921_v4, %v6763_v35 }
 0x20d   : > { %10464 = vst [vmem:[#allocation209_spill] sm:$0xff] %v7926_v50  ;;  %v3659_v16 = vadd.f32 %v7835_v37, %v3635_v39  ;;  %v7939_v31 = vadd.f32 %v4235_v12, %v4219_v22  ;;  %v7942_v44 = vadd.f32 %v2992_v25, %v7845_v3  ;;  %v7946_v17 = vmul.f32 %v7874_v46, %v10343_v51  ;;  %v10477_v50 = vld [vmem:[#allocation81_spill] sm:$0xff] }
 0x20e   : > { %10465 = vst [vmem:[#allocation210_spill] sm:$0xff] %v7933_v23  ;;  %10466 = vst [vmem:[#allocation211_spill] sm:$0xff] %v7936_v11  ;;  %v7950_v60 = vmul.f32 %v7907_v49, %v10345_v57  ;;  %v3047_v9 = vadd.f32 %v7828_v32, %v3023_v20  ;;  %v3064_v4 = vmul.f32 %v7872_v29, %v10367_v24  ;;  %v1031_v19 = vmax.f32 %v10477_v50, 0.0  ;;  %v1473_v50 = vld [vmem:[%s10112_s7 + $0x28] sm:$0xff] }
 0x20f   : > { %10467 = vst [vmem:[#allocation212_spill] sm:$0xff] %v7939_v31  ;;  %10468 = vst [vmem:[#allocation213_spill] sm:$0xff] %v7942_v44  ;;  %v3088_v37 = vmul.f32 %v7874_v46, %v10369_v62  ;;  %v7959_v25 = vmul.f32 %v7907_v49, %v10370_v47  ;;  %v7961_v3 = vadd.f32 %v2968_v26, %v2952_v54  ;;  %v7977_v26 = vld [vmem:[%s10109_s4] ss:$0 sm:$0xff]  ;;  %v10476_v31 = vld [vmem:[#allocation69_spill] sm:$0xff] }
 0x210   : > { %10469 = vst [vmem:[#allocation214_spill] sm:$0xff] %v7946_v17  ;;  %10470 = vst [vmem:[#allocation215_spill] sm:$0xff] %v7950_v60  ;;  %v3565_v38 = vmul.f32 %v7872_v29, %v6754_v27  ;;  %v3581_v63 = vmul.f32 %v7874_v46, %v6757_v28  ;;  %v4312_v21 = vadd.f32 %v4304_v0, %v4288_v53  ;;  %v10474_v53 = vld [vmem:[#allocation68_spill] sm:$0xff]  ;;  %v1032_v11 = vmax.f32 %v10476_v31, 0.0  ;;  %v3803_v60 = vld [vmem:[#allocation2 + $0x281] sm:$0xff] }
 0x211   : > { %10471 = vst [vmem:[#allocation216_spill] sm:$0xff] %v7961_v3  ;;  %v3605_v32 = vmul.f32 %v7907_v49, %v6779_v45  ;;  %v3683_v39 = vadd.f32 %v7838_v61, %v3659_v16  ;;  %v3699_v18 = vmul.f32 %v7872_v29, %v10290_v56  ;;  %v4352_v36 = vmul.f32 %v7872_v29, %v6775_v41  ;;  %v3787_v3 = vld [vmem:[#allocation2 + $0x280] sm:$0xff] }
 0x212   : > { %v3628_v54 = vmul.f32 %v7872_v29, %v6802_v2  ;;  %v7983_v0 = vmul.f32 %v7874_v46, %v6805_v15  ;;  %v4336_v22 = vadd.f32 %v4328_v8, %v4312_v21  ;;  %v10473_v61 = vmax.f32 %v7622_v48, 0.0  ;;  %v10479_v8 = vld [vmem:[#allocation89_spill] sm:$0xff]  ;;  %v10480_v48 = vld [vmem:[#allocation91_spill] sm:$0xff] }
 0x213   : > { %v3072_v20 = vadd.f32 %v3064_v4, %v3047_v9  ;;  %v10475_v16 = vmax.f32 %v10474_v53, 0.0  ;;  %v3589_v17 = vadd.f32 %v3581_v63, %v3565_v38  ;;  %v1210_v21 = vadd.f32 %v10479_v8, %v7977_v26  ;;  %v1472_v4 = vld [vmem:[%s10112_s7 + $0x20] sm:$0xff]  ;;  %v10481_v38 = vld [vmem:[#allocation40_spill] sm:$0xff] }
 0x214   : > { %10472 = vst [vmem:[#allocation217_spill] sm:$0xff] %v7983_v0  ;;  %v1062_v12 = vmin.f32 %v10473_v61, 6.0  ;;  %v7991_v44 = vadd.f32 %v4352_v36, %v4336_v22  ;;  %v1205_v9 = vadd.f32 %v7977_v26, %v10480_v48  ;;  %v3707_v31 = vadd.f32 %v3699_v18, %v3683_v39  ;;  %v3827_v39 = vld [vmem:[#allocation2 + $0x282] sm:$0xff]  ;;  %v10487_v0 = vld [vmem:[#allocation41_spill] sm:$0xff] }
 0x215   : > { %v1061_v23 = vmin.f32 %v10475_v16, 6.0  ;;  %v3723_v63 = vmul.f32 %v7874_v46, %v10481_v38  ;;  %v1064_v36 = vmin.f32 %v1032_v11, 6.0  ;;  %v1063_v22 = vmin.f32 %v1031_v19, 6.0 }
 0x216   : > { %10478 = vst [vmem:[#allocation68_spill] sm:$0xff] %v7991_v44  ;;  %1095 = vst.msk [vmem:[#allocation2 + $0x241] sm:$0xff] %vm491_vm0, %v1062_v12  ;;  %v1244_v61 = vmax.f32 %v1210_v21, 0.0  ;;  %v1243_v12 = vmax.f32 %v1205_v9, 0.0  ;;  %v3795_v53 = vmul.f32 %v3787_v3, %v6791_v52  ;;  %v3811_v16 = vmul.f32 %v3803_v60, %v6696_v55  ;;  %v10484_v9 = vld [vmem:[#allocation42_spill] sm:$0xff] }
 0x217   : > { %1094 = vst.msk [vmem:[#allocation2 + $0x231] sm:$0xff] %vm491_vm0, %v1061_v23  ;;  %v3096_v8 = vadd.f32 %v3088_v37, %v3072_v20  ;;  %v8011_v48 = vmul.f32 %v7907_v49, %v10288_v13  ;;  %1097 = vst.msk [vmem:[#allocation2 + $0x261] sm:$0xff] %vm491_vm0, %v1064_v36  ;;  %v4431_v23 = vmul.f32 %v3787_v3, %v6754_v27  ;;  %v10485_v44 = vld [vmem:[#allocation50_spill] sm:$0xff]  ;;  %v8021_v20 = vpop.f32.mrb[6].mxu1 }
 0x218   : > { %1096 = vst.msk [vmem:[#allocation2 + $0x251] sm:$0xff] %vm491_vm0, %v1063_v22  ;;  %v8016_v11 = vpack.c.bf16 %v1473_v50, %v1472_v4  ;;  %v1252_v19 = vmin.f32 %v1244_v61, 6.0  ;;  %v1251_v18 = vmin.f32 %v1243_v12, 6.0  ;;  %v4447_v21 = vmul.f32 %v3803_v60, %v6757_v28  ;;  %10486 = vst [vmem:[#allocation89_spill] sm:$0xff] %v8021_v20  ;;  %v10488_v4 = vld [vmem:[#allocation80_spill] sm:$0xff]  ;;  %v10489_v50 = vld [vmem:[#allocation39_spill] sm:$0xff] }
 0x219   : > { %10482 = vst [vmem:[#allocation69_spill] sm:$0xff] %v8011_v48  ;;  %v1627_v37 = vadd.f32 %v10485_v44, %v10484_v9  ;;  %v3747_v48 = vmul.f32 %v7907_v49, %v10487_v0  ;;  %v4218_v36 = vmul.f32 %v7872_v29, %v6733_v5  ;;  %v4234_v3 = vmul.f32 %v7874_v46, %v6736_v6  ;;  %v8032_v60 = vpop.f32.mrb[7].mxu1  ;;  %v10491_v9 = vld [vmem:[#allocation49_spill] sm:$0xff] }
 0x21a   : > { %10483 = vst [vmem:[#allocation81_spill] sm:$0xff] %v8016_v11  ;;  %5675 = vmatprep.subr.bf16.mxu1 %v8016_v11  ;;  %v1911_v22 = vadd.f32 %v10489_v50, %v10488_v4  ;;  %10490 = vst [vmem:[#allocation91_spill] sm:$0xff] %v8032_v60  ;;  %v3731_v61 = vadd.f32 %v3723_v63, %v3707_v31  ;;  %v3819_v44 = vadd.f32 %v3811_v16, %v3795_v53  ;;  %v10496_v16 = vld [vmem:[#allocation62_spill] sm:$0xff] }
 0x21b   : > { %1261 = vst.msk [vmem:[#allocation2 + $0x2a1] sm:$0xff] %vm491_vm0, %v1252_v19  ;;  %1260 = vst.msk [vmem:[#allocation2 + $0x291] sm:$0xff] %vm491_vm0, %v1251_v18  ;;  %v3835_v12 = vmul.f32 %v3827_v39, %v6706_v59  ;;  %v8038_v42 = vadd.f32 %v10491_v9, %v1627_v37  ;;  %5677 = vmatpush3.bf16.msra.mxu1 %v8016_v11  ;;  %v8041_v34 = vadd.f32 %v3605_v32, %v3589_v17  ;;  %v10495_v18 = vld [vmem:[#allocation78_spill] sm:$0xff] }
 0x21c   : > { %v8044_v1 = vadd.f32 %v3628_v54, %v7862_v58  ;;  %v8048_v31 = vmul.f32 %v7907_v49, %v6743_v14  ;;  %v8051_v53 = vadd.f32 %v10495_v18, %v1911_v22  ;;  %5679 = vmatprep.subr.bf16.mxu1 %v10496_v16  ;;  %v8055_v37 = vadd.f32 %v7959_v25, %v3096_v8  ;;  %v1692_v54 = vld [vmem:[#allocation2 + $0x22] sm:$0xff] }
 0x21d   : > { %10492 = vst [vmem:[#allocation40_spill] sm:$0xff] %v8041_v34  ;;  %v2923_v63 = vld [vmem:[#allocation2 + $0x240] sm:$0xff]  ;;  %v8059_v17 = vmul.f32 %v7872_v29, %v6763_v35  ;;  %v4455_v58 = vadd.f32 %v4447_v21, %v4431_v23  ;;  %v4471_v32 = vmul.f32 %v3827_v39, %v6779_v45  ;;  %5699 = vmatprep.subr.bf16.mxu0 %v8016_v11  ;;  %v10503_v23 = vld [vmem:[#allocation36_spill] sm:$0xff] }
 0x21e   : > { %10493 = vst [vmem:[#allocation42_spill] sm:$0xff] %v8044_v1  ;;  %10494 = vst [vmem:[#allocation50_spill] sm:$0xff] %v8048_v31  ;;  %v2939_v19 = vld [vmem:[#allocation2 + $0x241] sm:$0xff]  ;;  %v8063_v4 = vadd.f32 %v4234_v3, %v4218_v36  ;;  %v2931_v9 = vmul.f32 %v2923_v63, %v6791_v52  ;;  %5701 = vmatpush3.bf16.msra.mxu0 %v8016_v11  ;;  %v8076_v39 = vadd.f32 %v3747_v48, %v3731_v61  ;;  %v2938_v34 = vld [vmem:[#allocation2 + $0x231] sm:$0xff] }
 0x21f   : > { %10497 = vst [vmem:[#allocation41_spill] sm:$0xff] %v8055_v37  ;;  %10498 = vst [vmem:[#allocation80_spill] sm:$0xff] %v8059_v17  ;;  %v10500_v50 = vld [vmem:[#allocation34_spill] sm:$0xff]  ;;  %v2947_v25 = vmul.f32 %v2939_v19, %v6696_v55  ;;  %v8080_v21 = vmul.f32 %v7907_v49, %v10503_v23  ;;  %v8082_v3 = vadd.f32 %v3835_v12, %v3819_v44  ;;  %v10506_v49 = vld [vmem:[#allocation129_spill] sm:$0xff] }
 0x220   : > { %10499 = vst [vmem:[#allocation39_spill] sm:$0xff] %v8063_v4  ;;  %v8067_v22 = vmul.f32 %v7874_v46, %v10500_v50  ;;  %v8071_v8 = vld [vmem:[#allocation2 + $0x161] sm:$0xff]  ;;  %10502 = vst [vmem:[#allocation78_spill] sm:$0xff] %v8076_v39  ;;  %v3568_v4 = vmul.f32 %v2923_v63, %v6754_v27  ;;  %v3584_v17 = vmul.f32 %v2939_v19, %v6757_v28  ;;  %v2962_v60 = vld [vmem:[#allocation2 + $0x232] sm:$0xff] }
 0x221   : > { %v8073_v29 = vld [vmem:[#allocation2 + $0x162] sm:$0xff]  ;;  %10504 = vst [vmem:[#allocation34_spill] sm:$0xff] %v8080_v21  ;;  %v8090_v48 = vmul.f32 %v10503_v23, %v1692_v54  ;;  %v8096_v44 = vadd.f32 %v4471_v32, %v4455_v58  ;;  %v8104_v39 = vmul.f32 %v10369_v62, %v8071_v8  ;;  %v2955_v54 = vadd.f32 %v2947_v25, %v2931_v9  ;;  %v2940_v62 = vld [vmem:[#allocation2 + $0x251] sm:$0xff] }
 0x222   : > { %10501 = vst [vmem:[#allocation49_spill] sm:$0xff] %v8067_v22  ;;  %v2963_v36 = vld [vmem:[#allocation2 + $0x242] sm:$0xff]  ;;  %v2922_v22 = vld [vmem:[#allocation2 + $0x230] sm:$0xff]  ;;  %v8108_v1 = vmul.f32 %v10370_v47, %v8073_v29  ;;  %v8118_v32 = vmul.f32 %v2939_v19, %v10343_v51  ;;  %v2946_v30 = vmul.f32 %v2938_v34, %v6696_v55  ;;  %v3592_v7 = vadd.f32 %v3584_v17, %v3568_v4 }
 0x223   : > { %v5793_v46 = vld [vmem:[#allocation2 + $0x21] sm:$0xff]  ;;  %v2971_v37 = vmul.f32 %v2963_v36, %v6706_v59  ;;  %v3608_v9 = vmul.f32 %v2963_v36, %v6779_v45  ;;  %v4221_v25 = vmul.f32 %v2923_v63, %v6733_v5  ;;  %v3583_v20 = vmul.f32 %v2938_v34, %v6757_v28 }
 0x224   : > { %v8085_v18 = vmul.f32 %v5793_v46, %v10500_v50  ;;  %v2468_v31 = vld [vmem:[#allocation2 + $0xa0] sm:$0xff]  ;;  %10508 = vst [vmem:[#allocation36_spill] sm:$0xff] %v8108_v1  ;;  %10510 = vst [vmem:[#allocation129_spill] sm:$0xff] %v8118_v32  ;;  %v8132_v32 = vmul.f32 %v2939_v19, %v6805_v15  ;;  %v8137_v17 = vmul.f32 %v2963_v36, %v10288_v13 }
 0x225   : > { %v10505_v61 = vld [vmem:[#allocation130_spill] sm:$0xff]  ;;  %v8115_v58 = vmul.f32 %v2468_v31, %v6733_v5  ;;  %v8129_v31 = vmul.f32 %v2923_v63, %v6802_v2  ;;  %v2979_v11 = vadd.f32 %v2971_v37, %v2955_v54  ;;  %v8140_v4 = vmul.f32 %v2963_v36, %v6743_v14 }
 0x226   : > { %v8094_v21 = vadd.f32 %v10506_v49, %v10505_v61  ;;  %v10507_v12 = vld [vmem:[#allocation110_spill] sm:$0xff]  ;;  %v8112_v61 = vmul.f32 %v2923_v63, %v10342_v10  ;;  %v8121_v49 = vmul.f32 %v2963_v36, %v10345_v57  ;;  %10513 = vst [vmem:[#allocation219_spill] sm:$0xff] %v8132_v32  ;;  %10514 = vst [vmem:[#allocation220_spill] sm:$0xff] %v8137_v17 }
 0x227   : > { %v8100_v46 = vmul.f32 %v10367_v24, %v10507_v12  ;;  %v2930_v12 = vmul.f32 %v2922_v22, %v6791_v52  ;;  %10512 = vst [vmem:[#allocation218_spill] sm:$0xff] %v8129_v31  ;;  %10515 = vst [vmem:[#allocation221_spill] sm:$0xff] %v8140_v4  ;;  %v2994_v16 = vmul.f32 %v2922_v22, %v10342_v10 }
 0x228   : > { %10509 = vst [vmem:[#allocation130_spill] sm:$0xff] %v8112_v61  ;;  %10511 = vst [vmem:[#allocation110_spill] sm:$0xff] %v8121_v49  ;;  %v4237_v61 = vmul.f32 %v2939_v19, %v6736_v6  ;;  %v3567_v49 = vmul.f32 %v2922_v22, %v6754_v27  ;;  %v8144_v47 = vmul.f32 %v2923_v63, %v6763_v35 }
 0x229   : > { %v2954_v31 = vadd.f32 %v2946_v30, %v2930_v12  ;;  %v2970_v19 = vmul.f32 %v2962_v60, %v6706_v59  ;;  %v3630_v32 = vmul.f32 %v2922_v22, %v6802_v2  ;;  %v3616_v24 = vadd.f32 %v3608_v9, %v3592_v7  ;;  %v2989_v12 = vld [vmem:[#allocation2 + $0x260] sm:$0xff] }
 0x22a   : > { %10516 = vst [vmem:[#allocation222_spill] sm:$0xff] %v8144_v47  ;;  %v8148_v1 = vadd.f32 %v4237_v61, %v4221_v25  ;;  %v8151_v37 = vmul.f32 %v2938_v34, %v10343_v51  ;;  %v8154_v36 = vmul.f32 %v2962_v60, %v10345_v57  ;;  %v3591_v54 = vadd.f32 %v3583_v20, %v3567_v49  ;;  %v2924_v47 = vld [vmem:[#allocation2 + $0x250] sm:$0xff]  ;;  %v3013_v61 = vld [vmem:[#allocation2 + $0x261] sm:$0xff] }
 0x22b   : > { %v3607_v4 = vmul.f32 %v2962_v60, %v6779_v45  ;;  %v4220_v63 = vmul.f32 %v2922_v22, %v6733_v5  ;;  %v4236_v30 = vmul.f32 %v2938_v34, %v6736_v6  ;;  %v8160_v17 = vadd.f32 %v2994_v16, %v7916_v40  ;;  %v3037_v40 = vld [vmem:[#allocation2 + $0x262] sm:$0xff]  ;;  %v2964_v16 = vld [vmem:[#allocation2 + $0x252] sm:$0xff] }
 0x22c   : > { %10517 = vst [vmem:[#allocation223_spill] sm:$0xff] %v8148_v1  ;;  %10518 = vst [vmem:[#allocation224_spill] sm:$0xff] %v8151_v37  ;;  %v8163_v7 = vmul.f32 %v2938_v34, %v6805_v15  ;;  %v2932_v9 = vmul.f32 %v2924_v47, %v6791_v52  ;;  %v2948_v25 = vmul.f32 %v2940_v62, %v6696_v55 }
 0x22d   : > { %10519 = vst [vmem:[#allocation225_spill] sm:$0xff] %v8154_v36  ;;  %10520 = vst [vmem:[#allocation226_spill] sm:$0xff] %v8160_v17  ;;  %v8167_v20 = vadd.f32 %v2970_v19, %v2954_v31  ;;  %v8170_v49 = vadd.f32 %v3630_v32, %v7930_v33  ;;  %v8173_v1 = vmul.f32 %v2962_v60, %v10288_v13 }
 0x22e   : > { %10521 = vst [vmem:[#allocation227_spill] sm:$0xff] %v8163_v7  ;;  %v8176_v36 = vmul.f32 %v2962_v60, %v6743_v14  ;;  %v8179_v34 = vmul.f32 %v2922_v22, %v6763_v35  ;;  %v8182_v7 = vmul.f32 %v2989_v12, %v10342_v10  ;;  %v3569_v31 = vmul.f32 %v2924_v47, %v6754_v27 }
 0x22f   : > { %10522 = vst [vmem:[#allocation228_spill] sm:$0xff] %v8167_v20  ;;  %10523 = vst [vmem:[#allocation229_spill] sm:$0xff] %v8170_v49  ;;  %v3585_v19 = vmul.f32 %v2940_v62, %v6757_v28  ;;  %v8186_v33 = vadd.f32 %v3607_v4, %v3591_v54  ;;  %v8188_v32 = vadd.f32 %v4236_v30, %v4220_v63  ;;  %v3788_v30 = vld [vmem:[#allocation2 + $0x290] sm:$0xff] }
 0x230   : > { %10524 = vst [vmem:[#allocation230_spill] sm:$0xff] %v8173_v1  ;;  %10525 = vst [vmem:[#allocation231_spill] sm:$0xff] %v8176_v36  ;;  %v8191_v1 = vmul.f32 %v3013_v61, %v10343_v51  ;;  %v2996_v60 = vmul.f32 %v2924_v47, %v10342_v10  ;;  %v8195_v36 = vmul.f32 %v3037_v40, %v10345_v57 }
 0x231   : > { %10526 = vst [vmem:[#allocation232_spill] sm:$0xff] %v8179_v34  ;;  %10527 = vst [vmem:[#allocation233_spill] sm:$0xff] %v8182_v7  ;;  %v2956_v22 = vadd.f32 %v2948_v25, %v2932_v9  ;;  %v2972_v34 = vmul.f32 %v2964_v16, %v6706_v59  ;;  %v3632_v7 = vmul.f32 %v2924_v47, %v6802_v2 }
 0x232   : > { %10528 = vst [vmem:[#allocation234_spill] sm:$0xff] %v8186_v33  ;;  %10529 = vst [vmem:[#allocation235_spill] sm:$0xff] %v8188_v32  ;;  %v8200_v20 = vmul.f32 %v2989_v12, %v6802_v2  ;;  %v8203_v4 = vmul.f32 %v3013_v61, %v6805_v15  ;;  %v8206_v54 = vmul.f32 %v3037_v40, %v10288_v13  ;;  %v8218_v61 = vld [vmem:[#allocation2 + $0x291] sm:$0xff]  ;;  %v2508_v33 = vld [vmem:[#allocation2 + $0xa2] sm:$0xff] }
 0x233   : > { %10530 = vst [vmem:[#allocation236_spill] sm:$0xff] %v8191_v1  ;;  %10531 = vst [vmem:[#allocation237_spill] sm:$0xff] %v8195_v36  ;;  %v8209_v63 = vmul.f32 %v2989_v12, %v6763_v35  ;;  %v8212_v32 = vmul.f32 %v2940_v62, %v10343_v51  ;;  %v8215_v9 = vmul.f32 %v2964_v16, %v10345_v57  ;;  %v3805_v1 = vld [vmem:[#allocation2 + $0x2a1] sm:$0xff] }
 0x234   : > { %10532 = vst [vmem:[#allocation238_spill] sm:$0xff] %v8200_v20  ;;  %10533 = vst [vmem:[#allocation239_spill] sm:$0xff] %v8203_v4  ;;  %v3593_v25 = vadd.f32 %v3585_v19, %v3569_v31  ;;  %v3609_v36 = vmul.f32 %v2964_v16, %v6779_v45  ;;  %v3789_v20 = vld [vmem:[#allocation2 + $0x2a0] sm:$0xff]  ;;  %v8220_v4 = vadd.f32 %v2996_v60, %v2979_v11 }
 0x235   : > { %10534 = vst [vmem:[#allocation240_spill] sm:$0xff] %v8206_v54  ;;  %10535 = vst [vmem:[#allocation241_spill] sm:$0xff] %v8209_v63  ;;  %v8223_v40 = vmul.f32 %v2940_v62, %v6805_v15  ;;  %v4222_v12 = vmul.f32 %v2924_v47, %v6733_v5  ;;  %v4238_v63 = vmul.f32 %v2940_v62, %v6736_v6  ;;  %v3829_v19 = vld [vmem:[#allocation2 + $0x2a2] sm:$0xff] }
 0x236   : > { %10536 = vst [vmem:[#allocation242_spill] sm:$0xff] %v8212_v32  ;;  %10537 = vst [vmem:[#allocation243_spill] sm:$0xff] %v8215_v9  ;;  %v8227_v54 = vadd.f32 %v2972_v34, %v2956_v22  ;;  %v8229_v32 = vadd.f32 %v3632_v7, %v3616_v24  ;;  %v8232_v31 = vmul.f32 %v2964_v16, %v10288_v13  ;;  %v8242_v34 = vld [vmem:[#allocation2 + $0x292] sm:$0xff] }
 0x237   : > { %10538 = vst [vmem:[#allocation244_spill] sm:$0xff] %v8220_v4  ;;  %10539 = vst [vmem:[#allocation245_spill] sm:$0xff] %v8223_v40  ;;  %v3796_v9 = vmul.f32 %v3788_v30, %v6791_v52  ;;  %v8236_v11 = vmul.f32 %v2964_v16, %v6743_v14  ;;  %v3797_v60 = vmul.f32 %v3789_v20, %v6791_v52  ;;  %v2484_v4 = vld [vmem:[#allocation2 + $0xa1] sm:$0xff] }
 0x238   : > { %10540 = vst [vmem:[#allocation246_spill] sm:$0xff] %v8227_v54  ;;  %10541 = vst [vmem:[#allocation247_spill] sm:$0xff] %v8229_v32  ;;  %v3813_v40 = vmul.f32 %v3805_v1, %v6696_v55  ;;  %v3812_v62 = vmul.f32 %v8218_v61, %v6696_v55  ;;  %v8244_v24 = vadd.f32 %v3609_v36, %v3593_v25 }
 0x239   : > { %10542 = vst [vmem:[#allocation248_spill] sm:$0xff] %v8232_v31  ;;  %10543 = vst [vmem:[#allocation249_spill] sm:$0xff] %v8236_v11  ;;  %v8247_v7 = vmul.f32 %v2924_v47, %v6763_v35  ;;  %v4433_v22 = vmul.f32 %v3789_v20, %v6754_v27  ;;  %v4449_v31 = vmul.f32 %v3805_v1, %v6757_v28 }
 0x23a   : > { %10544 = vst [vmem:[#allocation250_spill] sm:$0xff] %v8244_v24  ;;  %v8251_v16 = vadd.f32 %v4238_v63, %v4222_v12  ;;  %v3837_v11 = vmul.f32 %v3829_v19, %v6706_v59  ;;  %v4432_v54 = vmul.f32 %v3788_v30, %v6754_v27  ;;  %v4448_v32 = vmul.f32 %v8218_v61, %v6757_v28 }
 0x23b   : > { %10545 = vst [vmem:[#allocation251_spill] sm:$0xff] %v8247_v7  ;;  %v3860_v36 = vmul.f32 %v3789_v20, %v10342_v10  ;;  %v8259_v35 = vmul.f32 %v3805_v1, %v10343_v51  ;;  %v3820_v47 = vadd.f32 %v3812_v62, %v3796_v9  ;;  %v3836_v25 = vmul.f32 %v8242_v34, %v6706_v59  ;;  %v10547_v7 = vld [vmem:[#allocation79_spill] sm:$0xff] }
 0x23c   : > { %10546 = vst [vmem:[#allocation252_spill] sm:$0xff] %v8251_v16  ;;  %v3821_v63 = vadd.f32 %v3813_v40, %v3797_v60  ;;  %v8264_v12 = vmul.f32 %v3829_v19, %v10345_v57  ;;  %v1684_v16 = vadd.f32 %v8085_v18, %v8038_v42  ;;  %v1967_v24 = vadd.f32 %v10547_v7, %v8051_v53 }
 0x23d   : > { %v4457_v49 = vadd.f32 %v4449_v31, %v4433_v22  ;;  %v4473_v37 = vmul.f32 %v3829_v19, %v6779_v45  ;;  %v2492_v17 = vmul.f32 %v2484_v4, %v6736_v6  ;;  %v2516_v9 = vmul.f32 %v2508_v33, %v6743_v14 }
 0x23e   : > { %v4496_v62 = vmul.f32 %v3789_v20, %v6802_v2  ;;  %v4456_v5 = vadd.f32 %v4448_v32, %v4432_v54  ;;  %v4472_v40 = vmul.f32 %v8242_v34, %v6779_v45  ;;  %v1712_v60 = vadd.f32 %v8090_v48, %v1684_v16  ;;  %v10549_v20 = vld [vmem:[#allocation131_spill] sm:$0xff]  ;;  %v10550_v54 = vld [vmem:[#allocation132_spill] sm:$0xff]  ;;  %v10551_v48 = vld [vmem:[#allocation133_spill] sm:$0xff] }
 0x23f   : > { %v8278_v42 = vmul.f32 %v3805_v1, %v6805_v15  ;;  %v8281_v53 = vmul.f32 %v3829_v19, %v10288_v13  ;;  %v3844_v18 = vadd.f32 %v3836_v25, %v3820_v47  ;;  %v2500_v31 = vadd.f32 %v2492_v17, %v8115_v58  ;;  %v2580_v16 = vld [vmem:[#allocation2 + $0xb2] sm:$0xff] }
 0x240   : > { %v8284_v4 = vadd.f32 %v3837_v11, %v3821_v63  ;;  %v3859_v33 = vmul.f32 %v3788_v30, %v10342_v10  ;;  %1720 = vst.msk [vmem:[#allocation3] sm:$0xff] %vm491_vm0, %v1712_v60  ;;  %v2153_v32 = vadd.f32 %v10549_v20, %v8094_v21  ;;  %v2788_v7 = vadd.f32 %v10551_v48, %v10550_v54  ;;  %v10555_v21 = vld [vmem:[#allocation71_spill] sm:$0xff]  ;;  %v10556_v25 = vld [vmem:[#allocation44_spill] sm:$0xff]  ;;  %v10558_v54 = vld [vmem:[#allocation30_spill] sm:$0xff] }
 0x241   : > { %v8292_v1 = vadd.f32 %v4473_v37, %v4457_v49  ;;  %v8296_v19 = vmul.f32 %v8218_v61, %v10343_v51  ;;  %v8300_v58 = vmul.f32 %v8242_v34, %v10345_v57  ;;  %v2524_v17 = vadd.f32 %v2516_v9, %v2500_v31  ;;  %v10557_v63 = vld [vmem:[#allocation84_spill] sm:$0xff] }
 0x242   : > { %10548 = vst [vmem:[#allocation79_spill] sm:$0xff] %v8284_v4  ;;  %v4480_v11 = vadd.f32 %v4472_v40, %v4456_v5  ;;  %v4495_v22 = vmul.f32 %v3788_v30, %v6802_v2  ;;  %v1220_v47 = vadd.f32 %v10555_v21, %v7977_v26  ;;  %v1215_v37 = vadd.f32 %v7977_v26, %v10556_v25  ;;  %v5794_v20 = vld [vmem:[#allocation2 + $0xb1] sm:$0xff]  ;;  %v10560_v40 = vld [vmem:[#allocation63_spill] sm:$0xff]  ;;  %v5795_v25 = vld [vmem:[#allocation2 + $0x160] sm:$0xff] }
 0x243   : > { %10552 = vst [vmem:[#allocation131_spill] sm:$0xff] %v8292_v1  ;;  %10553 = vst [vmem:[#allocation132_spill] sm:$0xff] %v8296_v19  ;;  %v3868_v49 = vadd.f32 %v3860_v36, %v3844_v18  ;;  %v2548_v60 = vadd.f32 %v10557_v63, %v2524_v17  ;;  %v2564_v48 = vmul.f32 %v5794_v20, %v10558_v54  ;;  %v10559_v19 = vld [vmem:[#allocation134_spill] sm:$0xff]  ;;  %v10561_v18 = vld [vmem:[#allocation88_spill] sm:$0xff] }
 0x244   : > { %10554 = vst [vmem:[#allocation133_spill] sm:$0xff] %v8300_v58  ;;  %v2812_v14 = vadd.f32 %v10559_v19, %v2788_v7  ;;  %v2247_v58 = vld [vmem:[#allocation3 + $0x8] sm:$0xff]  ;;  %v2182_v5 = vadd.f32 %v8100_v46, %v2153_v32  ;;  %v1246_v9 = vmax.f32 %v1220_v47, 0.0  ;;  %v1245_v30 = vmax.f32 %v1215_v37, 0.0  ;;  %v2604_v1 = vld [vmem:[#allocation2 + $0xc0] sm:$0xff] }
 0x245   : > { %v2255_v31 = vadd.f32 %v2247_v58, %v10560_v40  ;;  %v2572_v6 = vadd.f32 %v2564_v48, %v2548_v60  ;;  %v2588_v21 = vmul.f32 %v2580_v16, %v10451_v43  ;;  %v2828_v36 = vmul.f32 %v5795_v25, %v10290_v56  ;;  %v10562_v17 = vld [vmem:[#allocation98_spill] sm:$0xff]  ;;  %v10563_v46 = vld [vmem:[#allocation47_spill] sm:$0xff] }
 0x246   : > { %v2645_v63 = vadd.f32 %v10562_v17, %v10561_v18  ;;  %v1694_v20 = vld [vmem:[#allocation2 + $0x42] sm:$0xff]  ;;  %v4504_v4 = vadd.f32 %v4496_v62, %v4480_v11  ;;  %v1254_v7 = vmin.f32 %v1246_v9, 6.0  ;;  %v1253_v19 = vmin.f32 %v1245_v30, 6.0  ;;  %v10566_v62 = vld [vmem:[#allocation53_spill] sm:$0xff] }
 0x247   : > { %2263 = vst.msk [vmem:[#allocation3 + $0x8] sm:$0xff] %vm491_vm0, %v2255_v31  ;;  %v10564_v32 = vld [vmem:[#allocation54_spill] sm:$0xff]  ;;  %v2596_v37 = vadd.f32 %v2588_v21, %v2572_v6  ;;  %v2836_v60 = vadd.f32 %v2828_v36, %v2812_v14  ;;  %v10565_v16 = vld [vmem:[#allocation99_spill] sm:$0xff]  ;;  %v2612_v18 = vmul.f32 %v2604_v1, %v6775_v41  ;;  %v1706_v9 = vmul.f32 %v10503_v23, %v1694_v20  ;;  %v10571_v20 = vld [vmem:[#allocation73_spill] sm:$0xff] }
 0x248   : > { %v1629_v47 = vadd.f32 %v10564_v32, %v10563_v46  ;;  %v1975_v58 = vld [vmem:[#allocation3] sm:$0xff]  ;;  %v2669_v48 = vadd.f32 %v10565_v16, %v2645_v63  ;;  %1263 = vst.msk [vmem:[#allocation2 + $0x2c1] sm:$0xff] %vm491_vm0, %v1254_v7  ;;  %1262 = vst.msk [vmem:[#allocation2 + $0x2b1] sm:$0xff] %vm491_vm0, %v1253_v19  ;;  %v2210_v30 = vadd.f32 %v8104_v39, %v2182_v5  ;;  %v10567_v21 = vld [vmem:[#allocation147_spill] sm:$0xff] }
 0x249   : > { %v5796_v40 = vld [vmem:[#allocation2 + $0x41] sm:$0xff]  ;;  %v1983_v2 = vadd.f32 %v1975_v58, %v1967_v24  ;;  %v2852_v14 = vmul.f32 %v8071_v8, %v10481_v38  ;;  %v3892_v31 = vadd.f32 %v8259_v35, %v3868_v49  ;;  %v10568_v24 = vld [vmem:[#allocation145_spill] sm:$0xff]  ;;  %v2620_v1 = vadd.f32 %v2612_v18, %v2596_v37  ;;  %v10580_v18 = vld [vmem:[#allocation36_spill] sm:$0xff] }
 0x24a   : > { %v1678_v25 = vmul.f32 %v5796_v40, %v10500_v50  ;;  %v1658_v11 = vadd.f32 %v10566_v62, %v1629_v47  ;;  %v2628_v6 = vld [vmem:[#allocation2 + $0xc1] sm:$0xff]  ;;  %v2127_v36 = vadd.f32 %v10568_v24, %v10567_v21  ;;  %v10570_v19 = vld [vmem:[#allocation85_spill] sm:$0xff]  ;;  %v8338_v5 = vadd.f32 %v3859_v33, %v8082_v3 }
 0x24b   : > { %1991 = vst.msk [vmem:[#allocation3] sm:$0xff] %vm491_vm0, %v1983_v2  ;;  %v2652_v17 = vld [vmem:[#allocation2 + $0xc2] sm:$0xff]  ;;  %v8342_v8 = vmul.f32 %v8218_v61, %v6805_v15  ;;  %v2860_v35 = vadd.f32 %v2852_v14, %v2836_v60  ;;  %v4528_v49 = vadd.f32 %v8278_v42, %v4504_v4  ;;  %v8347_v2 = vmul.f32 %v8242_v34, %v10288_v13  ;;  %v10576_v16 = vld [vmem:[#allocation97_spill] sm:$0xff]  ;;  %v8358_v34 = vpop.f32.mrb[8].mxu1 }
 0x24c   : > { %v1686_v63 = vadd.f32 %v1678_v25, %v1658_v11  ;;  %v10569_v7 = vld [vmem:[#allocation86_spill] sm:$0xff]  ;;  %10573 = vst [vmem:[#allocation71_spill] sm:$0xff] %v8338_v5  ;;  %v2636_v47 = vmul.f32 %v2628_v6, %v10500_v50  ;;  %v8352_v3 = vadd.f32 %v4495_v22, %v8096_v44  ;;  %v2660_v33 = vmul.f32 %v2652_v17, %v10503_v23  ;;  %v10581_v44 = vld [vmem:[#allocation87_spill] sm:$0xff]  ;;  %v2582_v6 = vld [vmem:[#allocation2 + $0xd2] sm:$0xff] }
 0x24d   : > { %v1913_v46 = vadd.f32 %v10570_v19, %v10569_v7  ;;  %v10572_v32 = vld [vmem:[#allocation82_spill] sm:$0xff]  ;;  %10574 = vst [vmem:[#allocation44_spill] sm:$0xff] %v8342_v8  ;;  %10575 = vst [vmem:[#allocation84_spill] sm:$0xff] %v8347_v2  ;;  %v2876_v61 = vmul.f32 %v8073_v29, %v10487_v0  ;;  %v2238_v62 = vadd.f32 %v10580_v18, %v2210_v30  ;;  %v10582_v30 = vld [vmem:[#allocation43_spill] sm:$0xff] }
 0x24e   : > { %v2526_v39 = vadd.f32 %v10572_v32, %v10571_v20  ;;  %v1714_v58 = vadd.f32 %v1706_v9, %v1686_v63  ;;  %v2192_v37 = vld [vmem:[#allocation2 + $0x181] sm:$0xff]  ;;  %10577 = vst [vmem:[#allocation30_spill] sm:$0xff] %v8352_v3  ;;  %10579 = vst [vmem:[#allocation134_spill] sm:$0xff] %v8358_v34  ;;  %v2644_v11 = vadd.f32 %v2636_v47, %v2620_v1  ;;  %v10583_v17 = vld [vmem:[#allocation45_spill] sm:$0xff] }
 0x24f   : > { %v2271_v60 = vld [vmem:[#allocation3 + $0x8] sm:$0xff]  ;;  %v10578_v42 = vld [vmem:[#allocation146_spill] sm:$0xff]  ;;  %v8362_v9 = vadd.f32 %v8264_v12, %v3892_v31  ;;  %v1941_v22 = vadd.f32 %v10581_v44, %v1913_v46  ;;  %v8367_v29 = vadd.f32 %v2876_v61, %v2860_v35  ;;  %v8370_v24 = vadd.f32 %v8281_v53, %v4528_v49  ;;  %v5798_v46 = vld [vmem:[#allocation2 + $0xd1] sm:$0xff] }
 0x250   : > { %v2550_v40 = vadd.f32 %v10576_v16, %v2526_v39  ;;  %v2155_v4 = vadd.f32 %v10578_v42, %v2127_v36  ;;  %v2220_v25 = vld [vmem:[#allocation2 + $0x182] sm:$0xff]  ;;  %2677 = vst.msk [vmem:[#allocation3 + $0x8] sm:$0xff] %vm491_vm0, %v2669_v48  ;;  %1722 = vst.msk [vmem:[#allocation3 + $0x10] sm:$0xff] %vm491_vm0, %v1714_v58  ;;  %v2204_v12 = vmul.f32 %v10583_v17, %v2192_v37  ;;  %v8388_v61 = vld [vmem:[%s10111_s6] ss:$0 sm:$0xff] }
 0x251   : > { %v3791_v14 = vld [vmem:[#allocation2 + $0x2c0] sm:$0xff]  ;;  %v2566_v20 = vmul.f32 %v5798_v46, %v10558_v54  ;;  %v2590_v16 = vmul.f32 %v2582_v6, %v10451_v43  ;;  %10585 = vst [vmem:[#allocation63_spill] sm:$0xff] %v8388_v61  ;;  %v2668_v18 = vadd.f32 %v2660_v33, %v2644_v11  ;;  %v8394_v8 = vld [vmem:[#allocation2 + $0x2b0] sm:$0xff]  ;;  %v10587_v11 = vld [vmem:[#allocation151_spill] sm:$0xff] }
 0x252   : > { %v3807_v21 = vld [vmem:[#allocation2 + $0x2c1] sm:$0xff]  ;;  %v3799_v48 = vmul.f32 %v3791_v14, %v6791_v52  ;;  %v4435_v49 = vmul.f32 %v3791_v14, %v6754_v27  ;;  %v8396_v3 = vld [vmem:[#allocation2 + $0x2b1] sm:$0xff] }
 0x253   : > { %v5797_v36 = vld [vmem:[#allocation2 + $0x180] sm:$0xff]  ;;  %v3815_v63 = vmul.f32 %v3807_v21, %v6696_v55  ;;  %v4451_v47 = vmul.f32 %v3807_v21, %v6757_v28 }
 0x254   : > { %v2176_v1 = vmul.f32 %v5797_v36, %v10582_v30  ;;  %v2606_v31 = vld [vmem:[#allocation2 + $0xe0] sm:$0xff] }
 0x255   : > { %v10584_v7 = vld [vmem:[#allocation46_spill] sm:$0xff]  ;;  %v8392_v2 = vmul.f32 %v2606_v31, %v6775_v41  ;;  %v3823_v33 = vadd.f32 %v3815_v63, %v3799_v48  ;;  %v3814_v48 = vmul.f32 %v8396_v3, %v6696_v55  ;;  %v8419_v63 = vld [vmem:[#allocation2 + $0x2b2] sm:$0xff] }
 0x256   : > { %v8377_v19 = vmul.f32 %v10584_v7, %v2220_v25  ;;  %v2630_v32 = vld [vmem:[#allocation2 + $0xe1] sm:$0xff]  ;;  %v2184_v58 = vadd.f32 %v2176_v1, %v2155_v4  ;;  %v2285_v4 = vadd.f32 %v8388_v61, %v2271_v60  ;;  %v2574_v1 = vadd.f32 %v2566_v20, %v2550_v40 }
 0x257   : > { %v8380_v39 = vld [vmem:[#allocation2 + $0xe2] sm:$0xff]  ;;  %v8400_v6 = vmul.f32 %v2630_v32, %v10500_v50  ;;  %v8413_v20 = vmul.f32 %v2192_v37, %v10481_v38  ;;  %v3798_v32 = vmul.f32 %v8394_v8, %v6791_v52  ;;  %v8430_v37 = vmul.f32 %v3807_v21, %v10343_v51  ;;  %v1977_v41 = vld [vmem:[#allocation3 + $0x10] sm:$0xff] }
 0x258   : > { %v2246_v53 = vld [vmem:[#allocation3] sm:$0xff]  ;;  %v8404_v5 = vmul.f32 %v8380_v39, %v10503_v23  ;;  %v2212_v60 = vadd.f32 %v2204_v12, %v2184_v58  ;;  %v10593_v58 = vld [vmem:[#allocation37_spill] sm:$0xff] }
 0x259   : > { %v3831_v35 = vld [vmem:[#allocation2 + $0x2c2] sm:$0xff]  ;;  %v2254_v42 = vadd.f32 %v2246_v53, %v2238_v62  ;;  %v2830_v53 = vmul.f32 %v5797_v36, %v10290_v56  ;;  %10591 = vst [vmem:[#allocation98_spill] sm:$0xff] %v8430_v37 }
 0x25a   : > { %v10586_v44 = vld [vmem:[#allocation90_spill] sm:$0xff]  ;;  %v3839_v62 = vmul.f32 %v3831_v35, %v6706_v59  ;;  %v4475_v40 = vmul.f32 %v3831_v35, %v6779_v45  ;;  %v10589_v36 = vld [vmem:[#allocation175_spill] sm:$0xff]  ;;  %v8433_v12 = vmul.f32 %v3831_v35, %v10345_v57 }
 0x25b   : > { %v1969_v46 = vadd.f32 %v10586_v44, %v1941_v22  ;;  %2262 = vst.msk [vmem:[#allocation3] sm:$0xff] %vm491_vm0, %v2254_v42  ;;  %v10588_v22 = vld [vmem:[#allocation149_spill] sm:$0xff]  ;;  %v4459_v44 = vadd.f32 %v4451_v47, %v4435_v49  ;;  %v8422_v42 = vmul.f32 %v2220_v25, %v10487_v0  ;;  %v1230_v49 = vadd.f32 %v10589_v36, %v7977_v26 }
 0x25c   : > { %v2790_v31 = vadd.f32 %v10588_v22, %v10587_v11  ;;  %v8427_v47 = vmul.f32 %v3791_v14, %v10342_v10  ;;  %10592 = vst [vmem:[#allocation47_spill] sm:$0xff] %v8433_v12  ;;  %v8436_v11 = vmul.f32 %v3791_v14, %v10593_v58  ;;  %v2893_v22 = vld [vmem:[#allocation3 + $0x8] sm:$0xff]  ;;  %v8438_v34 = vadd.f32 %v3839_v62, %v3823_v33 }
 0x25d   : > { %v8441_v25 = vmul.f32 %v3807_v21, %v6805_v15  ;;  %v8444_v36 = vmul.f32 %v3831_v35, %v10288_v13  ;;  %v8448_v37 = vadd.f32 %v4475_v40, %v4459_v44  ;;  %v8452_v12 = vmul.f32 %v8419_v63, %v6706_v59  ;;  %v10601_v44 = vld [vmem:[#allocation154_spill] sm:$0xff] }
 0x25e   : > { %10590 = vst [vmem:[#allocation88_spill] sm:$0xff] %v8427_v47  ;;  %10594 = vst [vmem:[#allocation54_spill] sm:$0xff] %v8436_v11  ;;  %v3933_v47 = vmul.f32 %v8394_v8, %v10582_v30  ;;  %v3861_v14 = vmul.f32 %v8394_v8, %v10342_v10  ;;  %v8458_v21 = vmul.f32 %v8396_v3, %v10343_v51 }
 0x25f   : > { %10595 = vst [vmem:[#allocation99_spill] sm:$0xff] %v8438_v34  ;;  %10596 = vst [vmem:[#allocation53_spill] sm:$0xff] %v8441_v25  ;;  %v8460_v33 = vadd.f32 %v3814_v48, %v3798_v32  ;;  %v8464_v35 = vmul.f32 %v8419_v63, %v10345_v57  ;;  %v3957_v62 = vmul.f32 %v8396_v3, %v10583_v17  ;;  %v2293_v48 = vmax.f32 %v2285_v4, 0.0  ;;  %v10603_v34 = vld [vmem:[#allocation152_spill] sm:$0xff] }
 0x260   : > { %10597 = vst [vmem:[#allocation147_spill] sm:$0xff] %v8444_v36  ;;  %10598 = vst [vmem:[#allocation145_spill] sm:$0xff] %v8448_v37  ;;  %v2901_v40 = vadd.f32 %v2893_v22, %v10601_v44  ;;  %v8469_v36 = vpop.f32.mrb[9].mxu1  ;;  %v8473_v11 = vmul.f32 %v8419_v63, %v10584_v7  ;;  %v4568_v32 = vmul.f32 %v8394_v8, %v10290_v56 }
 0x261   : > { %10599 = vst [vmem:[#allocation86_spill] sm:$0xff] %v8458_v21  ;;  %10600 = vst [vmem:[#allocation85_spill] sm:$0xff] %v8464_v35  ;;  %v1985_v21 = vadd.f32 %v1977_v41, %v1969_v46  ;;  %v3941_v35 = vadd.f32 %v3933_v47, %v8362_v9  ;;  %v4434_v22 = vmul.f32 %v8394_v8, %v6754_v27  ;;  %v1248_v41 = vmax.f32 %v1230_v49, 0.0  ;;  %v10604_v46 = vld [vmem:[#allocation180_spill] sm:$0xff] }
 0x262   : > { %10602 = vst [vmem:[#allocation73_spill] sm:$0xff] %v8469_v36  ;;  %v2270_v25 = vld [vmem:[#allocation3] sm:$0xff]  ;;  %2909 = vst.msk [vmem:[#allocation3 + $0x8] sm:$0xff] %vm491_vm0, %v2901_v40  ;;  %v2598_v44 = vadd.f32 %v2590_v16, %v2574_v1  ;;  %v4450_v36 = vmul.f32 %v8396_v3, %v6757_v28  ;;  %v2814_v4 = vadd.f32 %v10603_v34, %v2790_v31  ;;  %v10605_v40 = vld [vmem:[#allocation57_spill] sm:$0xff]  ;;  %v2301_v51 = vmin.f32 %v2293_v48, 6.0 }
 0x263   : > { %v2284_v37 = vadd.f32 %v8388_v61, %v2270_v25  ;;  %2676 = vst.msk [vmem:[#allocation3] sm:$0xff] %vm491_vm0, %v2668_v18  ;;  %1993 = vst.msk [vmem:[#allocation3 + $0x10] sm:$0xff] %vm491_vm0, %v1985_v21  ;;  %v1225_v25 = vadd.f32 %v7977_v26, %v10604_v46  ;;  %v4474_v9 = vmul.f32 %v8419_v63, %v6779_v45  ;;  %v10606_v16 = vld [vmem:[#allocation51_spill] sm:$0xff]  ;;  %v1256_v21 = vmin.f32 %v1248_v41, 6.0  ;;  %v1695_v34 = vld [vmem:[#allocation2 + $0x52] sm:$0xff] }
 0x264   : > { %v4592_v47 = vmul.f32 %v8396_v3, %v10481_v38  ;;  %v1602_v1 = vadd.f32 %v10606_v16, %v10605_v40  ;;  %v4576_v57 = vadd.f32 %v4568_v32, %v8370_v24  ;;  %v2622_v49 = vadd.f32 %v8392_v2, %v2598_v44  ;;  %v10607_v26 = vld [vmem:[#allocation52_spill] sm:$0xff] }
 0x265   : > { %v2292_v18 = vmax.f32 %v2284_v37, 0.0  ;;  %v1247_v61 = vmax.f32 %v1225_v25, 0.0  ;;  %v5799_v46 = vld [vmem:[#allocation2 + $0x51] sm:$0xff]  ;;  %v2240_v10 = vadd.f32 %v8377_v19, %v2212_v60  ;;  %v2838_v59 = vadd.f32 %v2830_v53, %v2814_v4  ;;  %1265 = vst.msk [vmem:[#allocation2 + $0x2e1] sm:$0xff] %vm491_vm0, %v1256_v21 }
 0x266   : > { %v1630_v37 = vadd.f32 %v10607_v26, %v1602_v1  ;;  %v1679_v45 = vmul.f32 %v5799_v46, %v10500_v50  ;;  %v10608_v16 = vld [vmem:[#allocation148_spill] sm:$0xff]  ;;  %v3965_v48 = vadd.f32 %v3957_v62, %v3941_v35  ;;  %v4497_v2 = vmul.f32 %v8394_v8, %v10593_v58  ;;  %v10617_v26 = vld [vmem:[#allocation111_spill] sm:$0xff] }
 0x267   : > { %v2300_v31 = vmin.f32 %v2292_v18, 6.0  ;;  %v1255_v40 = vmin.f32 %v1247_v61, 6.0  ;;  %v10609_v24 = vld [vmem:[#allocation136_spill] sm:$0xff]  ;;  %v1707_v25 = vmul.f32 %v10503_v23, %v1695_v34  ;;  %v4458_v1 = vadd.f32 %v4450_v36, %v4434_v22  ;;  %v10611_v61 = vld [vmem:[#allocation137_spill] sm:$0xff]  ;;  %v10613_v34 = vld [vmem:[#allocation95_spill] sm:$0xff] }
 0x268   : > { %v2100_v32 = vadd.f32 %v10609_v24, %v10608_v16  ;;  %v10610_v44 = vld [vmem:[#allocation60_spill] sm:$0xff]  ;;  %v4600_v19 = vadd.f32 %v4592_v47, %v4576_v57  ;;  %v4616_v53 = vmul.f32 %v8419_v63, %v10487_v0  ;;  %v2646_v8 = vadd.f32 %v8400_v6, %v2622_v49  ;;  %v10614_v36 = vld [vmem:[#allocation62_spill] sm:$0xff]  ;;  %v10615_v57 = vld [vmem:[#allocation79_spill] sm:$0xff] }
 0x269   : > { %5582 = vmatprep.mubr.msk.f32.mxu1 %vm491_vm0, %v2300_v31  ;;  %v1659_v41 = vadd.f32 %v10610_v44, %v1630_v37  ;;  %1264 = vst.msk [vmem:[#allocation2 + $0x2d1] sm:$0xff] %vm491_vm0, %v1255_v40  ;;  %v10612_v21 = vld [vmem:[#allocation96_spill] sm:$0xff]  ;;  %v8519_v22 = vadd.f32 %v3861_v14, %v10615_v57  ;;  %v10618_v37 = vld [vmem:[#allocation106_spill] sm:$0xff]  ;;  %v8532_v6 = vmul.f32 %v8396_v3, %v6805_v15  ;;  %v10625_v16 = vld [vmem:[#allocation131_spill] sm:$0xff]  ;;  %v8548_v44 = vpop.f32.mrb[10].mxu1 }
 0x26a   : > { %v2892_v18 = vld [vmem:[#allocation3] sm:$0xff]  ;;  %5583 = vmatmul.mubr.msk.f32.vlgmr.msra.gmra.mrb[16].mxu1 %vm491_vm0, %v2301_v51  ;;  %v2128_v60 = vadd.f32 %v10611_v61, %v2100_v32  ;;  %v2248_v62 = vld [vmem:[#allocation3 + $0x10] sm:$0xff]  ;;  %v2527_v31 = vadd.f32 %v10613_v34, %v10612_v21  ;;  %v2862_v51 = vadd.f32 %v8413_v20, %v2838_v59  ;;  %v1942_v46 = vadd.f32 %v10618_v37, %v10617_v26  ;;  %v10631_v61 = vld [vmem:[#allocation93_spill] sm:$0xff] }
 0x26b   : > { %v2900_v35 = vadd.f32 %v2892_v18, %v8367_v29  ;;  %v1687_v4 = vadd.f32 %v1679_v45, %v1659_v41  ;;  %5681 = vmatpush3.bf16.msra.mxu1 %v10614_v36  ;;  %10616 = vst [vmem:[#allocation82_spill] sm:$0xff] %v8519_v22  ;;  %v2256_v47 = vadd.f32 %v2248_v62, %v2240_v10  ;;  %v2193_v40 = vld [vmem:[#allocation2 + $0x191] sm:$0xff]  ;;  %10621 = vst [vmem:[#allocation146_spill] sm:$0xff] %v8532_v6  ;;  %v5802_v6 = vld [vmem:[#allocation2 + $0x61] sm:$0xff] }
 0x26c   : > { %v10619_v29 = vld [vmem:[#allocation48_spill] sm:$0xff]  ;;  %v8528_v45 = vadd.f32 %v8452_v12, %v8460_v33  ;;  %v8536_v10 = vmul.f32 %v8419_v63, %v10288_v13  ;;  %v8539_v14 = vadd.f32 %v8473_v11, %v3965_v48  ;;  %v8541_v49 = vadd.f32 %v4474_v9, %v4458_v1  ;;  %v10627_v12 = vld [vmem:[#allocation138_spill] sm:$0xff]  ;;  %10628 = vst [vmem:[#allocation46_spill] sm:$0xff] %v8548_v44  ;;  %v10646_v22 = vld [vmem:[#allocation33_spill] sm:$0xff] }
 0x26d   : > { %5683 = vmatprep.subr.bf16.mxu1 %v10619_v29  ;;  %2908 = vst.msk [vmem:[#allocation3] sm:$0xff] %vm491_vm0, %v2900_v35  ;;  %v1715_v59 = vadd.f32 %v1707_v25, %v1687_v4  ;;  %v2221_v20 = vld [vmem:[#allocation2 + $0x192] sm:$0xff]  ;;  %v8544_v24 = vadd.f32 %v4497_v2, %v10625_v16  ;;  %2264 = vst.msk [vmem:[#allocation3 + $0x10] sm:$0xff] %vm491_vm0, %v2256_v47  ;;  %v2156_v33 = vadd.f32 %v10627_v12, %v2128_v60  ;;  %v3793_v25 = vld [vmem:[#allocation2 + $0x2e0] sm:$0xff] }
 0x26e   : > { %10620 = vst [vmem:[#allocation97_spill] sm:$0xff] %v8528_v45  ;;  %10622 = vst [vmem:[#allocation36_spill] sm:$0xff] %v8536_v10  ;;  %v2607_v3 = vld [vmem:[#allocation2 + $0xf0] sm:$0xff]  ;;  %v8550_v63 = vadd.f32 %v4616_v53, %v4600_v19  ;;  %v2670_v41 = vadd.f32 %v8404_v5, %v2646_v8  ;;  %v3809_v11 = vld [vmem:[#allocation2 + $0x2e1] sm:$0xff]  ;;  %v2205_v2 = vmul.f32 %v10583_v17, %v2193_v40 }
 0x26f   : > { %10623 = vst [vmem:[#allocation87_spill] sm:$0xff] %v8539_v14  ;;  %10624 = vst [vmem:[#allocation43_spill] sm:$0xff] %v8541_v49  ;;  %v2631_v32 = vld [vmem:[#allocation2 + $0xf1] sm:$0xff]  ;;  %5685 = vmatpush3.bf16.msra.mxu1 %v10619_v29  ;;  %v8560_v1 = vadd.f32 %v8422_v42, %v2862_v51  ;;  %v10630_v19 = vld [vmem:[#allocation107_spill] sm:$0xff]  ;;  %v8564_v5 = vmul.f32 %v10584_v7, %v2221_v20  ;;  %v2551_v60 = vadd.f32 %v10631_v61, %v2527_v31 }
 0x270   : > { %10626 = vst [vmem:[#allocation45_spill] sm:$0xff] %v8544_v24  ;;  %10629 = vst [vmem:[#allocation90_spill] sm:$0xff] %v8550_v63  ;;  %v5800_v9 = vld [vmem:[#allocation2 + $0x190] sm:$0xff]  ;;  %v1970_v53 = vadd.f32 %v10630_v19, %v1942_v46  ;;  %v10632_v35 = vld [vmem:[#allocation81_spill] sm:$0xff]  ;;  %v3801_v62 = vmul.f32 %v3793_v25, %v6791_v52  ;;  %v3817_v8 = vmul.f32 %v3809_v11, %v6696_v55 }
 0x271   : > { %1723 = vst.msk [vmem:[#allocation3 + $0x18] sm:$0xff] %vm491_vm0, %v1715_v59  ;;  %v2177_v48 = vmul.f32 %v5800_v9, %v10582_v30  ;;  %v8556_v18 = vld [vmem:[#allocation2 + $0xf2] sm:$0xff]  ;;  %5687 = vmatprep.subr.bf16.mxu1 %v10632_v35  ;;  %v5801_v4 = vld [vmem:[#allocation2 + $0xe1] sm:$0xff]  ;;  %v2591_v42 = vmul.f32 %v8380_v39, %v10451_v43  ;;  %v8577_v26 = vmul.f32 %v2631_v32, %v10500_v50 }
 0x272   : > { %v2567_v21 = vmul.f32 %v5801_v4, %v10558_v54  ;;  %v3833_v34 = vld [vmem:[#allocation2 + $0x2e2] sm:$0xff]  ;;  %v10633_v47 = vld [vmem:[#allocation32_spill] sm:$0xff]  ;;  %v8581_v31 = vmul.f32 %v8556_v18, %v10503_v23  ;;  %v4437_v37 = vmul.f32 %v3793_v25, %v6754_v27  ;;  %v4453_v46 = vmul.f32 %v3809_v11, %v6757_v28 }
 0x273   : > { %v2185_v57 = vadd.f32 %v2177_v48, %v2156_v33  ;;  %v8574_v51 = vmul.f32 %v2607_v3, %v10633_v47  ;;  %v10634_v59 = vld [vmem:[#allocation74_spill] sm:$0xff]  ;;  %v10635_v16 = vld [vmem:[#allocation139_spill] sm:$0xff]  ;;  %v8588_v39 = vmul.f32 %v5800_v9, %v10290_v56  ;;  %5689 = vmatpush3.bf16.msra.mxu1 %v10632_v35  ;;  %v3792_v33 = vld [vmem:[#allocation2 + $0x2d0] sm:$0xff]  ;;  %v8592_v48 = vmul.f32 %v2193_v40, %v10481_v38 }
 0x274   : > { %v2767_v12 = vadd.f32 %v10635_v16, %v10634_v59  ;;  %v3808_v3 = vld [vmem:[#allocation2 + $0x2d1] sm:$0xff]  ;;  %v2575_v32 = vadd.f32 %v2567_v21, %v2551_v60  ;;  %v8595_v19 = vmul.f32 %v2221_v20, %v10487_v0  ;;  %v10636_v61 = vld [vmem:[#allocation67_spill] sm:$0xff]  ;;  %5703 = vmatprep.subr.bf16.mxu1 %v10614_v36  ;;  %v3825_v16 = vadd.f32 %v3817_v8, %v3801_v62 }
 0x275   : > { %v10637_v4 = vld [vmem:[#allocation59_spill] sm:$0xff]  ;;  %v2272_v59 = vld [vmem:[#allocation3 + $0x10] sm:$0xff]  ;;  %v1680_v60 = vmul.f32 %v5802_v6, %v10500_v50  ;;  %v10642_v20 = vld [vmem:[#allocation25_spill] sm:$0xff]  ;;  %v4477_v62 = vmul.f32 %v3833_v34, %v10646_v22  ;;  %v4461_v35 = vadd.f32 %v4453_v46, %v4437_v37  ;;  %v3800_v6 = vmul.f32 %v3792_v33, %v6791_v52 }
 0x276   : > { %v1631_v49 = vadd.f32 %v10637_v4, %v10636_v61  ;;  %v10638_v9 = vld [vmem:[#allocation23_spill] sm:$0xff]  ;;  %v10639_v63 = vld [vmem:[#allocation24_spill] sm:$0xff]  ;;  %2678 = vst.msk [vmem:[#allocation3 + $0x10] sm:$0xff] %vm491_vm0, %v2670_v41  ;;  %v8608_v24 = vmul.f32 %v3809_v11, %v10642_v20  ;;  %v10644_v61 = vld [vmem:[#allocation26_spill] sm:$0xff]  ;;  %v8620_v29 = vmul.f32 %v3809_v11, %v6805_v15  ;;  %v2213_v11 = vadd.f32 %v2205_v2, %v2185_v57 }
 0x277   : > { %v3841_v10 = vmul.f32 %v3833_v34, %v10638_v9  ;;  %v8602_v45 = vmul.f32 %v3793_v25, %v10639_v63  ;;  %v10641_v40 = vld [vmem:[#allocation63_spill] sm:$0xff]  ;;  %v8611_v4 = vmul.f32 %v3833_v34, %v10644_v61  ;;  %v3832_v8 = vld [vmem:[#allocation2 + $0x2d2] sm:$0xff]  ;;  %v10650_v46 = vld [vmem:[#allocation58_spill] sm:$0xff] }
 0x278   : > { %v2286_v21 = vadd.f32 %v10641_v40, %v2272_v59  ;;  %10643 = vst [vmem:[#allocation149_spill] sm:$0xff] %v8608_v24  ;;  %v1978_v14 = vld [vmem:[#allocation3 + $0x18] sm:$0xff]  ;;  %v3816_v59 = vmul.f32 %v3808_v3, %v6696_v55  ;;  %v1696_v44 = vld [vmem:[#allocation2 + $0x62] sm:$0xff]  ;;  %10648 = vst [vmem:[#allocation154_spill] sm:$0xff] %v8620_v29  ;;  %v8623_v24 = vmul.f32 %v3833_v34, %v10288_v13  ;;  %v8635_v34 = vpop.f32.mrb[11].mxu1 }
 0x279   : > { %10640 = vst [vmem:[#allocation151_spill] sm:$0xff] %v8602_v45  ;;  %10645 = vst [vmem:[#allocation175_spill] sm:$0xff] %v8611_v4  ;;  %v8615_v45 = vmul.f32 %v3793_v25, %v10593_v58  ;;  %v1986_v4 = vadd.f32 %v1978_v14, %v1970_v53  ;;  %v8625_v36 = vadd.f32 %v3841_v10, %v3825_v16  ;;  %v10654_v16 = vld [vmem:[#allocation114_spill] sm:$0xff]  ;;  %v10657_v2 = vld [vmem:[#allocation140_spill] sm:$0xff] }
 0x27a   : > { %v2294_v41 = vmax.f32 %v2286_v21, 0.0  ;;  %10649 = vst [vmem:[#allocation152_spill] sm:$0xff] %v8623_v24  ;;  %v3840_v37 = vmul.f32 %v3832_v8, %v10638_v9  ;;  %v3863_v25 = vmul.f32 %v3792_v33, %v10639_v63  ;;  %v8631_v55 = vmul.f32 %v3808_v3, %v10642_v20  ;;  %10652 = vst [vmem:[#allocation57_spill] sm:$0xff] %v8635_v34  ;;  %v10655_v24 = vld [vmem:[#allocation100_spill] sm:$0xff] }
 0x27b   : > { %10647 = vst [vmem:[#allocation37_spill] sm:$0xff] %v8615_v45  ;;  %v1660_v45 = vadd.f32 %v10650_v46, %v1631_v49  ;;  %1994 = vst.msk [vmem:[#allocation3 + $0x18] sm:$0xff] %vm491_vm0, %v1986_v4  ;;  %v1708_v21 = vmul.f32 %v10503_v23, %v1696_v44  ;;  %v8637_v14 = vadd.f32 %v4477_v62, %v4461_v35  ;;  %v10658_v46 = vld [vmem:[#allocation99_spill] sm:$0xff]  ;;  %v10661_v62 = vld [vmem:[#allocation165_spill] sm:$0xff] }
 0x27c   : > { %v2302_v52 = vmin.f32 %v2294_v41, 6.0  ;;  %10651 = vst [vmem:[#allocation180_spill] sm:$0xff] %v8631_v55  ;;  %v3824_v10 = vadd.f32 %v3816_v59, %v3800_v6  ;;  %v1915_v29 = vadd.f32 %v10655_v24, %v10654_v16  ;;  %v8643_v49 = vmul.f32 %v3832_v8, %v10644_v61 }
 0x27d   : > { %10653 = vst [vmem:[#allocation51_spill] sm:$0xff] %v8637_v14  ;;  %v1688_v53 = vadd.f32 %v1680_v60, %v1660_v45  ;;  %v4436_v41 = vmul.f32 %v3792_v33, %v6754_v27  ;;  %v2599_v4 = vadd.f32 %v2591_v42, %v2575_v32  ;;  %v2791_v57 = vadd.f32 %v10657_v2, %v2767_v12  ;;  %v2894_v44 = vld [vmem:[#allocation3 + $0x10] sm:$0xff]  ;;  %v10660_v60 = vld [vmem:[#allocation167_spill] sm:$0xff]  ;;  %v10662_v42 = vld [vmem:[#allocation94_spill] sm:$0xff] }
 0x27e   : > { %5585 = vmatprep.mubr.msk.f32.mxu1 %vm491_vm0, %v2302_v52  ;;  %10656 = vst [vmem:[#allocation52_spill] sm:$0xff] %v8643_v49  ;;  %v8648_v55 = vadd.f32 %v3863_v25, %v10658_v46  ;;  %v4452_v35 = vmul.f32 %v3808_v3, %v6757_v28  ;;  %v2129_v24 = vadd.f32 %v10661_v62, %v10660_v60  ;;  %v10663_v32 = vld [vmem:[#allocation92_spill] sm:$0xff]  ;;  %v2194_v2 = vld [vmem:[#allocation2 + $0x1a1] sm:$0xff]  ;;  %v10668_v46 = vld [vmem:[#allocation109_spill] sm:$0xff] }
 0x27f   : > { %v1716_v45 = vadd.f32 %v1708_v21, %v1688_v53  ;;  %v2902_v52 = vadd.f32 %v2894_v44, %v8560_v1  ;;  %v8655_v6 = vmul.f32 %v3832_v8, %v10646_v22  ;;  %v2241_v59 = vadd.f32 %v8564_v5, %v2213_v11  ;;  %v10666_v53 = vld [vmem:[#allocation101_spill] sm:$0xff]  ;;  %v10670_v62 = vld [vmem:[#allocation166_spill] sm:$0xff]  ;;  %v10754_v14 = vld [vmem:[#allocation183_spill] sm:$0xff] }
 0x280   : > { %10659 = vst [vmem:[#allocation148_spill] sm:$0xff] %v8648_v55  ;;  %v2528_v12 = vadd.f32 %v10663_v32, %v10662_v42  ;;  %v8660_v16 = vadd.f32 %v3840_v37, %v3824_v10  ;;  %v8663_v25 = vmul.f32 %v3792_v33, %v10593_v58  ;;  %v8666_v21 = vmul.f32 %v3808_v3, %v6805_v15  ;;  %v10667_v11 = vld [vmem:[#allocation141_spill] sm:$0xff]  ;;  %v10671_v42 = vld [vmem:[#allocation171_spill] sm:$0xff]  ;;  %v10672_v32 = vld [vmem:[#allocation168_spill] sm:$0xff] }
 0x281   : > { %1724 = vst.msk [vmem:[#allocation3 + $0x20] sm:$0xff] %vm491_vm0, %v1716_v45  ;;  %v1943_v1 = vadd.f32 %v10666_v53, %v1915_v29  ;;  %2910 = vst.msk [vmem:[#allocation3 + $0x10] sm:$0xff] %vm491_vm0, %v2902_v52  ;;  %v2623_v5 = vadd.f32 %v8574_v51, %v2599_v4  ;;  %v2815_v44 = vadd.f32 %v10667_v11, %v2791_v57  ;;  %v5803_v10 = vld [vmem:[#allocation2 + $0xf1] sm:$0xff]  ;;  %v5804_v51 = vld [vmem:[#allocation2 + $0x1a0] sm:$0xff] }
 0x282   : > { %10664 = vst [vmem:[#allocation136_spill] sm:$0xff] %v8660_v16  ;;  %10665 = vst [vmem:[#allocation60_spill] sm:$0xff] %v8666_v21  ;;  %v2552_v37 = vadd.f32 %v10668_v46, %v2528_v12  ;;  %v2568_v33 = vmul.f32 %v5803_v10, %v10558_v54  ;;  %v8675_v60 = vadd.f32 %v4452_v35, %v4436_v41  ;;  %v2249_v45 = vld [vmem:[#allocation3 + $0x18] sm:$0xff]  ;;  %v10673_v11 = vld [vmem:[#allocation102_spill] sm:$0xff] }
 0x283   : > { %v8678_v3 = vmul.f32 %v3832_v8, %v10288_v13  ;;  %v2157_v29 = vadd.f32 %v10670_v62, %v2129_v24  ;;  %v2792_v52 = vadd.f32 %v10672_v32, %v10671_v42  ;;  %v2257_v53 = vadd.f32 %v2249_v45, %v2241_v59  ;;  %v5805_v8 = vld [vmem:[%s10109_s4] ss:$0 sm:$0xff]  ;;  %v10674_v35 = vld [vmem:[#allocation89_spill] sm:$0xff]  ;;  %v10675_v10 = vld [vmem:[#allocation91_spill] sm:$0xff] }
 0x284   : > { %v2178_v4 = vmul.f32 %v5804_v51, %v10582_v30  ;;  %v2206_v57 = vmul.f32 %v10583_v17, %v2194_v2  ;;  %v2576_v12 = vadd.f32 %v2568_v33, %v2552_v37  ;;  %v1971_v46 = vadd.f32 %v10673_v11, %v1943_v1  ;;  %v2608_v37 = vld [vmem:[#allocation2 + $0x100] sm:$0xff]  ;;  %v10678_v32 = vld [vmem:[#allocation55_spill] sm:$0xff]  ;;  %v8699_v11 = vpop.f32.mrb[12].mxu1  ;;  %v1697_v49 = vld [vmem:[#allocation2 + $0x72] sm:$0xff] }
 0x285   : > { %10669 = vst [vmem:[#allocation137_spill] sm:$0xff] %v8678_v3  ;;  %v2592_v41 = vmul.f32 %v8556_v18, %v10451_v43  ;;  %v1240_v24 = vadd.f32 %v5805_v8, %v10674_v35  ;;  %v1235_v62 = vadd.f32 %v5805_v8, %v10675_v10  ;;  %2265 = vst.msk [vmem:[#allocation3 + $0x18] sm:$0xff] %vm491_vm0, %v2257_v53  ;;  %v10676_v33 = vld [vmem:[#allocation170_spill] sm:$0xff] }
 0x286   : > { %v2647_v59 = vadd.f32 %v8577_v26, %v2623_v5  ;;  %v2839_v45 = vadd.f32 %v8588_v39, %v2815_v44  ;;  %v2816_v1 = vadd.f32 %v10676_v33, %v2792_v52  ;;  %v10677_v42 = vld [vmem:[#allocation66_spill] sm:$0xff]  ;;  %10679 = vst [vmem:[#allocation96_spill] sm:$0xff] %v8699_v11  ;;  %v2186_v3 = vadd.f32 %v2178_v4, %v2157_v29  ;;  %v10680_v26 = vld [vmem:[#allocation56_spill] sm:$0xff]  ;;  %v10681_v52 = vld [vmem:[#allocation169_spill] sm:$0xff] }
 0x287   : > { %v1604_v18 = vadd.f32 %v10678_v32, %v10677_v42  ;;  %v2600_v16 = vadd.f32 %v2592_v41, %v2576_v12  ;;  %v1250_v21 = vmax.f32 %v1240_v24, 0.0  ;;  %v1249_v35 = vmax.f32 %v1235_v62, 0.0  ;;  %v2222_v10 = vld [vmem:[#allocation2 + $0x1a2] sm:$0xff]  ;;  %v5806_v39 = vld [vmem:[#allocation2 + $0x71] sm:$0xff] }
 0x288   : > { %v1979_v8 = vld [vmem:[#allocation3 + $0x20] sm:$0xff]  ;;  %v2832_v53 = vmul.f32 %v5804_v51, %v10290_v56  ;;  %v1681_v44 = vmul.f32 %v5806_v39, %v10500_v50  ;;  %v10682_v33 = vld [vmem:[#allocation83_spill] sm:$0xff]  ;;  %v2616_v32 = vmul.f32 %v2608_v37, %v10633_v47  ;;  %v10683_v24 = vld [vmem:[#allocation72_spill] sm:$0xff]  ;;  %v1709_v11 = vmul.f32 %v10503_v23, %v1697_v49 }
 0x289   : > { %v1632_v5 = vadd.f32 %v10680_v26, %v1604_v18  ;;  %v2102_v55 = vadd.f32 %v10682_v33, %v10681_v52  ;;  %v1987_v42 = vadd.f32 %v1979_v8, %v1971_v46  ;;  %v1258_v29 = vmin.f32 %v1250_v21, 6.0  ;;  %v2632_v12 = vld [vmem:[#allocation2 + $0x101] sm:$0xff]  ;;  %v10684_v51 = vld [vmem:[#allocation157_spill] sm:$0xff]  ;;  %v10686_v49 = vld [vmem:[#allocation112_spill] sm:$0xff] }
 0x28a   : > { %v1257_v4 = vmin.f32 %v1249_v35, 6.0  ;;  %v2840_v41 = vadd.f32 %v2832_v53, %v2816_v1  ;;  %v2671_v18 = vadd.f32 %v8581_v31, %v2647_v59  ;;  %v2214_v26 = vadd.f32 %v2206_v57, %v2186_v3  ;;  %v10685_v1 = vld [vmem:[#allocation158_spill] sm:$0xff]  ;;  %v10687_v8 = vld [vmem:[#allocation108_spill] sm:$0xff]  ;;  %v10689_v59 = vld [vmem:[#allocation119_spill] sm:$0xff] }
 0x28b   : > { %v1661_v62 = vadd.f32 %v10683_v24, %v1632_v5  ;;  %v2130_v34 = vadd.f32 %v10684_v51, %v2102_v55  ;;  %1995 = vst.msk [vmem:[#allocation3 + $0x20] sm:$0xff] %vm491_vm0, %v1987_v42  ;;  %v2234_v39 = vmul.f32 %v10584_v7, %v2222_v10  ;;  %v2624_v46 = vadd.f32 %v2616_v32, %v2600_v16  ;;  %v10688_v57 = vld [vmem:[#allocation122_spill] sm:$0xff]  ;;  %v5807_v5 = vld [vmem:[#allocation2 + $0x1b0] sm:$0xff]  ;;  %v10690_v32 = vld [vmem:[#allocation105_spill] sm:$0xff] }
 0x28c   : > { %1267 = vst.msk [vmem:[#allocation2 + $0x301] sm:$0xff] %vm491_vm0, %v1258_v29  ;;  %1266 = vst.msk [vmem:[#allocation2 + $0x2f1] sm:$0xff] %vm491_vm0, %v1257_v4  ;;  %v2856_v21 = vmul.f32 %v2194_v2, %v10481_v38  ;;  %v2529_v55 = vadd.f32 %v10687_v8, %v10686_v49  ;;  %v2273_v53 = vld [vmem:[#allocation3 + $0x18] sm:$0xff]  ;;  %v2863_v31 = vadd.f32 %v8592_v48, %v2839_v45  ;;  %v2656_v2 = vld [vmem:[#allocation2 + $0x102] sm:$0xff] }
 0x28d   : > { %v1689_v37 = vadd.f32 %v1681_v44, %v1661_v62  ;;  %v2158_v35 = vadd.f32 %v10685_v1, %v2130_v34  ;;  %v2640_v3 = vmul.f32 %v2632_v12, %v10500_v50  ;;  %v1944_v16 = vadd.f32 %v10689_v59, %v10688_v57  ;;  %2679 = vst.msk [vmem:[#allocation3 + $0x18] sm:$0xff] %vm491_vm0, %v2671_v18  ;;  %v2195_v42 = vld [vmem:[#allocation2 + $0x1b1] sm:$0xff] }
 0x28e   : > { %v2179_v52 = vmul.f32 %v5807_v5, %v10582_v30  ;;  %v2287_v33 = vadd.f32 %v10641_v40, %v2273_v53  ;;  %v2864_v34 = vadd.f32 %v2856_v21, %v2840_v41  ;;  %v2553_v29 = vadd.f32 %v10690_v32, %v2529_v55  ;;  %v10691_v4 = vld [vmem:[#allocation145_spill] sm:$0xff]  ;;  %v5808_v41 = vld [vmem:[#allocation2 + $0x101] sm:$0xff]  ;;  %v10696_v55 = vld [vmem:[#allocation120_spill] sm:$0xff] }
 0x28f   : > { %v1717_v44 = vadd.f32 %v1709_v11, %v1689_v37  ;;  %v8729_v48 = vadd.f32 %v8663_v25, %v10691_v4  ;;  %v2242_v45 = vadd.f32 %v2234_v39, %v2214_v26  ;;  %v2648_v12 = vadd.f32 %v2640_v3, %v2624_v46  ;;  %v2223_v11 = vld [vmem:[#allocation2 + $0x1b2] sm:$0xff] }
 0x290   : > { %v2187_v24 = vadd.f32 %v2179_v52, %v2158_v35  ;;  %v8733_v62 = vadd.f32 %v8655_v6, %v8675_v60  ;;  %v2295_v51 = vmax.f32 %v2287_v33, 0.0  ;;  %v2880_v18 = vmul.f32 %v2222_v10, %v10487_v0  ;;  %v2609_v39 = vld [vmem:[#allocation2 + $0x110] sm:$0xff]  ;;  %v10695_v60 = vld [vmem:[#allocation159_spill] sm:$0xff]  ;;  %v8749_v52 = vpop.f32.mrb[13].mxu1 }
 0x291   : > { %10692 = vst [vmem:[#allocation95_spill] sm:$0xff] %v8729_v48  ;;  %1725 = vst.msk [vmem:[#allocation3 + $0x28] sm:$0xff] %vm491_vm0, %v1717_v44  ;;  %v2569_v21 = vmul.f32 %v5808_v41, %v10558_v54  ;;  %v2887_v37 = vadd.f32 %v8595_v19, %v2863_v31  ;;  %v2664_v25 = vmul.f32 %v2656_v2, %v10503_v23  ;;  %v2633_v46 = vld [vmem:[#allocation2 + $0x111] sm:$0xff] }
 0x292   : > { %10693 = vst [vmem:[#allocation79_spill] sm:$0xff] %v8733_v62  ;;  %v2207_v26 = vmul.f32 %v10583_v17, %v2195_v42  ;;  %v8741_v1 = vld [vmem:[#allocation2 + $0x112] sm:$0xff]  ;;  %v2303_v10 = vmin.f32 %v2295_v51, 6.0  ;;  %v2250_v49 = vld [vmem:[#allocation3 + $0x20] sm:$0xff]  ;;  %v8745_v8 = vadd.f32 %v2880_v18, %v2864_v34  ;;  %v1972_v53 = vadd.f32 %v10696_v55, %v1944_v16  ;;  %10697 = vst [vmem:[#allocation111_spill] sm:$0xff] %v8749_v52 }
 0x293   : > { %v10694_v6 = vld [vmem:[#allocation176_spill] sm:$0xff]  ;;  %v2577_v3 = vadd.f32 %v2569_v21, %v2553_v29  ;;  %v2258_v57 = vadd.f32 %v2250_v49, %v2242_v45  ;;  %v2672_v19 = vadd.f32 %v2664_v25, %v2648_v12  ;;  %v2235_v59 = vmul.f32 %v10584_v7, %v2223_v11  ;;  %v3858_v33 = vld [vmem:[#allocation2 + $0x300] sm:$0xff]  ;;  %v10703_v55 = vld [vmem:[#allocation125_spill] sm:$0xff] }
 0x294   : > { %v2769_v35 = vadd.f32 %v10695_v60, %v10694_v6  ;;  %v2215_v31 = vadd.f32 %v2207_v26, %v2187_v24  ;;  %5586 = vmatmul.mubr.msk.f32.gmra.mrb[18].mxu1 %vm491_vm0, %v2303_v10  ;;  %v2593_v44 = vmul.f32 %v2656_v2, %v10451_v43  ;;  %v2617_v32 = vmul.f32 %v2609_v39, %v10633_v47  ;;  %v1698_v29 = vld [vmem:[#allocation2 + $0x82] sm:$0xff]  ;;  %v2895_v4 = vld [vmem:[#allocation3 + $0x18] sm:$0xff]  ;;  %v10698_v24 = vld [vmem:[#allocation160_spill] sm:$0xff]  ;;  %v8769_v10 = vpop.f32.mrb[14].mxu1 }
 0x295   : > { %v2641_v34 = vmul.f32 %v2633_v46, %v10500_v50  ;;  %v8757_v16 = vmul.f32 %v8741_v1, %v10503_v23  ;;  %2266 = vst.msk [vmem:[#allocation3 + $0x20] sm:$0xff] %vm491_vm0, %v2258_v57  ;;  %v3882_v45 = vld [vmem:[#allocation2 + $0x301] sm:$0xff]  ;;  %v2833_v18 = vmul.f32 %v5807_v5, %v10290_v56  ;;  %v2857_v2 = vmul.f32 %v2195_v42, %v10481_v38  ;;  %v8779_v57 = vpop.f32.mrb[15].mxu1  ;;  %v10715_v62 = vld [vmem:[#allocation188_spill] sm:$0xff] }
 0x296   : > { %v3906_v12 = vld [vmem:[#allocation2 + $0x302] sm:$0xff]  ;;  %v2793_v51 = vadd.f32 %v10698_v24, %v2769_v35  ;;  %v8764_v41 = vmul.f32 %v2223_v11, %v10487_v0  ;;  %v2903_v21 = vadd.f32 %v2895_v4, %v2887_v37  ;;  %v2601_v25 = vadd.f32 %v2593_v44, %v2577_v3  ;;  %10701 = vst [vmem:[#allocation106_spill] sm:$0xff] %v8769_v10  ;;  %v8774_v35 = vld [vmem:[#allocation2 + $0x2f1] sm:$0xff] }
 0x297   : > { %v10699_v26 = vld [vmem:[#allocation75_spill] sm:$0xff]  ;;  %v10700_v39 = vld [vmem:[#allocation70_spill] sm:$0xff]  ;;  %v8772_v49 = vmul.f32 %v3858_v33, %v10639_v63  ;;  %v2243_v42 = vadd.f32 %v2235_v59, %v2215_v31  ;;  %v1710_v11 = vmul.f32 %v10503_v23, %v1698_v29  ;;  %10705 = vst [vmem:[#allocation138_spill] sm:$0xff] %v8779_v57  ;;  %v8783_v44 = vmul.f32 %v3882_v45, %v10642_v20  ;;  %v8791_v31 = vld [vmem:[#allocation2 + $0x2f2] sm:$0xff] }
 0x298   : > { %v1633_v46 = vadd.f32 %v10700_v39, %v10699_v26  ;;  %v5809_v6 = vld [vmem:[#allocation2 + $0x81] sm:$0xff]  ;;  %2911 = vst.msk [vmem:[#allocation3 + $0x18] sm:$0xff] %vm491_vm0, %v2903_v21  ;;  %v8786_v4 = vmul.f32 %v3906_v12, %v10644_v61  ;;  %v8789_v24 = vmul.f32 %v3858_v33, %v10593_v58  ;;  %v3794_v26 = vld [vmem:[#allocation2 + $0x2f0] sm:$0xff]  ;;  %v8794_v29 = vmul.f32 %v3882_v45, %v6805_v15 }
 0x299   : > { %v1682_v60 = vmul.f32 %v5809_v6, %v10500_v50  ;;  %10702 = vst [vmem:[#allocation131_spill] sm:$0xff] %v8772_v49  ;;  %v1980_v5 = vld [vmem:[#allocation3 + $0x28] sm:$0xff]  ;;  %10706 = vst [vmem:[#allocation107_spill] sm:$0xff] %v8783_v44  ;;  %v8797_v39 = vmul.f32 %v3906_v12, %v10288_v13  ;;  %v10713_v44 = vld [vmem:[#allocation22_spill] sm:$0xff]  ;;  %v2625_v33 = vadd.f32 %v2617_v32, %v2601_v25 }
 0x29a   : > { %v10704_v37 = vld [vmem:[#allocation115_spill] sm:$0xff]  ;;  %10707 = vst [vmem:[#allocation93_spill] sm:$0xff] %v8786_v4  ;;  %10708 = vst [vmem:[#allocation32_spill] sm:$0xff] %v8789_v24  ;;  %v1988_v59 = vadd.f32 %v1980_v5, %v1972_v53  ;;  %v3818_v4 = vmul.f32 %v8774_v35, %v10713_v44  ;;  %v10714_v24 = vld [vmem:[#allocation65_spill] sm:$0xff]  ;;  %v8809_v45 = vmul.f32 %v8791_v31, %v10638_v9 }
 0x29b   : > { %v1917_v3 = vadd.f32 %v10704_v37, %v10703_v55  ;;  %10709 = vst [vmem:[#allocation74_spill] sm:$0xff] %v8794_v29  ;;  %10710 = vst [vmem:[#allocation139_spill] sm:$0xff] %v8797_v39  ;;  %v10711_v21 = vld [vmem:[#allocation35_spill] sm:$0xff]  ;;  %v10712_v55 = vld [vmem:[#allocation161_spill] sm:$0xff]  ;;  %v1662_v49 = vadd.f32 %v10714_v24, %v1633_v46  ;;  %v3865_v12 = vmul.f32 %v3794_v26, %v10639_v63 }
 0x29c   : > { %v3802_v6 = vmul.f32 %v3794_v26, %v10711_v21  ;;  %v2817_v37 = vadd.f32 %v10712_v55, %v2793_v51  ;;  %1996 = vst.msk [vmem:[#allocation3 + $0x28] sm:$0xff] %vm491_vm0, %v1988_v59  ;;  %v10716_v53 = vld [vmem:[#allocation185_spill] sm:$0xff]  ;;  %10717 = vst [vmem:[#allocation67_spill] sm:$0xff] %v8809_v45  ;;  %v8814_v51 = vmul.f32 %v8774_v35, %v10642_v20  ;;  %v2274_v39 = vld [vmem:[#allocation3 + $0x20] sm:$0xff] }
 0x29d   : > { %v2131_v5 = vadd.f32 %v10716_v53, %v10715_v62  ;;  %v8818_v32 = vmul.f32 %v8791_v31, %v10644_v61  ;;  %v8821_v25 = vmul.f32 %v3794_v26, %v6754_v27  ;;  %v8825_v62 = vmul.f32 %v8774_v35, %v6757_v28  ;;  %2680 = vst.msk [vmem:[#allocation3 + $0x20] sm:$0xff] %vm491_vm0, %v2672_v19  ;;  %v10720_v59 = vld [vmem:[#allocation116_spill] sm:$0xff]  ;;  %v8831_v29 = vld [vmem:[#allocation2 + $0x1c1] sm:$0xff] }
 0x29e   : > { %10718 = vst [vmem:[#allocation59_spill] sm:$0xff] %v8814_v51  ;;  %v2841_v55 = vadd.f32 %v2833_v18, %v2817_v37  ;;  %v1690_v46 = vadd.f32 %v1682_v60, %v1662_v49  ;;  %v2288_v24 = vadd.f32 %v10641_v40, %v2274_v39  ;;  %v1945_v53 = vadd.f32 %v10720_v59, %v1917_v3  ;;  %v10721_v18 = vld [vmem:[#allocation186_spill] sm:$0xff]  ;;  %v10722_v51 = vld [vmem:[#allocation103_spill] sm:$0xff]  ;;  %v10725_v19 = vld [vmem:[#allocation124_spill] sm:$0xff] }
 0x29f   : > { %10719 = vst [vmem:[#allocation63_spill] sm:$0xff] %v8818_v32  ;;  %v2159_v37 = vadd.f32 %v10721_v18, %v2131_v5  ;;  %v10723_v32 = vld [vmem:[#allocation104_spill] sm:$0xff]  ;;  %v8835_v27 = vadd.f32 %v3818_v4, %v3802_v6  ;;  %v2649_v57 = vadd.f32 %v2641_v34, %v2625_v33  ;;  %v5810_v28 = vld [vmem:[#allocation2 + $0x1c0] sm:$0xff]  ;;  %v8843_v18 = vadd.f32 %v3865_v12, %v8625_v36 }
 0x2a0   : > { %v2530_v48 = vadd.f32 %v10723_v32, %v10722_v51  ;;  %v1718_v10 = vadd.f32 %v1710_v11, %v1690_v46  ;;  %v2180_v60 = vmul.f32 %v5810_v28, %v10582_v30  ;;  %v2296_v49 = vmax.f32 %v2288_v24, 0.0  ;;  %v8838_v52 = vld [vmem:[#allocation2 + $0x1c2] sm:$0xff]  ;;  %v5811_v59 = vld [vmem:[#allocation2 + $0x111] sm:$0xff] }
 0x2a1   : > { %10724 = vst [vmem:[#allocation33_spill] sm:$0xff] %v8835_v27  ;;  %v2865_v39 = vadd.f32 %v2857_v2, %v2841_v55  ;;  %v2570_v5 = vmul.f32 %v5811_v59, %v10558_v54  ;;  %10726 = vst [vmem:[#allocation58_spill] sm:$0xff] %v8843_v18  ;;  %v8847_v4 = vmul.f32 %v8791_v31, %v10646_v22  ;;  %v2610_v11 = vld [vmem:[#allocation2 + $0x120] sm:$0xff]  ;;  %v10729_v51 = vld [vmem:[#allocation117_spill] sm:$0xff] }
 0x2a2   : > { %v2554_v3 = vadd.f32 %v10725_v19, %v2530_v48  ;;  %v8850_v34 = vmul.f32 %v3794_v26, %v10593_v58  ;;  %1726 = vst.msk [vmem:[#allocation3 + $0x30] sm:$0xff] %vm491_vm0, %v1718_v10  ;;  %v2208_v2 = vmul.f32 %v10583_v17, %v8831_v29  ;;  %v1643_v48 = vld [vmem:[#allocation2 + $0x90] sm:$0xff]  ;;  %v2304_v6 = vmin.f32 %v2296_v49, 6.0  ;;  %v10730_v49 = vld [vmem:[#allocation38_spill] sm:$0xff]  ;;  %v10733_v59 = vld [vmem:[#allocation189_spill] sm:$0xff] }
 0x2a3   : > { %10727 = vst [vmem:[#allocation114_spill] sm:$0xff] %v8847_v4  ;;  %v2251_v33 = vld [vmem:[#allocation3 + $0x28] sm:$0xff]  ;;  %v1973_v55 = vadd.f32 %v10729_v51, %v1945_v53  ;;  %v2188_v36 = vadd.f32 %v2180_v60, %v2159_v37  ;;  %v8856_v32 = vld [vmem:[#allocation2 + $0x130] sm:$0xff]  ;;  %v2673_v46 = vadd.f32 %v8757_v16, %v2649_v57  ;;  %v2236_v58 = vmul.f32 %v10584_v7, %v8838_v52  ;;  %v10740_v63 = vld [vmem:[#allocation178_spill] sm:$0xff] }
 0x2a4   : > { %10728 = vst [vmem:[#allocation100_spill] sm:$0xff] %v8850_v34  ;;  %v2578_v12 = vadd.f32 %v2570_v5, %v2554_v3  ;;  %v2259_v22 = vadd.f32 %v2251_v33, %v2243_v42  ;;  %v2594_v10 = vmul.f32 %v8741_v1, %v10451_v43  ;;  %v1671_v26 = vld [vmem:[#allocation2 + $0x91] sm:$0xff]  ;;  %5588 = vmatprep.mubr.msk.f32.mxu1 %vm491_vm0, %v2304_v6  ;;  %v2634_v37 = vld [vmem:[#allocation2 + $0x121] sm:$0xff] }
 0x2a5   : > { %v8865_v24 = vadd.f32 %v8764_v41, %v2865_v39  ;;  %v2618_v53 = vmul.f32 %v2610_v11, %v10633_v47  ;;  %v2658_v60 = vld [vmem:[#allocation2 + $0x122] sm:$0xff]  ;;  %v10731_v42 = vld [vmem:[#allocation61_spill] sm:$0xff]  ;;  %v1655_v16 = vmul.f32 %v10633_v47, %v1643_v48  ;;  %v10732_v1 = vld [vmem:[#allocation192_spill] sm:$0xff]  ;;  %v1910_v11 = vmul.f32 %v10290_v56, %v8856_v32 }
 0x2a6   : > { %v1606_v19 = vadd.f32 %v10731_v42, %v10730_v49  ;;  %v2896_v57 = vld [vmem:[#allocation3 + $0x20] sm:$0xff]  ;;  %2267 = vst.msk [vmem:[#allocation3 + $0x28] sm:$0xff] %vm491_vm0, %v2259_v22  ;;  %v2602_v3 = vadd.f32 %v2594_v10, %v2578_v12  ;;  %v2794_v5 = vadd.f32 %v10733_v59, %v10732_v1  ;;  %v1699_v6 = vld [vmem:[#allocation2 + $0x92] sm:$0xff]  ;;  %v2216_v42 = vadd.f32 %v2208_v2, %v2188_v36  ;;  %v10737_v59 = vld [vmem:[#allocation187_spill] sm:$0xff] }
 0x2a7   : > { %v10734_v33 = vld [vmem:[#allocation126_spill] sm:$0xff]  ;;  %v10735_v41 = vld [vmem:[#allocation113_spill] sm:$0xff]  ;;  %v2904_v49 = vadd.f32 %v2896_v57, %v8745_v8  ;;  %v10736_v48 = vld [vmem:[#allocation64_spill] sm:$0xff]  ;;  %v1683_v22 = vmul.f32 %v10500_v50, %v1671_v26  ;;  %v2642_v12 = vmul.f32 %v2634_v37, %v10500_v50  ;;  %v8885_v10 = vmul.f32 %v2658_v60, %v10503_v23 }
 0x2a8   : > { %v1889_v39 = vadd.f32 %v10735_v41, %v10734_v33  ;;  %v8878_v51 = vld [vmem:[#allocation2 + $0x131] sm:$0xff]  ;;  %v1634_v18 = vadd.f32 %v10736_v48, %v1606_v19  ;;  %v2834_v1 = vmul.f32 %v5810_v28, %v10290_v56  ;;  %v10738_v33 = vld [vmem:[#allocation174_spill] sm:$0xff]  ;;  %v1711_v2 = vmul.f32 %v10503_v23, %v1699_v6 }
 0x2a9   : > { %v2104_v41 = vadd.f32 %v10738_v33, %v10737_v59  ;;  %v2169_v61 = vld [vmem:[#allocation2 + $0x1d0] sm:$0xff]  ;;  %2912 = vst.msk [vmem:[#allocation3 + $0x20] sm:$0xff] %vm491_vm0, %v2904_v49  ;;  %v1938_v26 = vmul.f32 %v10481_v38, %v8878_v51  ;;  %v2626_v57 = vadd.f32 %v2618_v53, %v2602_v3  ;;  %v10739_v48 = vld [vmem:[#allocation190_spill] sm:$0xff]  ;;  %v2858_v59 = vmul.f32 %v8831_v29, %v10481_v38  ;;  %v10742_v6 = vld [vmem:[#allocation121_spill] sm:$0xff] }
 0x2aa   : > { %v1981_v20 = vld [vmem:[#allocation3 + $0x30] sm:$0xff]  ;;  %v1663_v8 = vadd.f32 %v1655_v16, %v1634_v18  ;;  %v1918_v36 = vadd.f32 %v1910_v11, %v1889_v39  ;;  %v2818_v28 = vadd.f32 %v10739_v48, %v2794_v5  ;;  %v2181_v18 = vmul.f32 %v10582_v30, %v2169_v61  ;;  %v10741_v16 = vld [vmem:[#allocation123_spill] sm:$0xff] }
 0x2ab   : > { %v8894_v37 = vld [vmem:[#allocation2 + $0x132] sm:$0xff]  ;;  %v1989_v19 = vadd.f32 %v1981_v20, %v1973_v55  ;;  %v2132_v9 = vadd.f32 %v10740_v63, %v2104_v41  ;;  %v2531_v39 = vadd.f32 %v10742_v6, %v10741_v16  ;;  %v2244_v11 = vadd.f32 %v2236_v58, %v2216_v42  ;;  %v10743_v63 = vld [vmem:[#allocation179_spill] sm:$0xff]  ;;  %v10744_v41 = vld [vmem:[#allocation118_spill] sm:$0xff] }
 0x2ac   : > { %v1691_v49 = vadd.f32 %v1683_v22, %v1663_v8  ;;  %v8906_v20 = vmul.f32 %v8838_v52, %v10487_v0  ;;  %v1966_v55 = vmul.f32 %v10487_v0, %v8894_v37  ;;  %v2197_v3 = vld [vmem:[#allocation2 + $0x1d1] sm:$0xff]  ;;  %v1946_v22 = vadd.f32 %v1938_v26, %v1918_v36  ;;  %v5812_v48 = vld [vmem:[#allocation2 + $0x121] sm:$0xff] }
 0x2ad   : > { %1997 = vst.msk [vmem:[#allocation3 + $0x30] sm:$0xff] %vm491_vm0, %v1989_v19  ;;  %v2160_v53 = vadd.f32 %v10743_v63, %v2132_v9  ;;  %v2275_v29 = vld [vmem:[#allocation3 + $0x28] sm:$0xff]  ;;  %v2225_v33 = vld [vmem:[#allocation2 + $0x1d2] sm:$0xff]  ;;  %v2555_v8 = vadd.f32 %v10744_v41, %v2531_v39  ;;  %v2571_v19 = vmul.f32 %v5812_v48, %v10558_v54  ;;  %v2650_v52 = vadd.f32 %v2642_v12, %v2626_v57  ;;  %v10747_v63 = vld [vmem:[#allocation182_spill] sm:$0xff] }
 0x2ae   : > { %v1719_v5 = vadd.f32 %v1711_v2, %v1691_v49  ;;  %v2289_v58 = vadd.f32 %v10641_v40, %v2275_v29  ;;  %2681 = vst.msk [vmem:[#allocation3 + $0x28] sm:$0xff] %vm491_vm0, %v2673_v46  ;;  %v2842_v42 = vadd.f32 %v2834_v1, %v2818_v28  ;;  %v10745_v16 = vld [vmem:[#allocation191_spill] sm:$0xff]  ;;  %v10746_v6 = vld [vmem:[#allocation181_spill] sm:$0xff]  ;;  %v2209_v2 = vmul.f32 %v10583_v17, %v2197_v3  ;;  %v10748_v12 = vld [vmem:[#allocation198_spill] sm:$0xff] }
 0x2af   : > { %v2771_v4 = vadd.f32 %v10746_v6, %v10745_v16  ;;  %v2189_v9 = vadd.f32 %v2181_v18, %v2160_v53  ;;  %v2579_v36 = vadd.f32 %v2571_v19, %v2555_v8  ;;  %v2595_v26 = vmul.f32 %v2658_v60, %v10451_v43  ;;  %v8920_v49 = vld [vmem:[#allocation2 + $0x201] sm:$0xff] }
 0x2b0   : > { %1727 = vst.msk [vmem:[#allocation3 + $0x38] sm:$0xff] %vm491_vm0, %v1719_v5  ;;  %v2297_v39 = vmax.f32 %v2289_v58, 0.0  ;;  %v2237_v40 = vmul.f32 %v10584_v7, %v2225_v33  ;;  %v10749_v1 = vld [vmem:[#allocation31_spill] sm:$0xff]  ;;  %v3338_v28 = vld [vmem:[#allocation2 + $0x140] sm:$0xff]  ;;  %v1974_v5 = vadd.f32 %v1966_v55, %v1946_v22  ;;  %v2619_v53 = vmul.f32 %v8856_v32, %v10633_v47  ;;  %v10753_v32 = vld [vmem:[#allocation29_spill] sm:$0xff] }
 0x2b1   : > { %v2795_v46 = vadd.f32 %v10747_v63, %v2771_v4  ;;  %v3022_v57 = vadd.f32 %v10749_v1, %v10748_v12  ;;  %v3354_v29 = vld [vmem:[#allocation2 + $0x141] sm:$0xff]  ;;  %v2603_v18 = vadd.f32 %v2595_v26, %v2579_v36  ;;  %v2835_v58 = vmul.f32 %v2169_v61, %v10290_v56  ;;  %v10752_v36 = vld [vmem:[#allocation28_spill] sm:$0xff] }
 0x2b2   : > { %v3378_v41 = vld [vmem:[#allocation2 + $0x142] sm:$0xff]  ;;  %v2305_v19 = vmin.f32 %v2297_v39, 6.0  ;;  %v3087_v6 = vmul.f32 %v8920_v49, %v10583_v17  ;;  %v2217_v12 = vadd.f32 %v2209_v2, %v2189_v9  ;;  %v3362_v26 = vmul.f32 %v3354_v29, %v10752_v36 }
 0x2b3   : > { %v5813_v8 = vld [vmem:[#allocation2 + $0x200] sm:$0xff]  ;;  %v10750_v4 = vld [vmem:[#allocation199_spill] sm:$0xff]  ;;  %v3386_v1 = vmul.f32 %v3378_v41, %v10753_v32  ;;  %v2819_v39 = vadd.f32 %v10754_v14, %v2795_v46  ;;  %v2627_v27 = vadd.f32 %v2619_v53, %v2603_v18  ;;  %v2643_v9 = vmul.f32 %v8878_v51, %v10500_v50 }
 0x2b4   : > { %v3063_v60 = vmul.f32 %v5813_v8, %v10582_v30  ;;  %v8929_v48 = vld [vmem:[#allocation2 + $0x202] sm:$0xff]  ;;  %v3046_v16 = vadd.f32 %v10750_v4, %v3022_v57  ;;  %v2252_v63 = vld [vmem:[#allocation3 + $0x30] sm:$0xff]  ;;  %5589 = vmatmul.mubr.msk.f32.gmra.mrb[20].mxu1 %vm491_vm0, %v2305_v19  ;;  %v8942_v4 = vadd.f32 %v2858_v59, %v2842_v42  ;;  %v8951_v14 = vmul.f32 %v8894_v37, %v10503_v23 }
 0x2b5   : > { %v10751_v55 = vld [vmem:[#allocation27_spill] sm:$0xff]  ;;  %v2260_v34 = vadd.f32 %v2252_v63, %v2244_v11  ;;  %v3111_v61 = vmul.f32 %v8929_v48, %v10584_v7  ;;  %v2674_v11 = vadd.f32 %v8885_v10, %v2650_v52  ;;  %v2859_v42 = vmul.f32 %v2197_v3, %v10481_v38  ;;  %v3127_v51 = vld [vmem:[#allocation3] sm:$0xff]  ;;  %v10756_v19 = vld [vmem:[#allocation200_spill] sm:$0xff] }
 0x2b6   : > { %v3346_v22 = vmul.f32 %v3338_v28, %v10751_v55  ;;  %v3071_v45 = vadd.f32 %v3063_v60, %v3046_v16  ;;  %v2897_v57 = vld [vmem:[#allocation3 + $0x28] sm:$0xff]  ;;  %v8955_v18 = vmul.f32 %v2225_v33, %v10487_v0  ;;  %v2843_v10 = vadd.f32 %v2835_v58, %v2819_v39  ;;  %v10755_v60 = vld [vmem:[#allocation202_spill] sm:$0xff]  ;;  %v5814_v16 = vld [vmem:[#allocation2 + $0x151] sm:$0xff] }
 0x2b7   : > { %v2905_v28 = vadd.f32 %v2897_v57, %v8865_v24  ;;  %2268 = vst.msk [vmem:[#allocation3 + $0x30] sm:$0xff] %vm491_vm0, %v2260_v34  ;;  %v1982_v29 = vld [vmem:[#allocation3 + $0x38] sm:$0xff]  ;;  %v3128_v41 = vld [vmem:[#allocation3 + $0x8] sm:$0xff]  ;;  %v2245_v34 = vadd.f32 %v2237_v40, %v2217_v12  ;;  %v3658_v37 = vadd.f32 %v10756_v19, %v10755_v60  ;;  %v3434_v33 = vmul.f32 %v5814_v16, %v10558_v54  ;;  %v3474_v58 = vld [vmem:[#allocation2 + $0x160] sm:$0xff] }
 0x2b8   : > { %v3370_v2 = vadd.f32 %v3362_v26, %v3346_v22  ;;  %v3095_v46 = vadd.f32 %v3087_v6, %v3071_v45  ;;  %v1990_v59 = vadd.f32 %v1982_v29, %v1974_v5  ;;  %v3450_v24 = vld [vmem:[#allocation2 + $0x152] sm:$0xff]  ;;  %v8961_v45 = vadd.f32 %v2643_v9, %v2627_v27  ;;  %v10757_v5 = vld [vmem:[#allocation135_spill] sm:$0xff]  ;;  %v10759_v12 = vld [vmem:[#allocation150_spill] sm:$0xff] }
 0x2b9   : > { %2913 = vst.msk [vmem:[#allocation3 + $0x28] sm:$0xff] %vm491_vm0, %v2905_v28  ;;  %v10758_v6 = vld [vmem:[#allocation41_spill] sm:$0xff]  ;;  %v8966_v22 = vld [vmem:[#allocation2 + $0x221] sm:$0xff]  ;;  %v3458_v40 = vmul.f32 %v3450_v24, %v10451_v43 }
 0x2ba   : > { %v3394_v53 = vadd.f32 %v3386_v1, %v3370_v2  ;;  %v3119_v52 = vadd.f32 %v3111_v61, %v3095_v46  ;;  %1998 = vst.msk [vmem:[#allocation3 + $0x38] sm:$0xff] %vm491_vm0, %v1990_v59  ;;  %v3136_v63 = vadd.f32 %v3128_v41, %v10758_v6  ;;  %v10760_v1 = vld [vmem:[#allocation153_spill] sm:$0xff]  ;;  %v10762_v57 = vld [vmem:[#allocation214_spill] sm:$0xff]  ;;  %v3698_v46 = vmul.f32 %v5813_v8, %v10290_v56 }
 0x2bb   : > { %v3515_v39 = vadd.f32 %v10760_v1, %v10759_v12  ;;  %v10761_v61 = vld [vmem:[#allocation213_spill] sm:$0xff]  ;;  %v8973_v9 = vld [vmem:[#allocation2 + $0x222] sm:$0xff]  ;;  %v3089_v19 = vmul.f32 %v8966_v22, %v10583_v17  ;;  %v2867_v8 = vadd.f32 %v2859_v42, %v2843_v10  ;;  %v3482_v6 = vmul.f32 %v3474_v58, %v10633_v47  ;;  %v8992_v12 = vld [vmem:[%s10111_s6] ss:$0 sm:$0xff] }
 0x2bc   : > { %v3418_v3 = vadd.f32 %v10757_v5, %v3394_v53  ;;  %v3135_v26 = vadd.f32 %v3127_v51, %v3119_v52  ;;  %v3024_v27 = vadd.f32 %v10762_v57, %v10761_v61  ;;  %v10763_v28 = vld [vmem:[#allocation201_spill] sm:$0xff]  ;;  %3144 = vst.msk [vmem:[#allocation3 + $0x8] sm:$0xff] %vm491_vm0, %v3136_v63  ;;  %v5815_v41 = vld [vmem:[#allocation2 + $0x220] sm:$0xff]  ;;  %v10764_v53 = vld [vmem:[#allocation156_spill] sm:$0xff]  ;;  %v3113_v63 = vmul.f32 %v8973_v9, %v10584_v7 }
 0x2bd   : > { %v3682_v29 = vadd.f32 %v10763_v28, %v3658_v37  ;;  %v3065_v59 = vmul.f32 %v5815_v41, %v10582_v30  ;;  %v3498_v51 = vld [vmem:[#allocation2 + $0x161] sm:$0xff]  ;;  %v3539_v24 = vadd.f32 %v10764_v53, %v3515_v39  ;;  %v10766_v5 = vld [vmem:[#allocation128_spill] sm:$0xff]  ;;  %v10768_v57 = vld [vmem:[#allocation77_spill] sm:$0xff]  ;;  %v3722_v28 = vmul.f32 %v8920_v49, %v10481_v38 }
 0x2be   : > { %v3442_v2 = vadd.f32 %v3434_v33, %v3418_v3  ;;  %3143 = vst.msk [vmem:[#allocation3] sm:$0xff] %vm491_vm0, %v3135_v26  ;;  %v10765_v52 = vld [vmem:[#allocation215_spill] sm:$0xff]  ;;  %v2276_v16 = vld [vmem:[#allocation3 + $0x30] sm:$0xff]  ;;  %v3476_v53 = vld [vmem:[#allocation2 + $0x180] sm:$0xff] }
 0x2bf   : > { %v3048_v60 = vadd.f32 %v10765_v52, %v3024_v27  ;;  %v10767_v3 = vld [vmem:[#allocation127_spill] sm:$0xff]  ;;  %v3452_v26 = vld [vmem:[#allocation2 + $0x172] sm:$0xff]  ;;  %v2290_v1 = vadd.f32 %v8992_v12, %v2276_v16  ;;  %2682 = vst.msk [vmem:[#allocation3 + $0x30] sm:$0xff] %vm491_vm0, %v2674_v11  ;;  %v3506_v27 = vmul.f32 %v3498_v51, %v10500_v50 }
 0x2c0   : > { %v3396_v37 = vadd.f32 %v10767_v3, %v10766_v5  ;;  %v3466_v33 = vadd.f32 %v3458_v40, %v3442_v2  ;;  %v3522_v39 = vld [vmem:[#allocation2 + $0x162] sm:$0xff]  ;;  %v5817_v10 = vld [vmem:[#allocation2 + $0x171] sm:$0xff]  ;;  %v3706_v2 = vadd.f32 %v3698_v46, %v3682_v29  ;;  %v3460_v11 = vmul.f32 %v3452_v26, %v10451_v43  ;;  %v9008_v29 = vld [vmem:[%s10109_s4] ss:$0 sm:$0xff] }
 0x2c1   : > { %v3073_v61 = vadd.f32 %v3065_v59, %v3048_v60  ;;  %v3436_v40 = vmul.f32 %v5817_v10, %v10558_v54  ;;  %v2298_v52 = vmax.f32 %v2290_v1, 0.0  ;;  %v2253_v5 = vld [vmem:[#allocation3 + $0x38] sm:$0xff]  ;;  %v10769_v10 = vld [vmem:[#allocation42_spill] sm:$0xff]  ;;  %v3484_v1 = vmul.f32 %v3476_v53, %v10633_v47  ;;  %v3132_v36 = vld [vmem:[#allocation3 + $0x28] sm:$0xff] }
 0x2c2   : > { %v3420_v42 = vadd.f32 %v10768_v57, %v3396_v37  ;;  %v3490_v58 = vadd.f32 %v3482_v6, %v3466_v33  ;;  %v2261_v59 = vadd.f32 %v2253_v5, %v2245_v34  ;;  %v3530_v37 = vmul.f32 %v3522_v39, %v10503_v23  ;;  %v3129_v57 = vld [vmem:[#allocation3 + $0x10] sm:$0xff]  ;;  %v10770_v33 = vld [vmem:[#allocation217_spill] sm:$0xff]  ;;  %v3524_v53 = vld [vmem:[#allocation2 + $0x182] sm:$0xff] }
 0x2c3   : > { %v3097_v3 = vadd.f32 %v3089_v19, %v3073_v61  ;;  %v3660_v6 = vadd.f32 %v10770_v33, %v10769_v10  ;;  %v2306_v49 = vmin.f32 %v2298_v52, 6.0  ;;  %v3152_v46 = vld [vmem:[#allocation3 + $0x8] sm:$0xff]  ;;  %v2890_v34 = vadd.f32 %v8906_v20, %v8942_v4  ;;  %v10771_v20 = vld [vmem:[#allocation134_spill] sm:$0xff]  ;;  %v10773_v5 = vld [vmem:[#allocation216_spill] sm:$0xff] }
 0x2c4   : > { %v3444_v16 = vadd.f32 %v3436_v40, %v3420_v42  ;;  %v3514_v60 = vadd.f32 %v3506_v27, %v3490_v58  ;;  %2269 = vst.msk [vmem:[#allocation3 + $0x38] sm:$0xff] %vm491_vm0, %v2261_v59  ;;  %v3730_v61 = vadd.f32 %v3722_v28, %v3706_v2  ;;  %v3746_v42 = vmul.f32 %v8929_v48, %v10487_v0  ;;  %v3500_v40 = vld [vmem:[#allocation2 + $0x181] sm:$0xff]  ;;  %v10772_v48 = vld [vmem:[#allocation69_spill] sm:$0xff]  ;;  %v5818_v10 = vld [vmem:[#allocation2 + $0x230] sm:$0xff] }
 0x2c5   : > { %v3121_v51 = vadd.f32 %v3113_v63, %v3097_v3  ;;  %v3151_v26 = vld [vmem:[#allocation3] sm:$0xff]  ;;  %3547 = vst.msk [vmem:[#allocation3 + $0x8] sm:$0xff] %vm491_vm0, %v3539_v24  ;;  %5591 = vmatprep.mubr.msk.f32.mxu1 %vm491_vm0, %v2306_v49  ;;  %v2675_v63 = vadd.f32 %v8951_v14, %v8961_v45  ;;  %v1380_v4 = vadd.f32 %v10771_v20, %v9008_v29  ;;  %v10774_v3 = vld [vmem:[#allocation204_spill] sm:$0xff]  ;;  %v10825_v55 = vld [vmem:[#allocation57_spill] sm:$0xff] }
 0x2c6   : > { %v3468_v19 = vadd.f32 %v3460_v11, %v3444_v16  ;;  %v3538_v39 = vadd.f32 %v3530_v37, %v3514_v60  ;;  %v2898_v52 = vld [vmem:[#allocation3 + $0x30] sm:$0xff]  ;;  %v9023_v2 = vadd.f32 %v8955_v18, %v2867_v8  ;;  %v3684_v24 = vadd.f32 %v10772_v48, %v3660_v6  ;;  %v10775_v37 = vld [vmem:[#allocation205_spill] sm:$0xff]  ;;  %v10780_v48 = vld [vmem:[#allocation207_spill] sm:$0xff] }
 0x2c7   : > { %v3137_v58 = vadd.f32 %v3129_v57, %v3121_v51  ;;  %v3700_v28 = vmul.f32 %v5815_v41, %v10290_v56  ;;  %v3001_v16 = vadd.f32 %v10774_v3, %v10773_v5  ;;  %v2906_v14 = vadd.f32 %v2898_v52, %v2890_v34  ;;  %v9033_v60 = vld [vmem:[#allocation2 + $0x231] sm:$0xff]  ;;  %v10776_v34 = vld [vmem:[#allocation206_spill] sm:$0xff] }
 0x2c8   : > { %v3492_v27 = vadd.f32 %v3484_v1, %v3468_v19  ;;  %3546 = vst.msk [vmem:[#allocation3] sm:$0xff] %vm491_vm0, %v3538_v39  ;;  %v3159_v45 = vadd.f32 %v8992_v12, %v3151_v26  ;;  %v3508_v11 = vmul.f32 %v3500_v40, %v10500_v50  ;;  %v1414_v59 = vmax.f32 %v1380_v4, 0.0  ;;  %v9038_v33 = vld [vmem:[#allocation2 + $0x232] sm:$0xff]  ;;  %v10781_v5 = vld [vmem:[#allocation78_spill] sm:$0xff] }
 0x2c9   : > { %3145 = vst.msk [vmem:[#allocation3 + $0x10] sm:$0xff] %vm491_vm0, %v3137_v58  ;;  %v3754_v18 = vadd.f32 %v3746_v42, %v3730_v61  ;;  %v3532_v8 = vmul.f32 %v3524_v53, %v10503_v23  ;;  %v3025_v57 = vadd.f32 %v10775_v37, %v3001_v16  ;;  %v3066_v41 = vmul.f32 %v5818_v10, %v10582_v30  ;;  %v10777_v61 = vld [vmem:[#allocation155_spill] sm:$0xff]  ;;  %v10778_v42 = vld [vmem:[#allocation76_spill] sm:$0xff] }
 0x2ca   : > { %2914 = vst.msk [vmem:[#allocation3 + $0x30] sm:$0xff] %vm491_vm0, %v2906_v14  ;;  %v3160_v6 = vadd.f32 %v8992_v12, %v3152_v46  ;;  %v3516_v49 = vadd.f32 %v3508_v11, %v3492_v27  ;;  %v3724_v51 = vmul.f32 %v8966_v22, %v10481_v38  ;;  %v1422_v19 = vmin.f32 %v1414_v59, 6.0  ;;  %v5819_v27 = vld [vmem:[#allocation2 + $0x181] sm:$0xff]  ;;  %v10779_v52 = vld [vmem:[#allocation40_spill] sm:$0xff] }
 0x2cb   : > { %v3708_v1 = vadd.f32 %v3700_v28, %v3684_v24  ;;  %v3049_v26 = vadd.f32 %v10776_v34, %v3025_v57  ;;  %v3090_v39 = vmul.f32 %v9033_v60, %v10583_v17  ;;  %v3397_v40 = vadd.f32 %v10778_v42, %v10777_v61  ;;  %v2277_v58 = vld [vmem:[#allocation3 + $0x38] sm:$0xff]  ;;  %v3477_v34 = vld [vmem:[#allocation2 + $0x190] sm:$0xff]  ;;  %v5823_v32 = vld [vmem:[#allocation2 + $0x1a1] sm:$0xff] }
 0x2cc   : > { %v3167_v20 = vmax.f32 %v3159_v45, 0.0  ;;  %v3763_v4 = vld [vmem:[#allocation3 + $0x8] sm:$0xff]  ;;  %1431 = vst.msk [vmem:[#allocation2 + $0x341] sm:$0xff] %vm491_vm0, %v1422_v19  ;;  %v3114_v46 = vmul.f32 %v9038_v33, %v10584_v7  ;;  %v3437_v22 = vmul.f32 %v5819_v27, %v10558_v54  ;;  %v3637_v24 = vadd.f32 %v10780_v48, %v10779_v52  ;;  %2683 = vst.msk [vmem:[#allocation3 + $0x38] sm:$0xff] %vm491_vm0, %v2675_v63  ;;  %v10784_v61 = vld [vmem:[#allocation208_spill] sm:$0xff] }
 0x2cd   : > { %v2291_v28 = vadd.f32 %v8992_v12, %v2277_v58  ;;  %v3771_v3 = vadd.f32 %v3763_v4, %v10781_v5  ;;  %v10782_v16 = vmov 0.0   ;;  %v3074_v14 = vadd.f32 %v3066_v41, %v3049_v26  ;;  %v10783_v45 = vld [vmem:[#allocation143_spill] sm:$0xff] }
 0x2ce   : > { %1456 = vst.msk [vmem:[#allocation2 + $0x341] sm:$0xff] %vm491_vm0, %v10782_v16  ;;  %v3421_v11 = vadd.f32 %v10783_v45, %v3397_v40  ;;  %v3168_v37 = vmax.f32 %v3160_v6, 0.0  ;;  %v3540_v57 = vadd.f32 %v3532_v8, %v3516_v49  ;;  %v3461_v19 = vmul.f32 %v3524_v53, %v10451_v43  ;;  %v3130_v6 = vld [vmem:[#allocation3 + $0x18] sm:$0xff] }
 0x2cf   : > { %v3762_v59 = vld [vmem:[#allocation3] sm:$0xff]  ;;  %v3661_v42 = vadd.f32 %v10784_v61, %v3637_v24  ;;  %v2299_v27 = vmax.f32 %v2291_v28, 0.0  ;;  %3779 = vst.msk [vmem:[#allocation3 + $0x8] sm:$0xff] %vm491_vm0, %v3771_v3  ;;  %v3098_v4 = vadd.f32 %v3090_v39, %v3074_v14  ;;  %v3175_v48 = vmin.f32 %v3167_v20, 6.0  ;;  %v10785_v53 = vld [vmem:[#allocation73_spill] sm:$0xff] }
 0x2d0   : > { %v3770_v58 = vadd.f32 %v3762_v59, %v3754_v18  ;;  %v3153_v63 = vld [vmem:[#allocation3 + $0x10] sm:$0xff]  ;;  %v3445_v52 = vadd.f32 %v3437_v22, %v3421_v11  ;;  %v3748_v8 = vmul.f32 %v8973_v9, %v10487_v0  ;;  %v1375_v49 = vadd.f32 %v9008_v29, %v10785_v53  ;;  %v10786_v14 = vld [vmem:[#allocation209_spill] sm:$0xff]  ;;  %v4656_v59 = vld [vmem:[#allocation2 + $0x320] sm:$0xff] }
 0x2d1   : > { %v3161_v41 = vadd.f32 %v8992_v12, %v3153_v63  ;;  %3548 = vst.msk [vmem:[#allocation3 + $0x10] sm:$0xff] %vm491_vm0, %v3540_v57  ;;  %v2307_v26 = vmin.f32 %v2299_v27, 6.0  ;;  %v3122_v18 = vadd.f32 %v3114_v46, %v3098_v4  ;;  %v3485_v39 = vmul.f32 %v3477_v34, %v10633_v47  ;;  %v3501_v28 = vld [vmem:[#allocation2 + $0x191] sm:$0xff]  ;;  %v4672_v57 = vld [vmem:[#allocation2 + $0x321] sm:$0xff] }
 0x2d2   : > { %3778 = vst.msk [vmem:[#allocation3] sm:$0xff] %vm491_vm0, %v3770_v58  ;;  %v3469_v40 = vadd.f32 %v3461_v19, %v3445_v52  ;;  %v3176_v22 = vmin.f32 %v3168_v37, 6.0  ;;  %v3732_v24 = vadd.f32 %v3724_v51, %v3708_v1  ;;  %v1413_v5 = vmax.f32 %v1375_v49, 0.0  ;;  %v10787_v1 = vld [vmem:[#allocation226_spill] sm:$0xff]  ;;  %v10788_v34 = vld [vmem:[#allocation224_spill] sm:$0xff] }
 0x2d3   : > { %v3169_v20 = vmax.f32 %v3161_v41, 0.0  ;;  %5592 = vmatmul.mubr.msk.f32.gmra.mrb[22].mxu1 %vm491_vm0, %v2307_v26  ;;  %v3138_v3 = vadd.f32 %v3130_v6, %v3122_v18  ;;  %v3685_v45 = vadd.f32 %v10786_v14, %v3661_v42  ;;  %v3701_v11 = vmul.f32 %v5818_v10, %v10290_v56  ;;  %v2899_v19 = vld [vmem:[#allocation3 + $0x38] sm:$0xff]  ;;  %v9098_v4 = vld [vmem:[#allocation2 + $0x240] sm:$0xff]  ;;  %v10794_v26 = vld [vmem:[#allocation51_spill] sm:$0xff] }
 0x2d4   : > { %v3493_v9 = vadd.f32 %v3485_v39, %v3469_v40  ;;  %v4462_v46 = vadd.f32 %v8825_v62, %v8821_v25  ;;  %5606 = vmatprep.mubr.msk.f32.mxu1 %vm491_vm0, %v3175_v48  ;;  %v1421_v51 = vmin.f32 %v1413_v5, 6.0  ;;  %v3026_v61 = vadd.f32 %v10788_v34, %v10787_v1  ;;  %v9091_v62 = vld [vmem:[#allocation2 + $0x241] sm:$0xff]  ;;  %v9093_v63 = vld [vmem:[#allocation2 + $0x192] sm:$0xff] }
 0x2d5   : > { %v3177_v37 = vmin.f32 %v3169_v20, 6.0  ;;  %v9082_v27 = vmul.f32 %v8774_v35, %v6805_v15  ;;  %v9086_v10 = vmul.f32 %v8791_v31, %v10288_v13  ;;  %v2907_v42 = vadd.f32 %v2899_v19, %v9023_v2  ;;  %3146 = vst.msk [vmem:[#allocation3 + $0x18] sm:$0xff] %vm491_vm0, %v3138_v3  ;;  %v10791_v31 = vld [vmem:[#allocation33_spill] sm:$0xff]  ;;  %v10792_v2 = vld [vmem:[#allocation67_spill] sm:$0xff]  ;;  %v10795_v18 = vld [vmem:[#allocation100_spill] sm:$0xff] }
 0x2d6   : > { %v3509_v25 = vmul.f32 %v3501_v28, %v10500_v50  ;;  %v3756_v58 = vadd.f32 %v3748_v8, %v3732_v24  ;;  %1430 = vst.msk [vmem:[#allocation2 + $0x331] sm:$0xff] %vm491_vm0, %v1421_v51  ;;  %v4664_v15 = vmul.f32 %v4656_v59, %v10711_v21  ;;  %v4680_v35 = vmul.f32 %v4672_v57, %v10713_v44  ;;  %v4696_v53 = vld [vmem:[#allocation2 + $0x322] sm:$0xff]  ;;  %v10805_v34 = vld [vmem:[#allocation48_spill] sm:$0xff] }
 0x2d7   : > { %10789 = vst [vmem:[#allocation140_spill] sm:$0xff] %v9082_v27  ;;  %10790 = vst [vmem:[#allocation99_spill] sm:$0xff] %v9086_v10  ;;  %v3067_v13 = vmul.f32 %v9098_v4, %v10582_v30  ;;  %v9104_v52 = vadd.f32 %v10792_v2, %v10791_v31  ;;  %5607 = vmatmul.mubr.msk.f32.vlgmr.msra.gmra.mrb[24].mxu1 %vm491_vm0, %v3176_v22  ;;  %v3709_v8 = vadd.f32 %v3701_v11, %v3685_v45  ;;  %v9112_v49 = vld [vmem:[#allocation2 + $0x242] sm:$0xff]  ;;  %v10797_v22 = vld [vmem:[#allocation225_spill] sm:$0xff] }
 0x2d8   : > { %2915 = vst.msk [vmem:[#allocation3 + $0x38] sm:$0xff] %vm491_vm0, %v2907_v42  ;;  %v3764_v48 = vld [vmem:[#allocation3 + $0x10] sm:$0xff]  ;;  %v3517_v41 = vadd.f32 %v3509_v25, %v3493_v9  ;;  %v3725_v6 = vmul.f32 %v9033_v60, %v10481_v38  ;;  %1455 = vst.msk [vmem:[#allocation2 + $0x331] sm:$0xff] %vm491_vm0, %v10782_v16  ;;  %v9116_v40 = vadd.f32 %v10795_v18, %v10794_v26  ;;  %5609 = vmatprep.mubr.msk.f32.mxu1 %vm491_vm0, %v3177_v37  ;;  %v10798_v28 = vld [vmem:[#allocation114_spill] sm:$0xff] }
 0x2d9   : > { %10793 = vst [vmem:[#allocation167_spill] sm:$0xff] %v9104_v52  ;;  %v3772_v39 = vadd.f32 %v3764_v48, %v3756_v58  ;;  %v3050_v20 = vadd.f32 %v10797_v22, %v3026_v61  ;;  %v3091_v24 = vmul.f32 %v9091_v62, %v10583_v17  ;;  %v9123_v60 = vadd.f32 %v10798_v28, %v4462_v46  ;;  %v9125_v5 = vld [vmem:[#allocation2 + $0x340] sm:$0xff]  ;;  %v10801_v45 = vld [vmem:[#allocation144_spill] sm:$0xff]  ;;  %v10804_v46 = vld [vmem:[#allocation23_spill] sm:$0xff] }
 0x2da   : > { %10796 = vst [vmem:[#allocation165_spill] sm:$0xff] %v9116_v40  ;;  %v9127_v3 = vld [vmem:[#allocation2 + $0x341] sm:$0xff]  ;;  %v3533_v9 = vmul.f32 %v9093_v63, %v10503_v23  ;;  %v3749_v14 = vmul.f32 %v9038_v33, %v10487_v0  ;;  %v9137_v19 = vadd.f32 %v4680_v35, %v4664_v15  ;;  %v9140_v37 = vmul.f32 %v4696_v53, %v10804_v46  ;;  %v10807_v25 = vld [vmem:[#allocation173_spill] sm:$0xff] }
 0x2db   : > { %10799 = vst [vmem:[#allocation94_spill] sm:$0xff] %v9123_v60  ;;  %10800 = vst [vmem:[#allocation92_spill] sm:$0xff] %v9127_v3  ;;  %v10802_v11 = vld [vmem:[#allocation142_spill] sm:$0xff]  ;;  %v3075_v51 = vadd.f32 %v3067_v13, %v3050_v20  ;;  %v3115_v1 = vmul.f32 %v9112_v49, %v10584_v7  ;;  %v3733_v42 = vadd.f32 %v3725_v6, %v3709_v8  ;;  %v5821_v31 = vld [vmem:[#allocation2 + $0x191] sm:$0xff] }
 0x2dc   : > { %v3398_v59 = vadd.f32 %v10802_v11, %v10801_v45  ;;  %v10803_v57 = vld [vmem:[#allocation62_spill] sm:$0xff]  ;;  %3780 = vst.msk [vmem:[#allocation3 + $0x10] sm:$0xff] %vm491_vm0, %v3772_v39  ;;  %v3541_v33 = vadd.f32 %v3533_v9, %v3517_v41  ;;  %v3438_v2 = vmul.f32 %v5821_v31, %v10558_v54  ;;  %v9151_v15 = vmul.f32 %v9125_v5, %v10711_v21  ;;  %v3154_v13 = vld [vmem:[#allocation3 + $0x18] sm:$0xff]  ;;  %v10809_v41 = vld [vmem:[#allocation24_spill] sm:$0xff] }
 0x2dd   : > { %5705 = vmatpush3.bf16.msra.mxu1 %v10803_v57  ;;  %v9145_v61 = vld [vmem:[#allocation2 + $0x342] sm:$0xff]  ;;  %v9155_v35 = vmul.f32 %v9127_v3, %v10713_v44  ;;  %v3099_v48 = vadd.f32 %v3091_v24, %v3075_v51  ;;  %v9161_v8 = vmul.f32 %v9125_v5, %v10809_v41  ;;  %v3162_v6 = vadd.f32 %v8992_v12, %v3154_v13  ;;  %v10810_v20 = vld [vmem:[#allocation229_spill] sm:$0xff]  ;;  %v10812_v51 = vld [vmem:[#allocation228_spill] sm:$0xff] }
 0x2de   : > { %5707 = vmatprep.subr.bf16.mxu1 %v10805_v34  ;;  %10806 = vst [vmem:[#allocation101_spill] sm:$0xff] %v9145_v61  ;;  %v3422_v58 = vadd.f32 %v10807_v25, %v3398_v59  ;;  %v10808_v53 = vld [vmem:[#allocation46_spill] sm:$0xff]  ;;  %3549 = vst.msk [vmem:[#allocation3 + $0x18] sm:$0xff] %vm491_vm0, %v3541_v33  ;;  %v10811_v28 = vld [vmem:[#allocation227_spill] sm:$0xff]  ;;  %v9170_v24 = vmul.f32 %v9145_v61, %v10804_v46  ;;  %v3462_v13 = vmul.f32 %v9093_v63, %v10451_v43 }
 0x2df   : > { %v1390_v26 = vadd.f32 %v10808_v53, %v9008_v29  ;;  %v3131_v18 = vld [vmem:[#allocation3 + $0x20] sm:$0xff]  ;;  %v3662_v9 = vadd.f32 %v10811_v28, %v10810_v20  ;;  %v4657_v45 = vld [vmem:[#allocation2 + $0x330] sm:$0xff]  ;;  %v3123_v59 = vadd.f32 %v3115_v1, %v3099_v48  ;;  %v10814_v31 = vld [vmem:[#allocation81_spill] sm:$0xff]  ;;  %v3757_v1 = vadd.f32 %v3749_v14, %v3733_v42 }
 0x2e0   : > { %v3446_v39 = vadd.f32 %v3438_v2, %v3422_v58  ;;  %v3478_v22 = vld [vmem:[#allocation2 + $0x1a0] sm:$0xff]  ;;  %v9172_v11 = vld [vmem:[#allocation2 + $0x331] sm:$0xff]  ;;  %v3170_v58 = vmax.f32 %v3162_v6, 0.0  ;;  %v4665_v2 = vmul.f32 %v4657_v45, %v10711_v21  ;;  %v3702_v27 = vmul.f32 %v9098_v4, %v10290_v56 }
 0x2e1   : > { %5709 = vmatpush3.bf16.msra.mxu1 %v10805_v34  ;;  %v1416_v57 = vmax.f32 %v1390_v26, 0.0  ;;  %v10813_v25 = vld [vmem:[#allocation130_spill] sm:$0xff]  ;;  %v4681_v34 = vmul.f32 %v9172_v11, %v10713_v44  ;;  %v10815_v20 = vld [vmem:[#allocation25_spill] sm:$0xff]  ;;  %v3139_v26 = vadd.f32 %v3131_v18, %v3123_v59 }
 0x2e2   : > { %v3003_v33 = vadd.f32 %v10813_v25, %v10812_v51  ;;  %5711 = vmatprep.subr.bf16.mxu1 %v10814_v31  ;;  %v3502_v53 = vld [vmem:[#allocation2 + $0x1a1] sm:$0xff]  ;;  %v9184_v28 = vmul.f32 %v9127_v3, %v10815_v20  ;;  %v9186_v48 = vld [vmem:[#allocation2 + $0x332] sm:$0xff]  ;;  %v3486_v51 = vmul.f32 %v3478_v22, %v10633_v47  ;;  %v3178_v6 = vmin.f32 %v3170_v58, 6.0 }
 0x2e3   : > { %v3470_v25 = vadd.f32 %v3462_v13, %v3446_v39  ;;  %v3526_v60 = vld [vmem:[#allocation2 + $0x1a2] sm:$0xff]  ;;  %v9192_v63 = vld [vmem:[#allocation2 + $0x251] sm:$0xff]  ;;  %3147 = vst.msk [vmem:[#allocation3 + $0x20] sm:$0xff] %vm491_vm0, %v3139_v26  ;;  %v3510_v14 = vmul.f32 %v3502_v53, %v10500_v50  ;;  %v1424_v42 = vmin.f32 %v1416_v57, 6.0  ;;  %v4705_v4 = vmul.f32 %v9186_v48, %v10804_v46 }
 0x2e4   : > { %v10816_v10 = vld [vmem:[#allocation230_spill] sm:$0xff]  ;;  %v10817_v18 = vld [vmem:[#allocation129_spill] sm:$0xff]  ;;  %v9198_v22 = vld [vmem:[#allocation2 + $0x250] sm:$0xff]  ;;  %5610 = vmatmul.mubr.msk.f32.gmra.mrb[26].mxu1 %vm491_vm0, %v3178_v6 }
 0x2e5   : > { %v3686_v52 = vadd.f32 %v10816_v10, %v3662_v9  ;;  %5713 = vmatpush3.bf16.msra.mxu1 %v10814_v31  ;;  %v3027_v59 = vadd.f32 %v10817_v18, %v3003_v33  ;;  %v3068_v39 = vmul.f32 %v9198_v22, %v10582_v30  ;;  %v4689_v10 = vadd.f32 %v4681_v34, %v4665_v2  ;;  %v9205_v31 = vld [vmem:[#allocation2 + $0x252] sm:$0xff]  ;;  %v10820_v57 = vld [vmem:[#allocation26_spill] sm:$0xff] }
 0x2e6   : > { %v3494_v9 = vadd.f32 %v3486_v51, %v3470_v25  ;;  %v10818_v58 = vld [vmem:[#allocation177_spill] sm:$0xff]  ;;  %v10819_v13 = vld [vmem:[#allocation172_spill] sm:$0xff]  ;;  %v9211_v33 = vmul.f32 %v9145_v61, %v10820_v57  ;;  %v3534_v18 = vmul.f32 %v3526_v60, %v10503_v23  ;;  %1433 = vst.msk [vmem:[#allocation2 + $0x361] sm:$0xff] %vm491_vm0, %v1424_v42  ;;  %v10821_v6 = vld [vmem:[#allocation110_spill] sm:$0xff]  ;;  %v3092_v34 = vmul.f32 %v9192_v63, %v10583_v17 }
 0x2e7   : > { %v3399_v53 = vadd.f32 %v10819_v13, %v10818_v58  ;;  %v3765_v26 = vld [vmem:[#allocation3 + $0x18] sm:$0xff]  ;;  %v3051_v2 = vadd.f32 %v10821_v6, %v3027_v59  ;;  %v3710_v40 = vadd.f32 %v3702_v27, %v3686_v52  ;;  %v3726_v58 = vmul.f32 %v9091_v62, %v10481_v38  ;;  %1458 = vst.msk [vmem:[#allocation2 + $0x361] sm:$0xff] %vm491_vm0, %v10782_v16  ;;  %v10822_v3 = vld [vmem:[#allocation164_spill] sm:$0xff] }
 0x2e8   : > { %v3773_v51 = vadd.f32 %v3765_v26, %v3757_v1  ;;  %v3518_v25 = vadd.f32 %v3510_v14, %v3494_v9  ;;  %v3116_v61 = vmul.f32 %v9205_v31, %v10584_v7  ;;  %v3439_v59 = vmul.f32 %v5823_v32, %v10558_v54  ;;  %v3479_v1 = vld [vmem:[#allocation2 + $0x1b0] sm:$0xff]  ;;  %v10823_v14 = vld [vmem:[#allocation234_spill] sm:$0xff] }
 0x2e9   : > { %v3076_v13 = vadd.f32 %v3068_v39, %v3051_v2  ;;  %v3423_v42 = vadd.f32 %v10822_v3, %v3399_v53  ;;  %v4712_v27 = vadd.f32 %v9140_v37, %v9137_v19  ;;  %v4713_v52 = vadd.f32 %v4705_v4, %v4689_v10  ;;  %v10824_v39 = vld [vmem:[#allocation218_spill] sm:$0xff]  ;;  %v10826_v37 = vld [vmem:[#allocation244_spill] sm:$0xff] }
 0x2ea   : > { %3781 = vst.msk [vmem:[#allocation3 + $0x18] sm:$0xff] %vm491_vm0, %v3773_v51  ;;  %v3750_v62 = vmul.f32 %v9112_v49, %v10487_v0  ;;  %v3639_v9 = vadd.f32 %v10824_v39, %v10823_v14  ;;  %v3542_v26 = vadd.f32 %v3534_v18, %v3518_v25  ;;  %v3463_v3 = vmul.f32 %v3526_v60, %v10451_v43  ;;  %v3155_v53 = vld [vmem:[#allocation3 + $0x20] sm:$0xff] }
 0x2eb   : > { %v3100_v6 = vadd.f32 %v3092_v34, %v3076_v13  ;;  %v3447_v2 = vadd.f32 %v3439_v59, %v3423_v42  ;;  %v4728_v32 = vmul.f32 %v4657_v45, %v10809_v41  ;;  %v3734_v51 = vadd.f32 %v3726_v58, %v3710_v40  ;;  %v10827_v10 = vld [vmem:[#allocation242_spill] sm:$0xff]  ;;  %v3503_v45 = vld [vmem:[#allocation2 + $0x1b1] sm:$0xff]  ;;  %v10828_v13 = vld [vmem:[#allocation219_spill] sm:$0xff] }
 0x2ec   : > { %v1385_v19 = vadd.f32 %v9008_v29, %v10825_v55  ;;  %v3028_v49 = vadd.f32 %v10827_v10, %v10826_v37  ;;  %v3163_v4 = vadd.f32 %v8992_v12, %v3155_v53  ;;  %3550 = vst.msk [vmem:[#allocation3 + $0x20] sm:$0xff] %vm491_vm0, %v3542_v26  ;;  %v3487_v25 = vmul.f32 %v3479_v1, %v10633_v47  ;;  %v9244_v42 = vld [vmem:[#allocation2 + $0x260] sm:$0xff]  ;;  %v10832_v10 = vld [vmem:[#allocation163_spill] sm:$0xff] }
 0x2ed   : > { %v3124_v18 = vadd.f32 %v3116_v61, %v3100_v6  ;;  %v3471_v34 = vadd.f32 %v3463_v3, %v3447_v2  ;;  %v4737_v60 = vadd.f32 %v9161_v8, %v4713_v52  ;;  %v3663_v40 = vadd.f32 %v10828_v13, %v3639_v9  ;;  %v9248_v59 = vld [vmem:[#allocation2 + $0x261] sm:$0xff] }
 0x2ee   : > { %v1415_v58 = vmax.f32 %v1385_v19, 0.0  ;;  %v3069_v55 = vmul.f32 %v9244_v42, %v10582_v30  ;;  %v3171_v14 = vmax.f32 %v3163_v4, 0.0  ;;  %v10829_v61 = vld [vmem:[#allocation243_spill] sm:$0xff]  ;;  %v4690_v1 = vadd.f32 %v9155_v35, %v9151_v15  ;;  %v3527_v19 = vld [vmem:[#allocation2 + $0x1b2] sm:$0xff] }
 0x2ef   : > { %v3140_v39 = vadd.f32 %v3132_v36, %v3124_v18  ;;  %v3495_v26 = vadd.f32 %v3487_v25, %v3471_v34  ;;  %v3052_v6 = vadd.f32 %v10829_v61, %v3028_v49  ;;  %v9255_v8 = vmul.f32 %v9125_v5, %v10582_v30  ;;  %v9259_v2 = vld [vmem:[#allocation2 + $0x262] sm:$0xff]  ;;  %v10831_v35 = vld [vmem:[#allocation220_spill] sm:$0xff] }
 0x2f0   : > { %v4736_v52 = vadd.f32 %v4728_v32, %v4712_v27  ;;  %v4752_v9 = vmul.f32 %v9172_v11, %v10815_v20  ;;  %v3179_v3 = vmin.f32 %v3171_v14, 6.0  ;;  %v3758_v53 = vadd.f32 %v3750_v62, %v3734_v51  ;;  %v10833_v49 = vld [vmem:[#allocation162_spill] sm:$0xff]  ;;  %v3133_v61 = vld [vmem:[#allocation3 + $0x30] sm:$0xff] }
 0x2f1   : > { %10830 = vst [vmem:[#allocation141_spill] sm:$0xff] %v9255_v8  ;;  %3148 = vst.msk [vmem:[#allocation3 + $0x28] sm:$0xff] %vm491_vm0, %v3140_v39  ;;  %v3511_v36 = vmul.f32 %v3503_v45, %v10500_v50  ;;  %v3093_v15 = vmul.f32 %v9248_v59, %v10583_v17  ;;  %v3687_v37 = vadd.f32 %v10831_v35, %v3663_v40  ;;  %v1423_v27 = vmin.f32 %v1415_v58, 6.0  ;;  %v4660_v45 = vld [vmem:[#allocation2 + $0x360] sm:$0xff]  ;;  %v5825_v58 = vld [vmem:[#allocation2 + $0x1b1] sm:$0xff] }
 0x2f2   : > { %v3703_v5 = vmul.f32 %v9198_v22, %v10290_v56  ;;  %v4761_v11 = vadd.f32 %v9184_v28, %v4737_v60  ;;  %5612 = vmatprep.mubr.msk.f32.mxu1 %vm491_vm0, %v3179_v3  ;;  %v3077_v62 = vadd.f32 %v3069_v55, %v3052_v6  ;;  %v3117_v51 = vmul.f32 %v9259_v2, %v10584_v7  ;;  %v10834_v40 = vld [vmem:[#allocation194_spill] sm:$0xff]  ;;  %v10838_v35 = vld [vmem:[#allocation245_spill] sm:$0xff] }
 0x2f3   : > { %v3519_v32 = vadd.f32 %v3511_v36, %v3495_v26  ;;  %v3400_v4 = vadd.f32 %v10833_v49, %v10832_v10  ;;  %v9275_v18 = vadd.f32 %v9170_v24, %v4690_v1  ;;  %v9277_v34 = vadd.f32 %v4752_v9, %v4736_v52  ;;  %v3766_v28 = vld [vmem:[#allocation3 + $0x20] sm:$0xff]  ;;  %1432 = vst.msk [vmem:[#allocation2 + $0x351] sm:$0xff] %vm491_vm0, %v1423_v27  ;;  %v9312_v49 = vld [vmem:[#allocation2 + $0x270] sm:$0xff] }
 0x2f4   : > { %v9281_v22 = vmul.f32 %v9186_v48, %v10820_v57  ;;  %v3535_v25 = vmul.f32 %v3527_v19, %v10503_v23  ;;  %v3774_v60 = vadd.f32 %v3766_v28, %v3758_v53  ;;  %1457 = vst.msk [vmem:[#allocation2 + $0x351] sm:$0xff] %vm491_vm0, %v10782_v16  ;;  %v3101_v13 = vadd.f32 %v3093_v15, %v3077_v62  ;;  %v3480_v6 = vld [vmem:[#allocation2 + $0x1c0] sm:$0xff] }
 0x2f5   : > { %v3424_v24 = vadd.f32 %v10834_v40, %v3400_v4  ;;  %v3440_v55 = vmul.f32 %v5825_v58, %v10558_v54  ;;  %v3711_v14 = vadd.f32 %v3703_v5, %v3687_v37  ;;  %v3727_v48 = vmul.f32 %v9192_v63, %v10481_v38  ;;  %v9297_v1 = vld [vmem:[#allocation2 + $0x361] sm:$0xff]  ;;  %v10839_v37 = vld [vmem:[#allocation96_spill] sm:$0xff] }
 0x2f6   : > { %v3751_v39 = vmul.f32 %v9205_v31, %v10487_v0  ;;  %v9294_v26 = vadd.f32 %v9211_v33, %v4761_v11  ;;  %3782 = vst.msk [vmem:[#allocation3 + $0x20] sm:$0xff] %vm491_vm0, %v3774_v60  ;;  %10835 = vst [vmem:[#allocation109_spill] sm:$0xff] %v9297_v1  ;;  %v9299_v52 = vld [vmem:[#allocation2 + $0x362] sm:$0xff]  ;;  %v3543_v9 = vadd.f32 %v3535_v25, %v3519_v32  ;;  %v10841_v11 = vld [vmem:[#allocation233_spill] sm:$0xff] }
 0x2f7   : > { %10836 = vst [vmem:[#allocation166_spill] sm:$0xff] %v9299_v52  ;;  %v3125_v3 = vadd.f32 %v3117_v51, %v3101_v13  ;;  %v3448_v53 = vadd.f32 %v3440_v55, %v3424_v24  ;;  %v3464_v36 = vmul.f32 %v3527_v19, %v10451_v43  ;;  %v4668_v63 = vmul.f32 %v4660_v45, %v10711_v21  ;;  %v10837_v31 = vld [vmem:[#allocation247_spill] sm:$0xff]  ;;  %v10840_v27 = vld [vmem:[#allocation246_spill] sm:$0xff]  ;;  %v10842_v13 = vld [vmem:[#allocation236_spill] sm:$0xff] }
 0x2f8   : > { %v3156_v15 = vld [vmem:[#allocation3 + $0x28] sm:$0xff]  ;;  %v3664_v33 = vadd.f32 %v10838_v35, %v10837_v31  ;;  %v1400_v5 = vadd.f32 %v10839_v37, %v9008_v29  ;;  %v3005_v62 = vadd.f32 %v10841_v11, %v10840_v27  ;;  %v3488_v19 = vmul.f32 %v3480_v6, %v10633_v47  ;;  %v9322_v6 = vld [vmem:[#allocation2 + $0x271] sm:$0xff] }
 0x2f9   : > { %v3164_v10 = vadd.f32 %v8992_v12, %v3156_v15  ;;  %3551 = vst.msk [vmem:[#allocation3 + $0x28] sm:$0xff] %vm491_vm0, %v3543_v9  ;;  %v3141_v32 = vadd.f32 %v3133_v61, %v3125_v3  ;;  %v3472_v51 = vadd.f32 %v3464_v36, %v3448_v53  ;;  %v4684_v4 = vmul.f32 %v9297_v1, %v10713_v44  ;;  %v3504_v25 = vld [vmem:[#allocation2 + $0x1c1] sm:$0xff]  ;;  %v10843_v3 = vld [vmem:[#allocation248_spill] sm:$0xff]  ;;  %v10844_v15 = vld [vmem:[#allocation237_spill] sm:$0xff] }
 0x2fa   : > { %v4708_v28 = vmul.f32 %v9299_v52, %v10804_v46  ;;  %v1418_v60 = vmax.f32 %v1400_v5, 0.0  ;;  %v3029_v40 = vadd.f32 %v10842_v13, %v3005_v62  ;;  %v3735_v58 = vadd.f32 %v3727_v48, %v3711_v14  ;;  %v3528_v9 = vld [vmem:[#allocation2 + $0x1c2] sm:$0xff]  ;;  %v9332_v5 = vld [vmem:[#allocation2 + $0x272] sm:$0xff] }
 0x2fb   : > { %v3172_v24 = vmax.f32 %v3164_v10, 0.0  ;;  %3149 = vst.msk [vmem:[#allocation3 + $0x30] sm:$0xff] %vm491_vm0, %v3141_v32  ;;  %v3496_v55 = vadd.f32 %v3488_v19, %v3472_v51  ;;  %v3704_v61 = vmul.f32 %v9244_v42, %v10290_v56  ;;  %v3688_v53 = vadd.f32 %v10843_v3, %v3664_v33  ;;  %v10845_v42 = vld [vmem:[#allocation195_spill] sm:$0xff]  ;;  %v10846_v27 = vld [vmem:[#allocation193_spill] sm:$0xff] }
 0x2fc   : > { %v1426_v36 = vmin.f32 %v1418_v60, 6.0  ;;  %v3053_v31 = vadd.f32 %v10844_v15, %v3029_v40  ;;  %v3070_v35 = vmul.f32 %v9312_v49, %v10582_v30  ;;  %v9329_v37 = vmul.f32 %v4660_v45, %v10809_v41  ;;  %v10850_v15 = vld [vmem:[#allocation184_spill] sm:$0xff] }
 0x2fd   : > { %v3180_v14 = vmin.f32 %v3172_v24, 6.0  ;;  %v3512_v48 = vmul.f32 %v3504_v25, %v10500_v50  ;;  %v3401_v11 = vadd.f32 %v10846_v27, %v10845_v42  ;;  %v4692_v62 = vadd.f32 %v4684_v4, %v4668_v63  ;;  %v4659_v63 = vld [vmem:[#allocation2 + $0x350] sm:$0xff] }
 0x2fe   : > { %v9338_v33 = vmul.f32 %v9297_v1, %v10815_v20  ;;  %v9342_v10 = vmul.f32 %v9299_v52, %v10820_v57  ;;  %1435 = vst.msk [vmem:[#allocation2 + $0x381] sm:$0xff] %vm491_vm0, %v1426_v36  ;;  %v3094_v32 = vmul.f32 %v9322_v6, %v10583_v17  ;;  %v9348_v51 = vmul.f32 %v4660_v45, %v10582_v30  ;;  %v9351_v4 = vld [vmem:[#allocation2 + $0x351] sm:$0xff]  ;;  %v4223_v1 = vld [vmem:[#allocation2 + $0x1e1] sm:$0xff] }
 0x2ff   : > { %5613 = vmatmul.mubr.msk.f32.gmra.mrb[28].mxu1 %vm491_vm0, %v3180_v14  ;;  %v3759_v19 = vadd.f32 %v3751_v39, %v3735_v58  ;;  %v3520_v25 = vadd.f32 %v3512_v48, %v3496_v55  ;;  %v3536_v60 = vmul.f32 %v3528_v9, %v10503_v23  ;;  %1460 = vst.msk [vmem:[#allocation2 + $0x381] sm:$0xff] %vm491_vm0, %v10782_v16  ;;  %v9360_v39 = vld [vmem:[#allocation2 + $0x352] sm:$0xff]  ;;  %v5826_v14 = vld [vmem:[#allocation2 + $0x1c1] sm:$0xff] }
 0x300   : > { %10847 = vst [vmem:[#allocation171_spill] sm:$0xff] %v9338_v33  ;;  %10848 = vst [vmem:[#allocation168_spill] sm:$0xff] %v9342_v10  ;;  %v3767_v13 = vld [vmem:[#allocation3 + $0x28] sm:$0xff]  ;;  %v3712_v40 = vadd.f32 %v3704_v61, %v3688_v53  ;;  %v3728_v24 = vmul.f32 %v9248_v59, %v10481_v38  ;;  %v3078_v3 = vadd.f32 %v3070_v35, %v3053_v31  ;;  %v3481_v35 = vld [vmem:[#allocation2 + $0x1d0] sm:$0xff] }
 0x301   : > { %10849 = vst [vmem:[#allocation102_spill] sm:$0xff] %v9348_v51  ;;  %v3118_v45 = vmul.f32 %v9332_v5, %v10584_v7  ;;  %v3775_v36 = vadd.f32 %v3767_v13, %v3759_v19  ;;  %v3544_v58 = vadd.f32 %v3536_v60, %v3520_v25  ;;  %v3425_v55 = vadd.f32 %v10850_v15, %v3401_v11  ;;  %v3134_v11 = vld [vmem:[#allocation3 + $0x38] sm:$0xff]  ;;  %v10852_v10 = vld [vmem:[#allocation250_spill] sm:$0xff] }
 0x302   : > { %v3441_v48 = vmul.f32 %v5826_v14, %v10558_v54  ;;  %v9364_v42 = vadd.f32 %v4708_v28, %v4692_v62  ;;  %v4667_v61 = vmul.f32 %v4659_v63, %v10711_v21  ;;  %v4683_v59 = vmul.f32 %v9351_v4, %v10713_v44  ;;  %v3157_v53 = vld [vmem:[#allocation3 + $0x30] sm:$0xff] }
 0x303   : > { %v3102_v31 = vadd.f32 %v3094_v32, %v3078_v3  ;;  %3783 = vst.msk [vmem:[#allocation3 + $0x28] sm:$0xff] %vm491_vm0, %v3775_v36  ;;  %v4802_v27 = vmul.f32 %v4659_v63, %v10582_v30  ;;  %v3165_v19 = vadd.f32 %v8992_v12, %v3157_v53  ;;  %3552 = vst.msk [vmem:[#allocation3 + $0x30] sm:$0xff] %vm491_vm0, %v3544_v58  ;;  %v3505_v3 = vld [vmem:[#allocation2 + $0x1d1] sm:$0xff]  ;;  %v10853_v58 = vld [vmem:[#allocation238_spill] sm:$0xff] }
 0x304   : > { %10851 = vst [vmem:[#allocation89_spill] sm:$0xff] %v9364_v42  ;;  %v3449_v25 = vadd.f32 %v3441_v48, %v3425_v55  ;;  %v3465_v28 = vmul.f32 %v3528_v9, %v10451_v43  ;;  %v4707_v62 = vmul.f32 %v9360_v39, %v10804_v46  ;;  %v3736_v60 = vadd.f32 %v3728_v24, %v3712_v40  ;;  %v3529_v53 = vld [vmem:[#allocation2 + $0x1d2] sm:$0xff]  ;;  %v10854_v40 = vld [vmem:[#allocation111_spill] sm:$0xff] }
 0x305   : > { %v3752_v32 = vmul.f32 %v9259_v2, %v10487_v0  ;;  %v3126_v13 = vadd.f32 %v3118_v45, %v3102_v31  ;;  %v3173_v36 = vmax.f32 %v3165_v19, 0.0  ;;  %v3489_v14 = vmul.f32 %v3481_v35, %v10633_v47 }
 0x306   : > { %v3473_v15 = vadd.f32 %v3465_v28, %v3449_v25  ;;  %v3641_v52 = vadd.f32 %v10853_v58, %v10852_v10  ;;  %v4691_v55 = vadd.f32 %v4683_v59, %v4667_v61  ;;  %v4730_v9 = vmul.f32 %v4659_v63, %v10809_v41  ;;  %v9382_v48 = vld [vmem:[#allocation2 + $0x380] sm:$0xff] }
 0x307   : > { %v3142_v33 = vadd.f32 %v3134_v11, %v3126_v13  ;;  %v1395_v24 = vadd.f32 %v9008_v29, %v10854_v40  ;;  %v4810_v2 = vadd.f32 %v4802_v27, %v9294_v26  ;;  %v4826_v45 = vmul.f32 %v9351_v4, %v10583_v17  ;;  %v9390_v25 = vld [vmem:[#allocation2 + $0x381] sm:$0xff] }
 0x308   : > { %v3181_v31 = vmin.f32 %v3173_v36, 6.0  ;;  %v3513_v35 = vmul.f32 %v3505_v3, %v10500_v50  ;;  %v3760_v19 = vadd.f32 %v3752_v32, %v3736_v60  ;;  %10855 = vst [vmem:[#allocation91_spill] sm:$0xff] %v9390_v25  ;;  %v3537_v10 = vmul.f32 %v3529_v53, %v10503_v23  ;;  %v10856_v27 = vld [vmem:[#allocation239_spill] sm:$0xff]  ;;  %v10858_v13 = vld [vmem:[#allocation138_spill] sm:$0xff]  ;;  %v10860_v36 = vld [vmem:[#allocation132_spill] sm:$0xff] }
 0x309   : > { %3150 = vst.msk [vmem:[#allocation3 + $0x38] sm:$0xff] %vm491_vm0, %v3142_v33  ;;  %v3705_v63 = vmul.f32 %v9312_v49, %v10290_v56  ;;  %v3729_v61 = vmul.f32 %v9322_v6, %v10481_v38  ;;  %v4670_v26 = vmul.f32 %v9382_v48, %v10711_v21  ;;  %v3497_v59 = vadd.f32 %v3489_v14, %v3473_v15  ;;  %v10857_v33 = vld [vmem:[#allocation106_spill] sm:$0xff]  ;;  %v10859_v49 = vld [vmem:[#allocation71_spill] sm:$0xff] }
 0x30a   : > { %5615 = vmatprep.mubr.msk.f32.mxu1 %vm491_vm0, %v3181_v31  ;;  %v3665_v11 = vadd.f32 %v10856_v27, %v3641_v52  ;;  %v1417_v28 = vmax.f32 %v1395_v24, 0.0  ;;  %v3768_v60 = vld [vmem:[#allocation3 + $0x30] sm:$0xff]  ;;  %v1410_v32 = vadd.f32 %v10857_v33, %v9008_v29  ;;  %v1405_v3 = vadd.f32 %v9008_v29, %v10858_v13  ;;  %v9408_v6 = vld [vmem:[#allocation2 + $0x2a0] sm:$0xff] }
 0x30b   : > { %v3891_v53 = vadd.f32 %v10860_v36, %v10859_v49  ;;  %v3932_v58 = vmul.f32 %v9408_v6, %v10582_v30  ;;  %v9412_v40 = vld [vmem:[#allocation2 + $0x2a1] sm:$0xff]  ;;  %v3776_v52 = vadd.f32 %v3768_v60, %v3760_v19  ;;  %v4686_v14 = vmul.f32 %v9390_v25, %v10713_v44  ;;  %v10861_v31 = vld [vmem:[#allocation240_spill] sm:$0xff]  ;;  %v10862_v36 = vld [vmem:[#allocation133_spill] sm:$0xff] }
 0x30c   : > { %v9414_v15 = vld [vmem:[#allocation2 + $0x2a2] sm:$0xff]  ;;  %v3521_v24 = vadd.f32 %v3513_v35, %v3497_v59  ;;  %v3689_v27 = vadd.f32 %v10861_v31, %v3665_v11  ;;  %v1425_v33 = vmin.f32 %v1417_v28, 6.0  ;;  %v1420_v13 = vmax.f32 %v1410_v32, 0.0 }
 0x30d   : > { %v4207_v29 = vld [vmem:[#allocation2 + $0x1e0] sm:$0xff]  ;;  %v1419_v49 = vmax.f32 %v1405_v3, 0.0  ;;  %v3915_v51 = vadd.f32 %v10862_v36, %v3891_v53  ;;  %3784 = vst.msk [vmem:[#allocation3 + $0x30] sm:$0xff] %vm491_vm0, %v3776_v52  ;;  %v3956_v19 = vmul.f32 %v9412_v40, %v10583_v17  ;;  %v3980_v60 = vmul.f32 %v9414_v15, %v10584_v7  ;;  %v10864_v32 = vld [vmem:[#allocation27_spill] sm:$0xff] }
 0x30e   : > { %v3545_v42 = vadd.f32 %v3537_v10, %v3521_v24  ;;  %v3713_v8 = vadd.f32 %v3705_v63, %v3689_v27  ;;  %v9425_v35 = vld [vmem:[#allocation2 + $0x382] sm:$0xff]  ;;  %1434 = vst.msk [vmem:[#allocation2 + $0x371] sm:$0xff] %vm491_vm0, %v1425_v33  ;;  %v1428_v59 = vmin.f32 %v1420_v13, 6.0  ;;  %v4215_v3 = vmul.f32 %v4207_v29, %v10864_v32  ;;  %v10865_v24 = vld [vmem:[#allocation28_spill] sm:$0xff] }
 0x30f   : > { %10863 = vst [vmem:[#allocation170_spill] sm:$0xff] %v9425_v35  ;;  %v1427_v11 = vmin.f32 %v1419_v49, 6.0  ;;  %v3940_v28 = vadd.f32 %v3932_v58, %v3915_v51  ;;  %v4247_v53 = vld [vmem:[#allocation2 + $0x1e2] sm:$0xff]  ;;  %v4715_v31 = vadd.f32 %v4707_v62, %v4691_v55  ;;  %v4738_v10 = vadd.f32 %v4730_v9, %v9275_v18  ;;  %1459 = vst.msk [vmem:[#allocation2 + $0x371] sm:$0xff] %vm491_vm0, %v10782_v16 }
 0x310   : > { %v4754_v63 = vmul.f32 %v9351_v4, %v10815_v20  ;;  %v3158_v52 = vld [vmem:[#allocation3 + $0x38] sm:$0xff]  ;;  %v4231_v27 = vmul.f32 %v4223_v1, %v10865_v24  ;;  %v4834_v36 = vadd.f32 %v4826_v45, %v4810_v2  ;;  %v4850_v33 = vmul.f32 %v9360_v39, %v10584_v7  ;;  %1437 = vst.msk [vmem:[#allocation2 + $0x3a1] sm:$0xff] %vm491_vm0, %v1428_v59  ;;  %v3997_v29 = vld [vmem:[#allocation3 + $0x8] sm:$0xff] }
 0x311   : > { %v3166_v51 = vadd.f32 %v8992_v12, %v3158_v52  ;;  %3553 = vst.msk [vmem:[#allocation3 + $0x38] sm:$0xff] %vm491_vm0, %v3545_v42  ;;  %1436 = vst.msk [vmem:[#allocation2 + $0x391] sm:$0xff] %vm491_vm0, %v1427_v11  ;;  %v3964_v18 = vadd.f32 %v3956_v19, %v3940_v28  ;;  %v4710_v4 = vmul.f32 %v9425_v35, %v10804_v46  ;;  %v3996_v12 = vld [vmem:[#allocation3] sm:$0xff]  ;;  %v10866_v42 = vld [vmem:[#allocation29_spill] sm:$0xff] }
 0x312   : > { %v3753_v62 = vmul.f32 %v9332_v5, %v10487_v0  ;;  %1462 = vst.msk [vmem:[#allocation2 + $0x3a1] sm:$0xff] %vm491_vm0, %v10782_v16  ;;  %1461 = vst.msk [vmem:[#allocation2 + $0x391] sm:$0xff] %vm491_vm0, %v10782_v16  ;;  %v4239_v1 = vadd.f32 %v4231_v27, %v4215_v3  ;;  %v4255_v55 = vmul.f32 %v4247_v53, %v10866_v42  ;;  %v10867_v19 = vld [vmem:[#allocation30_spill] sm:$0xff]  ;;  %v10868_v16 = vld [vmem:[#allocation44_spill] sm:$0xff] }
 0x313   : > { %v4694_v9 = vadd.f32 %v4686_v14, %v4670_v26  ;;  %v3174_v2 = vmax.f32 %v3166_v51, 0.0  ;;  %v3737_v45 = vadd.f32 %v3729_v61, %v3713_v8  ;;  %v3988_v58 = vadd.f32 %v3980_v60, %v3964_v18  ;;  %v4319_v14 = vld [vmem:[#allocation2 + $0x1f2] sm:$0xff]  ;;  %v4343_v28 = vld [vmem:[#allocation2 + $0x200] sm:$0xff]  ;;  %v10871_v3 = vld [vmem:[#allocation87_spill] sm:$0xff] }
 0x314   : > { %v9451_v13 = vadd.f32 %v9329_v37, %v4715_v31  ;;  %v9453_v49 = vadd.f32 %v4754_v63, %v4738_v10  ;;  %v9457_v5 = vmul.f32 %v9360_v39, %v10820_v57  ;;  %v4527_v59 = vadd.f32 %v10868_v16, %v10867_v19  ;;  %v4367_v32 = vld [vmem:[#allocation2 + $0x201] sm:$0xff]  ;;  %v5828_v27 = vld [vmem:[#allocation2 + $0x1f1] sm:$0xff] }
 0x315   : > { %v9461_v11 = vadd.f32 %v4850_v33, %v4834_v36  ;;  %v9465_v26 = vmul.f32 %v9382_v48, %v10809_v41  ;;  %v3182_v8 = vmin.f32 %v3174_v2, 6.0  ;;  %v4004_v61 = vadd.f32 %v3996_v12, %v3988_v58  ;;  %v4391_v33 = vld [vmem:[#allocation2 + $0x202] sm:$0xff]  ;;  %v10876_v16 = vld [vmem:[#allocation92_spill] sm:$0xff] }
 0x316   : > { %v9469_v37 = vmul.f32 %v9390_v25, %v10815_v20  ;;  %v9473_v39 = vmul.f32 %v9425_v35, %v10820_v57  ;;  %v4263_v60 = vadd.f32 %v4255_v55, %v4239_v1  ;;  %v4005_v53 = vadd.f32 %v3997_v29, %v10871_v3  ;;  %v4661_v52 = vld [vmem:[#allocation2 + $0x370] sm:$0xff]  ;;  %v10881_v3 = vld [vmem:[#allocation141_spill] sm:$0xff] }
 0x317   : > { %v9476_v31 = vadd.f32 %v4710_v4, %v4694_v9  ;;  %v9480_v10 = vmul.f32 %v9382_v48, %v10582_v30  ;;  %5616 = vmatmul.mubr.msk.f32.gmra.mrb[30].mxu1 %vm491_vm0, %v3182_v8  ;;  %v3761_v63 = vadd.f32 %v3753_v62, %v3737_v45  ;;  %v9483_v24 = vld [vmem:[#allocation2 + $0x371] sm:$0xff]  ;;  %4012 = vst.msk [vmem:[#allocation3] sm:$0xff] %vm491_vm0, %v4004_v61  ;;  %v10875_v45 = vld [vmem:[#allocation203_spill] sm:$0xff] }
 0x318   : > { %10869 = vst [vmem:[#allocation66_spill] sm:$0xff] %v9469_v37  ;;  %10870 = vst [vmem:[#allocation55_spill] sm:$0xff] %v9473_v39  ;;  %v4303_v36 = vmul.f32 %v5828_v27, %v10558_v54  ;;  %v3769_v51 = vld [vmem:[#allocation3 + $0x38] sm:$0xff]  ;;  %v4327_v18 = vmul.f32 %v4319_v14, %v10451_v43  ;;  %v10873_v4 = vld [vmem:[#allocation84_spill] sm:$0xff]  ;;  %v4567_v48 = vmul.f32 %v9408_v6, %v10290_v56 }
 0x319   : > { %10872 = vst [vmem:[#allocation56_spill] sm:$0xff] %v9480_v10  ;;  %v4551_v12 = vadd.f32 %v10873_v4, %v4527_v59  ;;  %v4784_v62 = vadd.f32 %v9281_v22, %v9277_v34  ;;  %4013 = vst.msk [vmem:[#allocation3 + $0x8] sm:$0xff] %vm491_vm0, %v4005_v53  ;;  %v3777_v1 = vadd.f32 %v3769_v51, %v3761_v63  ;;  %v9498_v2 = vld [vmem:[#allocation2 + $0x372] sm:$0xff]  ;;  %v10883_v63 = vld [vmem:[#allocation82_spill] sm:$0xff] }
 0x31a   : > { %v4669_v42 = vmul.f32 %v4661_v52, %v10711_v21  ;;  %v4685_v55 = vmul.f32 %v9483_v24, %v10713_v44  ;;  %v4732_v9 = vmul.f32 %v4661_v52, %v10809_v41  ;;  %10874 = vst [vmem:[#allocation169_spill] sm:$0xff] %v9498_v2  ;;  %v4287_v58 = vadd.f32 %v10875_v45, %v4263_v60  ;;  %v10877_v8 = vld [vmem:[#allocation68_spill] sm:$0xff]  ;;  %v10878_v61 = vld [vmem:[#allocation49_spill] sm:$0xff]  ;;  %v9521_v60 = vld [vmem:[#allocation2 + $0x3a0] sm:$0xff] }
 0x31b   : > { %v4351_v29 = vmul.f32 %v4343_v28, %v10633_v47  ;;  %v4375_v6 = vmul.f32 %v4367_v32, %v10500_v50  ;;  %v9504_v34 = vmul.f32 %v4391_v33, %v10503_v23  ;;  %3785 = vst.msk [vmem:[#allocation3 + $0x38] sm:$0xff] %vm491_vm0, %v3777_v1  ;;  %v9509_v22 = vmul.f32 %v9412_v40, %v10481_v38  ;;  %v9523_v28 = vld [vmem:[#allocation2 + $0x3a1] sm:$0xff]  ;;  %v10882_v53 = vld [vmem:[#allocation101_spill] sm:$0xff] }
 0x31c   : > { %v9513_v19 = vmul.f32 %v9414_v15, %v10487_v0  ;;  %v9517_v59 = vmul.f32 %v10876_v16, %v10583_v17  ;;  %v4384_v14 = vadd.f32 %v10878_v61, %v10877_v8  ;;  %10879 = vst [vmem:[#allocation83_spill] sm:$0xff] %v9521_v60  ;;  %10880 = vst [vmem:[#allocation72_spill] sm:$0xff] %v9523_v28  ;;  %v10884_v27 = vld [vmem:[#allocation86_spill] sm:$0xff]  ;;  %v10885_v1 = vld [vmem:[#allocation89_spill] sm:$0xff] }
 0x31d   : > { %v9525_v32 = vadd.f32 %v4567_v48, %v4551_v12  ;;  %v9528_v40 = vadd.f32 %v10881_v3, %v4784_v62  ;;  %v9532_v15 = vmul.f32 %v10882_v53, %v10584_v7  ;;  %v3893_v33 = vadd.f32 %v10884_v27, %v10883_v63  ;;  %v4663_v48 = vld [vmem:[#allocation2 + $0x390] sm:$0xff]  ;;  %v10889_v63 = vld [vmem:[#allocation34_spill] sm:$0xff] }
 0x31e   : > { %v4693_v51 = vadd.f32 %v4685_v55, %v4669_v42  ;;  %v4709_v4 = vmul.f32 %v9498_v2, %v10804_v46  ;;  %v4740_v45 = vadd.f32 %v4732_v9, %v10885_v1  ;;  %v4756_v12 = vmul.f32 %v9483_v24, %v10815_v20  ;;  %v9541_v16 = vld [vmem:[#allocation2 + $0x391] sm:$0xff]  ;;  %v4020_v61 = vld [vmem:[#allocation3] sm:$0xff] }
 0x31f   : > { %v9545_v62 = vmul.f32 %v9498_v2, %v10820_v57  ;;  %v9548_v8 = vmul.f32 %v4661_v52, %v10582_v30  ;;  %v4311_v42 = vadd.f32 %v4303_v36, %v4287_v58  ;;  %v9550_v55 = vld [vmem:[#allocation2 + $0x2c0] sm:$0xff]  ;;  %v9556_v3 = vmul.f32 %v9521_v60, %v10809_v41  ;;  %v9579_v2 = vld [vmem:[#allocation2 + $0x392] sm:$0xff] }
 0x320   : > { %v3934_v9 = vmul.f32 %v9550_v55, %v10582_v30  ;;  %v9560_v53 = vmul.f32 %v9523_v28, %v10815_v20  ;;  %v9565_v52 = vld [vmem:[%s10111_s6] ss:$0 sm:$0xff]  ;;  %v4021_v58 = vld [vmem:[#allocation3 + $0x8] sm:$0xff]  ;;  %v4408_v27 = vadd.f32 %v10889_v63, %v4384_v14  ;;  %v4687_v28 = vmul.f32 %v9541_v16, %v10713_v44  ;;  %v10890_v14 = vld [vmem:[#allocation85_spill] sm:$0xff] }
 0x321   : > { %10886 = vst [vmem:[#allocation157_spill] sm:$0xff] %v9545_v62  ;;  %10887 = vst [vmem:[#allocation158_spill] sm:$0xff] %v9556_v3  ;;  %v4028_v36 = vadd.f32 %v9565_v52, %v4020_v61  ;;  %v9569_v1 = vld [vmem:[#allocation2 + $0x2c1] sm:$0xff]  ;;  %v4671_v3 = vmul.f32 %v4663_v48, %v10711_v21  ;;  %v4029_v60 = vadd.f32 %v9565_v52, %v4021_v58  ;;  %v5831_v58 = vld [vmem:[#allocation2 + $0x211] sm:$0xff] }
 0x322   : > { %10888 = vst [vmem:[#allocation112_spill] sm:$0xff] %v9560_v53  ;;  %v9571_v39 = vld [vmem:[#allocation2 + $0x2c2] sm:$0xff]  ;;  %v4335_v53 = vadd.f32 %v4327_v18, %v4311_v42  ;;  %v4717_v37 = vadd.f32 %v4709_v4, %v4693_v51  ;;  %v9577_v35 = vadd.f32 %v4756_v12, %v4740_v45  ;;  %4416 = vst.msk [vmem:[#allocation3 + $0x8] sm:$0xff] %vm491_vm0, %v4408_v27  ;;  %v4321_v18 = vld [vmem:[#allocation2 + $0x212] sm:$0xff] }
 0x323   : > { %v4036_v61 = vmax.f32 %v4028_v36, 0.0  ;;  %v3917_v63 = vadd.f32 %v10890_v14, %v3893_v33  ;;  %v4037_v25 = vmax.f32 %v4029_v60, 0.0  ;;  %v3958_v21 = vmul.f32 %v9569_v1, %v10583_v17  ;;  %v10891_v4 = vld [vmem:[#allocation197_spill] sm:$0xff]  ;;  %v10892_v45 = vld [vmem:[#allocation196_spill] sm:$0xff]  ;;  %v4345_v27 = vld [vmem:[#allocation2 + $0x220] sm:$0xff] }
 0x324   : > { %v4359_v10 = vadd.f32 %v4351_v29, %v4335_v53  ;;  %v3982_v44 = vmul.f32 %v9571_v39, %v10584_v7  ;;  %v4265_v12 = vadd.f32 %v10892_v45, %v10891_v4  ;;  %v4305_v36 = vmul.f32 %v5831_v58, %v10558_v54  ;;  %v10898_v58 = vld [vmem:[#allocation90_spill] sm:$0xff] }
 0x325   : > { %v4044_v42 = vmin.f32 %v4036_v61, 6.0  ;;  %v3942_v51 = vadd.f32 %v3934_v9, %v3917_v63  ;;  %v4711_v33 = vmul.f32 %v9579_v2, %v10804_v46  ;;  %v4734_v29 = vmul.f32 %v4663_v48, %v10809_v41  ;;  %v10893_v61 = vld [vmem:[#allocation80_spill] sm:$0xff] }
 0x326   : > { %v4383_v60 = vadd.f32 %v4375_v6, %v4359_v10  ;;  %v4045_v53 = vmin.f32 %v4037_v25, 6.0  ;;  %v4695_v14 = vadd.f32 %v4687_v28, %v4671_v3  ;;  %v4289_v9 = vadd.f32 %v10893_v61, %v4265_v12  ;;  %v3998_v10 = vld [vmem:[#allocation3 + $0x10] sm:$0xff]  ;;  %v4369_v6 = vld [vmem:[#allocation2 + $0x221] sm:$0xff]  ;;  %v10896_v12 = vld [vmem:[#allocation97_spill] sm:$0xff] }
 0x327   : > { %5630 = vmatprep.mubr.msk.f32.mxu0 %vm491_vm0, %v4044_v42  ;;  %v3966_v62 = vadd.f32 %v3958_v21, %v3942_v51  ;;  %v4329_v63 = vmul.f32 %v4321_v18, %v10451_v43  ;;  %v9598_v4 = vmul.f32 %v9541_v16, %v10815_v20  ;;  %v9602_v46 = vmul.f32 %v9579_v2, %v10820_v57  ;;  %v10894_v18 = vld [vmem:[#allocation45_spill] sm:$0xff]  ;;  %v10895_v20 = vld [vmem:[#allocation146_spill] sm:$0xff] }
 0x328   : > { %v9605_v41 = vmul.f32 %v4663_v48, %v10582_v30  ;;  %v4407_v25 = vadd.f32 %v9504_v34, %v4383_v60  ;;  %5631 = vmatmul.mubr.msk.f32.vlgmr.msra.gmra.mrb[32].mxu0 %vm491_vm0, %v4045_v53  ;;  %v4313_v3 = vadd.f32 %v4305_v36, %v4289_v9  ;;  %v4353_v21 = vmul.f32 %v4345_v27, %v10633_v47  ;;  %v10899_v61 = vld [vmem:[#allocation98_spill] sm:$0xff] }
 0x329   : > { %v3990_v28 = vadd.f32 %v3982_v44, %v3966_v62  ;;  %v4529_v42 = vadd.f32 %v10895_v20, %v10894_v18  ;;  %v9613_v51 = vadd.f32 %v9465_v26, %v4717_v37  ;;  %v9616_v45 = vadd.f32 %v4734_v29, %v9476_v31  ;;  %v4632_v48 = vld [vmem:[#allocation3 + $0x8] sm:$0xff]  ;;  %v10897_v62 = vld [vmem:[#allocation88_spill] sm:$0xff] }
 0x32a   : > { %4415 = vst.msk [vmem:[#allocation3] sm:$0xff] %vm491_vm0, %v4407_v25  ;;  %v4599_v34 = vadd.f32 %v9509_v22, %v9525_v32  ;;  %v3870_v44 = vadd.f32 %v10897_v62, %v10896_v12  ;;  %v4640_v36 = vadd.f32 %v4632_v48, %v10898_v58  ;;  %v4337_v53 = vadd.f32 %v4329_v63, %v4313_v3  ;;  %v9625_v26 = vld [vmem:[#allocation2 + $0x2d1] sm:$0xff]  ;;  %v4393_v29 = vld [vmem:[#allocation2 + $0x222] sm:$0xff] }
 0x32b   : > { %v4006_v60 = vadd.f32 %v3998_v10, %v3990_v28  ;;  %v4377_v27 = vmul.f32 %v4369_v6, %v10500_v50  ;;  %v9627_v37 = vadd.f32 %v4711_v33, %v4695_v14  ;;  %v4833_v31 = vadd.f32 %v9517_v59, %v9528_v40  ;;  %v5832_v32 = vld [vmem:[#allocation2 + $0x2d0] sm:$0xff]  ;;  %v10901_v6 = vld [vmem:[#allocation39_spill] sm:$0xff]  ;;  %v10902_v59 = vld [vmem:[#allocation50_spill] sm:$0xff] }
 0x32c   : > { %v3894_v22 = vadd.f32 %v10899_v61, %v3870_v44  ;;  %v3935_v9 = vmul.f32 %v5832_v32, %v10582_v30  ;;  %4648 = vst.msk [vmem:[#allocation3 + $0x8] sm:$0xff] %vm491_vm0, %v4640_v36  ;;  %v4361_v63 = vadd.f32 %v4353_v21, %v4337_v53  ;;  %v10900_v25 = vld [vmem:[#allocation36_spill] sm:$0xff]  ;;  %v4569_v33 = vmul.f32 %v9550_v55, %v10290_v56  ;;  %v10903_v3 = vld [vmem:[#allocation47_spill] sm:$0xff] }
 0x32d   : > { %4014 = vst.msk [vmem:[#allocation3 + $0x10] sm:$0xff] %vm491_vm0, %v4006_v60  ;;  %v4553_v10 = vadd.f32 %v10900_v25, %v4529_v42  ;;  %v9638_v14 = vld [vmem:[#allocation2 + $0x2d2] sm:$0xff]  ;;  %v4266_v40 = vadd.f32 %v10902_v59, %v10901_v6  ;;  %v4623_v28 = vadd.f32 %v9513_v19, %v4599_v34  ;;  %v3959_v20 = vmul.f32 %v9625_v26, %v10583_v17  ;;  %v5833_v48 = vld [vmem:[#allocation2 + $0x221] sm:$0xff] }
 0x32e   : > { %v3918_v18 = vadd.f32 %v10903_v3, %v3894_v22  ;;  %v4306_v21 = vmul.f32 %v5833_v48, %v10558_v54  ;;  %v4385_v12 = vadd.f32 %v4377_v27, %v4361_v63  ;;  %v4401_v42 = vmul.f32 %v4393_v29, %v10503_v23  ;;  %v10904_v62 = vld [vmem:[#allocation211_spill] sm:$0xff]  ;;  %v4346_v58 = vld [vmem:[#allocation2 + $0x230] sm:$0xff]  ;;  %v10906_v25 = vld [vmem:[#allocation54_spill] sm:$0xff] }
 0x32f   : > { %v4290_v55 = vadd.f32 %v10904_v62, %v4266_v40  ;;  %v4330_v44 = vmul.f32 %v4393_v29, %v10451_v43  ;;  %v9651_v36 = vadd.f32 %v9532_v15, %v4833_v31  ;;  %v4786_v19 = vadd.f32 %v9457_v5, %v9453_v49  ;;  %v10905_v63 = vld [vmem:[#allocation43_spill] sm:$0xff]  ;;  %v4370_v5 = vld [vmem:[#allocation2 + $0x231] sm:$0xff] }
 0x330   : > { %v3943_v34 = vadd.f32 %v3935_v9, %v3918_v18  ;;  %v3983_v60 = vmul.f32 %v9638_v14, %v10584_v7  ;;  %v4577_v61 = vadd.f32 %v4569_v33, %v4553_v10  ;;  %v4593_v27 = vmul.f32 %v9569_v1, %v10481_v38  ;;  %v10907_v59 = vld [vmem:[#allocation109_spill] sm:$0xff]  ;;  %v9667_v18 = vld [vmem:[#allocation2 + $0x2e1] sm:$0xff]  ;;  %v10910_v62 = vld [vmem:[#allocation148_spill] sm:$0xff] }
 0x331   : > { %v4631_v53 = vld [vmem:[#allocation3] sm:$0xff]  ;;  %v4314_v22 = vadd.f32 %v4306_v21, %v4290_v55  ;;  %v4506_v29 = vadd.f32 %v10906_v25, %v10905_v63  ;;  %v4617_v15 = vmul.f32 %v9571_v39, %v10487_v0  ;;  %v4354_v49 = vmul.f32 %v4346_v58, %v10633_v47  ;;  %v3999_v10 = vld [vmem:[#allocation3 + $0x18] sm:$0xff]  ;;  %v10911_v55 = vld [vmem:[#allocation180_spill] sm:$0xff] }
 0x332   : > { %v4639_v6 = vadd.f32 %v4631_v53, %v4623_v28  ;;  %v3967_v31 = vadd.f32 %v3959_v20, %v3943_v34  ;;  %v4409_v9 = vadd.f32 %v4401_v42, %v4385_v12  ;;  %v4827_v40 = vmul.f32 %v10907_v59, %v10583_v17  ;;  %v10908_v3 = vld [vmem:[#allocation53_spill] sm:$0xff]  ;;  %v10909_v21 = vld [vmem:[#allocation102_spill] sm:$0xff]  ;;  %v10912_v25 = vld [vmem:[#allocation52_spill] sm:$0xff] }
 0x333   : > { %v4338_v33 = vadd.f32 %v4330_v44, %v4314_v22  ;;  %v4530_v1 = vadd.f32 %v10908_v3, %v4506_v29  ;;  %v4866_v28 = vld [vmem:[#allocation3 + $0x8] sm:$0xff]  ;;  %v4811_v39 = vadd.f32 %v10909_v21, %v4786_v19  ;;  %v3895_v58 = vadd.f32 %v10911_v55, %v10910_v62  ;;  %v9673_v12 = vld [vmem:[#allocation2 + $0x2e0] sm:$0xff] }
 0x334   : > { %4647 = vst.msk [vmem:[#allocation3] sm:$0xff] %vm491_vm0, %v4639_v6  ;;  %v4022_v48 = vld [vmem:[#allocation3 + $0x10] sm:$0xff]  ;;  %v3991_v20 = vadd.f32 %v3983_v60, %v3967_v31  ;;  %v3936_v42 = vmul.f32 %v9673_v12, %v10582_v30  ;;  %v4874_v44 = vadd.f32 %v4866_v28, %v9461_v11  ;;  %v4601_v53 = vadd.f32 %v4593_v27, %v4577_v61  ;;  %v9681_v63 = vld [vmem:[#allocation2 + $0x2e2] sm:$0xff] }
 0x335   : > { %v4030_v34 = vadd.f32 %v9565_v52, %v4022_v48  ;;  %4417 = vst.msk [vmem:[#allocation3 + $0x10] sm:$0xff] %vm491_vm0, %v4409_v9  ;;  %v4378_v22 = vmul.f32 %v4370_v5, %v10500_v50  ;;  %v4362_v60 = vadd.f32 %v4354_v49, %v4338_v33  ;;  %v3919_v29 = vadd.f32 %v10912_v25, %v3895_v58  ;;  %v4394_v11 = vld [vmem:[#allocation2 + $0x232] sm:$0xff]  ;;  %v10913_v59 = vld [vmem:[#allocation147_spill] sm:$0xff]  ;;  %v10916_v33 = vld [vmem:[#allocation210_spill] sm:$0xff] }
 0x336   : > { %v4007_v19 = vadd.f32 %v3999_v10, %v3991_v20  ;;  %v3960_v6 = vmul.f32 %v9667_v18, %v10583_v17  ;;  %4882 = vst.msk [vmem:[#allocation3 + $0x8] sm:$0xff] %vm491_vm0, %v4874_v44  ;;  %v4554_v3 = vadd.f32 %v10913_v59, %v4530_v1  ;;  %v4570_v9 = vmul.f32 %v5832_v32, %v10290_v56  ;;  %v10914_v61 = vld [vmem:[#allocation171_spill] sm:$0xff]  ;;  %v10915_v10 = vld [vmem:[#allocation212_spill] sm:$0xff]  ;;  %v10917_v1 = vld [vmem:[#allocation166_spill] sm:$0xff] }
 0x337   : > { %v4038_v31 = vmax.f32 %v4030_v34, 0.0  ;;  %v4763_v27 = vadd.f32 %v10914_v61, %v9451_v13  ;;  %v3944_v5 = vadd.f32 %v3936_v42, %v3919_v29  ;;  %v3984_v49 = vmul.f32 %v9681_v63, %v10584_v7  ;;  %v5835_v48 = vld [vmem:[#allocation2 + $0x231] sm:$0xff]  ;;  %v4347_v13 = vld [vmem:[#allocation2 + $0x240] sm:$0xff] }
 0x338   : > { %4015 = vst.msk [vmem:[#allocation3 + $0x18] sm:$0xff] %vm491_vm0, %v4007_v19  ;;  %v4267_v28 = vadd.f32 %v10916_v33, %v10915_v10  ;;  %v4307_v21 = vmul.f32 %v5835_v48, %v10558_v54  ;;  %v4835_v62 = vadd.f32 %v4827_v40, %v4811_v39  ;;  %v4851_v32 = vmul.f32 %v10917_v1, %v10584_v7  ;;  %v10918_v42 = vld [vmem:[#allocation232_spill] sm:$0xff]  ;;  %v4000_v61 = vld [vmem:[#allocation3 + $0x20] sm:$0xff]  ;;  %v10923_v1 = vld [vmem:[#allocation151_spill] sm:$0xff] }
 0x339   : > { %v4046_v20 = vmin.f32 %v4038_v31, 6.0  ;;  %v4402_v55 = vmul.f32 %v4394_v11, %v10503_v23  ;;  %v4386_v58 = vadd.f32 %v4378_v22, %v4362_v60  ;;  %v3968_v44 = vadd.f32 %v3960_v6, %v3944_v5  ;;  %v10919_v39 = vld [vmem:[#allocation168_spill] sm:$0xff]  ;;  %v4371_v10 = vld [vmem:[#allocation2 + $0x241] sm:$0xff] }
 0x33a   : > { %v4291_v34 = vadd.f32 %v10918_v42, %v4267_v28  ;;  %v4331_v19 = vmul.f32 %v4394_v11, %v10451_v43  ;;  %v4625_v29 = vadd.f32 %v4617_v15, %v4601_v53  ;;  %v4578_v59 = vadd.f32 %v4570_v9, %v4554_v3  ;;  %v10920_v3 = vld [vmem:[#allocation95_spill] sm:$0xff]  ;;  %v10921_v9 = vld [vmem:[#allocation60_spill] sm:$0xff] }
 0x33b   : > { %v4865_v25 = vld [vmem:[#allocation3] sm:$0xff]  ;;  %5633 = vmatprep.mubr.msk.f32.mxu0 %vm491_vm0, %v4046_v20  ;;  %v4594_v40 = vmul.f32 %v9625_v26, %v10481_v38  ;;  %v4787_v31 = vadd.f32 %v10919_v39, %v4763_v27  ;;  %v3992_v60 = vadd.f32 %v3984_v49, %v3968_v44  ;;  %v4355_v5 = vmul.f32 %v4347_v13, %v10633_v47  ;;  %v9728_v42 = vld [vmem:[#allocation2 + $0x2f1] sm:$0xff] }
 0x33c   : > { %v4873_v33 = vadd.f32 %v4865_v25, %v9651_v36  ;;  %v4633_v22 = vld [vmem:[#allocation3 + $0x10] sm:$0xff]  ;;  %v4315_v6 = vadd.f32 %v4307_v21, %v4291_v34  ;;  %v9710_v11 = vadd.f32 %v9598_v4, %v9616_v45  ;;  %v4859_v53 = vadd.f32 %v4851_v32, %v4835_v62  ;;  %v4395_v20 = vld [vmem:[#allocation2 + $0x242] sm:$0xff]  ;;  %v10926_v39 = vld [vmem:[#allocation157_spill] sm:$0xff] }
 0x33d   : > { %v4641_v15 = vadd.f32 %v4633_v22, %v4625_v29  ;;  %v4531_v26 = vadd.f32 %v10921_v9, %v10920_v3  ;;  %v4410_v27 = vadd.f32 %v4402_v55, %v4386_v58  ;;  %v4008_v28 = vadd.f32 %v4000_v61, %v3992_v60  ;;  %v10922_v62 = vld [vmem:[#allocation136_spill] sm:$0xff] }
 0x33e   : > { %4881 = vst.msk [vmem:[#allocation3] sm:$0xff] %vm491_vm0, %v4873_v33  ;;  %v4339_v48 = vadd.f32 %v4331_v19, %v4315_v6  ;;  %v4379_v36 = vmul.f32 %v4371_v10, %v10500_v50  ;;  %v4602_v21 = vadd.f32 %v4594_v40, %v4578_v59  ;;  %v4618_v4 = vmul.f32 %v9638_v14, %v10487_v0  ;;  %v10924_v14 = vld [vmem:[#allocation137_spill] sm:$0xff]  ;;  %v9734_v29 = vld [vmem:[#allocation2 + $0x2f0] sm:$0xff]  ;;  %v10927_v10 = vld [vmem:[#allocation235_spill] sm:$0xff] }
 0x33f   : > { %4649 = vst.msk [vmem:[#allocation3 + $0x10] sm:$0xff] %vm491_vm0, %v4641_v15  ;;  %v4023_v49 = vld [vmem:[#allocation3 + $0x18] sm:$0xff]  ;;  %v4828_v45 = vmul.f32 %v9483_v24, %v10583_v17  ;;  %v3872_v32 = vadd.f32 %v10923_v1, %v10922_v62  ;;  %v4812_v13 = vadd.f32 %v9548_v8, %v4787_v31  ;;  %4016 = vst.msk [vmem:[#allocation3 + $0x20] sm:$0xff] %vm491_vm0, %v4008_v28  ;;  %v10928_v33 = vld [vmem:[#allocation231_spill] sm:$0xff] }
 0x340   : > { %v4031_v55 = vadd.f32 %v9565_v52, %v4023_v49  ;;  %4418 = vst.msk [vmem:[#allocation3 + $0x18] sm:$0xff] %vm491_vm0, %v4410_v27  ;;  %v4363_v58 = vadd.f32 %v4355_v5, %v4339_v48  ;;  %v4403_v44 = vmul.f32 %v4395_v20, %v10503_v23  ;;  %v4555_v34 = vadd.f32 %v10924_v14, %v4531_v26  ;;  %v10925_v19 = vld [vmem:[#allocation149_spill] sm:$0xff]  ;;  %v10929_v6 = vld [vmem:[#allocation175_spill] sm:$0xff]  ;;  %v10930_v27 = vld [vmem:[#allocation222_spill] sm:$0xff] }
 0x341   : > { %v4571_v24 = vmul.f32 %v9673_v12, %v10290_v56  ;;  %v3896_v25 = vadd.f32 %v10925_v19, %v3872_v32  ;;  %v3937_v59 = vmul.f32 %v9734_v29, %v10582_v30  ;;  %v4788_v31 = vadd.f32 %v10926_v39, %v9577_v35  ;;  %v9740_v61 = vld [vmem:[#allocation2 + $0x2f2] sm:$0xff]  ;;  %v5837_v15 = vld [vmem:[#allocation2 + $0x241] sm:$0xff] }
 0x342   : > { %v4039_v8 = vmax.f32 %v4031_v55, 0.0  ;;  %v4387_v40 = vadd.f32 %v4379_v36, %v4363_v58  ;;  %v4268_v22 = vadd.f32 %v10928_v33, %v10927_v10  ;;  %v4626_v60 = vadd.f32 %v4618_v4, %v4602_v21  ;;  %v4348_v48 = vld [vmem:[#allocation2 + $0x250] sm:$0xff]  ;;  %v10931_v49 = vld [vmem:[#allocation91_spill] sm:$0xff]  ;;  %v10934_v19 = vld [vmem:[#allocation37_spill] sm:$0xff] }
 0x343   : > { %v3920_v12 = vadd.f32 %v10929_v6, %v3896_v25  ;;  %v3961_v5 = vmul.f32 %v9728_v42, %v10583_v17  ;;  %v4308_v3 = vmul.f32 %v5837_v15, %v10558_v54  ;;  %v4595_v26 = vmul.f32 %v9667_v18, %v10481_v38  ;;  %v10932_v55 = vld [vmem:[#allocation56_spill] sm:$0xff]  ;;  %v10933_v14 = vld [vmem:[#allocation79_spill] sm:$0xff]  ;;  %v10936_v15 = vld [vmem:[#allocation170_spill] sm:$0xff] }
 0x344   : > { %v4047_v9 = vmin.f32 %v4039_v8, 6.0  ;;  %v4292_v35 = vadd.f32 %v10930_v27, %v4268_v22  ;;  %v4332_v28 = vmul.f32 %v4395_v20, %v10451_v43  ;;  %v4579_v36 = vadd.f32 %v4571_v24, %v4555_v34  ;;  %v10935_v34 = vld [vmem:[#allocation169_spill] sm:$0xff]  ;;  %v10937_v27 = vld [vmem:[#allocation154_spill] sm:$0xff] }
 0x345   : > { %v4829_v21 = vmul.f32 %v10931_v49, %v10583_v17  ;;  %v3945_v4 = vadd.f32 %v3937_v59, %v3920_v12  ;;  %v3985_v62 = vmul.f32 %v9740_v61, %v10584_v7  ;;  %v4411_v32 = vadd.f32 %v4403_v44, %v4387_v40  ;;  %v4001_v44 = vld [vmem:[#allocation3 + $0x28] sm:$0xff] }
 0x346   : > { %v4867_v1 = vld [vmem:[#allocation3 + $0x10] sm:$0xff]  ;;  %5634 = vmatmul.mubr.msk.f32.gmra.mrb[34].mxu0 %vm491_vm0, %v4047_v9  ;;  %v4813_v58 = vadd.f32 %v10932_v55, %v4788_v31  ;;  %v4316_v18 = vadd.f32 %v4308_v3, %v4292_v35  ;;  %v4508_v25 = vadd.f32 %v10934_v19, %v10933_v14  ;;  %v4852_v24 = vmul.f32 %v10935_v34, %v10584_v7  ;;  %v4024_v39 = vld [vmem:[#allocation3 + $0x20] sm:$0xff]  ;;  %v10941_v14 = vld [vmem:[#allocation63_spill] sm:$0xff] }
 0x347   : > { %v4875_v20 = vadd.f32 %v4867_v1, %v4859_v53  ;;  %v4634_v8 = vld [vmem:[#allocation3 + $0x18] sm:$0xff]  ;;  %v3969_v59 = vadd.f32 %v3961_v5, %v3945_v4  ;;  %v4356_v10 = vmul.f32 %v4348_v48, %v10633_v47  ;;  %v4836_v22 = vadd.f32 %v4828_v45, %v4812_v13  ;;  %4419 = vst.msk [vmem:[#allocation3 + $0x20] sm:$0xff] %vm491_vm0, %v4411_v32  ;;  %v9770_v9 = vld [vmem:[#allocation2 + $0x301] sm:$0xff]  ;;  %v9772_v45 = vpop.f32.mrb[16].mxu1 }
 0x348   : > { %v4642_v33 = vadd.f32 %v4634_v8, %v4626_v60  ;;  %v4032_v6 = vadd.f32 %v9565_v52, %v4024_v39  ;;  %v4340_v40 = vadd.f32 %v4332_v28, %v4316_v18  ;;  %v4372_v31 = vld [vmem:[#allocation2 + $0x251] sm:$0xff]  ;;  %v4603_v53 = vadd.f32 %v4595_v26, %v4579_v36  ;;  %v10938_v28 = vld [vmem:[#allocation58_spill] sm:$0xff]  ;;  %v10939_v48 = vld [vmem:[#allocation59_spill] sm:$0xff]  ;;  %v9778_v36 = vpop.f32.mrb[17].mxu1 }
 0x349   : > { %4883 = vst.msk [vmem:[#allocation3 + $0x10] sm:$0xff] %vm491_vm0, %v4875_v20  ;;  %v4619_v12 = vmul.f32 %v9681_v63, %v10487_v0  ;;  %v4853_v5 = vmul.f32 %v10936_v15, %v10584_v7  ;;  %v3993_v3 = vadd.f32 %v3985_v62, %v3969_v59  ;;  %v4837_v60 = vadd.f32 %v4829_v21, %v4813_v58  ;;  %v5838_v62 = vld [vmem:[#allocation2 + $0x300] sm:$0xff]  ;;  %v4396_v18 = vld [vmem:[#allocation2 + $0x252] sm:$0xff]  ;;  %v10942_v34 = vld [vmem:[#allocation223_spill] sm:$0xff] }
 0x34a   : > { %4650 = vst.msk [vmem:[#allocation3 + $0x18] sm:$0xff] %vm491_vm0, %v4642_v33  ;;  %v4040_v13 = vmax.f32 %v4032_v6, 0.0  ;;  %v4532_v35 = vadd.f32 %v10937_v27, %v4508_v25  ;;  %v3897_v26 = vadd.f32 %v10939_v48, %v10938_v28  ;;  %v4364_v49 = vadd.f32 %v4356_v10, %v4340_v40  ;;  %v9782_v32 = vld [vmem:[#allocation2 + $0x302] sm:$0xff]  ;;  %v10943_v39 = vld [vmem:[#allocation221_spill] sm:$0xff]  ;;  %v10944_v6 = vld [vmem:[#allocation152_spill] sm:$0xff] }
 0x34b   : > { %v4009_v63 = vadd.f32 %v4001_v44, %v3993_v3  ;;  %v4380_v4 = vmul.f32 %v4372_v31, %v10500_v50  ;;  %v3938_v1 = vmul.f32 %v5838_v62, %v10582_v30  ;;  %v10940_v21 = vld [vmem:[#allocation66_spill] sm:$0xff]  ;;  %v3962_v25 = vmul.f32 %v9770_v9, %v10583_v17  ;;  %v5839_v10 = vld [vmem:[#allocation2 + $0x251] sm:$0xff]  ;;  %v10945_v15 = vld [vmem:[#allocation251_spill] sm:$0xff] }
 0x34c   : > { %v4048_v55 = vmin.f32 %v4040_v13, 6.0  ;;  %v4765_v58 = vadd.f32 %v10940_v21, %v9613_v51  ;;  %v3921_v19 = vadd.f32 %v10941_v14, %v3897_v26  ;;  %v4860_v20 = vadd.f32 %v4852_v24, %v4836_v22  ;;  %v4349_v22 = vld [vmem:[#allocation2 + $0x260] sm:$0xff]  ;;  %v10946_v48 = vld [vmem:[#allocation55_spill] sm:$0xff]  ;;  %v10948_v14 = vld [vmem:[#allocation140_spill] sm:$0xff] }
 0x34d   : > { %v4627_v8 = vadd.f32 %v4619_v12, %v4603_v53  ;;  %4017 = vst.msk [vmem:[#allocation3 + $0x28] sm:$0xff] %vm491_vm0, %v4009_v63  ;;  %v4269_v59 = vadd.f32 %v10943_v39, %v10942_v34  ;;  %v4309_v33 = vmul.f32 %v5839_v10, %v10558_v54  ;;  %v4556_v44 = vadd.f32 %v10944_v6, %v4532_v35  ;;  %v9815_v39 = vld [vmem:[#allocation2 + $0x310] sm:$0xff]  ;;  %v10949_v6 = vld [vmem:[#allocation167_spill] sm:$0xff] }
 0x34e   : > { %5636 = vmatprep.mubr.msk.f32.mxu0 %vm491_vm0, %v4048_v55  ;;  %v4572_v51 = vmul.f32 %v9734_v29, %v10290_v56  ;;  %v3946_v40 = vadd.f32 %v3938_v1, %v3921_v19  ;;  %v3986_v24 = vmul.f32 %v9782_v32, %v10584_v7  ;;  %v4635_v31 = vld [vmem:[#allocation3 + $0x20] sm:$0xff]  ;;  %v4388_v53 = vadd.f32 %v4380_v4, %v4364_v49  ;;  %v4002_v1 = vld [vmem:[#allocation3 + $0x30] sm:$0xff]  ;;  %v10947_v4 = vld [vmem:[#allocation165_spill] sm:$0xff] }
 0x34f   : > { %v4404_v12 = vmul.f32 %v4396_v18, %v10503_v23  ;;  %v4293_v3 = vadd.f32 %v10945_v15, %v4269_v59  ;;  %v4333_v13 = vmul.f32 %v4396_v18, %v10451_v43  ;;  %v4643_v27 = vadd.f32 %v4635_v31, %v4627_v8  ;;  %v4373_v49 = vld [vmem:[#allocation2 + $0x261] sm:$0xff] }
 0x350   : > { %v4861_v28 = vadd.f32 %v4853_v5, %v4837_v60  ;;  %v4789_v35 = vadd.f32 %v10946_v48, %v4765_v58  ;;  %v3970_v26 = vadd.f32 %v3962_v25, %v3946_v40  ;;  %v4596_v29 = vmul.f32 %v9728_v42, %v10481_v38  ;;  %v9822_v40 = vld [vmem:[#allocation2 + $0x311] sm:$0xff] }
 0x351   : > { %v4868_v63 = vld [vmem:[#allocation3 + $0x18] sm:$0xff]  ;;  %v4317_v55 = vadd.f32 %v4309_v33, %v4293_v3  ;;  %v4357_v21 = vmul.f32 %v4349_v22, %v10633_v47  ;;  %v4533_v19 = vadd.f32 %v10948_v14, %v10947_v4  ;;  %4651 = vst.msk [vmem:[#allocation3 + $0x20] sm:$0xff] %vm491_vm0, %v4643_v27  ;;  %v4580_v18 = vadd.f32 %v4572_v51, %v4556_v44  ;;  %v10950_v44 = vld [vmem:[#allocation131_spill] sm:$0xff]  ;;  %v10953_v3 = vld [vmem:[#allocation252_spill] sm:$0xff] }
 0x352   : > { %v4876_v34 = vadd.f32 %v4868_v63, %v4860_v20  ;;  %v4620_v5 = vmul.f32 %v9740_v61, %v10487_v0  ;;  %v3994_v60 = vadd.f32 %v3986_v24, %v3970_v26  ;;  %v4412_v58 = vadd.f32 %v4404_v12, %v4388_v53  ;;  %v4397_v61 = vld [vmem:[#allocation2 + $0x262] sm:$0xff]  ;;  %v9837_v63 = vld [vmem:[#allocation2 + $0x312] sm:$0xff] }
 0x353   : > { %v4830_v42 = vmul.f32 %v9541_v16, %v10583_v17  ;;  %v4854_v25 = vmul.f32 %v9579_v2, %v10584_v7  ;;  %v4341_v8 = vadd.f32 %v4333_v13, %v4317_v55  ;;  %v4814_v59 = vadd.f32 %v9605_v41, %v4789_v35  ;;  %v10951_v24 = vld [vmem:[#allocation99_spill] sm:$0xff]  ;;  %v10954_v13 = vld [vmem:[#allocation249_spill] sm:$0xff] }
 0x354   : > { %4884 = vst.msk [vmem:[#allocation3 + $0x18] sm:$0xff] %vm491_vm0, %v4876_v34  ;;  %v4025_v20 = vld [vmem:[#allocation3 + $0x28] sm:$0xff]  ;;  %v4010_v10 = vadd.f32 %v4002_v1, %v3994_v60  ;;  %v4381_v33 = vmul.f32 %v4373_v49, %v10500_v50  ;;  %v3874_v51 = vadd.f32 %v10950_v44, %v10949_v6  ;;  %v4557_v22 = vadd.f32 %v10951_v24, %v4533_v19  ;;  %v10955_v55 = vld [vmem:[#allocation93_spill] sm:$0xff] }
 0x355   : > { %v4033_v16 = vadd.f32 %v9565_v52, %v4025_v20  ;;  %4420 = vst.msk [vmem:[#allocation3 + $0x28] sm:$0xff] %vm491_vm0, %v4412_v58  ;;  %v4365_v2 = vadd.f32 %v4357_v21, %v4341_v8  ;;  %v4573_v31 = vmul.f32 %v5838_v62, %v10290_v56  ;;  %v4604_v53 = vadd.f32 %v4596_v29, %v4580_v18  ;;  %v10952_v41 = vld [vmem:[#allocation107_spill] sm:$0xff]  ;;  %v10956_v49 = vld [vmem:[#allocation241_spill] sm:$0xff]  ;;  %v4350_v8 = vld [vmem:[#allocation2 + $0x270] sm:$0xff] }
 0x356   : > { %4018 = vst.msk [vmem:[#allocation3 + $0x30] sm:$0xff] %vm491_vm0, %v4010_v10  ;;  %v3898_v12 = vadd.f32 %v10952_v41, %v3874_v51  ;;  %v3939_v15 = vmul.f32 %v9815_v39, %v10582_v30  ;;  %v4270_v27 = vadd.f32 %v10954_v13, %v10953_v3  ;;  %v4405_v35 = vmul.f32 %v4397_v61, %v10503_v23  ;;  %v5840_v62 = vld [vmem:[#allocation2 + $0x261] sm:$0xff]  ;;  %v4374_v3 = vld [vmem:[#allocation2 + $0x271] sm:$0xff] }
 0x357   : > { %v4041_v48 = vmax.f32 %v4033_v16, 0.0  ;;  %v3963_v26 = vmul.f32 %v9822_v40, %v10583_v17  ;;  %v4310_v29 = vmul.f32 %v5840_v62, %v10558_v54  ;;  %v4389_v1 = vadd.f32 %v4381_v33, %v4365_v2  ;;  %v10957_v6 = vld [vmem:[#allocation83_spill] sm:$0xff]  ;;  %v10960_v41 = vld [vmem:[#allocation158_spill] sm:$0xff]  ;;  %v4398_v62 = vld [vmem:[#allocation2 + $0x272] sm:$0xff] }
 0x358   : > { %v3922_v21 = vadd.f32 %v10955_v55, %v3898_v12  ;;  %v4294_v4 = vadd.f32 %v10956_v49, %v4270_v27  ;;  %v4334_v14 = vmul.f32 %v4397_v61, %v10451_v43  ;;  %v4869_v19 = vld [vmem:[#allocation3 + $0x20] sm:$0xff]  ;;  %v4838_v18 = vadd.f32 %v4830_v42, %v4814_v59  ;;  %v10959_v61 = vld [vmem:[#allocation32_spill] sm:$0xff] }
 0x359   : > { %v4049_v34 = vmin.f32 %v4041_v48, 6.0  ;;  %v4581_v60 = vadd.f32 %v4573_v31, %v4557_v22  ;;  %v4597_v58 = vmul.f32 %v9770_v9, %v10481_v38  ;;  %v4877_v20 = vadd.f32 %v4869_v19, %v4861_v28  ;;  %v10958_v59 = vld [vmem:[#allocation94_spill] sm:$0xff]  ;;  %v4890_v31 = vld [vmem:[#allocation3 + $0x8] sm:$0xff] }
 0x35a   : > { %v3947_v10 = vadd.f32 %v3939_v15, %v3922_v21  ;;  %v3987_v54 = vmul.f32 %v9837_v63, %v10584_v7  ;;  %v4318_v33 = vadd.f32 %v4310_v29, %v4294_v4  ;;  %v4807_v44 = vmul.f32 %v10957_v6, %v10582_v30  ;;  %v4889_v22 = vld [vmem:[#allocation3] sm:$0xff]  ;;  %v4003_v15 = vld [vmem:[#allocation3 + $0x38] sm:$0xff] }
 0x35b   : > { %5637 = vmatmul.mubr.msk.f32.gmra.mrb[36].mxu0 %vm491_vm0, %v4049_v34  ;;  %v4628_v43 = vadd.f32 %v4620_v5, %v4604_v53  ;;  %v4790_v42 = vadd.f32 %v9602_v46, %v9710_v11  ;;  %v4510_v51 = vadd.f32 %v10959_v61, %v10958_v59  ;;  %4885 = vst.msk [vmem:[#allocation3 + $0x20] sm:$0xff] %vm491_vm0, %v4877_v20  ;;  %v10962_v29 = vld [vmem:[#allocation74_spill] sm:$0xff]  ;;  %v5308_v61 = vld [vmem:[%s6293_s27 + $0x48] sm:$0xff] }
 0x35c   : > { %v4636_v9 = vld [vmem:[#allocation3 + $0x28] sm:$0xff]  ;;  %v4413_v28 = vadd.f32 %v4405_v35, %v4389_v1  ;;  %v3971_v16 = vadd.f32 %v3963_v26, %v3947_v10  ;;  %v4342_v2 = vadd.f32 %v4334_v14, %v4318_v33  ;;  %v4358_v24 = vmul.f32 %v4350_v8, %v10633_v47  ;;  %v10961_v47 = vld [vmem:[#allocation72_spill] sm:$0xff] }
 0x35d   : > { %v9858_v12 = vadd.f32 %v10960_v41, %v9627_v37  ;;  %v4644_v5 = vadd.f32 %v4636_v9, %v4628_v43  ;;  %v4026_v53 = vld [vmem:[#allocation3 + $0x30] sm:$0xff]  ;;  %v4605_v46 = vadd.f32 %v4597_v58, %v4581_v60  ;;  %v4621_v11 = vmul.f32 %v9782_v32, %v10487_v0  ;;  %v9875_v58 = vld [vmem:[%s10113_s8] ss:$0 sm:$0xff]  ;;  %v4775_v8 = vld [vmem:[#allocation2 + $0x3a2] sm:$0xff] }
 0x35e   : > { %v4862_v13 = vadd.f32 %v4854_v25, %v4838_v18  ;;  %v4034_v27 = vadd.f32 %v9565_v52, %v4026_v53  ;;  %4421 = vst.msk [vmem:[#allocation3 + $0x30] sm:$0xff] %vm491_vm0, %v4413_v28  ;;  %v4831_v48 = vmul.f32 %v10961_v47, %v10583_v17  ;;  %v3995_v35 = vadd.f32 %v3987_v54, %v3971_v16  ;;  %v4891_v26 = vld [vmem:[#allocation3 + $0x10] sm:$0xff]  ;;  %v4892_v25 = vld [vmem:[#allocation3 + $0x18] sm:$0xff]  ;;  %v10963_v33 = vld [vmem:[#allocation139_spill] sm:$0xff] }
 0x35f   : > { %4652 = vst.msk [vmem:[#allocation3 + $0x28] sm:$0xff] %vm491_vm0, %v4644_v5  ;;  %v4815_v37 = vadd.f32 %v4807_v44, %v4790_v42  ;;  %v4534_v1 = vadd.f32 %v10962_v29, %v4510_v51  ;;  %v4897_v32 = vadd.f32 %v9565_v52, %v4889_v22  ;;  %v4898_v55 = vadd.f32 %v9565_v52, %v4890_v31  ;;  %v5307_v16 = vld [vmem:[%s6293_s27 + $0x40] sm:$0xff] }
 0x360   : > { %v4042_v21 = vmax.f32 %v4034_v27, 0.0  ;;  %v4011_v49 = vadd.f32 %v4003_v15, %v3995_v35  ;;  %v4366_v4 = vadd.f32 %v4358_v24, %v4342_v2  ;;  %v4382_v14 = vmul.f32 %v4374_v3, %v10500_v50  ;;  %v10964_v27 = vld [vmem:[#allocation112_spill] sm:$0xff] }
 0x361   : > { %v4629_v19 = vadd.f32 %v4621_v11, %v4605_v46  ;;  %v4905_v34 = vmax.f32 %v4897_v32, 0.0  ;;  %v4906_v18 = vmax.f32 %v4898_v55, 0.0  ;;  %v4899_v60 = vadd.f32 %v9565_v52, %v4891_v26 }
 0x362   : > { %v4050_v20 = vmin.f32 %v4042_v21, 6.0  ;;  %4019 = vst.msk [vmem:[#allocation3 + $0x38] sm:$0xff] %vm491_vm0, %v4011_v49  ;;  %v4406_v10 = vmul.f32 %v4398_v62, %v10503_v23  ;;  %v4574_v50 = vmul.f32 %v9815_v39, %v10290_v56  ;;  %v4900_v54 = vadd.f32 %v9565_v52, %v4892_v25  ;;  %v4893_v59 = vld [vmem:[#allocation3 + $0x20] sm:$0xff] }
 0x363   : > { %v4558_v6 = vadd.f32 %v10963_v33, %v4534_v1  ;;  %v4913_v44 = vmin.f32 %v4905_v34, 6.0  ;;  %v4914_v43 = vmin.f32 %v4906_v18, 6.0  ;;  %v4907_v42 = vmax.f32 %v4899_v60, 0.0  ;;  %v4824_v1 = vld [vmem:[#allocation2 + $0x3b1] sm:$0xff] }
 0x364   : > { %5639 = vmatprep.mubr.msk.f32.mxu0 %vm491_vm0, %v4050_v20  ;;  %v4390_v51 = vadd.f32 %v4382_v14, %v4366_v4  ;;  %v4908_v9 = vmax.f32 %v4900_v54, 0.0  ;;  %v4901_v28 = vadd.f32 %v9565_v52, %v4893_v59  ;;  %v2410_v23 = vadd.f32 %v9772_v45, %v9875_v58  ;;  %v4848_v14 = vld [vmem:[#allocation2 + $0x3b2] sm:$0xff] }
 0x365   : > { %v4783_v56 = vmul.f32 %v4775_v8, %v10820_v57  ;;  %v4637_v39 = vld [vmem:[#allocation3 + $0x30] sm:$0xff]  ;;  %v4855_v2 = vmul.f32 %v4775_v8, %v10584_v7  ;;  %5654 = vmatprep.mubr.msk.f32.mxu1 %vm491_vm0, %v4913_v44  ;;  %v4915_v24 = vmin.f32 %v4907_v42, 6.0  ;;  %v2405_v22 = vadd.f32 %v9875_v58, %v9778_v36  ;;  %v5310_v18 = vld [vmem:[%s6293_s27 + $0x58] sm:$0xff] }
 0x366   : > { %v4870_v31 = vld [vmem:[#allocation3 + $0x28] sm:$0xff]  ;;  %v4645_v41 = vadd.f32 %v4637_v39, %v4629_v19  ;;  %5655 = vmatmul.mubr.msk.f32.vlgmr.msra.gmra.mrb[32].mxu1 %vm491_vm0, %v4914_v43  ;;  %v4916_v5 = vmin.f32 %v4908_v9, 6.0  ;;  %v4909_v53 = vmax.f32 %v4901_v28, 0.0  ;;  %v2453_v45 = vadd.f32 %v5308_v61, %v2410_v23  ;;  %v5309_v20 = vld [vmem:[%s6293_s27 + $0x50] sm:$0xff] }
 0x367   : > { %v4878_v46 = vadd.f32 %v4870_v31, %v4862_v13  ;;  %v4839_v11 = vadd.f32 %v4831_v48, %v4815_v37  ;;  %v4598_v57 = vmul.f32 %v9822_v40, %v10481_v38  ;;  %5657 = vmatprep.mubr.msk.f32.mxu1 %vm491_vm0, %v4915_v24  ;;  %v2452_v15 = vadd.f32 %v5307_v16, %v2405_v22  ;;  %v4800_v40 = vld [vmem:[#allocation2 + $0x3b0] sm:$0xff]  ;;  %v5587_v34 = vpop.f32.mrb[18].mxu1  ;;  %v5311_v31 = vld [vmem:[%s6293_s27 + $0x60] sm:$0xff] }
 0x368   : > { %4653 = vst.msk [vmem:[#allocation3 + $0x30] sm:$0xff] %vm491_vm0, %v4645_v41  ;;  %v4414_v3 = vadd.f32 %v4406_v10, %v4390_v51  ;;  %v4582_v36 = vadd.f32 %v4574_v50, %v4558_v6  ;;  %v4767_v47 = vadd.f32 %v10964_v27, %v9858_v12  ;;  %v4917_v35 = vmin.f32 %v4909_v53, 6.0  ;;  %v2414_v8 = vpop.f32.mrb[19].mxu1 }
 0x369   : > { %2461 = vst.msk [vmem:[%s9903_s22 + $0x8] sm:$0xff] %vm679_vm2, %v2453_v45  ;;  %v4027_v38 = vld [vmem:[#allocation3 + $0x38] sm:$0xff]  ;;  %2460 = vst.msk [vmem:[%s9903_s22] sm:$0xff] %vm679_vm2, %v2452_v15  ;;  %v4863_v12 = vadd.f32 %v4855_v2, %v4839_v11  ;;  %v4622_v48 = vmul.f32 %v9837_v63, %v10487_v0  ;;  %v4808_v29 = vmul.f32 %v4800_v40, %v10582_v30  ;;  %v5312_v2 = vld [vmem:[%s6293_s27 + $0x68] sm:$0xff] }
 0x36a   : > { %4886 = vst.msk [vmem:[#allocation3 + $0x28] sm:$0xff] %vm491_vm0, %v4878_v46  ;;  %v4035_v13 = vadd.f32 %v9565_v52, %v4027_v38  ;;  %4422 = vst.msk [vmem:[#allocation3 + $0x38] sm:$0xff] %vm491_vm0, %v4414_v3  ;;  %5658 = vmatmul.mubr.msk.f32.gmra.mrb[34].mxu1 %vm491_vm0, %v4916_v5  ;;  %v4606_v37 = vadd.f32 %v4598_v57, %v4582_v36  ;;  %v4791_v62 = vadd.f32 %v4783_v56, %v4767_v47  ;;  %v5314_v45 = vld [vmem:[%s6293_s27 + $0x78] sm:$0xff]  ;;  %v5313_v57 = vld [vmem:[%s6293_s27 + $0x70] sm:$0xff] }
 0x36b   : > { %5660 = vmatprep.mubr.msk.f32.mxu1 %vm491_vm0, %v4917_v35  ;;  %v4832_v4 = vmul.f32 %v4824_v1, %v10583_v17  ;;  %v2420_v60 = vadd.f32 %v5587_v34, %v9875_v58  ;;  %v2415_v50 = vadd.f32 %v9875_v58, %v2414_v8  ;;  %v4856_v54 = vmul.f32 %v4848_v14, %v10584_v7  ;;  %v5324_v47 = vld [vmem:[%s6293_s27 + $0x88] sm:$0xff]  ;;  %v5323_v40 = vld [vmem:[%s6293_s27 + $0x80] sm:$0xff]  ;;  %v5325_v1 = vld [vmem:[%s6293_s27 + $0x90] sm:$0xff] }
 0x36c   : > { %v4043_v26 = vmax.f32 %v4035_v13, 0.0  ;;  %v4630_v21 = vadd.f32 %v4622_v48, %v4606_v37  ;;  %v4816_v49 = vadd.f32 %v4808_v29, %v4791_v62  ;;  %v5326_v37 = vld [vmem:[%s6293_s27 + $0x98] sm:$0xff] }
 0x36d   : > { %v2455_v33 = vadd.f32 %v5310_v18, %v2420_v60  ;;  %v2454_v44 = vadd.f32 %v5309_v20, %v2415_v50  ;;  %v5329_v20 = vld [vmem:[%s6293_s27 + $0xb0] sm:$0xff] }
 0x36e   : > { %v4051_v32 = vmin.f32 %v4043_v26, 6.0  ;;  %v4840_v17 = vadd.f32 %v4832_v4, %v4816_v49  ;;  %v5328_v49 = vld [vmem:[%s6293_s27 + $0xa8] sm:$0xff] }
 0x36f   : > { %v4871_v55 = vld [vmem:[#allocation3 + $0x30] sm:$0xff]  ;;  %2463 = vst.msk [vmem:[%s9903_s22 + $0x18] sm:$0xff] %vm679_vm2, %v2455_v33  ;;  %2462 = vst.msk [vmem:[%s9903_s22 + $0x10] sm:$0xff] %vm679_vm2, %v2454_v44  ;;  %v5348_v33 = vld [vmem:[%s6293_s27 + $0xc8] sm:$0xff] }
 0x370   : > { %v4879_v25 = vadd.f32 %v4871_v55, %v4863_v12  ;;  %5640 = vmatmul.mubr.msk.f32.gmra.mrb[38].mxu0 %vm491_vm0, %v4051_v32  ;;  %v4864_v43 = vadd.f32 %v4856_v54, %v4840_v17 }
 0x371   : > { %v4894_v0 = vld [vmem:[#allocation3 + $0x28] sm:$0xff]  ;;  %v4638_v63 = vld [vmem:[#allocation3 + $0x38] sm:$0xff] }
 0x372   : > { %v4902_v19 = vadd.f32 %v9565_v52, %v4894_v0  ;;  %4887 = vst.msk [vmem:[#allocation3 + $0x30] sm:$0xff] %vm491_vm0, %v4879_v25  ;;  %v4646_v30 = vadd.f32 %v4638_v63, %v4630_v21  ;;  %v5327_v63 = vld [vmem:[%s6293_s27 + $0xa0] sm:$0xff] }
 0x374   : > { %v4910_v10 = vmax.f32 %v4902_v19, 0.0  ;;  %4654 = vst.msk [vmem:[#allocation3 + $0x38] sm:$0xff] %vm491_vm0, %v4646_v30  ;;  %v5330_v30 = vld [vmem:[%s6293_s27 + $0xb8] sm:$0xff] }
 0x376   : > { %v4918_v6 = vmin.f32 %v4910_v10, 6.0 }
 0x378   : > { %5661 = vmatmul.mubr.msk.f32.gmra.mrb[36].mxu1 %vm491_vm0, %v4918_v6 }
 0x379   : > { %v4895_v42 = vld [vmem:[#allocation3 + $0x30] sm:$0xff] }
 0x37a   : > { %v4903_v59 = vadd.f32 %v9565_v52, %v4895_v42 }
 0x37b   : > { %v4872_v61 = vld [vmem:[#allocation3 + $0x38] sm:$0xff] }
 0x37c   : > { %v4880_v51 = vadd.f32 %v4872_v61, %v4864_v43  ;;  %v4911_v9 = vmax.f32 %v4903_v59, 0.0  ;;  %v5347_v43 = vld [vmem:[%s6293_s27 + $0xc0] sm:$0xff] }
 0x37e   : > { %4888 = vst.msk [vmem:[#allocation3 + $0x38] sm:$0xff] %vm491_vm0, %v4880_v51  ;;  %v4919_v7 = vmin.f32 %v4911_v9, 6.0  ;;  %v5350_v9 = vld [vmem:[%s6293_s27 + $0xd8] sm:$0xff] }
 0x380   : > { %5663 = vmatprep.mubr.msk.f32.mxu1 %vm491_vm0, %v4919_v7 }
 0x385   : > { %v4896_v28 = vld [vmem:[#allocation3 + $0x38] sm:$0xff] }
 0x386   : > { %v4904_v23 = vadd.f32 %v9565_v52, %v4896_v28 }
 0x387   : > { %v5590_v39 = vpop.f32.mrb[20].mxu1 }
 0x388   : > { %v4912_v16 = vmax.f32 %v4904_v23, 0.0  ;;  %v2430_v24 = vadd.f32 %v5590_v39, %v9875_v58  ;;  %v2424_v22 = vpop.f32.mrb[21].mxu1  ;;  %v5349_v23 = vld [vmem:[%s6293_s27 + $0xd0] sm:$0xff] }
 0x389   : > { %v2425_v41 = vadd.f32 %v9875_v58, %v2424_v22 }
 0x38a   : > { %v4920_v56 = vmin.f32 %v4912_v16, 6.0  ;;  %v2457_v5 = vadd.f32 %v5312_v2, %v2430_v24  ;;  %v5352_v24 = vld [vmem:[%s6293_s27 + $0xe8] sm:$0xff] }
 0x38b   : > { %v2456_v53 = vadd.f32 %v5311_v31, %v2425_v41  ;;  %v5351_v41 = vld [vmem:[%s6293_s27 + $0xe0] sm:$0xff] }
 0x38c   : > { %5664 = vmatmul.mubr.msk.f32.gmra.mrb[38].mxu1 %vm491_vm0, %v4920_v56  ;;  %2465 = vst.msk [vmem:[%s9903_s22 + $0x28] sm:$0xff] %vm679_vm2, %v2457_v5 }
 0x38d   : > { %2464 = vst.msk [vmem:[%s9903_s22 + $0x20] sm:$0xff] %vm679_vm2, %v2456_v53 }
 0x3a6   : > { %v5593_v52 = vpop.f32.mrb[22].mxu1 }
 0x3a7   : > { %v2440_v46 = vadd.f32 %v5593_v52, %v9875_v58  ;;  %v2434_v11 = vpop.f32.mrb[23].mxu1 }
 0x3a8   : > { %v2435_v15 = vadd.f32 %v9875_v58, %v2434_v11 }
 0x3a9   : > { %v2459_v3 = vadd.f32 %v5314_v45, %v2440_v46  ;;  %v5051_v46 = vld [vmem:[%s6303_s20 + $0x8] sm:$0xff] }
 0x3aa   : > { %v2458_v36 = vadd.f32 %v5313_v57, %v2435_v15  ;;  %v5608_v27 = vpop.f32.mrb[24].mxu1  ;;  %v5050_v15 = vld [vmem:[%s6303_s20] sm:$0xff] }
 0x3ab   : > { %2467 = vst.msk [vmem:[%s9903_s22 + $0x38] sm:$0xff] %vm679_vm2, %v2459_v3  ;;  %v3279_v35 = vadd.f32 %v5608_v27, %v9875_v58  ;;  %v3273_v38 = vpop.f32.mrb[25].mxu1 }
 0x3ac   : > { %2466 = vst.msk [vmem:[%s9903_s22 + $0x30] sm:$0xff] %vm679_vm2, %v2458_v36  ;;  %v3274_v13 = vadd.f32 %v9875_v58, %v3273_v38 }
 0x3ad   : > { %v3322_v12 = vadd.f32 %v5324_v47, %v3279_v35  ;;  %v5053_v35 = vld [vmem:[%s6303_s20 + $0x18] sm:$0xff] }
 0x3ae   : > { %v3321_v48 = vadd.f32 %v5323_v40, %v3274_v13  ;;  %v5052_v13 = vld [vmem:[%s6303_s20 + $0x10] sm:$0xff] }
 0x3af   : > { %5332 = vst.msk [vmem:[%s9903_s22 + $0x48] sm:$0xff] %vm679_vm2, %v3322_v12 }
 0x3b0   : > { %5331 = vst.msk [vmem:[%s9903_s22 + $0x40] sm:$0xff] %vm679_vm2, %v3321_v48 }
 0x3b7   : > { %v5611_v26 = vpop.f32.mrb[26].mxu1 }
 0x3b8   : > { %v3289_v62 = vadd.f32 %v5611_v26, %v9875_v58  ;;  %v3283_v29 = vpop.f32.mrb[27].mxu1 }
 0x3b9   : > { %v3284_v32 = vadd.f32 %v9875_v58, %v3283_v29 }
 0x3ba   : > { %v3324_v55 = vadd.f32 %v5326_v37, %v3289_v62  ;;  %v5354_v62 = vld [vmem:[%s6293_s27 + $0xf8] sm:$0xff] }
 0x3bb   : > { %v3323_v25 = vadd.f32 %v5325_v1, %v3284_v32  ;;  %v5353_v32 = vld [vmem:[%s6293_s27 + $0xf0] sm:$0xff]  ;;  %s5384_s27 = sshll.u32 %s6011_s12, 12  ;;  %s5076_s12 = scalar_lea.sflag [#allocation6], %s6287_s24 }
 0x3bc   : > { %5334 = vst.msk [vmem:[%s9903_s22 + $0x58] sm:$0xff] %vm679_vm2, %v3324_v55  ;;  %s10050_s19 = scalar_lea.hbm %s10966_s29, %s5384_s27 }
 0x3bd   : > { %5333 = vst.msk [vmem:[%s9903_s22 + $0x50] sm:$0xff] %vm679_vm2, %v3323_v25 }
 0x3d2   : > { %v5614_v21 = vpop.f32.mrb[28].mxu1 }
 0x3d3   : > { %v3299_v4 = vadd.f32 %v5614_v21, %v9875_v58  ;;  %v3293_v0 = vpop.f32.mrb[29].mxu1 }
 0x3d4   : > { %v3294_v14 = vadd.f32 %v9875_v58, %v3293_v0 }
 0x3d5   : > { %v3326_v19 = vadd.f32 %v5328_v49, %v3299_v4  ;;  %v5055_v4 = vld [vmem:[%s6303_s20 + $0x28] sm:$0xff] }
 0x3d6   : > { %v3325_v34 = vadd.f32 %v5327_v63, %v3294_v14  ;;  %v5054_v14 = vld [vmem:[%s6303_s20 + $0x20] sm:$0xff] }
 0x3d7   : > { %5336 = vst.msk [vmem:[%s9903_s22 + $0x68] sm:$0xff] %vm679_vm2, %v3326_v19 }
 0x3d8   : > { %5335 = vst.msk [vmem:[%s9903_s22 + $0x60] sm:$0xff] %vm679_vm2, %v3325_v34 }
 0x3ea   : > { %v5617_v18 = vpop.f32.mrb[30].mxu1 }
 0x3eb   : > { %v3309_v60 = vadd.f32 %v5617_v18, %v9875_v58  ;;  %v3303_v8 = vpop.f32.mrb[31].mxu1 }
 0x3ec   : > { %v3304_v10 = vadd.f32 %v9875_v58, %v3303_v8 }
 0x3ed   : > { %v3328_v50 = vadd.f32 %v5330_v30, %v3309_v60  ;;  %v5057_v60 = vld [vmem:[%s6303_s20 + $0x38] sm:$0xff] }
 0x3ee   : > { %v3327_v17 = vadd.f32 %v5329_v20, %v3304_v10  ;;  %v5056_v10 = vld [vmem:[%s6303_s20 + $0x30] sm:$0xff]  ;;  %s5933_s20 = scalar_lea.vmem %s10052_s14, 4096 }
 0x3ef   : > { %5338 = vst.msk [vmem:[%s9903_s22 + $0x78] sm:$0xff] %vm679_vm2, %v3328_v50  ;;  %p5934_p0 = scmp.ne.s32.totalorder %s10052_s14, %s5933_s20  ;;  %p5941_p4 = scmp.lt.s32.totalorder %s5939_s11, %s5933_s20 }
 0x3f0   : > { %5337 = vst.msk [vmem:[%s9903_s22 + $0x70] sm:$0xff] %vm679_vm2, %v3327_v17 }
 0x3f1   : > { %p5935_p8 = pnand %p5934_p0, %p10967_p6  ;;  %p5942_p10 = por %p5941_p4, %p5940_p12 }
 0x3f3   : > { %p5936_p9 = pneg %p5935_p8 }
 0x3f5   : > { %p5943_p13 = pnand %p5942_p10, %p5936_p9 }
 0x3fb   : > { %v5632_v54 = vpop.f32.mrb[32].mxu0 }
 0x3fc   : > { %v4148_v6 = vadd.f32 %v5632_v54, %v9875_v58  ;;  %v4142_v44 = vpop.f32.mrb[33].mxu0 }
 0x3fd   : > { %v4143_v42 = vadd.f32 %v9875_v58, %v4142_v44 }
 0x3fe   : > { %v4191_v59 = vadd.f32 %v5348_v33, %v4148_v6 }
 0x3ff   : > { %v4190_v61 = vadd.f32 %v5347_v43, %v4143_v42 }
 0x400   : > { %5356 = vst.msk [vmem:[%s9903_s22 + $0x88] sm:$0xff] %vm679_vm2, %v4191_v59 }
 0x401   : > { %5355 = vst.msk [vmem:[%s9903_s22 + $0x80] sm:$0xff] %vm679_vm2, %v4190_v61 }
 0x419   : > { %v5635_v51 = vpop.f32.mrb[34].mxu0 }
 0x41a   : > { %v4158_v7 = vadd.f32 %v5635_v51, %v9875_v58  ;;  %v4152_v28 = vpop.f32.mrb[35].mxu0 }
 0x41b   : > { %v4153_v16 = vadd.f32 %v9875_v58, %v4152_v28 }
 0x41c   : > { %v4193_v56 = vadd.f32 %v5350_v9, %v4158_v7 }
 0x41d   : > { %v4192_v39 = vadd.f32 %v5349_v23, %v4153_v16 }
 0x41e   : > { %5358 = vst.msk [vmem:[%s9903_s22 + $0x98] sm:$0xff] %vm679_vm2, %v4193_v56 }
 0x41f   : > { %5357 = vst.msk [vmem:[%s9903_s22 + $0x90] sm:$0xff] %vm679_vm2, %v4192_v39 }
 0x42e   : > { %v5638_v2 = vpop.f32.mrb[36].mxu0 }
 0x42f   : > { %v4168_v22 = vadd.f32 %v5638_v2, %v9875_v58  ;;  %v4162_v31 = vpop.f32.mrb[37].mxu0 }
 0x430   : > { %v4163_v5 = vadd.f32 %v9875_v58, %v4162_v31 }
 0x431   : > { %v4195_v53 = vadd.f32 %v5352_v24, %v4168_v22 }
 0x432   : > { %v4194_v52 = vadd.f32 %v5351_v41, %v4163_v5 }
 0x433   : > { %5360 = vst.msk [vmem:[%s9903_s22 + $0xa8] sm:$0xff] %vm679_vm2, %v4195_v53 }
 0x434   : > { %5359 = vst.msk [vmem:[%s9903_s22 + $0xa0] sm:$0xff] %vm679_vm2, %v4194_v52 }
 0x439   : > { %v5656_v45 = vpop.f32.mrb[32].mxu1 }
 0x43a   : > { %v5017_v11 = vadd.f32 %v5656_v45, %v9875_v58  ;;  %v5011_v57 = vpop.f32.mrb[33].mxu1 }
 0x43b   : > { %v5012_v3 = vadd.f32 %v9875_v58, %v5011_v57 }
 0x43c   : > { %v5059_v36 = vadd.f32 %v5051_v46, %v5017_v11 }
 0x43d   : > { %v5058_v27 = vadd.f32 %v5050_v15, %v5012_v3  ;;  %v5659_v47 = vpop.f32.mrb[34].mxu1 }
 0x43e   : > { %5372 = vst.msk [vmem:[%s9903_s22 + $0xc8] sm:$0xff] %vm679_vm2, %v5059_v36  ;;  %v5027_v38 = vadd.f32 %v5659_v47, %v9875_v58  ;;  %v5021_v40 = vpop.f32.mrb[35].mxu1 }
 0x43f   : > { %5371 = vst.msk [vmem:[%s9903_s22 + $0xc0] sm:$0xff] %vm679_vm2, %v5058_v27  ;;  %v5022_v12 = vadd.f32 %v9875_v58, %v5021_v40 }
 0x440   : > { %v5061_v48 = vadd.f32 %v5053_v35, %v5027_v38 }
 0x441   : > { %v5060_v26 = vadd.f32 %v5052_v13, %v5022_v12 }
 0x442   : > { %5374 = vst.msk [vmem:[%s9903_s22 + $0xd8] sm:$0xff] %vm679_vm2, %v5061_v48 }
 0x443   : > { %v5641_v37 = vpop.f32.mrb[38].mxu0  ;;  %5373 = vst.msk [vmem:[%s9903_s22 + $0xd0] sm:$0xff] %vm679_vm2, %v5060_v26 }
 0x444   : > { %v4178_v29 = vadd.f32 %v5641_v37, %v9875_v58  ;;  %v4172_v1 = vpop.f32.mrb[39].mxu0 }
 0x445   : > { %v4173_v55 = vadd.f32 %v9875_v58, %v4172_v1 }
 0x446   : > { %v4197_v25 = vadd.f32 %v5354_v62, %v4178_v29 }
 0x447   : > { %v4196_v21 = vadd.f32 %v5353_v32, %v4173_v55 }
 0x448   : > { %5362 = vst.msk [vmem:[%s9903_s22 + $0xb8] sm:$0xff] %vm679_vm2, %v4197_v25 }
 0x449   : > { %5361 = vst.msk [vmem:[%s9903_s22 + $0xb0] sm:$0xff] %vm679_vm2, %v4196_v21 }
 0x44b   : > { %v5662_v49 = vpop.f32.mrb[36].mxu1 }
 0x44c   : > { %v5037_v0 = vadd.f32 %v5662_v49, %v9875_v58  ;;  %v5031_v63 = vpop.f32.mrb[37].mxu1 }
 0x44d   : > { %v5032_v19 = vadd.f32 %v9875_v58, %v5031_v63 }
 0x44e   : > { %v5063_v34 = vadd.f32 %v5055_v4, %v5037_v0 }
 0x44f   : > { %v5062_v18 = vadd.f32 %v5054_v14, %v5032_v19 }
 0x450   : > { %5376 = vst.msk [vmem:[%s9903_s22 + $0xe8] sm:$0xff] %vm679_vm2, %v5063_v34 }
 0x451   : > { %5375 = vst.msk [vmem:[%s9903_s22 + $0xe0] sm:$0xff] %vm679_vm2, %v5062_v18 }
 0x45f   : > { %v5665_v30 = vpop.f32.mrb[38].mxu1 }
 0x460   : > { %v5047_v8 = vadd.f32 %v5665_v30, %v9875_v58  ;;  %v5041_v20 = vpop.f32.mrb[39].mxu1 }
 0x461   : > { %v5042_v50 = vadd.f32 %v9875_v58, %v5041_v20 }
 0x462   : > { %v5065_v17 = vadd.f32 %v5057_v60, %v5047_v8 }
 0x463   : > { %v5064_v54 = vadd.f32 %v5056_v10, %v5042_v50 }
 0x464   : > { %5378 = vst.msk [vmem:[%s9903_s22 + $0xf8] sm:$0xff] %vm679_vm2, %v5065_v17 }
 0x465   : > { %5377 = vst.msk [vmem:[%s9903_s22 + $0xf0] sm:$0xff] %vm679_vm2, %v5064_v54 }
 0x466   : > { %5946 = shalt.err (!%p5943_p13)
}
 0x467   : > { %s5947_s28 = scalar_lea.hbm %s10050_s19, 4096  ;;  %s5951_s1 = scalar_lea.hbm %s10966_s29, 8192 }
 0x468   : > { %p5948_p7 = scmp.ne.s32.totalorder %s10050_s19, %s5947_s28  ;;  %p5952_p5 = scmp.lt.u32.totalorder %s10050_s19, %s10966_s29 }
 0x469   : > { %p5953_p2 = scmp.lt.u32.totalorder %s5951_s1, %s5947_s28  ;;  %p5955_p0 = scmp.lt.u32.totalorder %s5947_s28, %s10050_s19 }
 0x46a   : > { %p5949_p11 = pnand %p5948_p7, %p10967_p6 }
 0x46b   : > { %p5954_p1 = por %p5953_p2, %p5952_p5 }
 0x46c   : > { %p5950_p3 = pneg %p5949_p11 }
 0x46d   : > { %p5956_p8 = por %p5955_p0, %p5954_p1 }
 0x46f   : > { %p5957_p9 = pnand %p5956_p8, %p5950_p3 }
 0x471   : > { %5960 = shalt.err (!%p5957_p9)
}
 0x472   : > { %s6028_s16 = smov 128   ;;  %s6029_s18 = smov 8  }
 0x473   : > { %5721 = dma.vmem_to_hbm [thread:$0]  (%p10967_p6), %s10052_s14, 4096, %s10050_s19, %s5076_s12, %s6028_s16, %s6028_s16, %s6029_s18  }
 0x474 PF: > { %s10968_s22 = sld [smem:[#allocation14_spill]]  ;;  %s10969_s27 = sld [smem:[#allocation21_spill]] }
 0x475   : > { %s10970_s9 = sld [smem:[#allocation17_spill]] }
 0x47a   : > { %s5107_s25 = sand.u32 1, %s10968_s22   ;;  %p10971_p12 = scmp.ne.s32.totalorder %s10969_s27, 0 }
 0x47b   : > { %p10972_p4 = scmp.ge.s32.totalorder %s10970_s9, 2  ;;  %s5108_s20 = scalar_lea.sflag [#allocation6], %s5107_s25 }
 0x47d   : > { %p5734_p10 = pnand %p10972_p4, %p10971_p12 }
 0x47f   : > { %5994 = dma.done.wait (!%p5734_p10), %s5108_s20, 4096  }
 0x480   : > { %5996 = vsyncadd (!%p5734_p10), %s5108_s20, 4294963200  ;;  %s28_s14 = sadd.s32 1, %s10970_s9   ;;  %s10973_s17 = sld [smem:[#allocation15_spill]] }
 0x481   : > { %p25_p13 = scmp.ge.s32.totalorder %s28_s14, 4   ;;  %s10974_s11 = sld [smem:[#allocation20_spill]] }
 0x482   : > { %s10975_s12 = sld [smem:[#allocation16_spill]]  ;;  %s10976_s13 = sld [smem:[#allocation18_spill]] }
 0x483   : > { %s10977_s30 = smov %s6003_s10  ;;  %27 = sbr.rel (!%p25_p13) target bundleno = 11 (0xb), region = 157 }
 0x486   : > { %s10978_s10 = smov %s10973_s17 }
 0x48a   :  { %5113 = vsyncpa [#allocation5], 1 }
 0x48b   :  { %5115 = vsyncpa [#allocation5 + $0x1], 1 }
 0x48c   :  { %5116 = vsyncpa [#allocation8], 1 }
 0x48d   :  { %5118 = vsyncpa [#allocation8 + $0x1], 1 }
 0x48e   :  { %5119 = vsyncpa [#allocation6], 1 }
 0x48f   :  { %5121 = vsyncpa [#allocation6 + $0x1], 1 }

</bundles_post_ra>
